<compile_context>
chip_gen: v5e
topology: v5e:2x2
jax: 0.10.0
libtpu: 0.0.40
codegen_flags: <defaults>
</compile_context>

<pallas_src>
from functools import partial

import jax
import jax.numpy as jnp
from jax.experimental import pallas as pl
from jax.experimental.pallas import tpu as pltpu


# --------------------------------------------------------------------------- kernel

def _dotacc(acc, window, w_mat, pre_relu):
    """acc += reshape(maybe_relu(window), (H*W, Cin)).bf16 @ w_mat  (f32 accumulate)."""
    x = window
    if pre_relu:
        x = jnp.maximum(x, 0.0)                       # f32 elementwise (VPU)
    hw = x.shape[0] * x.shape[1]
    lhs = x.reshape(hw, x.shape[2]).astype(jnp.bfloat16)
    y = jnp.dot(lhs, w_mat, preferred_element_type=jnp.float32)
    return y if acc is None else acc + y


def _decoder_kernel(x_ref, w1_ref, b1_ref, rw1_ref, rw2_ref, w2_ref, b2_ref,
                    w3_ref, b3_ref, o_ref, xpad_ref, hpad_ref, ppad_ref,
                    *, H, W, n_res_layers):
    HW = H * W
    c_h = hpad_ref.shape[-1]
    c_p = ppad_ref.shape[-1]
    c_o = o_ref.shape[-1]

    # -- stage 0: one image into a zero-haloed VMEM scratch ---------------------------
    xpad_ref[...] = jnp.zeros(xpad_ref.shape, xpad_ref.dtype)
    xpad_ref[1:H + 1, 1:W + 1, :] = x_ref[0]

    # -- stage 1: ConvT(in->h, k3, s1, p1) == 3x3 conv with spatially-flipped kernel --
    acc = None
    for ky in range(3):
        for kx in range(3):
            acc = _dotacc(acc, xpad_ref[ky:ky + H, kx:kx + W, :],
                          w1_ref[3 * ky + kx], False)
    h = acc + b1_ref[...]                              # (HW, c_h) f32
    hpad_ref[...] = jnp.zeros(hpad_ref.shape, hpad_ref.dtype)
    hpad_ref[1:H + 1, 1:W + 1, :] = h.reshape(H, W, c_h)

    # -- stage 2: ResidualStack (weights shared across repeats), fully VMEM-resident --
    for _ in range(n_res_layers):                      # tiny static count -> unrolled
        acc = None
        for ky in range(3):
            for kx in range(3):
                acc = _dotacc(acc, hpad_ref[ky:ky + H, kx:kx + W, :],
                              rw1_ref[3 * ky + kx], True)          # Conv3x3(relu(h))
        t = jnp.maximum(acc, 0.0).astype(jnp.bfloat16)             # relu -> bf16
        u = jnp.dot(t, rw2_ref[...], preferred_element_type=jnp.float32)  # Conv1x1
        h = hpad_ref[1:H + 1, 1:W + 1, :].reshape(HW, c_h) + u     # skip add (f32)
        hpad_ref[1:H + 1, 1:W + 1, :] = h.reshape(H, W, c_h)
    # stack's trailing ReLU is fused below as pre-relu of the ConvT taps.

    # -- stage 3: ConvT(h->h//2, k4, s2, p1) as 4 phase convs (2x2 taps each) ---------
    #    out[2a+r, 2b+s] = sum_{dy,dx} h[a+r+dy-1, b+s+dx-1] @ Wt[:,:, 3-r-2dy, 3-s-2dx]
    ppad_ref[...] = jnp.zeros(ppad_ref.shape, ppad_ref.dtype)
    for r in range(2):
        for s in range(2):
            acc = None
            for dy in range(2):
                for dx in range(2):
                    wi = ((r * 2 + s) * 2 + dy) * 2 + dx
                    acc = _dotacc(acc,
                                  hpad_ref[r + dy:r + dy + H, s + dx:s + dx + W, :],
                                  w2_ref[wi], True)
            p = acc + b2_ref[...]
            # nn.LeakyReLU(True): negative_slope == True == 1.0 -> identity.
            ppad_ref[r * 2 + s, 1:H + 1, 1:W + 1, :] = p.reshape(H, W, c_p)

    # -- stage 4: ConvT(h//2->out, k3, s1, p1) + Sigmoid, evaluated per output phase --
    #    z[2a+r, 2b+s] = sum_{ky,kx} y[2a+r+ky-1, 2b+s+kx-1] @ W3flip[ky,kx]
    #    source phase pr = (r+ky-1) mod 2, half-index offset dy = floor((r+ky-1)/2).
    for r in range(2):
        for s in range(2):
            acc = None
            for ky in range(3):
                for kx in range(3):
                    pr = (r + ky + 1) % 2
                    ps = (s + kx + 1) % 2
                    dy = (r + ky - 1) // 2
                    dx = (s + kx - 1) // 2
                    acc = _dotacc(
                        acc,
                        ppad_ref[pr * 2 + ps, 1 + dy:1 + dy + H, 1 + dx:1 + dx + W, :],
                        w3_ref[3 * ky + kx], False)
            z = acc + b3_ref[...]                      # (HW, 128) f32
            y = 1.0 / (1.0 + jnp.exp(-z))              # sigmoid in f32 (EUP exp)
            o_ref[0, r * 2 + s] = y.reshape(H, W, c_o)  # lane-dense (128-wide) store


# --------------------------------------------------------------------------- wrapper

def decoder_forward(prepped, x_nchw, *, n_res_layers, out_dim):
    N, c_in, H, W = x_nchw.shape
    x = jnp.transpose(x_nchw, (0, 2, 3, 1)).astype(jnp.float32)    # NCHW -> NHWC

    c_h = prepped["b1"].shape[-1]
    c_p = prepped["b2"].shape[-1]
    c_o = prepped["b3"].shape[-1]                                  # 128 (lane-padded)

    kernel = partial(_decoder_kernel, H=H, W=W, n_res_layers=n_res_layers)

    def full_spec(shape):
        return pl.BlockSpec(shape, lambda b: (0,) * len(shape))

    out = pl.pallas_call(
        kernel,
        out_shape=jax.ShapeDtypeStruct((N, 4, H, W, c_o), jnp.float32),
        grid_spec=pltpu.PrefetchScalarGridSpec(
            num_scalar_prefetch=0,
            grid=(N,),                                  # >=2 parallel steps (v7x 2 TCs)
            in_specs=[
                pl.BlockSpec((1, H, W, c_in), lambda b: (b, 0, 0, 0)),
                full_spec(prepped["w1"].shape),
                full_spec(prepped["b1"].shape),
                full_spec(prepped["rw1"].shape),
                full_spec(prepped["rw2"].shape),
                full_spec(prepped["w2"].shape),
                full_spec(prepped["b2"].shape),
                full_spec(prepped["w3"].shape),
                full_spec(prepped["b3"].shape),
            ],
            out_specs=pl.BlockSpec((1, 4, H, W, c_o), lambda b: (b, 0, 0, 0, 0)),
            scratch_shapes=[
                pltpu.VMEM((H + 2, W + 2, c_in), jnp.float32),      # padded input
                pltpu.VMEM((H + 2, W + 2, c_h), jnp.float32),       # padded h (res stack)
                pltpu.VMEM((4, H + 2, W + 2, c_p), jnp.float32),    # padded phase maps
            ],
        ),
        compiler_params=pltpu.CompilerParams(
            dimension_semantics=("parallel",),
        ),
    )(x, prepped["w1"], prepped["b1"], prepped["rw1"], prepped["rw2"],
      prepped["w2"], prepped["b2"], prepped["w3"], prepped["b3"])

    # Interleave the 4 phases -> (N, 2H, 2W, out), drop channel padding, back to NCHW.
    y = out[..., :out_dim].reshape(N, 2, 2, H, W, out_dim)
    y = jnp.transpose(y, (0, 5, 3, 1, 4, 2)).reshape(N, out_dim, 2 * H, 2 * W)
    return y


# --------------------------------------------------------------- one-time weight prep

def prepare_decoder_params(params):
    """Hoisted weight preprocessing: flips/transposes/phase split + bf16 cast, done once."""
    f32, bf16 = jnp.float32, jnp.bfloat16

    def convT_s1(w_t):            # torch ConvT weight (Ci,Co,k,k) -> (k*k, Ci, Co), flipped
        w = jnp.flip(w_t, axis=(2, 3))
        w = jnp.transpose(w, (2, 3, 0, 1))
        k0, k1, ci, co = w.shape
        return w.reshape(k0 * k1, ci, co)

    def conv2d(w):                # torch Conv2d weight (Co,Ci,k,k) -> (k*k, Ci, Co)
        w = jnp.transpose(w, (2, 3, 1, 0))
        k0, k1, ci, co = w.shape
        return w.reshape(k0 * k1, ci, co)

    def convT_s2_phases(w_t):     # (Ci,Co,4,4) -> (16, Ci, Co), idx = ((r*2+s)*2+dy)*2+dx
        mats = []
        for r in range(2):
            for s in range(2):
                for dy in range(2):
                    for dx in range(2):
                        mats.append(w_t[:, :, 3 - r - 2 * dy, 3 - s - 2 * dx])
        return jnp.stack(mats, axis=0)

    c_pad = 128                                         # lane-dense final output store
    w3 = convT_s1(params["ct3_w"])                      # (9, h/2, out)
    assert w3.shape[-1] <= c_pad
    w3 = jnp.pad(w3, ((0, 0), (0, 0), (0, c_pad - w3.shape[-1])))
    b3 = jnp.pad(params["ct3_b"], (0, c_pad - params["ct3_b"].shape[0]))

    return {
        "w1": convT_s1(params["ct1_w"]).astype(bf16),
        "b1": params["ct1_b"].reshape(1, -1).astype(f32),
        "rw1": conv2d(params["res_w1"]).astype(bf16),
        "rw2": conv2d(params["res_w2"])[0].astype(bf16),          # (Ci, Co) 1x1 conv
        "w2": convT_s2_phases(params["ct2_w"]).astype(bf16),
        "b2": params["ct2_b"].reshape(1, -1).astype(f32),
        "w3": w3.astype(bf16),
        "b3": b3.reshape(1, -1).astype(f32),
    }


def init_decoder_params(key, in_dim, h_dim, res_h_dim, out_dim):
    ks = jax.random.split(key, 8)
    s = 0.1
    return {
        # ConvTranspose2d(in_dim, h_dim, 3, stride=1, padding=1)
        "ct1_w": s * jax.random.normal(ks[0], (in_dim, h_dim, 3, 3), jnp.float32),
        "ct1_b": s * jax.random.normal(ks[1], (h_dim,), jnp.float32),
        # ResidualLayer (shared across repeats): Conv3x3 no-bias, Conv1x1 no-bias
        "res_w1": s * jax.random.normal(ks[2], (res_h_dim, h_dim, 3, 3), jnp.float32),
        "res_w2": s * jax.random.normal(ks[3], (h_dim, res_h_dim, 1, 1), jnp.float32),
        # ConvTranspose2d(h_dim, h_dim//2, 4, stride=2, padding=1)
        "ct2_w": s * jax.random.normal(ks[4], (h_dim, h_dim // 2, 4, 4), jnp.float32),
        "ct2_b": s * jax.random.normal(ks[5], (h_dim // 2,), jnp.float32),
        # ConvTranspose2d(h_dim//2, out_dim, 3, stride=1, padding=1)
        "ct3_w": s * jax.random.normal(ks[6], (h_dim // 2, out_dim, 3, 3), jnp.float32),
        "ct3_b": s * jax.random.normal(ks[7], (out_dim,), jnp.float32),
    }


# ------------------------------------------------------- pure-JAX reference (checking)

def _reference_decoder(params, x, *, n_res_layers):
    dn = ("NCHW", "OIHW", "NCHW")

    def conv_t(h, w, b, k, s, p):
        w_flip = jnp.transpose(w, (1, 0, 2, 3))[:, :, ::-1, ::-1]
        out = jax.lax.conv_general_dilated(
            h, w_flip, window_strides=(1, 1),
            padding=[(k - 1 - p, k - 1 - p)] * 2,
            lhs_dilation=(s, s), dimension_numbers=dn)
        return out + b[None, :, None, None]

    def conv(h, w, p):
        return jax.lax.conv_general_dilated(
            h, w, window_strides=(1, 1), padding=[(p, p)] * 2,
            dimension_numbers=dn)

    h = conv_t(x, params["ct1_w"], params["ct1_b"], 3, 1, 1)
    for _ in range(n_res_layers):
        t = conv(jax.nn.relu(h), params["res_w1"], 1)
        t = conv(jax.nn.relu(t), params["res_w2"], 0)
        h = h + t
    h = jax.nn.relu(h)
    h = conv_t(h, params["ct2_w"], params["ct2_b"], 4, 2, 1)
    # nn.LeakyReLU(True): negative_slope == 1.0 -> identity
    h = conv_t(h, params["ct3_w"], params["ct3_b"], 3, 1, 1)
    return jax.nn.sigmoid(h)


# ------------------------------------------------------------------------------- main

if __name__ == "__main__":
    in_dim, h_dim, res_h_dim, n_res_layers, stacks, out_dim = 4, 32, 16, 2, 1, 3
    batch, H, W = 2, 8, 8

    key = jax.random.PRNGKey(0)
    kp, kx = jax.random.split(key)
    params = init_decoder_params(kp, in_dim, h_dim, res_h_dim, out_dim)
    prepped = prepare_decoder_params(params)          # hoisted, done once
    x = jax.random.normal(kx, (batch, in_dim, H, W), jnp.float32)

    fwd = jax.jit(partial(decoder_forward, n_res_layers=n_res_layers, out_dim=out_dim))
    y = fwd(prepped, x)
    jax.block_until_ready(y)

    assert y.shape == (batch, out_dim, 2 * H, 2 * W), y.shape
    assert bool(jnp.all(jnp.isfinite(y)))
    assert bool(jnp.all((y >= 0.0) & (y <= 1.0)))     # sigmoid output range

    # Numerical check against a pure-JAX/XLA reference (bf16 matmuls -> loose tol).
    y_ref = _reference_decoder(params, x, n_res_layers=n_res_layers)
    max_err = float(jnp.max(jnp.abs(y - y_ref)))
    assert max_err < 5e-2, f"max abs error vs reference: {max_err}"

    print("KERNEL_OK")
</pallas_src>

<mosaic_0001>
module attributes {stable_mosaic.version = 11 : i64} {
  func.func @_decoder_kernel(%arg0: i32, %arg1: memref<1x8x8x4xf32, #tpu.memory_space<vmem>>, %arg2: memref<9x4x32xbf16, #tpu.memory_space<vmem>>, %arg3: memref<1x32xf32, #tpu.memory_space<vmem>>, %arg4: memref<9x32x16xbf16, #tpu.memory_space<vmem>>, %arg5: memref<16x32xbf16, #tpu.memory_space<vmem>>, %arg6: memref<16x32x16xbf16, #tpu.memory_space<vmem>>, %arg7: memref<1x16xf32, #tpu.memory_space<vmem>>, %arg8: memref<9x16x128xbf16, #tpu.memory_space<vmem>>, %arg9: memref<1x128xf32, #tpu.memory_space<vmem>>, %arg10: memref<1x4x8x8x128xf32, #tpu.memory_space<vmem>>, %arg11: memref<10x10x4xf32, #tpu.memory_space<vmem>>, %arg12: memref<10x10x32xf32, #tpu.memory_space<vmem>>, %arg13: memref<4x10x10x16xf32, #tpu.memory_space<vmem>>) attributes {dimension_semantics = [#tpu.dimension_semantics<parallel>], iteration_bounds = array<i64: 2>, scalar_prefetch = 0 : i64, scratch_operands = 3 : i64, tpu.core_type = #tpu.core_type<tc>, window_params = [{transform_indices = @transform_0, window_bounds = array<i64: 1, 8, 8, 4>}, {pipeline_mode = #tpu.pipeline_mode<synchronous>, transform_indices = @transform_1, window_bounds = array<i64: 9, 4, 32>}, {pipeline_mode = #tpu.pipeline_mode<synchronous>, transform_indices = @transform_2, window_bounds = array<i64: 1, 32>}, {pipeline_mode = #tpu.pipeline_mode<synchronous>, transform_indices = @transform_3, window_bounds = array<i64: 9, 32, 16>}, {pipeline_mode = #tpu.pipeline_mode<synchronous>, transform_indices = @transform_4, window_bounds = array<i64: 16, 32>}, {pipeline_mode = #tpu.pipeline_mode<synchronous>, transform_indices = @transform_5, window_bounds = array<i64: 16, 32, 16>}, {pipeline_mode = #tpu.pipeline_mode<synchronous>, transform_indices = @transform_6, window_bounds = array<i64: 1, 16>}, {pipeline_mode = #tpu.pipeline_mode<synchronous>, transform_indices = @transform_7, window_bounds = array<i64: 9, 16, 128>}, {pipeline_mode = #tpu.pipeline_mode<synchronous>, transform_indices = @transform_8, window_bounds = array<i64: 1, 128>}, {transform_indices = @transform_9, window_bounds = array<i64: 1, 4, 8, 8, 128>}]} {
    %cst = arith.constant 0.000000e+00 : f32
    %0 = vector.broadcast %cst : f32 to vector<10x10x4xf32>
    %c0 = arith.constant 0 : index
    %c0_0 = arith.constant 0 : index
    %c0_1 = arith.constant 0 : index
    %1 = vector.load %arg11[%c0, %c0_0, %c0_1] : memref<10x10x4xf32, #tpu.memory_space<vmem>>, vector<10x10x4xf32>
    tpu.vector_store %arg11[%c0, %c0_0, %c0_1], %0 {strides = array<i32>} : memref<10x10x4xf32, #tpu.memory_space<vmem>>, vector<10x10x4xf32>,
    %c0_2 = arith.constant 0 : index
    %c0_3 = arith.constant 0 : index
    %c0_4 = arith.constant 0 : index
    %c0_5 = arith.constant 0 : index
    %2 = vector.load %arg1[%c0_2, %c0_3, %c0_4, %c0_5] : memref<1x8x8x4xf32, #tpu.memory_space<vmem>>, vector<1x8x8x4xf32>
    %3 = vector.shape_cast %2 : vector<1x8x8x4xf32> to vector<8x8x4xf32>
    %c1 = arith.constant 1 : index
    %c1_6 = arith.constant 1 : index
    %c0_7 = arith.constant 0 : index
    %4 = vector.load %arg11[%c1, %c1_6, %c0_7] : memref<10x10x4xf32, #tpu.memory_space<vmem>>, vector<8x8x4xf32>
    tpu.vector_store %arg11[%c1, %c1_6, %c0_7], %3 {strides = array<i32>} : memref<10x10x4xf32, #tpu.memory_space<vmem>>, vector<8x8x4xf32>,
    %c0_8 = arith.constant 0 : index
    %c0_9 = arith.constant 0 : index
    %c0_10 = arith.constant 0 : index
    %5 = vector.load %arg11[%c0_8, %c0_9, %c0_10] : memref<10x10x4xf32, #tpu.memory_space<vmem>>, vector<8x8x4xf32>
    %c0_11 = arith.constant 0 : index
    %c0_12 = arith.constant 0 : index
    %c0_13 = arith.constant 0 : index
    %6 = vector.load %arg2[%c0_11, %c0_12, %c0_13] : memref<9x4x32xbf16, #tpu.memory_space<vmem>>, vector<1x4x32xbf16>
    %7 = vector.shape_cast %6 : vector<1x4x32xbf16> to vector<4x32xbf16>
    %8 = vector.shape_cast %5 : vector<8x8x4xf32> to vector<64x4xf32>
    %9 = arith.truncf %8 : vector<64x4xf32> to vector<64x4xbf16>
    %cst_14 = arith.constant dense<0.000000e+00> : vector<64x32xf32>
    %10 = tpu.matmul %9, %7, %cst_14 {dimension_numbers = #tpu.dot_dimension_numbers<[1], [0], [0], [1], [0, 0, 1, 1], [], []>} : vector<64x4xbf16>, vector<4x32xbf16>, vector<64x32xf32> -> vector<64x32xf32>
    %c0_15 = arith.constant 0 : index
    %c1_16 = arith.constant 1 : index
    %c0_17 = arith.constant 0 : index
    %11 = vector.load %arg11[%c0_15, %c1_16, %c0_17] : memref<10x10x4xf32, #tpu.memory_space<vmem>>, vector<8x8x4xf32>
    %c1_18 = arith.constant 1 : index
    %c0_19 = arith.constant 0 : index
    %c0_20 = arith.constant 0 : index
    %12 = vector.load %arg2[%c1_18, %c0_19, %c0_20] : memref<9x4x32xbf16, #tpu.memory_space<vmem>>, vector<1x4x32xbf16>
    %13 = vector.shape_cast %12 : vector<1x4x32xbf16> to vector<4x32xbf16>
    %14 = vector.shape_cast %11 : vector<8x8x4xf32> to vector<64x4xf32>
    %15 = arith.truncf %14 : vector<64x4xf32> to vector<64x4xbf16>
    %cst_21 = arith.constant dense<0.000000e+00> : vector<64x32xf32>
    %16 = tpu.matmul %15, %13, %cst_21 {dimension_numbers = #tpu.dot_dimension_numbers<[1], [0], [0], [1], [0, 0, 1, 1], [], []>} : vector<64x4xbf16>, vector<4x32xbf16>, vector<64x32xf32> -> vector<64x32xf32>
    %17 = arith.addf %10, %16 : vector<64x32xf32>
    %c0_22 = arith.constant 0 : index
    %c2 = arith.constant 2 : index
    %c0_23 = arith.constant 0 : index
    %18 = vector.load %arg11[%c0_22, %c2, %c0_23] : memref<10x10x4xf32, #tpu.memory_space<vmem>>, vector<8x8x4xf32>
    %c2_24 = arith.constant 2 : index
    %c0_25 = arith.constant 0 : index
    %c0_26 = arith.constant 0 : index
    %19 = vector.load %arg2[%c2_24, %c0_25, %c0_26] : memref<9x4x32xbf16, #tpu.memory_space<vmem>>, vector<1x4x32xbf16>
    %20 = vector.shape_cast %19 : vector<1x4x32xbf16> to vector<4x32xbf16>
    %21 = vector.shape_cast %18 : vector<8x8x4xf32> to vector<64x4xf32>
    %22 = arith.truncf %21 : vector<64x4xf32> to vector<64x4xbf16>
    %cst_27 = arith.constant dense<0.000000e+00> : vector<64x32xf32>
    %23 = tpu.matmul %22, %20, %cst_27 {dimension_numbers = #tpu.dot_dimension_numbers<[1], [0], [0], [1], [0, 0, 1, 1], [], []>} : vector<64x4xbf16>, vector<4x32xbf16>, vector<64x32xf32> -> vector<64x32xf32>
    %24 = arith.addf %17, %23 : vector<64x32xf32>
    %c1_28 = arith.constant 1 : index
    %c0_29 = arith.constant 0 : index
    %c0_30 = arith.constant 0 : index
    %25 = vector.load %arg11[%c1_28, %c0_29, %c0_30] : memref<10x10x4xf32, #tpu.memory_space<vmem>>, vector<8x8x4xf32>
    %c3 = arith.constant 3 : index
    %c0_31 = arith.constant 0 : index
    %c0_32 = arith.constant 0 : index
    %26 = vector.load %arg2[%c3, %c0_31, %c0_32] : memref<9x4x32xbf16, #tpu.memory_space<vmem>>, vector<1x4x32xbf16>
    %27 = vector.shape_cast %26 : vector<1x4x32xbf16> to vector<4x32xbf16>
    %28 = vector.shape_cast %25 : vector<8x8x4xf32> to vector<64x4xf32>
    %29 = arith.truncf %28 : vector<64x4xf32> to vector<64x4xbf16>
    %cst_33 = arith.constant dense<0.000000e+00> : vector<64x32xf32>
    %30 = tpu.matmul %29, %27, %cst_33 {dimension_numbers = #tpu.dot_dimension_numbers<[1], [0], [0], [1], [0, 0, 1, 1], [], []>} : vector<64x4xbf16>, vector<4x32xbf16>, vector<64x32xf32> -> vector<64x32xf32>
    %31 = arith.addf %24, %30 : vector<64x32xf32>
    %c1_34 = arith.constant 1 : index
    %c1_35 = arith.constant 1 : index
    %c0_36 = arith.constant 0 : index
    %32 = vector.load %arg11[%c1_34, %c1_35, %c0_36] : memref<10x10x4xf32, #tpu.memory_space<vmem>>, vector<8x8x4xf32>
    %c4 = arith.constant 4 : index
    %c0_37 = arith.constant 0 : index
    %c0_38 = arith.constant 0 : index
    %33 = vector.load %arg2[%c4, %c0_37, %c0_38] : memref<9x4x32xbf16, #tpu.memory_space<vmem>>, vector<1x4x32xbf16>
    %34 = vector.shape_cast %33 : vector<1x4x32xbf16> to vector<4x32xbf16>
    %35 = vector.shape_cast %32 : vector<8x8x4xf32> to vector<64x4xf32>
    %36 = arith.truncf %35 : vector<64x4xf32> to vector<64x4xbf16>
    %cst_39 = arith.constant dense<0.000000e+00> : vector<64x32xf32>
    %37 = tpu.matmul %36, %34, %cst_39 {dimension_numbers = #tpu.dot_dimension_numbers<[1], [0], [0], [1], [0, 0, 1, 1], [], []>} : vector<64x4xbf16>, vector<4x32xbf16>, vector<64x32xf32> -> vector<64x32xf32>
    %38 = arith.addf %31, %37 : vector<64x32xf32>
    %c1_40 = arith.constant 1 : index
    %c2_41 = arith.constant 2 : index
    %c0_42 = arith.constant 0 : index
    %39 = vector.load %arg11[%c1_40, %c2_41, %c0_42] : memref<10x10x4xf32, #tpu.memory_space<vmem>>, vector<8x8x4xf32>
    %c5 = arith.constant 5 : index
    %c0_43 = arith.constant 0 : index
    %c0_44 = arith.constant 0 : index
    %40 = vector.load %arg2[%c5, %c0_43, %c0_44] : memref<9x4x32xbf16, #tpu.memory_space<vmem>>, vector<1x4x32xbf16>
    %41 = vector.shape_cast %40 : vector<1x4x32xbf16> to vector<4x32xbf16>
    %42 = vector.shape_cast %39 : vector<8x8x4xf32> to vector<64x4xf32>
    %43 = arith.truncf %42 : vector<64x4xf32> to vector<64x4xbf16>
    %cst_45 = arith.constant dense<0.000000e+00> : vector<64x32xf32>
    %44 = tpu.matmul %43, %41, %cst_45 {dimension_numbers = #tpu.dot_dimension_numbers<[1], [0], [0], [1], [0, 0, 1, 1], [], []>} : vector<64x4xbf16>, vector<4x32xbf16>, vector<64x32xf32> -> vector<64x32xf32>
    %45 = arith.addf %38, %44 : vector<64x32xf32>
    %c2_46 = arith.constant 2 : index
    %c0_47 = arith.constant 0 : index
    %c0_48 = arith.constant 0 : index
    %46 = vector.load %arg11[%c2_46, %c0_47, %c0_48] : memref<10x10x4xf32, #tpu.memory_space<vmem>>, vector<8x8x4xf32>
    %c6 = arith.constant 6 : index
    %c0_49 = arith.constant 0 : index
    %c0_50 = arith.constant 0 : index
    %47 = vector.load %arg2[%c6, %c0_49, %c0_50] : memref<9x4x32xbf16, #tpu.memory_space<vmem>>, vector<1x4x32xbf16>
    %48 = vector.shape_cast %47 : vector<1x4x32xbf16> to vector<4x32xbf16>
    %49 = vector.shape_cast %46 : vector<8x8x4xf32> to vector<64x4xf32>
    %50 = arith.truncf %49 : vector<64x4xf32> to vector<64x4xbf16>
    %cst_51 = arith.constant dense<0.000000e+00> : vector<64x32xf32>
    %51 = tpu.matmul %50, %48, %cst_51 {dimension_numbers = #tpu.dot_dimension_numbers<[1], [0], [0], [1], [0, 0, 1, 1], [], []>} : vector<64x4xbf16>, vector<4x32xbf16>, vector<64x32xf32> -> vector<64x32xf32>
    %52 = arith.addf %45, %51 : vector<64x32xf32>
    %c2_52 = arith.constant 2 : index
    %c1_53 = arith.constant 1 : index
    %c0_54 = arith.constant 0 : index
    %53 = vector.load %arg11[%c2_52, %c1_53, %c0_54] : memref<10x10x4xf32, #tpu.memory_space<vmem>>, vector<8x8x4xf32>
    %c7 = arith.constant 7 : index
    %c0_55 = arith.constant 0 : index
    %c0_56 = arith.constant 0 : index
    %54 = vector.load %arg2[%c7, %c0_55, %c0_56] : memref<9x4x32xbf16, #tpu.memory_space<vmem>>, vector<1x4x32xbf16>
    %55 = vector.shape_cast %54 : vector<1x4x32xbf16> to vector<4x32xbf16>
    %56 = vector.shape_cast %53 : vector<8x8x4xf32> to vector<64x4xf32>
    %57 = arith.truncf %56 : vector<64x4xf32> to vector<64x4xbf16>
    %cst_57 = arith.constant dense<0.000000e+00> : vector<64x32xf32>
    %58 = tpu.matmul %57, %55, %cst_57 {dimension_numbers = #tpu.dot_dimension_numbers<[1], [0], [0], [1], [0, 0, 1, 1], [], []>} : vector<64x4xbf16>, vector<4x32xbf16>, vector<64x32xf32> -> vector<64x32xf32>
    %59 = arith.addf %52, %58 : vector<64x32xf32>
    %c2_58 = arith.constant 2 : index
    %c2_59 = arith.constant 2 : index
    %c0_60 = arith.constant 0 : index
    %60 = vector.load %arg11[%c2_58, %c2_59, %c0_60] : memref<10x10x4xf32, #tpu.memory_space<vmem>>, vector<8x8x4xf32>
    %c8 = arith.constant 8 : index
    %c0_61 = arith.constant 0 : index
    %c0_62 = arith.constant 0 : index
    %61 = vector.load %arg2[%c8, %c0_61, %c0_62] : memref<9x4x32xbf16, #tpu.memory_space<vmem>>, vector<1x4x32xbf16>
    %62 = vector.shape_cast %61 : vector<1x4x32xbf16> to vector<4x32xbf16>
    %63 = vector.shape_cast %60 : vector<8x8x4xf32> to vector<64x4xf32>
    %64 = arith.truncf %63 : vector<64x4xf32> to vector<64x4xbf16>
    %cst_63 = arith.constant dense<0.000000e+00> : vector<64x32xf32>
    %65 = tpu.matmul %64, %62, %cst_63 {dimension_numbers = #tpu.dot_dimension_numbers<[1], [0], [0], [1], [0, 0, 1, 1], [], []>} : vector<64x4xbf16>, vector<4x32xbf16>, vector<64x32xf32> -> vector<64x32xf32>
    %66 = arith.addf %59, %65 : vector<64x32xf32>
    %c0_64 = arith.constant 0 : index
    %c0_65 = arith.constant 0 : index
    %67 = vector.load %arg3[%c0_64, %c0_65] : memref<1x32xf32, #tpu.memory_space<vmem>>, vector<1x32xf32>
    %68 = vector.broadcast %67 : vector<1x32xf32> to vector<64x32xf32>
    %69 = arith.addf %66, %68 : vector<64x32xf32>
    %cst_66 = arith.constant 0.000000e+00 : f32
    %70 = vector.broadcast %cst_66 : f32 to vector<10x10x32xf32>
    %c0_67 = arith.constant 0 : index
    %c0_68 = arith.constant 0 : index
    %c0_69 = arith.constant 0 : index
    %71 = vector.load %arg12[%c0_67, %c0_68, %c0_69] : memref<10x10x32xf32, #tpu.memory_space<vmem>>, vector<10x10x32xf32>
    tpu.vector_store %arg12[%c0_67, %c0_68, %c0_69], %70 {strides = array<i32>} : memref<10x10x32xf32, #tpu.memory_space<vmem>>, vector<10x10x32xf32>,
    %72 = vector.shape_cast %69 : vector<64x32xf32> to vector<8x8x32xf32>
    %c1_70 = arith.constant 1 : index
    %c1_71 = arith.constant 1 : index
    %c0_72 = arith.constant 0 : index
    %73 = vector.load %arg12[%c1_70, %c1_71, %c0_72] : memref<10x10x32xf32, #tpu.memory_space<vmem>>, vector<8x8x32xf32>
    tpu.vector_store %arg12[%c1_70, %c1_71, %c0_72], %72 {strides = array<i32>} : memref<10x10x32xf32, #tpu.memory_space<vmem>>, vector<8x8x32xf32>,
    %c0_73 = arith.constant 0 : index
    %c0_74 = arith.constant 0 : index
    %c0_75 = arith.constant 0 : index
    %74 = vector.load %arg12[%c0_73, %c0_74, %c0_75] : memref<10x10x32xf32, #tpu.memory_space<vmem>>, vector<8x8x32xf32>
    %c0_76 = arith.constant 0 : index
    %c0_77 = arith.constant 0 : index
    %c0_78 = arith.constant 0 : index
    %75 = vector.load %arg4[%c0_76, %c0_77, %c0_78] : memref<9x32x16xbf16, #tpu.memory_space<vmem>>, vector<1x32x16xbf16>
    %76 = vector.shape_cast %75 : vector<1x32x16xbf16> to vector<32x16xbf16>
    %cst_79 = arith.constant 0.000000e+00 : f32
    %77 = vector.broadcast %cst_79 : f32 to vector<8x8x32xf32>
    %78 = arith.maximumf %74, %77 : vector<8x8x32xf32>
    %79 = vector.shape_cast %78 : vector<8x8x32xf32> to vector<64x32xf32>
    %80 = arith.truncf %79 : vector<64x32xf32> to vector<64x32xbf16>
    %cst_80 = arith.constant dense<0.000000e+00> : vector<64x16xf32>
    %81 = tpu.matmul %80, %76, %cst_80 {dimension_numbers = #tpu.dot_dimension_numbers<[1], [0], [0], [1], [0, 0, 1, 1], [], []>} : vector<64x32xbf16>, vector<32x16xbf16>, vector<64x16xf32> -> vector<64x16xf32>
    %c0_81 = arith.constant 0 : index
    %c1_82 = arith.constant 1 : index
    %c0_83 = arith.constant 0 : index
    %82 = vector.load %arg12[%c0_81, %c1_82, %c0_83] : memref<10x10x32xf32, #tpu.memory_space<vmem>>, vector<8x8x32xf32>
    %c1_84 = arith.constant 1 : index
    %c0_85 = arith.constant 0 : index
    %c0_86 = arith.constant 0 : index
    %83 = vector.load %arg4[%c1_84, %c0_85, %c0_86] : memref<9x32x16xbf16, #tpu.memory_space<vmem>>, vector<1x32x16xbf16>
    %84 = vector.shape_cast %83 : vector<1x32x16xbf16> to vector<32x16xbf16>
    %cst_87 = arith.constant 0.000000e+00 : f32
    %85 = vector.broadcast %cst_87 : f32 to vector<8x8x32xf32>
    %86 = arith.maximumf %82, %85 : vector<8x8x32xf32>
    %87 = vector.shape_cast %86 : vector<8x8x32xf32> to vector<64x32xf32>
    %88 = arith.truncf %87 : vector<64x32xf32> to vector<64x32xbf16>
    %cst_88 = arith.constant dense<0.000000e+00> : vector<64x16xf32>
    %89 = tpu.matmul %88, %84, %cst_88 {dimension_numbers = #tpu.dot_dimension_numbers<[1], [0], [0], [1], [0, 0, 1, 1], [], []>} : vector<64x32xbf16>, vector<32x16xbf16>, vector<64x16xf32> -> vector<64x16xf32>
    %90 = arith.addf %81, %89 : vector<64x16xf32>
    %c0_89 = arith.constant 0 : index
    %c2_90 = arith.constant 2 : index
    %c0_91 = arith.constant 0 : index
    %91 = vector.load %arg12[%c0_89, %c2_90, %c0_91] : memref<10x10x32xf32, #tpu.memory_space<vmem>>, vector<8x8x32xf32>
    %c2_92 = arith.constant 2 : index
    %c0_93 = arith.constant 0 : index
    %c0_94 = arith.constant 0 : index
    %92 = vector.load %arg4[%c2_92, %c0_93, %c0_94] : memref<9x32x16xbf16, #tpu.memory_space<vmem>>, vector<1x32x16xbf16>
    %93 = vector.shape_cast %92 : vector<1x32x16xbf16> to vector<32x16xbf16>
    %cst_95 = arith.constant 0.000000e+00 : f32
    %94 = vector.broadcast %cst_95 : f32 to vector<8x8x32xf32>
    %95 = arith.maximumf %91, %94 : vector<8x8x32xf32>
    %96 = vector.shape_cast %95 : vector<8x8x32xf32> to vector<64x32xf32>
    %97 = arith.truncf %96 : vector<64x32xf32> to vector<64x32xbf16>
    %cst_96 = arith.constant dense<0.000000e+00> : vector<64x16xf32>
    %98 = tpu.matmul %97, %93, %cst_96 {dimension_numbers = #tpu.dot_dimension_numbers<[1], [0], [0], [1], [0, 0, 1, 1], [], []>} : vector<64x32xbf16>, vector<32x16xbf16>, vector<64x16xf32> -> vector<64x16xf32>
    %99 = arith.addf %90, %98 : vector<64x16xf32>
    %c1_97 = arith.constant 1 : index
    %c0_98 = arith.constant 0 : index
    %c0_99 = arith.constant 0 : index
    %100 = vector.load %arg12[%c1_97, %c0_98, %c0_99] : memref<10x10x32xf32, #tpu.memory_space<vmem>>, vector<8x8x32xf32>
    %c3_100 = arith.constant 3 : index
    %c0_101 = arith.constant 0 : index
    %c0_102 = arith.constant 0 : index
    %101 = vector.load %arg4[%c3_100, %c0_101, %c0_102] : memref<9x32x16xbf16, #tpu.memory_space<vmem>>, vector<1x32x16xbf16>
    %102 = vector.shape_cast %101 : vector<1x32x16xbf16> to vector<32x16xbf16>
    %cst_103 = arith.constant 0.000000e+00 : f32
    %103 = vector.broadcast %cst_103 : f32 to vector<8x8x32xf32>
    %104 = arith.maximumf %100, %103 : vector<8x8x32xf32>
    %105 = vector.shape_cast %104 : vector<8x8x32xf32> to vector<64x32xf32>
    %106 = arith.truncf %105 : vector<64x32xf32> to vector<64x32xbf16>
    %cst_104 = arith.constant dense<0.000000e+00> : vector<64x16xf32>
    %107 = tpu.matmul %106, %102, %cst_104 {dimension_numbers = #tpu.dot_dimension_numbers<[1], [0], [0], [1], [0, 0, 1, 1], [], []>} : vector<64x32xbf16>, vector<32x16xbf16>, vector<64x16xf32> -> vector<64x16xf32>
    %108 = arith.addf %99, %107 : vector<64x16xf32>
    %c1_105 = arith.constant 1 : index
    %c1_106 = arith.constant 1 : index
    %c0_107 = arith.constant 0 : index
    %109 = vector.load %arg12[%c1_105, %c1_106, %c0_107] : memref<10x10x32xf32, #tpu.memory_space<vmem>>, vector<8x8x32xf32>
    %c4_108 = arith.constant 4 : index
    %c0_109 = arith.constant 0 : index
    %c0_110 = arith.constant 0 : index
    %110 = vector.load %arg4[%c4_108, %c0_109, %c0_110] : memref<9x32x16xbf16, #tpu.memory_space<vmem>>, vector<1x32x16xbf16>
    %111 = vector.shape_cast %110 : vector<1x32x16xbf16> to vector<32x16xbf16>
    %cst_111 = arith.constant 0.000000e+00 : f32
    %112 = vector.broadcast %cst_111 : f32 to vector<8x8x32xf32>
    %113 = arith.maximumf %109, %112 : vector<8x8x32xf32>
    %114 = vector.shape_cast %113 : vector<8x8x32xf32> to vector<64x32xf32>
    %115 = arith.truncf %114 : vector<64x32xf32> to vector<64x32xbf16>
    %cst_112 = arith.constant dense<0.000000e+00> : vector<64x16xf32>
    %116 = tpu.matmul %115, %111, %cst_112 {dimension_numbers = #tpu.dot_dimension_numbers<[1], [0], [0], [1], [0, 0, 1, 1], [], []>} : vector<64x32xbf16>, vector<32x16xbf16>, vector<64x16xf32> -> vector<64x16xf32>
    %117 = arith.addf %108, %116 : vector<64x16xf32>
    %c1_113 = arith.constant 1 : index
    %c2_114 = arith.constant 2 : index
    %c0_115 = arith.constant 0 : index
    %118 = vector.load %arg12[%c1_113, %c2_114, %c0_115] : memref<10x10x32xf32, #tpu.memory_space<vmem>>, vector<8x8x32xf32>
    %c5_116 = arith.constant 5 : index
    %c0_117 = arith.constant 0 : index
    %c0_118 = arith.constant 0 : index
    %119 = vector.load %arg4[%c5_116, %c0_117, %c0_118] : memref<9x32x16xbf16, #tpu.memory_space<vmem>>, vector<1x32x16xbf16>
    %120 = vector.shape_cast %119 : vector<1x32x16xbf16> to vector<32x16xbf16>
    %cst_119 = arith.constant 0.000000e+00 : f32
    %121 = vector.broadcast %cst_119 : f32 to vector<8x8x32xf32>
    %122 = arith.maximumf %118, %121 : vector<8x8x32xf32>
    %123 = vector.shape_cast %122 : vector<8x8x32xf32> to vector<64x32xf32>
    %124 = arith.truncf %123 : vector<64x32xf32> to vector<64x32xbf16>
    %cst_120 = arith.constant dense<0.000000e+00> : vector<64x16xf32>
    %125 = tpu.matmul %124, %120, %cst_120 {dimension_numbers = #tpu.dot_dimension_numbers<[1], [0], [0], [1], [0, 0, 1, 1], [], []>} : vector<64x32xbf16>, vector<32x16xbf16>, vector<64x16xf32> -> vector<64x16xf32>
    %126 = arith.addf %117, %125 : vector<64x16xf32>
    %c2_121 = arith.constant 2 : index
    %c0_122 = arith.constant 0 : index
    %c0_123 = arith.constant 0 : index
    %127 = vector.load %arg12[%c2_121, %c0_122, %c0_123] : memref<10x10x32xf32, #tpu.memory_space<vmem>>, vector<8x8x32xf32>
    %c6_124 = arith.constant 6 : index
    %c0_125 = arith.constant 0 : index
    %c0_126 = arith.constant 0 : index
    %128 = vector.load %arg4[%c6_124, %c0_125, %c0_126] : memref<9x32x16xbf16, #tpu.memory_space<vmem>>, vector<1x32x16xbf16>
    %129 = vector.shape_cast %128 : vector<1x32x16xbf16> to vector<32x16xbf16>
    %cst_127 = arith.constant 0.000000e+00 : f32
    %130 = vector.broadcast %cst_127 : f32 to vector<8x8x32xf32>
    %131 = arith.maximumf %127, %130 : vector<8x8x32xf32>
    %132 = vector.shape_cast %131 : vector<8x8x32xf32> to vector<64x32xf32>
    %133 = arith.truncf %132 : vector<64x32xf32> to vector<64x32xbf16>
    %cst_128 = arith.constant dense<0.000000e+00> : vector<64x16xf32>
    %134 = tpu.matmul %133, %129, %cst_128 {dimension_numbers = #tpu.dot_dimension_numbers<[1], [0], [0], [1], [0, 0, 1, 1], [], []>} : vector<64x32xbf16>, vector<32x16xbf16>, vector<64x16xf32> -> vector<64x16xf32>
    %135 = arith.addf %126, %134 : vector<64x16xf32>
    %c2_129 = arith.constant 2 : index
    %c1_130 = arith.constant 1 : index
    %c0_131 = arith.constant 0 : index
    %136 = vector.load %arg12[%c2_129, %c1_130, %c0_131] : memref<10x10x32xf32, #tpu.memory_space<vmem>>, vector<8x8x32xf32>
    %c7_132 = arith.constant 7 : index
    %c0_133 = arith.constant 0 : index
    %c0_134 = arith.constant 0 : index
    %137 = vector.load %arg4[%c7_132, %c0_133, %c0_134] : memref<9x32x16xbf16, #tpu.memory_space<vmem>>, vector<1x32x16xbf16>
    %138 = vector.shape_cast %137 : vector<1x32x16xbf16> to vector<32x16xbf16>
    %cst_135 = arith.constant 0.000000e+00 : f32
    %139 = vector.broadcast %cst_135 : f32 to vector<8x8x32xf32>
    %140 = arith.maximumf %136, %139 : vector<8x8x32xf32>
    %141 = vector.shape_cast %140 : vector<8x8x32xf32> to vector<64x32xf32>
    %142 = arith.truncf %141 : vector<64x32xf32> to vector<64x32xbf16>
    %cst_136 = arith.constant dense<0.000000e+00> : vector<64x16xf32>
    %143 = tpu.matmul %142, %138, %cst_136 {dimension_numbers = #tpu.dot_dimension_numbers<[1], [0], [0], [1], [0, 0, 1, 1], [], []>} : vector<64x32xbf16>, vector<32x16xbf16>, vector<64x16xf32> -> vector<64x16xf32>
    %144 = arith.addf %135, %143 : vector<64x16xf32>
    %c2_137 = arith.constant 2 : index
    %c2_138 = arith.constant 2 : index
    %c0_139 = arith.constant 0 : index
    %145 = vector.load %arg12[%c2_137, %c2_138, %c0_139] : memref<10x10x32xf32, #tpu.memory_space<vmem>>, vector<8x8x32xf32>
    %c8_140 = arith.constant 8 : index
    %c0_141 = arith.constant 0 : index
    %c0_142 = arith.constant 0 : index
    %146 = vector.load %arg4[%c8_140, %c0_141, %c0_142] : memref<9x32x16xbf16, #tpu.memory_space<vmem>>, vector<1x32x16xbf16>
    %147 = vector.shape_cast %146 : vector<1x32x16xbf16> to vector<32x16xbf16>
    %cst_143 = arith.constant 0.000000e+00 : f32
    %148 = vector.broadcast %cst_143 : f32 to vector<8x8x32xf32>
    %149 = arith.maximumf %145, %148 : vector<8x8x32xf32>
    %150 = vector.shape_cast %149 : vector<8x8x32xf32> to vector<64x32xf32>
    %151 = arith.truncf %150 : vector<64x32xf32> to vector<64x32xbf16>
    %cst_144 = arith.constant dense<0.000000e+00> : vector<64x16xf32>
    %152 = tpu.matmul %151, %147, %cst_144 {dimension_numbers = #tpu.dot_dimension_numbers<[1], [0], [0], [1], [0, 0, 1, 1], [], []>} : vector<64x32xbf16>, vector<32x16xbf16>, vector<64x16xf32> -> vector<64x16xf32>
    %153 = arith.addf %144, %152 : vector<64x16xf32>
    %cst_145 = arith.constant 0.000000e+00 : f32
    %154 = vector.broadcast %cst_145 : f32 to vector<64x16xf32>
    %155 = arith.maximumf %153, %154 : vector<64x16xf32>
    %156 = arith.truncf %155 : vector<64x16xf32> to vector<64x16xbf16>
    %c0_146 = arith.constant 0 : index
    %c0_147 = arith.constant 0 : index
    %157 = vector.load %arg5[%c0_146, %c0_147] : memref<16x32xbf16, #tpu.memory_space<vmem>>, vector<16x32xbf16>
    %cst_148 = arith.constant dense<0.000000e+00> : vector<64x32xf32>
    %158 = tpu.matmul %156, %157, %cst_148 {dimension_numbers = #tpu.dot_dimension_numbers<[1], [0], [0], [1], [0, 0, 1, 1], [], []>} : vector<64x16xbf16>, vector<16x32xbf16>, vector<64x32xf32> -> vector<64x32xf32>
    %c1_149 = arith.constant 1 : index
    %c1_150 = arith.constant 1 : index
    %c0_151 = arith.constant 0 : index
    %159 = vector.load %arg12[%c1_149, %c1_150, %c0_151] : memref<10x10x32xf32, #tpu.memory_space<vmem>>, vector<8x8x32xf32>
    %160 = vector.shape_cast %159 : vector<8x8x32xf32> to vector<64x32xf32>
    %161 = arith.addf %160, %158 : vector<64x32xf32>
    %162 = vector.shape_cast %161 : vector<64x32xf32> to vector<8x8x32xf32>
    %c1_152 = arith.constant 1 : index
    %c1_153 = arith.constant 1 : index
    %c0_154 = arith.constant 0 : index
    %163 = vector.load %arg12[%c1_152, %c1_153, %c0_154] : memref<10x10x32xf32, #tpu.memory_space<vmem>>, vector<8x8x32xf32>
    tpu.vector_store %arg12[%c1_152, %c1_153, %c0_154], %162 {strides = array<i32>} : memref<10x10x32xf32, #tpu.memory_space<vmem>>, vector<8x8x32xf32>,
    %c0_155 = arith.constant 0 : index
    %c0_156 = arith.constant 0 : index
    %c0_157 = arith.constant 0 : index
    %164 = vector.load %arg12[%c0_155, %c0_156, %c0_157] : memref<10x10x32xf32, #tpu.memory_space<vmem>>, vector<8x8x32xf32>
    %c0_158 = arith.constant 0 : index
    %c0_159 = arith.constant 0 : index
    %c0_160 = arith.constant 0 : index
    %165 = vector.load %arg4[%c0_158, %c0_159, %c0_160] : memref<9x32x16xbf16, #tpu.memory_space<vmem>>, vector<1x32x16xbf16>
    %166 = vector.shape_cast %165 : vector<1x32x16xbf16> to vector<32x16xbf16>
    %cst_161 = arith.constant 0.000000e+00 : f32
    %167 = vector.broadcast %cst_161 : f32 to vector<8x8x32xf32>
    %168 = arith.maximumf %164, %167 : vector<8x8x32xf32>
    %169 = vector.shape_cast %168 : vector<8x8x32xf32> to vector<64x32xf32>
    %170 = arith.truncf %169 : vector<64x32xf32> to vector<64x32xbf16>
    %cst_162 = arith.constant dense<0.000000e+00> : vector<64x16xf32>
    %171 = tpu.matmul %170, %166, %cst_162 {dimension_numbers = #tpu.dot_dimension_numbers<[1], [0], [0], [1], [0, 0, 1, 1], [], []>} : vector<64x32xbf16>, vector<32x16xbf16>, vector<64x16xf32> -> vector<64x16xf32>
    %c0_163 = arith.constant 0 : index
    %c1_164 = arith.constant 1 : index
    %c0_165 = arith.constant 0 : index
    %172 = vector.load %arg12[%c0_163, %c1_164, %c0_165] : memref<10x10x32xf32, #tpu.memory_space<vmem>>, vector<8x8x32xf32>
    %c1_166 = arith.constant 1 : index
    %c0_167 = arith.constant 0 : index
    %c0_168 = arith.constant 0 : index
    %173 = vector.load %arg4[%c1_166, %c0_167, %c0_168] : memref<9x32x16xbf16, #tpu.memory_space<vmem>>, vector<1x32x16xbf16>
    %174 = vector.shape_cast %173 : vector<1x32x16xbf16> to vector<32x16xbf16>
    %cst_169 = arith.constant 0.000000e+00 : f32
    %175 = vector.broadcast %cst_169 : f32 to vector<8x8x32xf32>
    %176 = arith.maximumf %172, %175 : vector<8x8x32xf32>
    %177 = vector.shape_cast %176 : vector<8x8x32xf32> to vector<64x32xf32>
    %178 = arith.truncf %177 : vector<64x32xf32> to vector<64x32xbf16>
    %cst_170 = arith.constant dense<0.000000e+00> : vector<64x16xf32>
    %179 = tpu.matmul %178, %174, %cst_170 {dimension_numbers = #tpu.dot_dimension_numbers<[1], [0], [0], [1], [0, 0, 1, 1], [], []>} : vector<64x32xbf16>, vector<32x16xbf16>, vector<64x16xf32> -> vector<64x16xf32>
    %180 = arith.addf %171, %179 : vector<64x16xf32>
    %c0_171 = arith.constant 0 : index
    %c2_172 = arith.constant 2 : index
    %c0_173 = arith.constant 0 : index
    %181 = vector.load %arg12[%c0_171, %c2_172, %c0_173] : memref<10x10x32xf32, #tpu.memory_space<vmem>>, vector<8x8x32xf32>
    %c2_174 = arith.constant 2 : index
    %c0_175 = arith.constant 0 : index
    %c0_176 = arith.constant 0 : index
    %182 = vector.load %arg4[%c2_174, %c0_175, %c0_176] : memref<9x32x16xbf16, #tpu.memory_space<vmem>>, vector<1x32x16xbf16>
    %183 = vector.shape_cast %182 : vector<1x32x16xbf16> to vector<32x16xbf16>
    %cst_177 = arith.constant 0.000000e+00 : f32
    %184 = vector.broadcast %cst_177 : f32 to vector<8x8x32xf32>
    %185 = arith.maximumf %181, %184 : vector<8x8x32xf32>
    %186 = vector.shape_cast %185 : vector<8x8x32xf32> to vector<64x32xf32>
    %187 = arith.truncf %186 : vector<64x32xf32> to vector<64x32xbf16>
    %cst_178 = arith.constant dense<0.000000e+00> : vector<64x16xf32>
    %188 = tpu.matmul %187, %183, %cst_178 {dimension_numbers = #tpu.dot_dimension_numbers<[1], [0], [0], [1], [0, 0, 1, 1], [], []>} : vector<64x32xbf16>, vector<32x16xbf16>, vector<64x16xf32> -> vector<64x16xf32>
    %189 = arith.addf %180, %188 : vector<64x16xf32>
    %c1_179 = arith.constant 1 : index
    %c0_180 = arith.constant 0 : index
    %c0_181 = arith.constant 0 : index
    %190 = vector.load %arg12[%c1_179, %c0_180, %c0_181] : memref<10x10x32xf32, #tpu.memory_space<vmem>>, vector<8x8x32xf32>
    %c3_182 = arith.constant 3 : index
    %c0_183 = arith.constant 0 : index
    %c0_184 = arith.constant 0 : index
    %191 = vector.load %arg4[%c3_182, %c0_183, %c0_184] : memref<9x32x16xbf16, #tpu.memory_space<vmem>>, vector<1x32x16xbf16>
    %192 = vector.shape_cast %191 : vector<1x32x16xbf16> to vector<32x16xbf16>
    %cst_185 = arith.constant 0.000000e+00 : f32
    %193 = vector.broadcast %cst_185 : f32 to vector<8x8x32xf32>
    %194 = arith.maximumf %190, %193 : vector<8x8x32xf32>
    %195 = vector.shape_cast %194 : vector<8x8x32xf32> to vector<64x32xf32>
    %196 = arith.truncf %195 : vector<64x32xf32> to vector<64x32xbf16>
    %cst_186 = arith.constant dense<0.000000e+00> : vector<64x16xf32>
    %197 = tpu.matmul %196, %192, %cst_186 {dimension_numbers = #tpu.dot_dimension_numbers<[1], [0], [0], [1], [0, 0, 1, 1], [], []>} : vector<64x32xbf16>, vector<32x16xbf16>, vector<64x16xf32> -> vector<64x16xf32>
    %198 = arith.addf %189, %197 : vector<64x16xf32>
    %c1_187 = arith.constant 1 : index
    %c1_188 = arith.constant 1 : index
    %c0_189 = arith.constant 0 : index
    %199 = vector.load %arg12[%c1_187, %c1_188, %c0_189] : memref<10x10x32xf32, #tpu.memory_space<vmem>>, vector<8x8x32xf32>
    %c4_190 = arith.constant 4 : index
    %c0_191 = arith.constant 0 : index
    %c0_192 = arith.constant 0 : index
    %200 = vector.load %arg4[%c4_190, %c0_191, %c0_192] : memref<9x32x16xbf16, #tpu.memory_space<vmem>>, vector<1x32x16xbf16>
    %201 = vector.shape_cast %200 : vector<1x32x16xbf16> to vector<32x16xbf16>
    %cst_193 = arith.constant 0.000000e+00 : f32
    %202 = vector.broadcast %cst_193 : f32 to vector<8x8x32xf32>
    %203 = arith.maximumf %199, %202 : vector<8x8x32xf32>
    %204 = vector.shape_cast %203 : vector<8x8x32xf32> to vector<64x32xf32>
    %205 = arith.truncf %204 : vector<64x32xf32> to vector<64x32xbf16>
    %cst_194 = arith.constant dense<0.000000e+00> : vector<64x16xf32>
    %206 = tpu.matmul %205, %201, %cst_194 {dimension_numbers = #tpu.dot_dimension_numbers<[1], [0], [0], [1], [0, 0, 1, 1], [], []>} : vector<64x32xbf16>, vector<32x16xbf16>, vector<64x16xf32> -> vector<64x16xf32>
    %207 = arith.addf %198, %206 : vector<64x16xf32>
    %c1_195 = arith.constant 1 : index
    %c2_196 = arith.constant 2 : index
    %c0_197 = arith.constant 0 : index
    %208 = vector.load %arg12[%c1_195, %c2_196, %c0_197] : memref<10x10x32xf32, #tpu.memory_space<vmem>>, vector<8x8x32xf32>
    %c5_198 = arith.constant 5 : index
    %c0_199 = arith.constant 0 : index
    %c0_200 = arith.constant 0 : index
    %209 = vector.load %arg4[%c5_198, %c0_199, %c0_200] : memref<9x32x16xbf16, #tpu.memory_space<vmem>>, vector<1x32x16xbf16>
    %210 = vector.shape_cast %209 : vector<1x32x16xbf16> to vector<32x16xbf16>
    %cst_201 = arith.constant 0.000000e+00 : f32
    %211 = vector.broadcast %cst_201 : f32 to vector<8x8x32xf32>
    %212 = arith.maximumf %208, %211 : vector<8x8x32xf32>
    %213 = vector.shape_cast %212 : vector<8x8x32xf32> to vector<64x32xf32>
    %214 = arith.truncf %213 : vector<64x32xf32> to vector<64x32xbf16>
    %cst_202 = arith.constant dense<0.000000e+00> : vector<64x16xf32>
    %215 = tpu.matmul %214, %210, %cst_202 {dimension_numbers = #tpu.dot_dimension_numbers<[1], [0], [0], [1], [0, 0, 1, 1], [], []>} : vector<64x32xbf16>, vector<32x16xbf16>, vector<64x16xf32> -> vector<64x16xf32>
    %216 = arith.addf %207, %215 : vector<64x16xf32>
    %c2_203 = arith.constant 2 : index
    %c0_204 = arith.constant 0 : index
    %c0_205 = arith.constant 0 : index
    %217 = vector.load %arg12[%c2_203, %c0_204, %c0_205] : memref<10x10x32xf32, #tpu.memory_space<vmem>>, vector<8x8x32xf32>
    %c6_206 = arith.constant 6 : index
    %c0_207 = arith.constant 0 : index
    %c0_208 = arith.constant 0 : index
    %218 = vector.load %arg4[%c6_206, %c0_207, %c0_208] : memref<9x32x16xbf16, #tpu.memory_space<vmem>>, vector<1x32x16xbf16>
    %219 = vector.shape_cast %218 : vector<1x32x16xbf16> to vector<32x16xbf16>
    %cst_209 = arith.constant 0.000000e+00 : f32
    %220 = vector.broadcast %cst_209 : f32 to vector<8x8x32xf32>
    %221 = arith.maximumf %217, %220 : vector<8x8x32xf32>
    %222 = vector.shape_cast %221 : vector<8x8x32xf32> to vector<64x32xf32>
    %223 = arith.truncf %222 : vector<64x32xf32> to vector<64x32xbf16>
    %cst_210 = arith.constant dense<0.000000e+00> : vector<64x16xf32>
    %224 = tpu.matmul %223, %219, %cst_210 {dimension_numbers = #tpu.dot_dimension_numbers<[1], [0], [0], [1], [0, 0, 1, 1], [], []>} : vector<64x32xbf16>, vector<32x16xbf16>, vector<64x16xf32> -> vector<64x16xf32>
    %225 = arith.addf %216, %224 : vector<64x16xf32>
    %c2_211 = arith.constant 2 : index
    %c1_212 = arith.constant 1 : index
    %c0_213 = arith.constant 0 : index
    %226 = vector.load %arg12[%c2_211, %c1_212, %c0_213] : memref<10x10x32xf32, #tpu.memory_space<vmem>>, vector<8x8x32xf32>
    %c7_214 = arith.constant 7 : index
    %c0_215 = arith.constant 0 : index
    %c0_216 = arith.constant 0 : index
    %227 = vector.load %arg4[%c7_214, %c0_215, %c0_216] : memref<9x32x16xbf16, #tpu.memory_space<vmem>>, vector<1x32x16xbf16>
    %228 = vector.shape_cast %227 : vector<1x32x16xbf16> to vector<32x16xbf16>
    %cst_217 = arith.constant 0.000000e+00 : f32
    %229 = vector.broadcast %cst_217 : f32 to vector<8x8x32xf32>
    %230 = arith.maximumf %226, %229 : vector<8x8x32xf32>
    %231 = vector.shape_cast %230 : vector<8x8x32xf32> to vector<64x32xf32>
    %232 = arith.truncf %231 : vector<64x32xf32> to vector<64x32xbf16>
    %cst_218 = arith.constant dense<0.000000e+00> : vector<64x16xf32>
    %233 = tpu.matmul %232, %228, %cst_218 {dimension_numbers = #tpu.dot_dimension_numbers<[1], [0], [0], [1], [0, 0, 1, 1], [], []>} : vector<64x32xbf16>, vector<32x16xbf16>, vector<64x16xf32> -> vector<64x16xf32>
    %234 = arith.addf %225, %233 : vector<64x16xf32>
    %c2_219 = arith.constant 2 : index
    %c2_220 = arith.constant 2 : index
    %c0_221 = arith.constant 0 : index
    %235 = vector.load %arg12[%c2_219, %c2_220, %c0_221] : memref<10x10x32xf32, #tpu.memory_space<vmem>>, vector<8x8x32xf32>
    %c8_222 = arith.constant 8 : index
    %c0_223 = arith.constant 0 : index
    %c0_224 = arith.constant 0 : index
    %236 = vector.load %arg4[%c8_222, %c0_223, %c0_224] : memref<9x32x16xbf16, #tpu.memory_space<vmem>>, vector<1x32x16xbf16>
    %237 = vector.shape_cast %236 : vector<1x32x16xbf16> to vector<32x16xbf16>
    %cst_225 = arith.constant 0.000000e+00 : f32
    %238 = vector.broadcast %cst_225 : f32 to vector<8x8x32xf32>
    %239 = arith.maximumf %235, %238 : vector<8x8x32xf32>
    %240 = vector.shape_cast %239 : vector<8x8x32xf32> to vector<64x32xf32>
    %241 = arith.truncf %240 : vector<64x32xf32> to vector<64x32xbf16>
    %cst_226 = arith.constant dense<0.000000e+00> : vector<64x16xf32>
    %242 = tpu.matmul %241, %237, %cst_226 {dimension_numbers = #tpu.dot_dimension_numbers<[1], [0], [0], [1], [0, 0, 1, 1], [], []>} : vector<64x32xbf16>, vector<32x16xbf16>, vector<64x16xf32> -> vector<64x16xf32>
    %243 = arith.addf %234, %242 : vector<64x16xf32>
    %cst_227 = arith.constant 0.000000e+00 : f32
    %244 = vector.broadcast %cst_227 : f32 to vector<64x16xf32>
    %245 = arith.maximumf %243, %244 : vector<64x16xf32>
    %246 = arith.truncf %245 : vector<64x16xf32> to vector<64x16xbf16>
    %c0_228 = arith.constant 0 : index
    %c0_229 = arith.constant 0 : index
    %247 = vector.load %arg5[%c0_228, %c0_229] : memref<16x32xbf16, #tpu.memory_space<vmem>>, vector<16x32xbf16>
    %cst_230 = arith.constant dense<0.000000e+00> : vector<64x32xf32>
    %248 = tpu.matmul %246, %247, %cst_230 {dimension_numbers = #tpu.dot_dimension_numbers<[1], [0], [0], [1], [0, 0, 1, 1], [], []>} : vector<64x16xbf16>, vector<16x32xbf16>, vector<64x32xf32> -> vector<64x32xf32>
    %c1_231 = arith.constant 1 : index
    %c1_232 = arith.constant 1 : index
    %c0_233 = arith.constant 0 : index
    %249 = vector.load %arg12[%c1_231, %c1_232, %c0_233] : memref<10x10x32xf32, #tpu.memory_space<vmem>>, vector<8x8x32xf32>
    %250 = vector.shape_cast %249 : vector<8x8x32xf32> to vector<64x32xf32>
    %251 = arith.addf %250, %248 : vector<64x32xf32>
    %252 = vector.shape_cast %251 : vector<64x32xf32> to vector<8x8x32xf32>
    %c1_234 = arith.constant 1 : index
    %c1_235 = arith.constant 1 : index
    %c0_236 = arith.constant 0 : index
    %253 = vector.load %arg12[%c1_234, %c1_235, %c0_236] : memref<10x10x32xf32, #tpu.memory_space<vmem>>, vector<8x8x32xf32>
    tpu.vector_store %arg12[%c1_234, %c1_235, %c0_236], %252 {strides = array<i32>} : memref<10x10x32xf32, #tpu.memory_space<vmem>>, vector<8x8x32xf32>,
    %cst_237 = arith.constant 0.000000e+00 : f32
    %254 = vector.broadcast %cst_237 : f32 to vector<4x10x10x16xf32>
    %c0_238 = arith.constant 0 : index
    %c0_239 = arith.constant 0 : index
    %c0_240 = arith.constant 0 : index
    %c0_241 = arith.constant 0 : index
    %255 = vector.load %arg13[%c0_238, %c0_239, %c0_240, %c0_241] : memref<4x10x10x16xf32, #tpu.memory_space<vmem>>, vector<4x10x10x16xf32>
    tpu.vector_store %arg13[%c0_238, %c0_239, %c0_240, %c0_241], %254 {strides = array<i32>} : memref<4x10x10x16xf32, #tpu.memory_space<vmem>>, vector<4x10x10x16xf32>,
    %c0_242 = arith.constant 0 : index
    %c0_243 = arith.constant 0 : index
    %c0_244 = arith.constant 0 : index
    %256 = vector.load %arg12[%c0_242, %c0_243, %c0_244] : memref<10x10x32xf32, #tpu.memory_space<vmem>>, vector<8x8x32xf32>
    %c0_245 = arith.constant 0 : index
    %c0_246 = arith.constant 0 : index
    %c0_247 = arith.constant 0 : index
    %257 = vector.load %arg6[%c0_245, %c0_246, %c0_247] : memref<16x32x16xbf16, #tpu.memory_space<vmem>>, vector<1x32x16xbf16>
    %258 = vector.shape_cast %257 : vector<1x32x16xbf16> to vector<32x16xbf16>
    %cst_248 = arith.constant 0.000000e+00 : f32
    %259 = vector.broadcast %cst_248 : f32 to vector<8x8x32xf32>
    %260 = arith.maximumf %256, %259 : vector<8x8x32xf32>
    %261 = vector.shape_cast %260 : vector<8x8x32xf32> to vector<64x32xf32>
    %262 = arith.truncf %261 : vector<64x32xf32> to vector<64x32xbf16>
    %cst_249 = arith.constant dense<0.000000e+00> : vector<64x16xf32>
    %263 = tpu.matmul %262, %258, %cst_249 {dimension_numbers = #tpu.dot_dimension_numbers<[1], [0], [0], [1], [0, 0, 1, 1], [], []>} : vector<64x32xbf16>, vector<32x16xbf16>, vector<64x16xf32> -> vector<64x16xf32>
    %c0_250 = arith.constant 0 : index
    %c1_251 = arith.constant 1 : index
    %c0_252 = arith.constant 0 : index
    %264 = vector.load %arg12[%c0_250, %c1_251, %c0_252] : memref<10x10x32xf32, #tpu.memory_space<vmem>>, vector<8x8x32xf32>
    %c1_253 = arith.constant 1 : index
    %c0_254 = arith.constant 0 : index
    %c0_255 = arith.constant 0 : index
    %265 = vector.load %arg6[%c1_253, %c0_254, %c0_255] : memref<16x32x16xbf16, #tpu.memory_space<vmem>>, vector<1x32x16xbf16>
    %266 = vector.shape_cast %265 : vector<1x32x16xbf16> to vector<32x16xbf16>
    %cst_256 = arith.constant 0.000000e+00 : f32
    %267 = vector.broadcast %cst_256 : f32 to vector<8x8x32xf32>
    %268 = arith.maximumf %264, %267 : vector<8x8x32xf32>
    %269 = vector.shape_cast %268 : vector<8x8x32xf32> to vector<64x32xf32>
    %270 = arith.truncf %269 : vector<64x32xf32> to vector<64x32xbf16>
    %cst_257 = arith.constant dense<0.000000e+00> : vector<64x16xf32>
    %271 = tpu.matmul %270, %266, %cst_257 {dimension_numbers = #tpu.dot_dimension_numbers<[1], [0], [0], [1], [0, 0, 1, 1], [], []>} : vector<64x32xbf16>, vector<32x16xbf16>, vector<64x16xf32> -> vector<64x16xf32>
    %272 = arith.addf %263, %271 : vector<64x16xf32>
    %c1_258 = arith.constant 1 : index
    %c0_259 = arith.constant 0 : index
    %c0_260 = arith.constant 0 : index
    %273 = vector.load %arg12[%c1_258, %c0_259, %c0_260] : memref<10x10x32xf32, #tpu.memory_space<vmem>>, vector<8x8x32xf32>
    %c2_261 = arith.constant 2 : index
    %c0_262 = arith.constant 0 : index
    %c0_263 = arith.constant 0 : index
    %274 = vector.load %arg6[%c2_261, %c0_262, %c0_263] : memref<16x32x16xbf16, #tpu.memory_space<vmem>>, vector<1x32x16xbf16>
    %275 = vector.shape_cast %274 : vector<1x32x16xbf16> to vector<32x16xbf16>
    %cst_264 = arith.constant 0.000000e+00 : f32
    %276 = vector.broadcast %cst_264 : f32 to vector<8x8x32xf32>
    %277 = arith.maximumf %273, %276 : vector<8x8x32xf32>
    %278 = vector.shape_cast %277 : vector<8x8x32xf32> to vector<64x32xf32>
    %279 = arith.truncf %278 : vector<64x32xf32> to vector<64x32xbf16>
    %cst_265 = arith.constant dense<0.000000e+00> : vector<64x16xf32>
    %280 = tpu.matmul %279, %275, %cst_265 {dimension_numbers = #tpu.dot_dimension_numbers<[1], [0], [0], [1], [0, 0, 1, 1], [], []>} : vector<64x32xbf16>, vector<32x16xbf16>, vector<64x16xf32> -> vector<64x16xf32>
    %281 = arith.addf %272, %280 : vector<64x16xf32>
    %c1_266 = arith.constant 1 : index
    %c1_267 = arith.constant 1 : index
    %c0_268 = arith.constant 0 : index
    %282 = vector.load %arg12[%c1_266, %c1_267, %c0_268] : memref<10x10x32xf32, #tpu.memory_space<vmem>>, vector<8x8x32xf32>
    %c3_269 = arith.constant 3 : index
    %c0_270 = arith.constant 0 : index
    %c0_271 = arith.constant 0 : index
    %283 = vector.load %arg6[%c3_269, %c0_270, %c0_271] : memref<16x32x16xbf16, #tpu.memory_space<vmem>>, vector<1x32x16xbf16>
    %284 = vector.shape_cast %283 : vector<1x32x16xbf16> to vector<32x16xbf16>
    %cst_272 = arith.constant 0.000000e+00 : f32
    %285 = vector.broadcast %cst_272 : f32 to vector<8x8x32xf32>
    %286 = arith.maximumf %282, %285 : vector<8x8x32xf32>
    %287 = vector.shape_cast %286 : vector<8x8x32xf32> to vector<64x32xf32>
    %288 = arith.truncf %287 : vector<64x32xf32> to vector<64x32xbf16>
    %cst_273 = arith.constant dense<0.000000e+00> : vector<64x16xf32>
    %289 = tpu.matmul %288, %284, %cst_273 {dimension_numbers = #tpu.dot_dimension_numbers<[1], [0], [0], [1], [0, 0, 1, 1], [], []>} : vector<64x32xbf16>, vector<32x16xbf16>, vector<64x16xf32> -> vector<64x16xf32>
    %290 = arith.addf %281, %289 : vector<64x16xf32>
    %c0_274 = arith.constant 0 : index
    %c0_275 = arith.constant 0 : index
    %291 = vector.load %arg7[%c0_274, %c0_275] : memref<1x16xf32, #tpu.memory_space<vmem>>, vector<1x16xf32>
    %292 = vector.broadcast %291 : vector<1x16xf32> to vector<64x16xf32>
    %293 = arith.addf %290, %292 : vector<64x16xf32>
    %294 = vector.shape_cast %293 : vector<64x16xf32> to vector<8x8x16xf32>
    %c0_276 = arith.constant 0 : index
    %c1_277 = arith.constant 1 : index
    %c1_278 = arith.constant 1 : index
    %c0_279 = arith.constant 0 : index
    %295 = vector.load %arg13[%c0_276, %c1_277, %c1_278, %c0_279] : memref<4x10x10x16xf32, #tpu.memory_space<vmem>>, vector<1x8x8x16xf32>
    %296 = vector.shape_cast %295 : vector<1x8x8x16xf32> to vector<8x8x16xf32>
    %297 = vector.shape_cast %294 : vector<8x8x16xf32> to vector<1x8x8x16xf32>
    tpu.vector_store %arg13[%c0_276, %c1_277, %c1_278, %c0_279], %297 {strides = array<i32>} : memref<4x10x10x16xf32, #tpu.memory_space<vmem>>, vector<1x8x8x16xf32>,
    %c0_280 = arith.constant 0 : index
    %c1_281 = arith.constant 1 : index
    %c0_282 = arith.constant 0 : index
    %298 = vector.load %arg12[%c0_280, %c1_281, %c0_282] : memref<10x10x32xf32, #tpu.memory_space<vmem>>, vector<8x8x32xf32>
    %c4_283 = arith.constant 4 : index
    %c0_284 = arith.constant 0 : index
    %c0_285 = arith.constant 0 : index
    %299 = vector.load %arg6[%c4_283, %c0_284, %c0_285] : memref<16x32x16xbf16, #tpu.memory_space<vmem>>, vector<1x32x16xbf16>
    %300 = vector.shape_cast %299 : vector<1x32x16xbf16> to vector<32x16xbf16>
    %cst_286 = arith.constant 0.000000e+00 : f32
    %301 = vector.broadcast %cst_286 : f32 to vector<8x8x32xf32>
    %302 = arith.maximumf %298, %301 : vector<8x8x32xf32>
    %303 = vector.shape_cast %302 : vector<8x8x32xf32> to vector<64x32xf32>
    %304 = arith.truncf %303 : vector<64x32xf32> to vector<64x32xbf16>
    %cst_287 = arith.constant dense<0.000000e+00> : vector<64x16xf32>
    %305 = tpu.matmul %304, %300, %cst_287 {dimension_numbers = #tpu.dot_dimension_numbers<[1], [0], [0], [1], [0, 0, 1, 1], [], []>} : vector<64x32xbf16>, vector<32x16xbf16>, vector<64x16xf32> -> vector<64x16xf32>
    %c0_288 = arith.constant 0 : index
    %c2_289 = arith.constant 2 : index
    %c0_290 = arith.constant 0 : index
    %306 = vector.load %arg12[%c0_288, %c2_289, %c0_290] : memref<10x10x32xf32, #tpu.memory_space<vmem>>, vector<8x8x32xf32>
    %c5_291 = arith.constant 5 : index
    %c0_292 = arith.constant 0 : index
    %c0_293 = arith.constant 0 : index
    %307 = vector.load %arg6[%c5_291, %c0_292, %c0_293] : memref<16x32x16xbf16, #tpu.memory_space<vmem>>, vector<1x32x16xbf16>
    %308 = vector.shape_cast %307 : vector<1x32x16xbf16> to vector<32x16xbf16>
    %cst_294 = arith.constant 0.000000e+00 : f32
    %309 = vector.broadcast %cst_294 : f32 to vector<8x8x32xf32>
    %310 = arith.maximumf %306, %309 : vector<8x8x32xf32>
    %311 = vector.shape_cast %310 : vector<8x8x32xf32> to vector<64x32xf32>
    %312 = arith.truncf %311 : vector<64x32xf32> to vector<64x32xbf16>
    %cst_295 = arith.constant dense<0.000000e+00> : vector<64x16xf32>
    %313 = tpu.matmul %312, %308, %cst_295 {dimension_numbers = #tpu.dot_dimension_numbers<[1], [0], [0], [1], [0, 0, 1, 1], [], []>} : vector<64x32xbf16>, vector<32x16xbf16>, vector<64x16xf32> -> vector<64x16xf32>
    %314 = arith.addf %305, %313 : vector<64x16xf32>
    %c1_296 = arith.constant 1 : index
    %c1_297 = arith.constant 1 : index
    %c0_298 = arith.constant 0 : index
    %315 = vector.load %arg12[%c1_296, %c1_297, %c0_298] : memref<10x10x32xf32, #tpu.memory_space<vmem>>, vector<8x8x32xf32>
    %c6_299 = arith.constant 6 : index
    %c0_300 = arith.constant 0 : index
    %c0_301 = arith.constant 0 : index
    %316 = vector.load %arg6[%c6_299, %c0_300, %c0_301] : memref<16x32x16xbf16, #tpu.memory_space<vmem>>, vector<1x32x16xbf16>
    %317 = vector.shape_cast %316 : vector<1x32x16xbf16> to vector<32x16xbf16>
    %cst_302 = arith.constant 0.000000e+00 : f32
    %318 = vector.broadcast %cst_302 : f32 to vector<8x8x32xf32>
    %319 = arith.maximumf %315, %318 : vector<8x8x32xf32>
    %320 = vector.shape_cast %319 : vector<8x8x32xf32> to vector<64x32xf32>
    %321 = arith.truncf %320 : vector<64x32xf32> to vector<64x32xbf16>
    %cst_303 = arith.constant dense<0.000000e+00> : vector<64x16xf32>
    %322 = tpu.matmul %321, %317, %cst_303 {dimension_numbers = #tpu.dot_dimension_numbers<[1], [0], [0], [1], [0, 0, 1, 1], [], []>} : vector<64x32xbf16>, vector<32x16xbf16>, vector<64x16xf32> -> vector<64x16xf32>
    %323 = arith.addf %314, %322 : vector<64x16xf32>
    %c1_304 = arith.constant 1 : index
    %c2_305 = arith.constant 2 : index
    %c0_306 = arith.constant 0 : index
    %324 = vector.load %arg12[%c1_304, %c2_305, %c0_306] : memref<10x10x32xf32, #tpu.memory_space<vmem>>, vector<8x8x32xf32>
    %c7_307 = arith.constant 7 : index
    %c0_308 = arith.constant 0 : index
    %c0_309 = arith.constant 0 : index
    %325 = vector.load %arg6[%c7_307, %c0_308, %c0_309] : memref<16x32x16xbf16, #tpu.memory_space<vmem>>, vector<1x32x16xbf16>
    %326 = vector.shape_cast %325 : vector<1x32x16xbf16> to vector<32x16xbf16>
    %cst_310 = arith.constant 0.000000e+00 : f32
    %327 = vector.broadcast %cst_310 : f32 to vector<8x8x32xf32>
    %328 = arith.maximumf %324, %327 : vector<8x8x32xf32>
    %329 = vector.shape_cast %328 : vector<8x8x32xf32> to vector<64x32xf32>
    %330 = arith.truncf %329 : vector<64x32xf32> to vector<64x32xbf16>
    %cst_311 = arith.constant dense<0.000000e+00> : vector<64x16xf32>
    %331 = tpu.matmul %330, %326, %cst_311 {dimension_numbers = #tpu.dot_dimension_numbers<[1], [0], [0], [1], [0, 0, 1, 1], [], []>} : vector<64x32xbf16>, vector<32x16xbf16>, vector<64x16xf32> -> vector<64x16xf32>
    %332 = arith.addf %323, %331 : vector<64x16xf32>
    %c0_312 = arith.constant 0 : index
    %c0_313 = arith.constant 0 : index
    %333 = vector.load %arg7[%c0_312, %c0_313] : memref<1x16xf32, #tpu.memory_space<vmem>>, vector<1x16xf32>
    %334 = vector.broadcast %333 : vector<1x16xf32> to vector<64x16xf32>
    %335 = arith.addf %332, %334 : vector<64x16xf32>
    %336 = vector.shape_cast %335 : vector<64x16xf32> to vector<8x8x16xf32>
    %c1_314 = arith.constant 1 : index
    %c1_315 = arith.constant 1 : index
    %c1_316 = arith.constant 1 : index
    %c0_317 = arith.constant 0 : index
    %337 = vector.load %arg13[%c1_314, %c1_315, %c1_316, %c0_317] : memref<4x10x10x16xf32, #tpu.memory_space<vmem>>, vector<1x8x8x16xf32>
    %338 = vector.shape_cast %337 : vector<1x8x8x16xf32> to vector<8x8x16xf32>
    %339 = vector.shape_cast %336 : vector<8x8x16xf32> to vector<1x8x8x16xf32>
    tpu.vector_store %arg13[%c1_314, %c1_315, %c1_316, %c0_317], %339 {strides = array<i32>} : memref<4x10x10x16xf32, #tpu.memory_space<vmem>>, vector<1x8x8x16xf32>,
    %c1_318 = arith.constant 1 : index
    %c0_319 = arith.constant 0 : index
    %c0_320 = arith.constant 0 : index
    %340 = vector.load %arg12[%c1_318, %c0_319, %c0_320] : memref<10x10x32xf32, #tpu.memory_space<vmem>>, vector<8x8x32xf32>
    %c8_321 = arith.constant 8 : index
    %c0_322 = arith.constant 0 : index
    %c0_323 = arith.constant 0 : index
    %341 = vector.load %arg6[%c8_321, %c0_322, %c0_323] : memref<16x32x16xbf16, #tpu.memory_space<vmem>>, vector<1x32x16xbf16>
    %342 = vector.shape_cast %341 : vector<1x32x16xbf16> to vector<32x16xbf16>
    %cst_324 = arith.constant 0.000000e+00 : f32
    %343 = vector.broadcast %cst_324 : f32 to vector<8x8x32xf32>
    %344 = arith.maximumf %340, %343 : vector<8x8x32xf32>
    %345 = vector.shape_cast %344 : vector<8x8x32xf32> to vector<64x32xf32>
    %346 = arith.truncf %345 : vector<64x32xf32> to vector<64x32xbf16>
    %cst_325 = arith.constant dense<0.000000e+00> : vector<64x16xf32>
    %347 = tpu.matmul %346, %342, %cst_325 {dimension_numbers = #tpu.dot_dimension_numbers<[1], [0], [0], [1], [0, 0, 1, 1], [], []>} : vector<64x32xbf16>, vector<32x16xbf16>, vector<64x16xf32> -> vector<64x16xf32>
    %c1_326 = arith.constant 1 : index
    %c1_327 = arith.constant 1 : index
    %c0_328 = arith.constant 0 : index
    %348 = vector.load %arg12[%c1_326, %c1_327, %c0_328] : memref<10x10x32xf32, #tpu.memory_space<vmem>>, vector<8x8x32xf32>
    %c9 = arith.constant 9 : index
    %c0_329 = arith.constant 0 : index
    %c0_330 = arith.constant 0 : index
    %349 = vector.load %arg6[%c9, %c0_329, %c0_330] : memref<16x32x16xbf16, #tpu.memory_space<vmem>>, vector<1x32x16xbf16>
    %350 = vector.shape_cast %349 : vector<1x32x16xbf16> to vector<32x16xbf16>
    %cst_331 = arith.constant 0.000000e+00 : f32
    %351 = vector.broadcast %cst_331 : f32 to vector<8x8x32xf32>
    %352 = arith.maximumf %348, %351 : vector<8x8x32xf32>
    %353 = vector.shape_cast %352 : vector<8x8x32xf32> to vector<64x32xf32>
    %354 = arith.truncf %353 : vector<64x32xf32> to vector<64x32xbf16>
    %cst_332 = arith.constant dense<0.000000e+00> : vector<64x16xf32>
    %355 = tpu.matmul %354, %350, %cst_332 {dimension_numbers = #tpu.dot_dimension_numbers<[1], [0], [0], [1], [0, 0, 1, 1], [], []>} : vector<64x32xbf16>, vector<32x16xbf16>, vector<64x16xf32> -> vector<64x16xf32>
    %356 = arith.addf %347, %355 : vector<64x16xf32>
    %c2_333 = arith.constant 2 : index
    %c0_334 = arith.constant 0 : index
    %c0_335 = arith.constant 0 : index
    %357 = vector.load %arg12[%c2_333, %c0_334, %c0_335] : memref<10x10x32xf32, #tpu.memory_space<vmem>>, vector<8x8x32xf32>
    %c10 = arith.constant 10 : index
    %c0_336 = arith.constant 0 : index
    %c0_337 = arith.constant 0 : index
    %358 = vector.load %arg6[%c10, %c0_336, %c0_337] : memref<16x32x16xbf16, #tpu.memory_space<vmem>>, vector<1x32x16xbf16>
    %359 = vector.shape_cast %358 : vector<1x32x16xbf16> to vector<32x16xbf16>
    %cst_338 = arith.constant 0.000000e+00 : f32
    %360 = vector.broadcast %cst_338 : f32 to vector<8x8x32xf32>
    %361 = arith.maximumf %357, %360 : vector<8x8x32xf32>
    %362 = vector.shape_cast %361 : vector<8x8x32xf32> to vector<64x32xf32>
    %363 = arith.truncf %362 : vector<64x32xf32> to vector<64x32xbf16>
    %cst_339 = arith.constant dense<0.000000e+00> : vector<64x16xf32>
    %364 = tpu.matmul %363, %359, %cst_339 {dimension_numbers = #tpu.dot_dimension_numbers<[1], [0], [0], [1], [0, 0, 1, 1], [], []>} : vector<64x32xbf16>, vector<32x16xbf16>, vector<64x16xf32> -> vector<64x16xf32>
    %365 = arith.addf %356, %364 : vector<64x16xf32>
    %c2_340 = arith.constant 2 : index
    %c1_341 = arith.constant 1 : index
    %c0_342 = arith.constant 0 : index
    %366 = vector.load %arg12[%c2_340, %c1_341, %c0_342] : memref<10x10x32xf32, #tpu.memory_space<vmem>>, vector<8x8x32xf32>
    %c11 = arith.constant 11 : index
    %c0_343 = arith.constant 0 : index
    %c0_344 = arith.constant 0 : index
    %367 = vector.load %arg6[%c11, %c0_343, %c0_344] : memref<16x32x16xbf16, #tpu.memory_space<vmem>>, vector<1x32x16xbf16>
    %368 = vector.shape_cast %367 : vector<1x32x16xbf16> to vector<32x16xbf16>
    %cst_345 = arith.constant 0.000000e+00 : f32
    %369 = vector.broadcast %cst_345 : f32 to vector<8x8x32xf32>
    %370 = arith.maximumf %366, %369 : vector<8x8x32xf32>
    %371 = vector.shape_cast %370 : vector<8x8x32xf32> to vector<64x32xf32>
    %372 = arith.truncf %371 : vector<64x32xf32> to vector<64x32xbf16>
    %cst_346 = arith.constant dense<0.000000e+00> : vector<64x16xf32>
    %373 = tpu.matmul %372, %368, %cst_346 {dimension_numbers = #tpu.dot_dimension_numbers<[1], [0], [0], [1], [0, 0, 1, 1], [], []>} : vector<64x32xbf16>, vector<32x16xbf16>, vector<64x16xf32> -> vector<64x16xf32>
    %374 = arith.addf %365, %373 : vector<64x16xf32>
    %c0_347 = arith.constant 0 : index
    %c0_348 = arith.constant 0 : index
    %375 = vector.load %arg7[%c0_347, %c0_348] : memref<1x16xf32, #tpu.memory_space<vmem>>, vector<1x16xf32>
    %376 = vector.broadcast %375 : vector<1x16xf32> to vector<64x16xf32>
    %377 = arith.addf %374, %376 : vector<64x16xf32>
    %378 = vector.shape_cast %377 : vector<64x16xf32> to vector<8x8x16xf32>
    %c2_349 = arith.constant 2 : index
    %c1_350 = arith.constant 1 : index
    %c1_351 = arith.constant 1 : index
    %c0_352 = arith.constant 0 : index
    %379 = vector.load %arg13[%c2_349, %c1_350, %c1_351, %c0_352] : memref<4x10x10x16xf32, #tpu.memory_space<vmem>>, vector<1x8x8x16xf32>
    %380 = vector.shape_cast %379 : vector<1x8x8x16xf32> to vector<8x8x16xf32>
    %381 = vector.shape_cast %378 : vector<8x8x16xf32> to vector<1x8x8x16xf32>
    tpu.vector_store %arg13[%c2_349, %c1_350, %c1_351, %c0_352], %381 {strides = array<i32>} : memref<4x10x10x16xf32, #tpu.memory_space<vmem>>, vector<1x8x8x16xf32>,
    %c1_353 = arith.constant 1 : index
    %c1_354 = arith.constant 1 : index
    %c0_355 = arith.constant 0 : index
    %382 = vector.load %arg12[%c1_353, %c1_354, %c0_355] : memref<10x10x32xf32, #tpu.memory_space<vmem>>, vector<8x8x32xf32>
    %c12 = arith.constant 12 : index
    %c0_356 = arith.constant 0 : index
    %c0_357 = arith.constant 0 : index
    %383 = vector.load %arg6[%c12, %c0_356, %c0_357] : memref<16x32x16xbf16, #tpu.memory_space<vmem>>, vector<1x32x16xbf16>
    %384 = vector.shape_cast %383 : vector<1x32x16xbf16> to vector<32x16xbf16>
    %cst_358 = arith.constant 0.000000e+00 : f32
    %385 = vector.broadcast %cst_358 : f32 to vector<8x8x32xf32>
    %386 = arith.maximumf %382, %385 : vector<8x8x32xf32>
    %387 = vector.shape_cast %386 : vector<8x8x32xf32> to vector<64x32xf32>
    %388 = arith.truncf %387 : vector<64x32xf32> to vector<64x32xbf16>
    %cst_359 = arith.constant dense<0.000000e+00> : vector<64x16xf32>
    %389 = tpu.matmul %388, %384, %cst_359 {dimension_numbers = #tpu.dot_dimension_numbers<[1], [0], [0], [1], [0, 0, 1, 1], [], []>} : vector<64x32xbf16>, vector<32x16xbf16>, vector<64x16xf32> -> vector<64x16xf32>
    %c1_360 = arith.constant 1 : index
    %c2_361 = arith.constant 2 : index
    %c0_362 = arith.constant 0 : index
    %390 = vector.load %arg12[%c1_360, %c2_361, %c0_362] : memref<10x10x32xf32, #tpu.memory_space<vmem>>, vector<8x8x32xf32>
    %c13 = arith.constant 13 : index
    %c0_363 = arith.constant 0 : index
    %c0_364 = arith.constant 0 : index
    %391 = vector.load %arg6[%c13, %c0_363, %c0_364] : memref<16x32x16xbf16, #tpu.memory_space<vmem>>, vector<1x32x16xbf16>
    %392 = vector.shape_cast %391 : vector<1x32x16xbf16> to vector<32x16xbf16>
    %cst_365 = arith.constant 0.000000e+00 : f32
    %393 = vector.broadcast %cst_365 : f32 to vector<8x8x32xf32>
    %394 = arith.maximumf %390, %393 : vector<8x8x32xf32>
    %395 = vector.shape_cast %394 : vector<8x8x32xf32> to vector<64x32xf32>
    %396 = arith.truncf %395 : vector<64x32xf32> to vector<64x32xbf16>
    %cst_366 = arith.constant dense<0.000000e+00> : vector<64x16xf32>
    %397 = tpu.matmul %396, %392, %cst_366 {dimension_numbers = #tpu.dot_dimension_numbers<[1], [0], [0], [1], [0, 0, 1, 1], [], []>} : vector<64x32xbf16>, vector<32x16xbf16>, vector<64x16xf32> -> vector<64x16xf32>
    %398 = arith.addf %389, %397 : vector<64x16xf32>
    %c2_367 = arith.constant 2 : index
    %c1_368 = arith.constant 1 : index
    %c0_369 = arith.constant 0 : index
    %399 = vector.load %arg12[%c2_367, %c1_368, %c0_369] : memref<10x10x32xf32, #tpu.memory_space<vmem>>, vector<8x8x32xf32>
    %c14 = arith.constant 14 : index
    %c0_370 = arith.constant 0 : index
    %c0_371 = arith.constant 0 : index
    %400 = vector.load %arg6[%c14, %c0_370, %c0_371] : memref<16x32x16xbf16, #tpu.memory_space<vmem>>, vector<1x32x16xbf16>
    %401 = vector.shape_cast %400 : vector<1x32x16xbf16> to vector<32x16xbf16>
    %cst_372 = arith.constant 0.000000e+00 : f32
    %402 = vector.broadcast %cst_372 : f32 to vector<8x8x32xf32>
    %403 = arith.maximumf %399, %402 : vector<8x8x32xf32>
    %404 = vector.shape_cast %403 : vector<8x8x32xf32> to vector<64x32xf32>
    %405 = arith.truncf %404 : vector<64x32xf32> to vector<64x32xbf16>
    %cst_373 = arith.constant dense<0.000000e+00> : vector<64x16xf32>
    %406 = tpu.matmul %405, %401, %cst_373 {dimension_numbers = #tpu.dot_dimension_numbers<[1], [0], [0], [1], [0, 0, 1, 1], [], []>} : vector<64x32xbf16>, vector<32x16xbf16>, vector<64x16xf32> -> vector<64x16xf32>
    %407 = arith.addf %398, %406 : vector<64x16xf32>
    %c2_374 = arith.constant 2 : index
    %c2_375 = arith.constant 2 : index
    %c0_376 = arith.constant 0 : index
    %408 = vector.load %arg12[%c2_374, %c2_375, %c0_376] : memref<10x10x32xf32, #tpu.memory_space<vmem>>, vector<8x8x32xf32>
    %c15 = arith.constant 15 : index
    %c0_377 = arith.constant 0 : index
    %c0_378 = arith.constant 0 : index
    %409 = vector.load %arg6[%c15, %c0_377, %c0_378] : memref<16x32x16xbf16, #tpu.memory_space<vmem>>, vector<1x32x16xbf16>
    %410 = vector.shape_cast %409 : vector<1x32x16xbf16> to vector<32x16xbf16>
    %cst_379 = arith.constant 0.000000e+00 : f32
    %411 = vector.broadcast %cst_379 : f32 to vector<8x8x32xf32>
    %412 = arith.maximumf %408, %411 : vector<8x8x32xf32>
    %413 = vector.shape_cast %412 : vector<8x8x32xf32> to vector<64x32xf32>
    %414 = arith.truncf %413 : vector<64x32xf32> to vector<64x32xbf16>
    %cst_380 = arith.constant dense<0.000000e+00> : vector<64x16xf32>
    %415 = tpu.matmul %414, %410, %cst_380 {dimension_numbers = #tpu.dot_dimension_numbers<[1], [0], [0], [1], [0, 0, 1, 1], [], []>} : vector<64x32xbf16>, vector<32x16xbf16>, vector<64x16xf32> -> vector<64x16xf32>
    %416 = arith.addf %407, %415 : vector<64x16xf32>
    %c0_381 = arith.constant 0 : index
    %c0_382 = arith.constant 0 : index
    %417 = vector.load %arg7[%c0_381, %c0_382] : memref<1x16xf32, #tpu.memory_space<vmem>>, vector<1x16xf32>
    %418 = vector.broadcast %417 : vector<1x16xf32> to vector<64x16xf32>
    %419 = arith.addf %416, %418 : vector<64x16xf32>
    %420 = vector.shape_cast %419 : vector<64x16xf32> to vector<8x8x16xf32>
    %c3_383 = arith.constant 3 : index
    %c1_384 = arith.constant 1 : index
    %c1_385 = arith.constant 1 : index
    %c0_386 = arith.constant 0 : index
    %421 = vector.load %arg13[%c3_383, %c1_384, %c1_385, %c0_386] : memref<4x10x10x16xf32, #tpu.memory_space<vmem>>, vector<1x8x8x16xf32>
    %422 = vector.shape_cast %421 : vector<1x8x8x16xf32> to vector<8x8x16xf32>
    %423 = vector.shape_cast %420 : vector<8x8x16xf32> to vector<1x8x8x16xf32>
    tpu.vector_store %arg13[%c3_383, %c1_384, %c1_385, %c0_386], %423 {strides = array<i32>} : memref<4x10x10x16xf32, #tpu.memory_space<vmem>>, vector<1x8x8x16xf32>,
    %c3_387 = arith.constant 3 : index
    %c0_388 = arith.constant 0 : index
    %c0_389 = arith.constant 0 : index
    %c0_390 = arith.constant 0 : index
    %424 = vector.load %arg13[%c3_387, %c0_388, %c0_389, %c0_390] : memref<4x10x10x16xf32, #tpu.memory_space<vmem>>, vector<1x8x8x16xf32>
    %425 = vector.shape_cast %424 : vector<1x8x8x16xf32> to vector<8x8x16xf32>
    %c0_391 = arith.constant 0 : index
    %c0_392 = arith.constant 0 : index
    %c0_393 = arith.constant 0 : index
    %426 = vector.load %arg8[%c0_391, %c0_392, %c0_393] : memref<9x16x128xbf16, #tpu.memory_space<vmem>>, vector<1x16x128xbf16>
    %427 = vector.shape_cast %426 : vector<1x16x128xbf16> to vector<16x128xbf16>
    %428 = vector.shape_cast %425 : vector<8x8x16xf32> to vector<64x16xf32>
    %429 = arith.truncf %428 : vector<64x16xf32> to vector<64x16xbf16>
    %cst_394 = arith.constant dense<0.000000e+00> : vector<64x128xf32>
    %430 = tpu.matmul %429, %427, %cst_394 {dimension_numbers = #tpu.dot_dimension_numbers<[1], [0], [0], [1], [0, 0, 1, 1], [], []>} : vector<64x16xbf16>, vector<16x128xbf16>, vector<64x128xf32> -> vector<64x128xf32>
    %c2_395 = arith.constant 2 : index
    %c0_396 = arith.constant 0 : index
    %c1_397 = arith.constant 1 : index
    %c0_398 = arith.constant 0 : index
    %431 = vector.load %arg13[%c2_395, %c0_396, %c1_397, %c0_398] : memref<4x10x10x16xf32, #tpu.memory_space<vmem>>, vector<1x8x8x16xf32>
    %432 = vector.shape_cast %431 : vector<1x8x8x16xf32> to vector<8x8x16xf32>
    %c1_399 = arith.constant 1 : index
    %c0_400 = arith.constant 0 : index
    %c0_401 = arith.constant 0 : index
    %433 = vector.load %arg8[%c1_399, %c0_400, %c0_401] : memref<9x16x128xbf16, #tpu.memory_space<vmem>>, vector<1x16x128xbf16>
    %434 = vector.shape_cast %433 : vector<1x16x128xbf16> to vector<16x128xbf16>
    %435 = vector.shape_cast %432 : vector<8x8x16xf32> to vector<64x16xf32>
    %436 = arith.truncf %435 : vector<64x16xf32> to vector<64x16xbf16>
    %cst_402 = arith.constant dense<0.000000e+00> : vector<64x128xf32>
    %437 = tpu.matmul %436, %434, %cst_402 {dimension_numbers = #tpu.dot_dimension_numbers<[1], [0], [0], [1], [0, 0, 1, 1], [], []>} : vector<64x16xbf16>, vector<16x128xbf16>, vector<64x128xf32> -> vector<64x128xf32>
    %438 = arith.addf %430, %437 : vector<64x128xf32>
    %c3_403 = arith.constant 3 : index
    %c0_404 = arith.constant 0 : index
    %c1_405 = arith.constant 1 : index
    %c0_406 = arith.constant 0 : index
    %439 = vector.load %arg13[%c3_403, %c0_404, %c1_405, %c0_406] : memref<4x10x10x16xf32, #tpu.memory_space<vmem>>, vector<1x8x8x16xf32>
    %440 = vector.shape_cast %439 : vector<1x8x8x16xf32> to vector<8x8x16xf32>
    %c2_407 = arith.constant 2 : index
    %c0_408 = arith.constant 0 : index
    %c0_409 = arith.constant 0 : index
    %441 = vector.load %arg8[%c2_407, %c0_408, %c0_409] : memref<9x16x128xbf16, #tpu.memory_space<vmem>>, vector<1x16x128xbf16>
    %442 = vector.shape_cast %441 : vector<1x16x128xbf16> to vector<16x128xbf16>
    %443 = vector.shape_cast %440 : vector<8x8x16xf32> to vector<64x16xf32>
    %444 = arith.truncf %443 : vector<64x16xf32> to vector<64x16xbf16>
    %cst_410 = arith.constant dense<0.000000e+00> : vector<64x128xf32>
    %445 = tpu.matmul %444, %442, %cst_410 {dimension_numbers = #tpu.dot_dimension_numbers<[1], [0], [0], [1], [0, 0, 1, 1], [], []>} : vector<64x16xbf16>, vector<16x128xbf16>, vector<64x128xf32> -> vector<64x128xf32>
    %446 = arith.addf %438, %445 : vector<64x128xf32>
    %c1_411 = arith.constant 1 : index
    %c1_412 = arith.constant 1 : index
    %c0_413 = arith.constant 0 : index
    %c0_414 = arith.constant 0 : index
    %447 = vector.load %arg13[%c1_411, %c1_412, %c0_413, %c0_414] : memref<4x10x10x16xf32, #tpu.memory_space<vmem>>, vector<1x8x8x16xf32>
    %448 = vector.shape_cast %447 : vector<1x8x8x16xf32> to vector<8x8x16xf32>
    %c3_415 = arith.constant 3 : index
    %c0_416 = arith.constant 0 : index
    %c0_417 = arith.constant 0 : index
    %449 = vector.load %arg8[%c3_415, %c0_416, %c0_417] : memref<9x16x128xbf16, #tpu.memory_space<vmem>>, vector<1x16x128xbf16>
    %450 = vector.shape_cast %449 : vector<1x16x128xbf16> to vector<16x128xbf16>
    %451 = vector.shape_cast %448 : vector<8x8x16xf32> to vector<64x16xf32>
    %452 = arith.truncf %451 : vector<64x16xf32> to vector<64x16xbf16>
    %cst_418 = arith.constant dense<0.000000e+00> : vector<64x128xf32>
    %453 = tpu.matmul %452, %450, %cst_418 {dimension_numbers = #tpu.dot_dimension_numbers<[1], [0], [0], [1], [0, 0, 1, 1], [], []>} : vector<64x16xbf16>, vector<16x128xbf16>, vector<64x128xf32> -> vector<64x128xf32>
    %454 = arith.addf %446, %453 : vector<64x128xf32>
    %c0_419 = arith.constant 0 : index
    %c1_420 = arith.constant 1 : index
    %c1_421 = arith.constant 1 : index
    %c0_422 = arith.constant 0 : index
    %455 = vector.load %arg13[%c0_419, %c1_420, %c1_421, %c0_422] : memref<4x10x10x16xf32, #tpu.memory_space<vmem>>, vector<1x8x8x16xf32>
    %456 = vector.shape_cast %455 : vector<1x8x8x16xf32> to vector<8x8x16xf32>
    %c4_423 = arith.constant 4 : index
    %c0_424 = arith.constant 0 : index
    %c0_425 = arith.constant 0 : index
    %457 = vector.load %arg8[%c4_423, %c0_424, %c0_425] : memref<9x16x128xbf16, #tpu.memory_space<vmem>>, vector<1x16x128xbf16>
    %458 = vector.shape_cast %457 : vector<1x16x128xbf16> to vector<16x128xbf16>
    %459 = vector.shape_cast %456 : vector<8x8x16xf32> to vector<64x16xf32>
    %460 = arith.truncf %459 : vector<64x16xf32> to vector<64x16xbf16>
    %cst_426 = arith.constant dense<0.000000e+00> : vector<64x128xf32>
    %461 = tpu.matmul %460, %458, %cst_426 {dimension_numbers = #tpu.dot_dimension_numbers<[1], [0], [0], [1], [0, 0, 1, 1], [], []>} : vector<64x16xbf16>, vector<16x128xbf16>, vector<64x128xf32> -> vector<64x128xf32>
    %462 = arith.addf %454, %461 : vector<64x128xf32>
    %c1_427 = arith.constant 1 : index
    %c1_428 = arith.constant 1 : index
    %c1_429 = arith.constant 1 : index
    %c0_430 = arith.constant 0 : index
    %463 = vector.load %arg13[%c1_427, %c1_428, %c1_429, %c0_430] : memref<4x10x10x16xf32, #tpu.memory_space<vmem>>, vector<1x8x8x16xf32>
    %464 = vector.shape_cast %463 : vector<1x8x8x16xf32> to vector<8x8x16xf32>
    %c5_431 = arith.constant 5 : index
    %c0_432 = arith.constant 0 : index
    %c0_433 = arith.constant 0 : index
    %465 = vector.load %arg8[%c5_431, %c0_432, %c0_433] : memref<9x16x128xbf16, #tpu.memory_space<vmem>>, vector<1x16x128xbf16>
    %466 = vector.shape_cast %465 : vector<1x16x128xbf16> to vector<16x128xbf16>
    %467 = vector.shape_cast %464 : vector<8x8x16xf32> to vector<64x16xf32>
    %468 = arith.truncf %467 : vector<64x16xf32> to vector<64x16xbf16>
    %cst_434 = arith.constant dense<0.000000e+00> : vector<64x128xf32>
    %469 = tpu.matmul %468, %466, %cst_434 {dimension_numbers = #tpu.dot_dimension_numbers<[1], [0], [0], [1], [0, 0, 1, 1], [], []>} : vector<64x16xbf16>, vector<16x128xbf16>, vector<64x128xf32> -> vector<64x128xf32>
    %470 = arith.addf %462, %469 : vector<64x128xf32>
    %c3_435 = arith.constant 3 : index
    %c1_436 = arith.constant 1 : index
    %c0_437 = arith.constant 0 : index
    %c0_438 = arith.constant 0 : index
    %471 = vector.load %arg13[%c3_435, %c1_436, %c0_437, %c0_438] : memref<4x10x10x16xf32, #tpu.memory_space<vmem>>, vector<1x8x8x16xf32>
    %472 = vector.shape_cast %471 : vector<1x8x8x16xf32> to vector<8x8x16xf32>
    %c6_439 = arith.constant 6 : index
    %c0_440 = arith.constant 0 : index
    %c0_441 = arith.constant 0 : index
    %473 = vector.load %arg8[%c6_439, %c0_440, %c0_441] : memref<9x16x128xbf16, #tpu.memory_space<vmem>>, vector<1x16x128xbf16>
    %474 = vector.shape_cast %473 : vector<1x16x128xbf16> to vector<16x128xbf16>
    %475 = vector.shape_cast %472 : vector<8x8x16xf32> to vector<64x16xf32>
    %476 = arith.truncf %475 : vector<64x16xf32> to vector<64x16xbf16>
    %cst_442 = arith.constant dense<0.000000e+00> : vector<64x128xf32>
    %477 = tpu.matmul %476, %474, %cst_442 {dimension_numbers = #tpu.dot_dimension_numbers<[1], [0], [0], [1], [0, 0, 1, 1], [], []>} : vector<64x16xbf16>, vector<16x128xbf16>, vector<64x128xf32> -> vector<64x128xf32>
    %478 = arith.addf %470, %477 : vector<64x128xf32>
    %c2_443 = arith.constant 2 : index
    %c1_444 = arith.constant 1 : index
    %c1_445 = arith.constant 1 : index
    %c0_446 = arith.constant 0 : index
    %479 = vector.load %arg13[%c2_443, %c1_444, %c1_445, %c0_446] : memref<4x10x10x16xf32, #tpu.memory_space<vmem>>, vector<1x8x8x16xf32>
    %480 = vector.shape_cast %479 : vector<1x8x8x16xf32> to vector<8x8x16xf32>
    %c7_447 = arith.constant 7 : index
    %c0_448 = arith.constant 0 : index
    %c0_449 = arith.constant 0 : index
    %481 = vector.load %arg8[%c7_447, %c0_448, %c0_449] : memref<9x16x128xbf16, #tpu.memory_space<vmem>>, vector<1x16x128xbf16>
    %482 = vector.shape_cast %481 : vector<1x16x128xbf16> to vector<16x128xbf16>
    %483 = vector.shape_cast %480 : vector<8x8x16xf32> to vector<64x16xf32>
    %484 = arith.truncf %483 : vector<64x16xf32> to vector<64x16xbf16>
    %cst_450 = arith.constant dense<0.000000e+00> : vector<64x128xf32>
    %485 = tpu.matmul %484, %482, %cst_450 {dimension_numbers = #tpu.dot_dimension_numbers<[1], [0], [0], [1], [0, 0, 1, 1], [], []>} : vector<64x16xbf16>, vector<16x128xbf16>, vector<64x128xf32> -> vector<64x128xf32>
    %486 = arith.addf %478, %485 : vector<64x128xf32>
    %c3_451 = arith.constant 3 : index
    %c1_452 = arith.constant 1 : index
    %c1_453 = arith.constant 1 : index
    %c0_454 = arith.constant 0 : index
    %487 = vector.load %arg13[%c3_451, %c1_452, %c1_453, %c0_454] : memref<4x10x10x16xf32, #tpu.memory_space<vmem>>, vector<1x8x8x16xf32>
    %488 = vector.shape_cast %487 : vector<1x8x8x16xf32> to vector<8x8x16xf32>
    %c8_455 = arith.constant 8 : index
    %c0_456 = arith.constant 0 : index
    %c0_457 = arith.constant 0 : index
    %489 = vector.load %arg8[%c8_455, %c0_456, %c0_457] : memref<9x16x128xbf16, #tpu.memory_space<vmem>>, vector<1x16x128xbf16>
    %490 = vector.shape_cast %489 : vector<1x16x128xbf16> to vector<16x128xbf16>
    %491 = vector.shape_cast %488 : vector<8x8x16xf32> to vector<64x16xf32>
    %492 = arith.truncf %491 : vector<64x16xf32> to vector<64x16xbf16>
    %cst_458 = arith.constant dense<0.000000e+00> : vector<64x128xf32>
    %493 = tpu.matmul %492, %490, %cst_458 {dimension_numbers = #tpu.dot_dimension_numbers<[1], [0], [0], [1], [0, 0, 1, 1], [], []>} : vector<64x16xbf16>, vector<16x128xbf16>, vector<64x128xf32> -> vector<64x128xf32>
    %494 = arith.addf %486, %493 : vector<64x128xf32>
    %c0_459 = arith.constant 0 : index
    %c0_460 = arith.constant 0 : index
    %495 = vector.load %arg9[%c0_459, %c0_460] : memref<1x128xf32, #tpu.memory_space<vmem>>, vector<1x128xf32>
    %496 = vector.broadcast %495 : vector<1x128xf32> to vector<64x128xf32>
    %497 = arith.addf %494, %496 : vector<64x128xf32>
    %cst_461 = arith.constant 0.000000e+00 : f32
    %498 = vector.broadcast %cst_461 : f32 to vector<64x128xf32>
    %499 = arith.subf %498, %497 : vector<64x128xf32>
    %500 = math.exp %499 : vector<64x128xf32>
    %cst_462 = arith.constant 1.000000e+00 : f32
    %501 = vector.broadcast %cst_462 : f32 to vector<64x128xf32>
    %502 = arith.addf %501, %500 : vector<64x128xf32>
    %cst_463 = arith.constant 1.000000e+00 : f32
    %503 = vector.broadcast %cst_463 : f32 to vector<64x128xf32>
    %504 = arith.divf %503, %502 : vector<64x128xf32>
    %505 = vector.shape_cast %504 : vector<64x128xf32> to vector<8x8x128xf32>
    %c0_464 = arith.constant 0 : index
    %c0_465 = arith.constant 0 : index
    %c0_466 = arith.constant 0 : index
    %c0_467 = arith.constant 0 : index
    %c0_468 = arith.constant 0 : index
    %506 = vector.load %arg10[%c0_464, %c0_465, %c0_466, %c0_467, %c0_468] : memref<1x4x8x8x128xf32, #tpu.memory_space<vmem>>, vector<1x1x8x8x128xf32>
    %507 = vector.shape_cast %506 : vector<1x1x8x8x128xf32> to vector<8x8x128xf32>
    %508 = vector.shape_cast %505 : vector<8x8x128xf32> to vector<1x1x8x8x128xf32>
    tpu.vector_store %arg10[%c0_464, %c0_465, %c0_466, %c0_467, %c0_468], %508 {strides = array<i32>} : memref<1x4x8x8x128xf32, #tpu.memory_space<vmem>>, vector<1x1x8x8x128xf32>,
    %c2_469 = arith.constant 2 : index
    %c0_470 = arith.constant 0 : index
    %c1_471 = arith.constant 1 : index
    %c0_472 = arith.constant 0 : index
    %509 = vector.load %arg13[%c2_469, %c0_470, %c1_471, %c0_472] : memref<4x10x10x16xf32, #tpu.memory_space<vmem>>, vector<1x8x8x16xf32>
    %510 = vector.shape_cast %509 : vector<1x8x8x16xf32> to vector<8x8x16xf32>
    %c0_473 = arith.constant 0 : index
    %c0_474 = arith.constant 0 : index
    %c0_475 = arith.constant 0 : index
    %511 = vector.load %arg8[%c0_473, %c0_474, %c0_475] : memref<9x16x128xbf16, #tpu.memory_space<vmem>>, vector<1x16x128xbf16>
    %512 = vector.shape_cast %511 : vector<1x16x128xbf16> to vector<16x128xbf16>
    %513 = vector.shape_cast %510 : vector<8x8x16xf32> to vector<64x16xf32>
    %514 = arith.truncf %513 : vector<64x16xf32> to vector<64x16xbf16>
    %cst_476 = arith.constant dense<0.000000e+00> : vector<64x128xf32>
    %515 = tpu.matmul %514, %512, %cst_476 {dimension_numbers = #tpu.dot_dimension_numbers<[1], [0], [0], [1], [0, 0, 1, 1], [], []>} : vector<64x16xbf16>, vector<16x128xbf16>, vector<64x128xf32> -> vector<64x128xf32>
    %c3_477 = arith.constant 3 : index
    %c0_478 = arith.constant 0 : index
    %c1_479 = arith.constant 1 : index
    %c0_480 = arith.constant 0 : index
    %516 = vector.load %arg13[%c3_477, %c0_478, %c1_479, %c0_480] : memref<4x10x10x16xf32, #tpu.memory_space<vmem>>, vector<1x8x8x16xf32>
    %517 = vector.shape_cast %516 : vector<1x8x8x16xf32> to vector<8x8x16xf32>
    %c1_481 = arith.constant 1 : index
    %c0_482 = arith.constant 0 : index
    %c0_483 = arith.constant 0 : index
    %518 = vector.load %arg8[%c1_481, %c0_482, %c0_483] : memref<9x16x128xbf16, #tpu.memory_space<vmem>>, vector<1x16x128xbf16>
    %519 = vector.shape_cast %518 : vector<1x16x128xbf16> to vector<16x128xbf16>
    %520 = vector.shape_cast %517 : vector<8x8x16xf32> to vector<64x16xf32>
    %521 = arith.truncf %520 : vector<64x16xf32> to vector<64x16xbf16>
    %cst_484 = arith.constant dense<0.000000e+00> : vector<64x128xf32>
    %522 = tpu.matmul %521, %519, %cst_484 {dimension_numbers = #tpu.dot_dimension_numbers<[1], [0], [0], [1], [0, 0, 1, 1], [], []>} : vector<64x16xbf16>, vector<16x128xbf16>, vector<64x128xf32> -> vector<64x128xf32>
    %523 = arith.addf %515, %522 : vector<64x128xf32>
    %c2_485 = arith.constant 2 : index
    %c0_486 = arith.constant 0 : index
    %c2_487 = arith.constant 2 : index
    %c0_488 = arith.constant 0 : index
    %524 = vector.load %arg13[%c2_485, %c0_486, %c2_487, %c0_488] : memref<4x10x10x16xf32, #tpu.memory_space<vmem>>, vector<1x8x8x16xf32>
    %525 = vector.shape_cast %524 : vector<1x8x8x16xf32> to vector<8x8x16xf32>
    %c2_489 = arith.constant 2 : index
    %c0_490 = arith.constant 0 : index
    %c0_491 = arith.constant 0 : index
    %526 = vector.load %arg8[%c2_489, %c0_490, %c0_491] : memref<9x16x128xbf16, #tpu.memory_space<vmem>>, vector<1x16x128xbf16>
    %527 = vector.shape_cast %526 : vector<1x16x128xbf16> to vector<16x128xbf16>
    %528 = vector.shape_cast %525 : vector<8x8x16xf32> to vector<64x16xf32>
    %529 = arith.truncf %528 : vector<64x16xf32> to vector<64x16xbf16>
    %cst_492 = arith.constant dense<0.000000e+00> : vector<64x128xf32>
    %530 = tpu.matmul %529, %527, %cst_492 {dimension_numbers = #tpu.dot_dimension_numbers<[1], [0], [0], [1], [0, 0, 1, 1], [], []>} : vector<64x16xbf16>, vector<16x128xbf16>, vector<64x128xf32> -> vector<64x128xf32>
    %531 = arith.addf %523, %530 : vector<64x128xf32>
    %c0_493 = arith.constant 0 : index
    %c1_494 = arith.constant 1 : index
    %c1_495 = arith.constant 1 : index
    %c0_496 = arith.constant 0 : index
    %532 = vector.load %arg13[%c0_493, %c1_494, %c1_495, %c0_496] : memref<4x10x10x16xf32, #tpu.memory_space<vmem>>, vector<1x8x8x16xf32>
    %533 = vector.shape_cast %532 : vector<1x8x8x16xf32> to vector<8x8x16xf32>
    %c3_497 = arith.constant 3 : index
    %c0_498 = arith.constant 0 : index
    %c0_499 = arith.constant 0 : index
    %534 = vector.load %arg8[%c3_497, %c0_498, %c0_499] : memref<9x16x128xbf16, #tpu.memory_space<vmem>>, vector<1x16x128xbf16>
    %535 = vector.shape_cast %534 : vector<1x16x128xbf16> to vector<16x128xbf16>
    %536 = vector.shape_cast %533 : vector<8x8x16xf32> to vector<64x16xf32>
    %537 = arith.truncf %536 : vector<64x16xf32> to vector<64x16xbf16>
    %cst_500 = arith.constant dense<0.000000e+00> : vector<64x128xf32>
    %538 = tpu.matmul %537, %535, %cst_500 {dimension_numbers = #tpu.dot_dimension_numbers<[1], [0], [0], [1], [0, 0, 1, 1], [], []>} : vector<64x16xbf16>, vector<16x128xbf16>, vector<64x128xf32> -> vector<64x128xf32>
    %539 = arith.addf %531, %538 : vector<64x128xf32>
    %c1_501 = arith.constant 1 : index
    %c1_502 = arith.constant 1 : index
    %c1_503 = arith.constant 1 : index
    %c0_504 = arith.constant 0 : index
    %540 = vector.load %arg13[%c1_501, %c1_502, %c1_503, %c0_504] : memref<4x10x10x16xf32, #tpu.memory_space<vmem>>, vector<1x8x8x16xf32>
    %541 = vector.shape_cast %540 : vector<1x8x8x16xf32> to vector<8x8x16xf32>
    %c4_505 = arith.constant 4 : index
    %c0_506 = arith.constant 0 : index
    %c0_507 = arith.constant 0 : index
    %542 = vector.load %arg8[%c4_505, %c0_506, %c0_507] : memref<9x16x128xbf16, #tpu.memory_space<vmem>>, vector<1x16x128xbf16>
    %543 = vector.shape_cast %542 : vector<1x16x128xbf16> to vector<16x128xbf16>
    %544 = vector.shape_cast %541 : vector<8x8x16xf32> to vector<64x16xf32>
    %545 = arith.truncf %544 : vector<64x16xf32> to vector<64x16xbf16>
    %cst_508 = arith.constant dense<0.000000e+00> : vector<64x128xf32>
    %546 = tpu.matmul %545, %543, %cst_508 {dimension_numbers = #tpu.dot_dimension_numbers<[1], [0], [0], [1], [0, 0, 1, 1], [], []>} : vector<64x16xbf16>, vector<16x128xbf16>, vector<64x128xf32> -> vector<64x128xf32>
    %547 = arith.addf %539, %546 : vector<64x128xf32>
    %c0_509 = arith.constant 0 : index
    %c1_510 = arith.constant 1 : index
    %c2_511 = arith.constant 2 : index
    %c0_512 = arith.constant 0 : index
    %548 = vector.load %arg13[%c0_509, %c1_510, %c2_511, %c0_512] : memref<4x10x10x16xf32, #tpu.memory_space<vmem>>, vector<1x8x8x16xf32>
    %549 = vector.shape_cast %548 : vector<1x8x8x16xf32> to vector<8x8x16xf32>
    %c5_513 = arith.constant 5 : index
    %c0_514 = arith.constant 0 : index
    %c0_515 = arith.constant 0 : index
    %550 = vector.load %arg8[%c5_513, %c0_514, %c0_515] : memref<9x16x128xbf16, #tpu.memory_space<vmem>>, vector<1x16x128xbf16>
    %551 = vector.shape_cast %550 : vector<1x16x128xbf16> to vector<16x128xbf16>
    %552 = vector.shape_cast %549 : vector<8x8x16xf32> to vector<64x16xf32>
    %553 = arith.truncf %552 : vector<64x16xf32> to vector<64x16xbf16>
    %cst_516 = arith.constant dense<0.000000e+00> : vector<64x128xf32>
    %554 = tpu.matmul %553, %551, %cst_516 {dimension_numbers = #tpu.dot_dimension_numbers<[1], [0], [0], [1], [0, 0, 1, 1], [], []>} : vector<64x16xbf16>, vector<16x128xbf16>, vector<64x128xf32> -> vector<64x128xf32>
    %555 = arith.addf %547, %554 : vector<64x128xf32>
    %c2_517 = arith.constant 2 : index
    %c1_518 = arith.constant 1 : index
    %c1_519 = arith.constant 1 : index
    %c0_520 = arith.constant 0 : index
    %556 = vector.load %arg13[%c2_517, %c1_518, %c1_519, %c0_520] : memref<4x10x10x16xf32, #tpu.memory_space<vmem>>, vector<1x8x8x16xf32>
    %557 = vector.shape_cast %556 : vector<1x8x8x16xf32> to vector<8x8x16xf32>
    %c6_521 = arith.constant 6 : index
    %c0_522 = arith.constant 0 : index
    %c0_523 = arith.constant 0 : index
    %558 = vector.load %arg8[%c6_521, %c0_522, %c0_523] : memref<9x16x128xbf16, #tpu.memory_space<vmem>>, vector<1x16x128xbf16>
    %559 = vector.shape_cast %558 : vector<1x16x128xbf16> to vector<16x128xbf16>
    %560 = vector.shape_cast %557 : vector<8x8x16xf32> to vector<64x16xf32>
    %561 = arith.truncf %560 : vector<64x16xf32> to vector<64x16xbf16>
    %cst_524 = arith.constant dense<0.000000e+00> : vector<64x128xf32>
    %562 = tpu.matmul %561, %559, %cst_524 {dimension_numbers = #tpu.dot_dimension_numbers<[1], [0], [0], [1], [0, 0, 1, 1], [], []>} : vector<64x16xbf16>, vector<16x128xbf16>, vector<64x128xf32> -> vector<64x128xf32>
    %563 = arith.addf %555, %562 : vector<64x128xf32>
    %c3_525 = arith.constant 3 : index
    %c1_526 = arith.constant 1 : index
    %c1_527 = arith.constant 1 : index
    %c0_528 = arith.constant 0 : index
    %564 = vector.load %arg13[%c3_525, %c1_526, %c1_527, %c0_528] : memref<4x10x10x16xf32, #tpu.memory_space<vmem>>, vector<1x8x8x16xf32>
    %565 = vector.shape_cast %564 : vector<1x8x8x16xf32> to vector<8x8x16xf32>
    %c7_529 = arith.constant 7 : index
    %c0_530 = arith.constant 0 : index
    %c0_531 = arith.constant 0 : index
    %566 = vector.load %arg8[%c7_529, %c0_530, %c0_531] : memref<9x16x128xbf16, #tpu.memory_space<vmem>>, vector<1x16x128xbf16>
    %567 = vector.shape_cast %566 : vector<1x16x128xbf16> to vector<16x128xbf16>
    %568 = vector.shape_cast %565 : vector<8x8x16xf32> to vector<64x16xf32>
    %569 = arith.truncf %568 : vector<64x16xf32> to vector<64x16xbf16>
    %cst_532 = arith.constant dense<0.000000e+00> : vector<64x128xf32>
    %570 = tpu.matmul %569, %567, %cst_532 {dimension_numbers = #tpu.dot_dimension_numbers<[1], [0], [0], [1], [0, 0, 1, 1], [], []>} : vector<64x16xbf16>, vector<16x128xbf16>, vector<64x128xf32> -> vector<64x128xf32>
    %571 = arith.addf %563, %570 : vector<64x128xf32>
    %c2_533 = arith.constant 2 : index
    %c1_534 = arith.constant 1 : index
    %c2_535 = arith.constant 2 : index
    %c0_536 = arith.constant 0 : index
    %572 = vector.load %arg13[%c2_533, %c1_534, %c2_535, %c0_536] : memref<4x10x10x16xf32, #tpu.memory_space<vmem>>, vector<1x8x8x16xf32>
    %573 = vector.shape_cast %572 : vector<1x8x8x16xf32> to vector<8x8x16xf32>
    %c8_537 = arith.constant 8 : index
    %c0_538 = arith.constant 0 : index
    %c0_539 = arith.constant 0 : index
    %574 = vector.load %arg8[%c8_537, %c0_538, %c0_539] : memref<9x16x128xbf16, #tpu.memory_space<vmem>>, vector<1x16x128xbf16>
    %575 = vector.shape_cast %574 : vector<1x16x128xbf16> to vector<16x128xbf16>
    %576 = vector.shape_cast %573 : vector<8x8x16xf32> to vector<64x16xf32>
    %577 = arith.truncf %576 : vector<64x16xf32> to vector<64x16xbf16>
    %cst_540 = arith.constant dense<0.000000e+00> : vector<64x128xf32>
    %578 = tpu.matmul %577, %575, %cst_540 {dimension_numbers = #tpu.dot_dimension_numbers<[1], [0], [0], [1], [0, 0, 1, 1], [], []>} : vector<64x16xbf16>, vector<16x128xbf16>, vector<64x128xf32> -> vector<64x128xf32>
    %579 = arith.addf %571, %578 : vector<64x128xf32>
    %c0_541 = arith.constant 0 : index
    %c0_542 = arith.constant 0 : index
    %580 = vector.load %arg9[%c0_541, %c0_542] : memref<1x128xf32, #tpu.memory_space<vmem>>, vector<1x128xf32>
    %581 = vector.broadcast %580 : vector<1x128xf32> to vector<64x128xf32>
    %582 = arith.addf %579, %581 : vector<64x128xf32>
    %cst_543 = arith.constant 0.000000e+00 : f32
    %583 = vector.broadcast %cst_543 : f32 to vector<64x128xf32>
    %584 = arith.subf %583, %582 : vector<64x128xf32>
    %585 = math.exp %584 : vector<64x128xf32>
    %cst_544 = arith.constant 1.000000e+00 : f32
    %586 = vector.broadcast %cst_544 : f32 to vector<64x128xf32>
    %587 = arith.addf %586, %585 : vector<64x128xf32>
    %cst_545 = arith.constant 1.000000e+00 : f32
    %588 = vector.broadcast %cst_545 : f32 to vector<64x128xf32>
    %589 = arith.divf %588, %587 : vector<64x128xf32>
    %590 = vector.shape_cast %589 : vector<64x128xf32> to vector<8x8x128xf32>
    %c0_546 = arith.constant 0 : index
    %c1_547 = arith.constant 1 : index
    %c0_548 = arith.constant 0 : index
    %c0_549 = arith.constant 0 : index
    %c0_550 = arith.constant 0 : index
    %591 = vector.load %arg10[%c0_546, %c1_547, %c0_548, %c0_549, %c0_550] : memref<1x4x8x8x128xf32, #tpu.memory_space<vmem>>, vector<1x1x8x8x128xf32>
    %592 = vector.shape_cast %591 : vector<1x1x8x8x128xf32> to vector<8x8x128xf32>
    %593 = vector.shape_cast %590 : vector<8x8x128xf32> to vector<1x1x8x8x128xf32>
    tpu.vector_store %arg10[%c0_546, %c1_547, %c0_548, %c0_549, %c0_550], %593 {strides = array<i32>} : memref<1x4x8x8x128xf32, #tpu.memory_space<vmem>>, vector<1x1x8x8x128xf32>,
    %c1_551 = arith.constant 1 : index
    %c1_552 = arith.constant 1 : index
    %c0_553 = arith.constant 0 : index
    %c0_554 = arith.constant 0 : index
    %594 = vector.load %arg13[%c1_551, %c1_552, %c0_553, %c0_554] : memref<4x10x10x16xf32, #tpu.memory_space<vmem>>, vector<1x8x8x16xf32>
    %595 = vector.shape_cast %594 : vector<1x8x8x16xf32> to vector<8x8x16xf32>
    %c0_555 = arith.constant 0 : index
    %c0_556 = arith.constant 0 : index
    %c0_557 = arith.constant 0 : index
    %596 = vector.load %arg8[%c0_555, %c0_556, %c0_557] : memref<9x16x128xbf16, #tpu.memory_space<vmem>>, vector<1x16x128xbf16>
    %597 = vector.shape_cast %596 : vector<1x16x128xbf16> to vector<16x128xbf16>
    %598 = vector.shape_cast %595 : vector<8x8x16xf32> to vector<64x16xf32>
    %599 = arith.truncf %598 : vector<64x16xf32> to vector<64x16xbf16>
    %cst_558 = arith.constant dense<0.000000e+00> : vector<64x128xf32>
    %600 = tpu.matmul %599, %597, %cst_558 {dimension_numbers = #tpu.dot_dimension_numbers<[1], [0], [0], [1], [0, 0, 1, 1], [], []>} : vector<64x16xbf16>, vector<16x128xbf16>, vector<64x128xf32> -> vector<64x128xf32>
    %c0_559 = arith.constant 0 : index
    %c1_560 = arith.constant 1 : index
    %c1_561 = arith.constant 1 : index
    %c0_562 = arith.constant 0 : index
    %601 = vector.load %arg13[%c0_559, %c1_560, %c1_561, %c0_562] : memref<4x10x10x16xf32, #tpu.memory_space<vmem>>, vector<1x8x8x16xf32>
    %602 = vector.shape_cast %601 : vector<1x8x8x16xf32> to vector<8x8x16xf32>
    %c1_563 = arith.constant 1 : index
    %c0_564 = arith.constant 0 : index
    %c0_565 = arith.constant 0 : index
    %603 = vector.load %arg8[%c1_563, %c0_564, %c0_565] : memref<9x16x128xbf16, #tpu.memory_space<vmem>>, vector<1x16x128xbf16>
    %604 = vector.shape_cast %603 : vector<1x16x128xbf16> to vector<16x128xbf16>
    %605 = vector.shape_cast %602 : vector<8x8x16xf32> to vector<64x16xf32>
    %606 = arith.truncf %605 : vector<64x16xf32> to vector<64x16xbf16>
    %cst_566 = arith.constant dense<0.000000e+00> : vector<64x128xf32>
    %607 = tpu.matmul %606, %604, %cst_566 {dimension_numbers = #tpu.dot_dimension_numbers<[1], [0], [0], [1], [0, 0, 1, 1], [], []>} : vector<64x16xbf16>, vector<16x128xbf16>, vector<64x128xf32> -> vector<64x128xf32>
    %608 = arith.addf %600, %607 : vector<64x128xf32>
    %c1_567 = arith.constant 1 : index
    %c1_568 = arith.constant 1 : index
    %c1_569 = arith.constant 1 : index
    %c0_570 = arith.constant 0 : index
    %609 = vector.load %arg13[%c1_567, %c1_568, %c1_569, %c0_570] : memref<4x10x10x16xf32, #tpu.memory_space<vmem>>, vector<1x8x8x16xf32>
    %610 = vector.shape_cast %609 : vector<1x8x8x16xf32> to vector<8x8x16xf32>
    %c2_571 = arith.constant 2 : index
    %c0_572 = arith.constant 0 : index
    %c0_573 = arith.constant 0 : index
    %611 = vector.load %arg8[%c2_571, %c0_572, %c0_573] : memref<9x16x128xbf16, #tpu.memory_space<vmem>>, vector<1x16x128xbf16>
    %612 = vector.shape_cast %611 : vector<1x16x128xbf16> to vector<16x128xbf16>
    %613 = vector.shape_cast %610 : vector<8x8x16xf32> to vector<64x16xf32>
    %614 = arith.truncf %613 : vector<64x16xf32> to vector<64x16xbf16>
    %cst_574 = arith.constant dense<0.000000e+00> : vector<64x128xf32>
    %615 = tpu.matmul %614, %612, %cst_574 {dimension_numbers = #tpu.dot_dimension_numbers<[1], [0], [0], [1], [0, 0, 1, 1], [], []>} : vector<64x16xbf16>, vector<16x128xbf16>, vector<64x128xf32> -> vector<64x128xf32>
    %616 = arith.addf %608, %615 : vector<64x128xf32>
    %c3_575 = arith.constant 3 : index
    %c1_576 = arith.constant 1 : index
    %c0_577 = arith.constant 0 : index
    %c0_578 = arith.constant 0 : index
    %617 = vector.load %arg13[%c3_575, %c1_576, %c0_577, %c0_578] : memref<4x10x10x16xf32, #tpu.memory_space<vmem>>, vector<1x8x8x16xf32>
    %618 = vector.shape_cast %617 : vector<1x8x8x16xf32> to vector<8x8x16xf32>
    %c3_579 = arith.constant 3 : index
    %c0_580 = arith.constant 0 : index
    %c0_581 = arith.constant 0 : index
    %619 = vector.load %arg8[%c3_579, %c0_580, %c0_581] : memref<9x16x128xbf16, #tpu.memory_space<vmem>>, vector<1x16x128xbf16>
    %620 = vector.shape_cast %619 : vector<1x16x128xbf16> to vector<16x128xbf16>
    %621 = vector.shape_cast %618 : vector<8x8x16xf32> to vector<64x16xf32>
    %622 = arith.truncf %621 : vector<64x16xf32> to vector<64x16xbf16>
    %cst_582 = arith.constant dense<0.000000e+00> : vector<64x128xf32>
    %623 = tpu.matmul %622, %620, %cst_582 {dimension_numbers = #tpu.dot_dimension_numbers<[1], [0], [0], [1], [0, 0, 1, 1], [], []>} : vector<64x16xbf16>, vector<16x128xbf16>, vector<64x128xf32> -> vector<64x128xf32>
    %624 = arith.addf %616, %623 : vector<64x128xf32>
    %c2_583 = arith.constant 2 : index
    %c1_584 = arith.constant 1 : index
    %c1_585 = arith.constant 1 : index
    %c0_586 = arith.constant 0 : index
    %625 = vector.load %arg13[%c2_583, %c1_584, %c1_585, %c0_586] : memref<4x10x10x16xf32, #tpu.memory_space<vmem>>, vector<1x8x8x16xf32>
    %626 = vector.shape_cast %625 : vector<1x8x8x16xf32> to vector<8x8x16xf32>
    %c4_587 = arith.constant 4 : index
    %c0_588 = arith.constant 0 : index
    %c0_589 = arith.constant 0 : index
    %627 = vector.load %arg8[%c4_587, %c0_588, %c0_589] : memref<9x16x128xbf16, #tpu.memory_space<vmem>>, vector<1x16x128xbf16>
    %628 = vector.shape_cast %627 : vector<1x16x128xbf16> to vector<16x128xbf16>
    %629 = vector.shape_cast %626 : vector<8x8x16xf32> to vector<64x16xf32>
    %630 = arith.truncf %629 : vector<64x16xf32> to vector<64x16xbf16>
    %cst_590 = arith.constant dense<0.000000e+00> : vector<64x128xf32>
    %631 = tpu.matmul %630, %628, %cst_590 {dimension_numbers = #tpu.dot_dimension_numbers<[1], [0], [0], [1], [0, 0, 1, 1], [], []>} : vector<64x16xbf16>, vector<16x128xbf16>, vector<64x128xf32> -> vector<64x128xf32>
    %632 = arith.addf %624, %631 : vector<64x128xf32>
    %c3_591 = arith.constant 3 : index
    %c1_592 = arith.constant 1 : index
    %c1_593 = arith.constant 1 : index
    %c0_594 = arith.constant 0 : index
    %633 = vector.load %arg13[%c3_591, %c1_592, %c1_593, %c0_594] : memref<4x10x10x16xf32, #tpu.memory_space<vmem>>, vector<1x8x8x16xf32>
    %634 = vector.shape_cast %633 : vector<1x8x8x16xf32> to vector<8x8x16xf32>
    %c5_595 = arith.constant 5 : index
    %c0_596 = arith.constant 0 : index
    %c0_597 = arith.constant 0 : index
    %635 = vector.load %arg8[%c5_595, %c0_596, %c0_597] : memref<9x16x128xbf16, #tpu.memory_space<vmem>>, vector<1x16x128xbf16>
    %636 = vector.shape_cast %635 : vector<1x16x128xbf16> to vector<16x128xbf16>
    %637 = vector.shape_cast %634 : vector<8x8x16xf32> to vector<64x16xf32>
    %638 = arith.truncf %637 : vector<64x16xf32> to vector<64x16xbf16>
    %cst_598 = arith.constant dense<0.000000e+00> : vector<64x128xf32>
    %639 = tpu.matmul %638, %636, %cst_598 {dimension_numbers = #tpu.dot_dimension_numbers<[1], [0], [0], [1], [0, 0, 1, 1], [], []>} : vector<64x16xbf16>, vector<16x128xbf16>, vector<64x128xf32> -> vector<64x128xf32>
    %640 = arith.addf %632, %639 : vector<64x128xf32>
    %c1_599 = arith.constant 1 : index
    %c2_600 = arith.constant 2 : index
    %c0_601 = arith.constant 0 : index
    %c0_602 = arith.constant 0 : index
    %641 = vector.load %arg13[%c1_599, %c2_600, %c0_601, %c0_602] : memref<4x10x10x16xf32, #tpu.memory_space<vmem>>, vector<1x8x8x16xf32>
    %642 = vector.shape_cast %641 : vector<1x8x8x16xf32> to vector<8x8x16xf32>
    %c6_603 = arith.constant 6 : index
    %c0_604 = arith.constant 0 : index
    %c0_605 = arith.constant 0 : index
    %643 = vector.load %arg8[%c6_603, %c0_604, %c0_605] : memref<9x16x128xbf16, #tpu.memory_space<vmem>>, vector<1x16x128xbf16>
    %644 = vector.shape_cast %643 : vector<1x16x128xbf16> to vector<16x128xbf16>
    %645 = vector.shape_cast %642 : vector<8x8x16xf32> to vector<64x16xf32>
    %646 = arith.truncf %645 : vector<64x16xf32> to vector<64x16xbf16>
    %cst_606 = arith.constant dense<0.000000e+00> : vector<64x128xf32>
    %647 = tpu.matmul %646, %644, %cst_606 {dimension_numbers = #tpu.dot_dimension_numbers<[1], [0], [0], [1], [0, 0, 1, 1], [], []>} : vector<64x16xbf16>, vector<16x128xbf16>, vector<64x128xf32> -> vector<64x128xf32>
    %648 = arith.addf %640, %647 : vector<64x128xf32>
    %c0_607 = arith.constant 0 : index
    %c2_608 = arith.constant 2 : index
    %c1_609 = arith.constant 1 : index
    %c0_610 = arith.constant 0 : index
    %649 = vector.load %arg13[%c0_607, %c2_608, %c1_609, %c0_610] : memref<4x10x10x16xf32, #tpu.memory_space<vmem>>, vector<1x8x8x16xf32>
    %650 = vector.shape_cast %649 : vector<1x8x8x16xf32> to vector<8x8x16xf32>
    %c7_611 = arith.constant 7 : index
    %c0_612 = arith.constant 0 : index
    %c0_613 = arith.constant 0 : index
    %651 = vector.load %arg8[%c7_611, %c0_612, %c0_613] : memref<9x16x128xbf16, #tpu.memory_space<vmem>>, vector<1x16x128xbf16>
    %652 = vector.shape_cast %651 : vector<1x16x128xbf16> to vector<16x128xbf16>
    %653 = vector.shape_cast %650 : vector<8x8x16xf32> to vector<64x16xf32>
    %654 = arith.truncf %653 : vector<64x16xf32> to vector<64x16xbf16>
    %cst_614 = arith.constant dense<0.000000e+00> : vector<64x128xf32>
    %655 = tpu.matmul %654, %652, %cst_614 {dimension_numbers = #tpu.dot_dimension_numbers<[1], [0], [0], [1], [0, 0, 1, 1], [], []>} : vector<64x16xbf16>, vector<16x128xbf16>, vector<64x128xf32> -> vector<64x128xf32>
    %656 = arith.addf %648, %655 : vector<64x128xf32>
    %c1_615 = arith.constant 1 : index
    %c2_616 = arith.constant 2 : index
    %c1_617 = arith.constant 1 : index
    %c0_618 = arith.constant 0 : index
    %657 = vector.load %arg13[%c1_615, %c2_616, %c1_617, %c0_618] : memref<4x10x10x16xf32, #tpu.memory_space<vmem>>, vector<1x8x8x16xf32>
    %658 = vector.shape_cast %657 : vector<1x8x8x16xf32> to vector<8x8x16xf32>
    %c8_619 = arith.constant 8 : index
    %c0_620 = arith.constant 0 : index
    %c0_621 = arith.constant 0 : index
    %659 = vector.load %arg8[%c8_619, %c0_620, %c0_621] : memref<9x16x128xbf16, #tpu.memory_space<vmem>>, vector<1x16x128xbf16>
    %660 = vector.shape_cast %659 : vector<1x16x128xbf16> to vector<16x128xbf16>
    %661 = vector.shape_cast %658 : vector<8x8x16xf32> to vector<64x16xf32>
    %662 = arith.truncf %661 : vector<64x16xf32> to vector<64x16xbf16>
    %cst_622 = arith.constant dense<0.000000e+00> : vector<64x128xf32>
    %663 = tpu.matmul %662, %660, %cst_622 {dimension_numbers = #tpu.dot_dimension_numbers<[1], [0], [0], [1], [0, 0, 1, 1], [], []>} : vector<64x16xbf16>, vector<16x128xbf16>, vector<64x128xf32> -> vector<64x128xf32>
    %664 = arith.addf %656, %663 : vector<64x128xf32>
    %c0_623 = arith.constant 0 : index
    %c0_624 = arith.constant 0 : index
    %665 = vector.load %arg9[%c0_623, %c0_624] : memref<1x128xf32, #tpu.memory_space<vmem>>, vector<1x128xf32>
    %666 = vector.broadcast %665 : vector<1x128xf32> to vector<64x128xf32>
    %667 = arith.addf %664, %666 : vector<64x128xf32>
    %cst_625 = arith.constant 0.000000e+00 : f32
    %668 = vector.broadcast %cst_625 : f32 to vector<64x128xf32>
    %669 = arith.subf %668, %667 : vector<64x128xf32>
    %670 = math.exp %669 : vector<64x128xf32>
    %cst_626 = arith.constant 1.000000e+00 : f32
    %671 = vector.broadcast %cst_626 : f32 to vector<64x128xf32>
    %672 = arith.addf %671, %670 : vector<64x128xf32>
    %cst_627 = arith.constant 1.000000e+00 : f32
    %673 = vector.broadcast %cst_627 : f32 to vector<64x128xf32>
    %674 = arith.divf %673, %672 : vector<64x128xf32>
    %675 = vector.shape_cast %674 : vector<64x128xf32> to vector<8x8x128xf32>
    %c0_628 = arith.constant 0 : index
    %c2_629 = arith.constant 2 : index
    %c0_630 = arith.constant 0 : index
    %c0_631 = arith.constant 0 : index
    %c0_632 = arith.constant 0 : index
    %676 = vector.load %arg10[%c0_628, %c2_629, %c0_630, %c0_631, %c0_632] : memref<1x4x8x8x128xf32, #tpu.memory_space<vmem>>, vector<1x1x8x8x128xf32>
    %677 = vector.shape_cast %676 : vector<1x1x8x8x128xf32> to vector<8x8x128xf32>
    %678 = vector.shape_cast %675 : vector<8x8x128xf32> to vector<1x1x8x8x128xf32>
    tpu.vector_store %arg10[%c0_628, %c2_629, %c0_630, %c0_631, %c0_632], %678 {strides = array<i32>} : memref<1x4x8x8x128xf32, #tpu.memory_space<vmem>>, vector<1x1x8x8x128xf32>,
    %c0_633 = arith.constant 0 : index
    %c1_634 = arith.constant 1 : index
    %c1_635 = arith.constant 1 : index
    %c0_636 = arith.constant 0 : index
    %679 = vector.load %arg13[%c0_633, %c1_634, %c1_635, %c0_636] : memref<4x10x10x16xf32, #tpu.memory_space<vmem>>, vector<1x8x8x16xf32>
    %680 = vector.shape_cast %679 : vector<1x8x8x16xf32> to vector<8x8x16xf32>
    %c0_637 = arith.constant 0 : index
    %c0_638 = arith.constant 0 : index
    %c0_639 = arith.constant 0 : index
    %681 = vector.load %arg8[%c0_637, %c0_638, %c0_639] : memref<9x16x128xbf16, #tpu.memory_space<vmem>>, vector<1x16x128xbf16>
    %682 = vector.shape_cast %681 : vector<1x16x128xbf16> to vector<16x128xbf16>
    %683 = vector.shape_cast %680 : vector<8x8x16xf32> to vector<64x16xf32>
    %684 = arith.truncf %683 : vector<64x16xf32> to vector<64x16xbf16>
    %cst_640 = arith.constant dense<0.000000e+00> : vector<64x128xf32>
    %685 = tpu.matmul %684, %682, %cst_640 {dimension_numbers = #tpu.dot_dimension_numbers<[1], [0], [0], [1], [0, 0, 1, 1], [], []>} : vector<64x16xbf16>, vector<16x128xbf16>, vector<64x128xf32> -> vector<64x128xf32>
    %c1_641 = arith.constant 1 : index
    %c1_642 = arith.constant 1 : index
    %c1_643 = arith.constant 1 : index
    %c0_644 = arith.constant 0 : index
    %686 = vector.load %arg13[%c1_641, %c1_642, %c1_643, %c0_644] : memref<4x10x10x16xf32, #tpu.memory_space<vmem>>, vector<1x8x8x16xf32>
    %687 = vector.shape_cast %686 : vector<1x8x8x16xf32> to vector<8x8x16xf32>
    %c1_645 = arith.constant 1 : index
    %c0_646 = arith.constant 0 : index
    %c0_647 = arith.constant 0 : index
    %688 = vector.load %arg8[%c1_645, %c0_646, %c0_647] : memref<9x16x128xbf16, #tpu.memory_space<vmem>>, vector<1x16x128xbf16>
    %689 = vector.shape_cast %688 : vector<1x16x128xbf16> to vector<16x128xbf16>
    %690 = vector.shape_cast %687 : vector<8x8x16xf32> to vector<64x16xf32>
    %691 = arith.truncf %690 : vector<64x16xf32> to vector<64x16xbf16>
    %cst_648 = arith.constant dense<0.000000e+00> : vector<64x128xf32>
    %692 = tpu.matmul %691, %689, %cst_648 {dimension_numbers = #tpu.dot_dimension_numbers<[1], [0], [0], [1], [0, 0, 1, 1], [], []>} : vector<64x16xbf16>, vector<16x128xbf16>, vector<64x128xf32> -> vector<64x128xf32>
    %693 = arith.addf %685, %692 : vector<64x128xf32>
    %c0_649 = arith.constant 0 : index
    %c1_650 = arith.constant 1 : index
    %c2_651 = arith.constant 2 : index
    %c0_652 = arith.constant 0 : index
    %694 = vector.load %arg13[%c0_649, %c1_650, %c2_651, %c0_652] : memref<4x10x10x16xf32, #tpu.memory_space<vmem>>, vector<1x8x8x16xf32>
    %695 = vector.shape_cast %694 : vector<1x8x8x16xf32> to vector<8x8x16xf32>
    %c2_653 = arith.constant 2 : index
    %c0_654 = arith.constant 0 : index
    %c0_655 = arith.constant 0 : index
    %696 = vector.load %arg8[%c2_653, %c0_654, %c0_655] : memref<9x16x128xbf16, #tpu.memory_space<vmem>>, vector<1x16x128xbf16>
    %697 = vector.shape_cast %696 : vector<1x16x128xbf16> to vector<16x128xbf16>
    %698 = vector.shape_cast %695 : vector<8x8x16xf32> to vector<64x16xf32>
    %699 = arith.truncf %698 : vector<64x16xf32> to vector<64x16xbf16>
    %cst_656 = arith.constant dense<0.000000e+00> : vector<64x128xf32>
    %700 = tpu.matmul %699, %697, %cst_656 {dimension_numbers = #tpu.dot_dimension_numbers<[1], [0], [0], [1], [0, 0, 1, 1], [], []>} : vector<64x16xbf16>, vector<16x128xbf16>, vector<64x128xf32> -> vector<64x128xf32>
    %701 = arith.addf %693, %700 : vector<64x128xf32>
    %c2_657 = arith.constant 2 : index
    %c1_658 = arith.constant 1 : index
    %c1_659 = arith.constant 1 : index
    %c0_660 = arith.constant 0 : index
    %702 = vector.load %arg13[%c2_657, %c1_658, %c1_659, %c0_660] : memref<4x10x10x16xf32, #tpu.memory_space<vmem>>, vector<1x8x8x16xf32>
    %703 = vector.shape_cast %702 : vector<1x8x8x16xf32> to vector<8x8x16xf32>
    %c3_661 = arith.constant 3 : index
    %c0_662 = arith.constant 0 : index
    %c0_663 = arith.constant 0 : index
    %704 = vector.load %arg8[%c3_661, %c0_662, %c0_663] : memref<9x16x128xbf16, #tpu.memory_space<vmem>>, vector<1x16x128xbf16>
    %705 = vector.shape_cast %704 : vector<1x16x128xbf16> to vector<16x128xbf16>
    %706 = vector.shape_cast %703 : vector<8x8x16xf32> to vector<64x16xf32>
    %707 = arith.truncf %706 : vector<64x16xf32> to vector<64x16xbf16>
    %cst_664 = arith.constant dense<0.000000e+00> : vector<64x128xf32>
    %708 = tpu.matmul %707, %705, %cst_664 {dimension_numbers = #tpu.dot_dimension_numbers<[1], [0], [0], [1], [0, 0, 1, 1], [], []>} : vector<64x16xbf16>, vector<16x128xbf16>, vector<64x128xf32> -> vector<64x128xf32>
    %709 = arith.addf %701, %708 : vector<64x128xf32>
    %c3_665 = arith.constant 3 : index
    %c1_666 = arith.constant 1 : index
    %c1_667 = arith.constant 1 : index
    %c0_668 = arith.constant 0 : index
    %710 = vector.load %arg13[%c3_665, %c1_666, %c1_667, %c0_668] : memref<4x10x10x16xf32, #tpu.memory_space<vmem>>, vector<1x8x8x16xf32>
    %711 = vector.shape_cast %710 : vector<1x8x8x16xf32> to vector<8x8x16xf32>
    %c4_669 = arith.constant 4 : index
    %c0_670 = arith.constant 0 : index
    %c0_671 = arith.constant 0 : index
    %712 = vector.load %arg8[%c4_669, %c0_670, %c0_671] : memref<9x16x128xbf16, #tpu.memory_space<vmem>>, vector<1x16x128xbf16>
    %713 = vector.shape_cast %712 : vector<1x16x128xbf16> to vector<16x128xbf16>
    %714 = vector.shape_cast %711 : vector<8x8x16xf32> to vector<64x16xf32>
    %715 = arith.truncf %714 : vector<64x16xf32> to vector<64x16xbf16>
    %cst_672 = arith.constant dense<0.000000e+00> : vector<64x128xf32>
    %716 = tpu.matmul %715, %713, %cst_672 {dimension_numbers = #tpu.dot_dimension_numbers<[1], [0], [0], [1], [0, 0, 1, 1], [], []>} : vector<64x16xbf16>, vector<16x128xbf16>, vector<64x128xf32> -> vector<64x128xf32>
    %717 = arith.addf %709, %716 : vector<64x128xf32>
    %c2_673 = arith.constant 2 : index
    %c1_674 = arith.constant 1 : index
    %c2_675 = arith.constant 2 : index
    %c0_676 = arith.constant 0 : index
    %718 = vector.load %arg13[%c2_673, %c1_674, %c2_675, %c0_676] : memref<4x10x10x16xf32, #tpu.memory_space<vmem>>, vector<1x8x8x16xf32>
    %719 = vector.shape_cast %718 : vector<1x8x8x16xf32> to vector<8x8x16xf32>
    %c5_677 = arith.constant 5 : index
    %c0_678 = arith.constant 0 : index
    %c0_679 = arith.constant 0 : index
    %720 = vector.load %arg8[%c5_677, %c0_678, %c0_679] : memref<9x16x128xbf16, #tpu.memory_space<vmem>>, vector<1x16x128xbf16>
    %721 = vector.shape_cast %720 : vector<1x16x128xbf16> to vector<16x128xbf16>
    %722 = vector.shape_cast %719 : vector<8x8x16xf32> to vector<64x16xf32>
    %723 = arith.truncf %722 : vector<64x16xf32> to vector<64x16xbf16>
    %cst_680 = arith.constant dense<0.000000e+00> : vector<64x128xf32>
    %724 = tpu.matmul %723, %721, %cst_680 {dimension_numbers = #tpu.dot_dimension_numbers<[1], [0], [0], [1], [0, 0, 1, 1], [], []>} : vector<64x16xbf16>, vector<16x128xbf16>, vector<64x128xf32> -> vector<64x128xf32>
    %725 = arith.addf %717, %724 : vector<64x128xf32>
    %c0_681 = arith.constant 0 : index
    %c2_682 = arith.constant 2 : index
    %c1_683 = arith.constant 1 : index
    %c0_684 = arith.constant 0 : index
    %726 = vector.load %arg13[%c0_681, %c2_682, %c1_683, %c0_684] : memref<4x10x10x16xf32, #tpu.memory_space<vmem>>, vector<1x8x8x16xf32>
    %727 = vector.shape_cast %726 : vector<1x8x8x16xf32> to vector<8x8x16xf32>
    %c6_685 = arith.constant 6 : index
    %c0_686 = arith.constant 0 : index
    %c0_687 = arith.constant 0 : index
    %728 = vector.load %arg8[%c6_685, %c0_686, %c0_687] : memref<9x16x128xbf16, #tpu.memory_space<vmem>>, vector<1x16x128xbf16>
    %729 = vector.shape_cast %728 : vector<1x16x128xbf16> to vector<16x128xbf16>
    %730 = vector.shape_cast %727 : vector<8x8x16xf32> to vector<64x16xf32>
    %731 = arith.truncf %730 : vector<64x16xf32> to vector<64x16xbf16>
    %cst_688 = arith.constant dense<0.000000e+00> : vector<64x128xf32>
    %732 = tpu.matmul %731, %729, %cst_688 {dimension_numbers = #tpu.dot_dimension_numbers<[1], [0], [0], [1], [0, 0, 1, 1], [], []>} : vector<64x16xbf16>, vector<16x128xbf16>, vector<64x128xf32> -> vector<64x128xf32>
    %733 = arith.addf %725, %732 : vector<64x128xf32>
    %c1_689 = arith.constant 1 : index
    %c2_690 = arith.constant 2 : index
    %c1_691 = arith.constant 1 : index
    %c0_692 = arith.constant 0 : index
    %734 = vector.load %arg13[%c1_689, %c2_690, %c1_691, %c0_692] : memref<4x10x10x16xf32, #tpu.memory_space<vmem>>, vector<1x8x8x16xf32>
    %735 = vector.shape_cast %734 : vector<1x8x8x16xf32> to vector<8x8x16xf32>
    %c7_693 = arith.constant 7 : index
    %c0_694 = arith.constant 0 : index
    %c0_695 = arith.constant 0 : index
    %736 = vector.load %arg8[%c7_693, %c0_694, %c0_695] : memref<9x16x128xbf16, #tpu.memory_space<vmem>>, vector<1x16x128xbf16>
    %737 = vector.shape_cast %736 : vector<1x16x128xbf16> to vector<16x128xbf16>
    %738 = vector.shape_cast %735 : vector<8x8x16xf32> to vector<64x16xf32>
    %739 = arith.truncf %738 : vector<64x16xf32> to vector<64x16xbf16>
    %cst_696 = arith.constant dense<0.000000e+00> : vector<64x128xf32>
    %740 = tpu.matmul %739, %737, %cst_696 {dimension_numbers = #tpu.dot_dimension_numbers<[1], [0], [0], [1], [0, 0, 1, 1], [], []>} : vector<64x16xbf16>, vector<16x128xbf16>, vector<64x128xf32> -> vector<64x128xf32>
    %741 = arith.addf %733, %740 : vector<64x128xf32>
    %c0_697 = arith.constant 0 : index
    %c2_698 = arith.constant 2 : index
    %c2_699 = arith.constant 2 : index
    %c0_700 = arith.constant 0 : index
    %742 = vector.load %arg13[%c0_697, %c2_698, %c2_699, %c0_700] : memref<4x10x10x16xf32, #tpu.memory_space<vmem>>, vector<1x8x8x16xf32>
    %743 = vector.shape_cast %742 : vector<1x8x8x16xf32> to vector<8x8x16xf32>
    %c8_701 = arith.constant 8 : index
    %c0_702 = arith.constant 0 : index
    %c0_703 = arith.constant 0 : index
    %744 = vector.load %arg8[%c8_701, %c0_702, %c0_703] : memref<9x16x128xbf16, #tpu.memory_space<vmem>>, vector<1x16x128xbf16>
    %745 = vector.shape_cast %744 : vector<1x16x128xbf16> to vector<16x128xbf16>
    %746 = vector.shape_cast %743 : vector<8x8x16xf32> to vector<64x16xf32>
    %747 = arith.truncf %746 : vector<64x16xf32> to vector<64x16xbf16>
    %cst_704 = arith.constant dense<0.000000e+00> : vector<64x128xf32>
    %748 = tpu.matmul %747, %745, %cst_704 {dimension_numbers = #tpu.dot_dimension_numbers<[1], [0], [0], [1], [0, 0, 1, 1], [], []>} : vector<64x16xbf16>, vector<16x128xbf16>, vector<64x128xf32> -> vector<64x128xf32>
    %749 = arith.addf %741, %748 : vector<64x128xf32>
    %c0_705 = arith.constant 0 : index
    %c0_706 = arith.constant 0 : index
    %750 = vector.load %arg9[%c0_705, %c0_706] : memref<1x128xf32, #tpu.memory_space<vmem>>, vector<1x128xf32>
    %751 = vector.broadcast %750 : vector<1x128xf32> to vector<64x128xf32>
    %752 = arith.addf %749, %751 : vector<64x128xf32>
    %cst_707 = arith.constant 0.000000e+00 : f32
    %753 = vector.broadcast %cst_707 : f32 to vector<64x128xf32>
    %754 = arith.subf %753, %752 : vector<64x128xf32>
    %755 = math.exp %754 : vector<64x128xf32>
    %cst_708 = arith.constant 1.000000e+00 : f32
    %756 = vector.broadcast %cst_708 : f32 to vector<64x128xf32>
    %757 = arith.addf %756, %755 : vector<64x128xf32>
    %cst_709 = arith.constant 1.000000e+00 : f32
    %758 = vector.broadcast %cst_709 : f32 to vector<64x128xf32>
    %759 = arith.divf %758, %757 : vector<64x128xf32>
    %760 = vector.shape_cast %759 : vector<64x128xf32> to vector<8x8x128xf32>
    %c0_710 = arith.constant 0 : index
    %c3_711 = arith.constant 3 : index
    %c0_712 = arith.constant 0 : index
    %c0_713 = arith.constant 0 : index
    %c0_714 = arith.constant 0 : index
    %761 = vector.load %arg10[%c0_710, %c3_711, %c0_712, %c0_713, %c0_714] : memref<1x4x8x8x128xf32, #tpu.memory_space<vmem>>, vector<1x1x8x8x128xf32>
    %762 = vector.shape_cast %761 : vector<1x1x8x8x128xf32> to vector<8x8x128xf32>
    %763 = vector.shape_cast %760 : vector<8x8x128xf32> to vector<1x1x8x8x128xf32>
    tpu.vector_store %arg10[%c0_710, %c3_711, %c0_712, %c0_713, %c0_714], %763 {strides = array<i32>} : memref<1x4x8x8x128xf32, #tpu.memory_space<vmem>>, vector<1x1x8x8x128xf32>,
    return
  }
  func.func @transform_0(%arg0: i32) -> (i32, i32, i32, i32) {
    %c0_i32 = arith.constant 0 : i32
    %c0_i32_0 = arith.constant 0 : i32
    %c0_i32_1 = arith.constant 0 : i32
    %c0_i32_2 = arith.constant 0 : i32
    return %arg0, %c0_i32, %c0_i32_0, %c0_i32_1 : i32, i32, i32, i32
  }
  func.func @transform_1(%arg0: i32) -> (i32, i32, i32) {
    %c0_i32 = arith.constant 0 : i32
    %c0_i32_0 = arith.constant 0 : i32
    %c0_i32_1 = arith.constant 0 : i32
    %c0_i32_2 = arith.constant 0 : i32
    return %c0_i32, %c0_i32_0, %c0_i32_1 : i32, i32, i32
  }
  func.func @transform_2(%arg0: i32) -> (i32, i32) {
    %c0_i32 = arith.constant 0 : i32
    %c0_i32_0 = arith.constant 0 : i32
    %c0_i32_1 = arith.constant 0 : i32
    return %c0_i32, %c0_i32_0 : i32, i32
  }
  func.func @transform_3(%arg0: i32) -> (i32, i32, i32) {
    %c0_i32 = arith.constant 0 : i32
    %c0_i32_0 = arith.constant 0 : i32
    %c0_i32_1 = arith.constant 0 : i32
    %c0_i32_2 = arith.constant 0 : i32
    return %c0_i32, %c0_i32_0, %c0_i32_1 : i32, i32, i32
  }
  func.func @transform_4(%arg0: i32) -> (i32, i32) {
    %c0_i32 = arith.constant 0 : i32
    %c0_i32_0 = arith.constant 0 : i32
    %c0_i32_1 = arith.constant 0 : i32
    return %c0_i32, %c0_i32_0 : i32, i32
  }
  func.func @transform_5(%arg0: i32) -> (i32, i32, i32) {
    %c0_i32 = arith.constant 0 : i32
    %c0_i32_0 = arith.constant 0 : i32
    %c0_i32_1 = arith.constant 0 : i32
    %c0_i32_2 = arith.constant 0 : i32
    return %c0_i32, %c0_i32_0, %c0_i32_1 : i32, i32, i32
  }
  func.func @transform_6(%arg0: i32) -> (i32, i32) {
    %c0_i32 = arith.constant 0 : i32
    %c0_i32_0 = arith.constant 0 : i32
    %c0_i32_1 = arith.constant 0 : i32
    return %c0_i32, %c0_i32_0 : i32, i32
  }
  func.func @transform_7(%arg0: i32) -> (i32, i32, i32) {
    %c0_i32 = arith.constant 0 : i32
    %c0_i32_0 = arith.constant 0 : i32
    %c0_i32_1 = arith.constant 0 : i32
    %c0_i32_2 = arith.constant 0 : i32
    return %c0_i32, %c0_i32_0, %c0_i32_1 : i32, i32, i32
  }
  func.func @transform_8(%arg0: i32) -> (i32, i32) {
    %c0_i32 = arith.constant 0 : i32
    %c0_i32_0 = arith.constant 0 : i32
    %c0_i32_1 = arith.constant 0 : i32
    return %c0_i32, %c0_i32_0 : i32, i32
  }
  func.func @transform_9(%arg0: i32) -> (i32, i32, i32, i32, i32) {
    %c0_i32 = arith.constant 0 : i32
    %c0_i32_0 = arith.constant 0 : i32
    %c0_i32_1 = arith.constant 0 : i32
    %c0_i32_2 = arith.constant 0 : i32
    %c0_i32_3 = arith.constant 0 : i32
    return %arg0, %c0_i32, %c0_i32_0, %c0_i32_1, %c0_i32_2 : i32, i32, i32, i32, i32
  }
}

</mosaic_0001>

<bundles_post_ra>
// kernel: decoder_forward.1
= control target key start
LH: loop header
LB: loop body
LE: loop exit
PB: predicated region body
PF: predicated region fallthrough
CT: control target
= control target key end

     0   :  { %s8618_s30 = smov 0   ;;  %s11363_s0 = inlined_call_operand.vmem [shape: f32[2,8,8,4], index: 0, kind: input, shape index: {}]   ;;  %s11364_s1 = inlined_call_operand.vmem [shape: bf16[9,4,32], index: 1, kind: input, shape index: {}]   ;;  %s11365_s2 = inlined_call_operand.vmem [shape: f32[1,32], index: 2, kind: input, shape index: {}]   ;;  %s11366_s3 = inlined_call_operand.vmem [shape: bf16[9,32,16], index: 3, kind: input, shape index: {}]   ;;  %s11367_s4 = inlined_call_operand.vmem [shape: bf16[16,32], index: 4, kind: input, shape index: {}]   ;;  %s11368_s5 = inlined_call_operand.vmem [shape: bf16[16,32,16], index: 5, kind: input, shape index: {}]   ;;  %s11369_s6 = inlined_call_operand.vmem [shape: f32[1,16], index: 6, kind: input, shape index: {}]   ;;  %s11370_s7 = inlined_call_operand.vmem [shape: bf16[9,16,128], index: 7, kind: input, shape index: {}]   ;;  %s11371_s8 = inlined_call_operand.vmem [shape: f32[1,128], index: 8, kind: input, shape index: {}]   ;;  %s11372_s9 = inlined_call_operand.vmem [shape: f32[2,4,8,8,128], index: 9, kind: output, shape index: {}]  }
   0x1 LB: > { %s7311_s10 = sadd.s32 4294967295, %s8565_s30   ;;  %p7315_p0 = scmp.ge.s32.totalorder %s8565_s30, 1  ;;  %s8565_s30 = sphi %s8618_s30, %s19_s30  }
   0x2   : > { %p287_p1 = scmp.lt.s32.totalorder %s8565_s30, 3 }
   0x4   : > { %p288_p2 = pnand %p7315_p0, %p287_p1 }
   0x6   : > { %291 = sbr.rel (%p288_p2) target bundleno = 2193 (0x891), region = 56 }
   0xb   : > { %v7320_v0 = vld [vmem:[%s11364_s1 + $0x2] sm:$0x3]  ;;  %vm412_vm0 = vcmask 1041408   ;;  %p323_p3 = scmp.lt.s32.totalorder %s7311_s10, 1  ;;  %vm334_vm1 = vcmask 31744   ;;  %vm336_vm2 = vcmask 25600  }
   0xc   : > { %v414_v1 = vsel %vm412_vm0, %v7320_v0, 0  ;;  %v8567_v2 = vmov 0.0   ;;  %v7329_v3 = vld [vmem:[%s11364_s1 + $0x4] sm:$0x3]  ;;  %v7334_v5 = vld [vmem:[%s11364_s1 + $0x6] sm:$0x3] }
   0xd   : > { %340 = vst.msk [vmem:[#allocation2 + $0x20] sm:$0xff] %vm334_vm1, %v8567_v2  ;;  %8398 = vmatpush.bf16.msra.mxu1 %v414_v1  ;;  %8399 = vmatpush.bf16.msra.mxu2 %v414_v1  ;;  %s11441_s10 = smov (!%p323_p3, %s7311_s10), 1  ;;  %v516_v4 = vsel %vm412_vm0, %v7329_v3, 0  ;;  %v381_v6 = vld [vmem:[%s11364_s1] sm:$0x3]  ;;  %v582_v9 = vsel %vm412_vm0, %v7334_v5, 0 }
   0xe   : > { %341 = vst.msk [vmem:[#allocation2 + $0x28] sm:$0x3] %vm336_vm2, %v8567_v2  ;;  %8400 = vmatpush.bf16.msra.mxu3 %v414_v1  ;;  %423 = vmatpush.bf16.msra.mxu0 %v414_v1  ;;  %s8290_s13 = sshll.u32 %s11441_s10, 6  ;;  %v458_v10 = vsel %vm412_vm0, %v381_v6, 0  ;;  %v7339_v11 = vld [vmem:[%s11364_s1 + $0x8] sm:$0x3] }
   0xf   : > { %342 = vst.msk [vmem:[#allocation2 + $0x30] sm:$0xff] %vm334_vm1, %v8567_v2  ;;  %s8647_s18 = scalar_lea.vmem %s11363_s0, %s8290_s13  ;;  %v648_v12 = vsel %vm412_vm0, %v7339_v11, 0  ;;  %v7344_v18 = vld [vmem:[%s11364_s1 + $0xa] sm:$0x3]  ;;  %v7349_v23 = vld [vmem:[%s11364_s1 + $0xc] sm:$0x3] }
  0x10   : > { %343 = vst.msk [vmem:[#allocation2 + $0x38] sm:$0x3] %vm336_vm2, %v8567_v2  ;;  %v357_v7 = vld [vmem:[%s8647_s18 + $0x8] sm:$0xff]  ;;  %v358_v8 = vld [vmem:[%s8647_s18 + $0x10] sm:$0xff]  ;;  %v359_v16 = vld [vmem:[%s8647_s18 + $0x18] sm:$0xff]  ;;  %v714_v20 = vsel %vm412_vm0, %v7344_v18, 0 }
  0x11   : > { %335 = vst.msk [vmem:[#allocation2] sm:$0xff] %vm334_vm1, %v8567_v2  ;;  %525 = vmatpush.bf16.msrb.mxu2 %v516_v4  ;;  %467 = vmatpush.bf16.msrb.mxu1 %v458_v10  ;;  %v360_v17 = vld [vmem:[%s8647_s18 + $0x20] sm:$0xff]  ;;  %v361_v19 = vld [vmem:[%s8647_s18 + $0x28] sm:$0xff]  ;;  %v362_v21 = vld [vmem:[%s8647_s18 + $0x30] sm:$0xff]  ;;  %v781_v30 = vsel %vm412_vm0, %v7349_v23, 0  ;;  %vm964_vm3 = vcmask 261120  }
  0x12   : > { %337 = vst.msk [vmem:[#allocation2 + $0x8] sm:$0x3] %vm336_vm2, %v8567_v2  ;;  %591 = vmatpush.bf16.msrb.mxu3 %v582_v9  ;;  %657 = vmatpush.bf16.msrb.mxu0 %v648_v12  ;;  %v356_v22 = vld [vmem:[%s8647_s18] sm:$0xff]  ;;  %v7354_v31 = vld [vmem:[%s11364_s1 + $0xe] sm:$0x3]  ;;  %v363_v49 = vld [vmem:[%s8647_s18 + $0x38] sm:$0xff] }
  0x13   : > { %366 = vst.msk [vmem:[#allocation2 + $0x21] sm:$0xff] %vm334_vm1, %v357_v7  ;;  %v7359_v32 = vld [vmem:[%s11364_s1 + $0x10] sm:$0x3]  ;;  %v847_v39 = vsel %vm412_vm0, %v7354_v31, 0  ;;  %vm966_vm4 = vcmask 254976   ;;  %vm1773_vm5 = vcmask 130048  }
  0x14   : > { %367 = vst.msk [vmem:[#allocation2 + $0x31] sm:$0xff] %vm334_vm1, %v358_v8  ;;  %v913_v40 = vsel %vm412_vm0, %v7359_v32, 0  ;;  %vm2658_vm6 = vcmask 123904   ;;  %s8291_s20 = sshll.u32 %s11441_s10, 8 }
  0x15   : > { %338 = vst.msk [vmem:[#allocation2 + $0x10] sm:$0xff] %vm334_vm1, %v8567_v2  ;;  %s10541_s22 = scalar_lea.vmem %s11372_s9, %s8291_s20 }
  0x16   : > { %339 = vst.msk [vmem:[#allocation2 + $0x18] sm:$0x3] %vm336_vm2, %v8567_v2 }
  0x17   : > { %344 = vst.msk [vmem:[#allocation2 + $0x40] sm:$0xff] %vm334_vm1, %v8567_v2 }
  0x18   : > { %345 = vst.msk [vmem:[#allocation2 + $0x48] sm:$0x3] %vm336_vm2, %v8567_v2  ;;  %v373_v27 = vld [vmem:[#allocation2] sm:$0xff] }
  0x19   : > { %346 = vst.msk [vmem:[#allocation2 + $0x50] sm:$0xff] %vm334_vm1, %v8567_v2  ;;  %v386_v26 = vld [vmem:[#allocation2 + $0x1] sm:$0xff] }
  0x1a   : > { %v388_v13 = vld [vmem:[#allocation2 + $0x21] sm:$0xff]  ;;  %347 = vst.msk [vmem:[#allocation2 + $0x58] sm:$0x3] %vm336_vm2, %v8567_v2 }
  0x1b   : > { %v8682_v14 = vld [vmem:[#allocation2 + $0x31] sm:$0xff]  ;;  %348 = vst.msk [vmem:[#allocation2 + $0x60] sm:$0xff] %vm334_vm1, %v8567_v2  ;;  %v489_v41 = vld [vmem:[#allocation2 + $0x2] sm:$0xff] }
  0x1c   : > { %v8687_v15 = vpack.c.bf16 %v8682_v14, %v388_v13  ;;  %349 = vst.msk [vmem:[#allocation2 + $0x68] sm:$0x3] %vm336_vm2, %v8567_v2  ;;  %v556_v43 = vld [vmem:[#allocation2 + $0x20] sm:$0xff]  ;;  %v376_v45 = vld [vmem:[#allocation2 + $0x30] sm:$0xff] }
  0x1d   : > { %350 = vst.msk [vmem:[#allocation2 + $0x70] sm:$0xff] %vm334_vm1, %v8567_v2  ;;  %v383_v48 = vpack.c.bf16 %v376_v45, %v556_v43  ;;  %v491_v50 = vld [vmem:[#allocation2 + $0x22] sm:$0xff]  ;;  %v492_v51 = vld [vmem:[#allocation2 + $0x32] sm:$0xff] }
  0x1e   : > { %7322 = vmatmul.msk.bf16.vlgmr.msra.gmra.mxu1 %vm334_vm1, %v8687_v15  ;;  %351 = vst.msk [vmem:[#allocation2 + $0x78] sm:$0x3] %vm336_vm2, %v8567_v2  ;;  %v500_v53 = vpack.c.bf16 %v492_v51, %v491_v50 }
  0x1f   : > { %352 = vst.msk [vmem:[#allocation2 + $0x80] sm:$0xff] %vm334_vm1, %v8567_v2  ;;  %723 = vmatpush.bf16.msra.mxu1 %v714_v20 }
  0x20   : > { %353 = vst.msk [vmem:[#allocation2 + $0x88] sm:$0x3] %vm336_vm2, %v8567_v2 }
  0x21   : > { %354 = vst.msk [vmem:[#allocation2 + $0x90] sm:$0xff] %vm334_vm1, %v8567_v2 }
  0x22   : > { %355 = vst.msk [vmem:[#allocation2 + $0x98] sm:$0x3] %vm336_vm2, %v8567_v2 }
  0x23   : > { %368 = vst.msk [vmem:[#allocation2 + $0x41] sm:$0xff] %vm334_vm1, %v359_v16 }
  0x24   : > { %369 = vst.msk [vmem:[#allocation2 + $0x51] sm:$0xff] %vm334_vm1, %v360_v17 }
  0x25   : > { %370 = vst.msk [vmem:[#allocation2 + $0x61] sm:$0xff] %vm334_vm1, %v361_v19 }
  0x26   : > { %371 = vst.msk [vmem:[#allocation2 + $0x71] sm:$0xff] %vm334_vm1, %v362_v21 }
  0x27   : > { %365 = vst.msk [vmem:[#allocation2 + $0x11] sm:$0xff] %vm334_vm1, %v356_v22 }
  0x28   : > { %372 = vst.msk [vmem:[#allocation2 + $0x81] sm:$0xff] %vm334_vm1, %v363_v49  ;;  %v761_v17 = vld [vmem:[#allocation2 + $0x90] sm:$0xff] }
  0x29   : > { %v827_v18 = vld [vmem:[#allocation2 + $0x91] sm:$0xff]  ;;  %968 = vst.msk [vmem:[#allocation3 + $0x10] sm:$0xff] %vm964_vm3, %v8567_v2 }
  0x2a   : > { %v390_v24 = vld [vmem:[#allocation2 + $0x41] sm:$0xff]  ;;  %v893_v20 = vld [vmem:[#allocation2 + $0x92] sm:$0xff]  ;;  %969 = vst.msk [vmem:[#allocation3 + $0x18] sm:$0x3] %vm966_vm4, %v8567_v2 }
  0x2b   : > { %v391_v25 = vld [vmem:[#allocation2 + $0x51] sm:$0xff]  ;;  %v558_v52 = vld [vmem:[#allocation2 + $0x40] sm:$0xff]  ;;  %v632_v56 = vpack.c.bf16 %v390_v24, %v8682_v14  ;;  %965 = vst.msk [vmem:[#allocation3] sm:$0xff] %vm964_vm3, %v8567_v2 }
  0x2c   : > { %v8722_v28 = vpack.c.bf16 %v391_v25, %v390_v24  ;;  %v392_v29 = vld [vmem:[#allocation2 + $0x61] sm:$0xff]  ;;  %v378_v54 = vld [vmem:[#allocation2 + $0x50] sm:$0xff]  ;;  %v566_v55 = vpack.c.bf16 %v558_v52, %v376_v45  ;;  %967 = vst.msk [vmem:[#allocation3 + $0x8] sm:$0x3] %vm966_vm4, %v8567_v2 }
  0x2d   : > { %v8731_v33 = vld [vmem:[#allocation2 + $0x71] sm:$0xff]  ;;  %v384_v57 = vpack.c.bf16 %v378_v54, %v558_v52  ;;  %v493_v58 = vld [vmem:[#allocation2 + $0x42] sm:$0xff]  ;;  %v633_v0 = vpack.c.bf16 %v392_v29, %v391_v25  ;;  %970 = vst.msk [vmem:[#allocation3 + $0x20] sm:$0xff] %vm964_vm3, %v8567_v2 }
  0x2e   : > { %7323 = vmatmul.msk.bf16.vlgmr.msra.gmra.mxu2 %vm334_vm1, %v8722_v28  ;;  %v8736_v34 = vpack.c.bf16 %v8731_v33, %v392_v29  ;;  %v387_v35 = vld [vmem:[#allocation2 + $0x11] sm:$0xff]  ;;  %v560_v60 = vld [vmem:[#allocation2 + $0x60] sm:$0xff]  ;;  %v698_v11 = vpack.c.bf16 %v493_v58, %v492_v51  ;;  %971 = vst.msk [vmem:[#allocation3 + $0x28] sm:$0x3] %vm966_vm4, %v8567_v2 }
  0x2f   : > { %v374_v36 = vld [vmem:[#allocation2 + $0x10] sm:$0xff]  ;;  %v396_v37 = vpack.c.bf16 %v387_v35, %v386_v26  ;;  %790 = vmatpush.bf16.msra.mxu2 %v781_v30  ;;  %v631_v47 = vpack.c.bf16 %v388_v13, %v387_v35  ;;  %v567_v63 = vpack.c.bf16 %v560_v60, %v378_v54  ;;  %v495_v3 = vld [vmem:[#allocation2 + $0x62] sm:$0xff]  ;;  %v8295_v29 = vld [vmem:[%s11366_s3 + $0x18] sm:$0xff]  ;;  %972 = vst.msk [vmem:[#allocation3 + $0x30] sm:$0xff] %vm964_vm3, %v8567_v2 }
  0x30   : > { %v382_v38 = vpack.c.bf16 %v374_v36, %v373_v27  ;;  %7324 = vmatmul.msk.bf16.vlgmr.msra.gmra.mxu3 %vm334_vm1, %v8736_v34  ;;  %v490_v42 = vld [vmem:[#allocation2 + $0x12] sm:$0xff]  ;;  %v565_v46 = vpack.c.bf16 %v556_v43, %v374_v36  ;;  %v562_v5 = vld [vmem:[#allocation2 + $0x80] sm:$0xff]  ;;  %973 = vst.msk [vmem:[#allocation3 + $0x38] sm:$0x3] %vm966_vm4, %v8567_v2 }
  0x31   : > { %7321 = vmatmul.msk.bf16.vlgmr.msra.gmra.mxu0 %vm334_vm1, %v396_v37  ;;  %856 = vmatpush.bf16.msra.mxu3 %v847_v39  ;;  %v499_v44 = vpack.c.bf16 %v490_v42, %v489_v41  ;;  %v494_v59 = vld [vmem:[#allocation2 + $0x52] sm:$0xff]  ;;  %v628_v7 = vld [vmem:[#allocation2 + $0x81] sm:$0xff]  ;;  %v697_v10 = vpack.c.bf16 %v491_v50, %v490_v42  ;;  %v767_v19 = vpack.c.bf16 %v761_v17, %v562_v5 }
  0x32   : > { %7325 = vmatmul.msk.bf16.vlgmr.msrb.gmra.mxu1 %vm334_vm1, %v382_v38  ;;  %922 = vmatpush.bf16.msra.mxu0 %v913_v40  ;;  %v501_v61 = vpack.c.bf16 %v494_v59, %v493_v58  ;;  %v380_v62 = vld [vmem:[#allocation2 + $0x70] sm:$0xff]  ;;  %v634_v9 = vpack.c.bf16 %v628_v7, %v8731_v33  ;;  %v699_v12 = vpack.c.bf16 %v495_v3, %v494_v59  ;;  %v694_v13 = vld [vmem:[#allocation2 + $0x82] sm:$0xff] }
  0x33   : > { %v385_v1 = vpack.c.bf16 %v380_v62, %v560_v60  ;;  %v496_v4 = vld [vmem:[#allocation2 + $0x72] sm:$0xff]  ;;  %v568_v8 = vpack.c.bf16 %v562_v5, %v380_v62  ;;  %v833_v21 = vpack.c.bf16 %v827_v18, %v628_v7  ;;  %v899_v22 = vpack.c.bf16 %v893_v20, %v694_v13  ;;  %1074 = vmatpush.bf16.msrb.mxu1 %v8295_v29  ;;  %v8293_v59 = vld [vmem:[%s11366_s3 + $0x8] sm:$0xff] }
  0x34   : > { %v502_v6 = vpack.c.bf16 %v496_v4, %v495_v3  ;;  %v700_v16 = vpack.c.bf16 %v694_v13, %v496_v4  ;;  %v8297_v60 = vld [vmem:[%s11366_s3 + $0x28] sm:$0xff]  ;;  %974 = vst.msk [vmem:[#allocation3 + $0x40] sm:$0xff] %vm964_vm3, %v8567_v2  ;;  %v8299_v5 = vld [vmem:[%s11366_s3 + $0x38] sm:$0xff] }
  0x35   : > { %975 = vst.msk [vmem:[#allocation3 + $0x48] sm:$0x3] %vm966_vm4, %v8567_v2 }
  0x36   : > { %976 = vst.msk [vmem:[#allocation3 + $0x50] sm:$0xff] %vm964_vm3, %v8567_v2 }
  0x37   : > { %977 = vst.msk [vmem:[#allocation3 + $0x58] sm:$0x3] %vm966_vm4, %v8567_v2 }
  0x38   : > { %978 = vst.msk [vmem:[#allocation3 + $0x60] sm:$0xff] %vm964_vm3, %v8567_v2 }
  0x39   : > { %979 = vst.msk [vmem:[#allocation3 + $0x68] sm:$0x3] %vm966_vm4, %v8567_v2 }
  0x3a   : > { %980 = vst.msk [vmem:[#allocation3 + $0x70] sm:$0xff] %vm964_vm3, %v8567_v2 }
  0x3b   : > { %981 = vst.msk [vmem:[#allocation3 + $0x78] sm:$0x3] %vm966_vm4, %v8567_v2 }
  0x3c   : > { %982 = vst.msk [vmem:[#allocation3 + $0x80] sm:$0xff] %vm964_vm3, %v8567_v2 }
  0x3d   : > { %983 = vst.msk [vmem:[#allocation3 + $0x88] sm:$0x3] %vm966_vm4, %v8567_v2 }
  0x3e   : > { %7330 = vmatmul.msk.bf16.vlgmr.msrb.gmra.mxu2 %vm334_vm1, %v499_v44  ;;  %984 = vst.msk [vmem:[#allocation3 + $0x90] sm:$0xff] %vm964_vm3, %v8567_v2 }
  0x3f   : > { %1127 = vmatpush.bf16.msrb.mxu2 %v8293_v59  ;;  %985 = vst.msk [vmem:[#allocation3 + $0x98] sm:$0x3] %vm966_vm4, %v8567_v2 }
  0x40   : > { %7335 = vmatmul.msk.bf16.vlgmr.msrb.gmra.mxu3 %vm334_vm1, %v565_v46  ;;  %v8294_v46 = vld [vmem:[%s11366_s3 + $0x10] sm:$0xff]  ;;  %2660 = vst.msk [vmem:[#allocation4 + $0x10] sm:$0xff] %vm1773_vm5, %v8567_v2 }
  0x41   : > { %7340 = vmatmul.msk.bf16.vlgmr.msrb.gmra.mxu0 %vm334_vm1, %v631_v47  ;;  %1075 = vmatpush.bf16.msrb.mxu1 %v8294_v46  ;;  %2662 = vst.msk [vmem:[#allocation4 + $0x20] sm:$0xff] %vm1773_vm5, %v8567_v2 }
  0x42   : > { %7326 = vmatmul.msk.bf16.gmra.mxu1 %vm334_vm1, %v383_v48  ;;  %1205 = vmatpush.bf16.msrb.mxu3 %v8297_v60  ;;  %2664 = vst.msk [vmem:[#allocation4 + $0x30] sm:$0xff] %vm1773_vm5, %v8567_v2 }
  0x43   : > { %1291 = vmatpush.bf16.msrb.mxu0 %v8299_v5  ;;  %2666 = vst.msk [vmem:[#allocation4 + $0x40] sm:$0xff] %vm1773_vm5, %v8567_v2 }
  0x44   : > { %2668 = vst.msk [vmem:[#allocation4 + $0x50] sm:$0xff] %vm1773_vm5, %v8567_v2 }
  0x45   : > { %2670 = vst.msk [vmem:[#allocation4 + $0x60] sm:$0xff] %vm1773_vm5, %v8567_v2 }
  0x46   : > { %2672 = vst.msk [vmem:[#allocation4 + $0x70] sm:$0xff] %vm1773_vm5, %v8567_v2 }
  0x47   : > { %2674 = vst.msk [vmem:[#allocation4 + $0x80] sm:$0xff] %vm1773_vm5, %v8567_v2 }
  0x48   : > { %2676 = vst.msk [vmem:[#allocation4 + $0x90] sm:$0xff] %vm1773_vm5, %v8567_v2 }
  0x49   : > { %2680 = vst.msk [vmem:[#allocation4 + $0xb0] sm:$0xff] %vm1773_vm5, %v8567_v2 }
  0x4a   : > { %2682 = vst.msk [vmem:[#allocation4 + $0xc0] sm:$0xff] %vm1773_vm5, %v8567_v2 }
  0x4b   : > { %2684 = vst.msk [vmem:[#allocation4 + $0xd0] sm:$0xff] %vm1773_vm5, %v8567_v2 }
  0x4c   : > { %2686 = vst.msk [vmem:[#allocation4 + $0xe0] sm:$0xff] %vm1773_vm5, %v8567_v2 }
  0x4d   : > { %2688 = vst.msk [vmem:[#allocation4 + $0xf0] sm:$0xff] %vm1773_vm5, %v8567_v2 }
  0x4e   : > { %7331 = vmatmul.msk.bf16.gmra.mxu2 %vm334_vm1, %v500_v53  ;;  %2690 = vst.msk [vmem:[#allocation4 + $0x100] sm:$0xff] %vm1773_vm5, %v8567_v2 }
  0x4f   : > { %2692 = vst.msk [vmem:[#allocation4 + $0x110] sm:$0xff] %vm1773_vm5, %v8567_v2 }
  0x50   : > { %7336 = vmatmul.msk.bf16.gmra.mxu3 %vm334_vm1, %v566_v55  ;;  %2694 = vst.msk [vmem:[#allocation4 + $0x120] sm:$0xff] %vm1773_vm5, %v8567_v2 }
  0x51   : > { %7341 = vmatmul.msk.bf16.gmra.mxu0 %vm334_vm1, %v632_v56  ;;  %2696 = vst.msk [vmem:[#allocation4 + $0x130] sm:$0xff] %vm1773_vm5, %v8567_v2 }
  0x52   : > { %7327 = vmatmul.msk.bf16.gmra.mxu1 %vm334_vm1, %v384_v57  ;;  %2698 = vst.msk [vmem:[#allocation4 + $0x140] sm:$0xff] %vm1773_vm5, %v8567_v2 }
  0x53   : > { %2700 = vst.msk [vmem:[#allocation4 + $0x150] sm:$0xff] %vm1773_vm5, %v8567_v2 }
  0x54   : > { %2702 = vst.msk [vmem:[#allocation4 + $0x160] sm:$0xff] %vm1773_vm5, %v8567_v2 }
  0x55   : > { %2704 = vst.msk [vmem:[#allocation4 + $0x170] sm:$0xff] %vm1773_vm5, %v8567_v2 }
  0x56   : > { %2706 = vst.msk [vmem:[#allocation4 + $0x180] sm:$0xff] %vm1773_vm5, %v8567_v2 }
  0x57   : > { %2708 = vst.msk [vmem:[#allocation4 + $0x190] sm:$0xff] %vm1773_vm5, %v8567_v2 }
  0x58   : > { %2710 = vst.msk [vmem:[#allocation4 + $0x1a0] sm:$0xff] %vm1773_vm5, %v8567_v2 }
  0x59   : > { %2712 = vst.msk [vmem:[#allocation4 + $0x1b0] sm:$0xff] %vm1773_vm5, %v8567_v2 }
  0x5a   : > { %2714 = vst.msk [vmem:[#allocation4 + $0x1c0] sm:$0xff] %vm1773_vm5, %v8567_v2 }
  0x5b   : > { %2718 = vst.msk [vmem:[#allocation4 + $0x1e0] sm:$0xff] %vm1773_vm5, %v8567_v2 }
  0x5c   : > { %2720 = vst.msk [vmem:[#allocation4 + $0x1f0] sm:$0xff] %vm1773_vm5, %v8567_v2 }
  0x5d   : > { %2722 = vst.msk [vmem:[#allocation4 + $0x200] sm:$0xff] %vm1773_vm5, %v8567_v2 }
  0x5e   : > { %7332 = vmatmul.msk.bf16.gmra.mxu2 %vm334_vm1, %v501_v61  ;;  %2724 = vst.msk [vmem:[#allocation4 + $0x210] sm:$0xff] %vm1773_vm5, %v8567_v2 }
  0x5f   : > { %2726 = vst.msk [vmem:[#allocation4 + $0x220] sm:$0xff] %vm1773_vm5, %v8567_v2 }
  0x60   : > { %7337 = vmatmul.msk.bf16.gmra.mxu3 %vm334_vm1, %v567_v63  ;;  %v8292_v63 = vld [vmem:[%s11366_s3] sm:$0xff]  ;;  %2728 = vst.msk [vmem:[#allocation4 + $0x230] sm:$0xff] %vm1773_vm5, %v8567_v2 }
  0x61   : > { %7342 = vmatmul.msk.bf16.gmra.mxu0 %vm334_vm1, %v633_v0  ;;  %v8296_v0 = vld [vmem:[%s11366_s3 + $0x20] sm:$0xff]  ;;  %1128 = vmatpush.bf16.msrb.mxu2 %v8292_v63  ;;  %2730 = vst.msk [vmem:[#allocation4 + $0x240] sm:$0xff] %vm1773_vm5, %v8567_v2 }
  0x62   : > { %7328 = vmatmul.msk.bf16.gmra.mxu1 %vm334_vm1, %v385_v1  ;;  %1206 = vmatpush.bf16.msrb.mxu3 %v8296_v0  ;;  %v1019_v63 = vld [vmem:[#allocation3 + $0x1] sm:$0xff]  ;;  %2732 = vst.msk [vmem:[#allocation4 + $0x250] sm:$0xff] %vm1773_vm5, %v8567_v2 }
  0x63   : > { %2734 = vst.msk [vmem:[#allocation4 + $0x260] sm:$0xff] %vm1773_vm5, %v8567_v2 }
  0x64   : > { %2661 = vst.msk [vmem:[#allocation4 + $0x18] sm:$0x3] %vm2658_vm6, %v8567_v2 }
  0x65   : > { %2663 = vst.msk [vmem:[#allocation4 + $0x28] sm:$0x3] %vm2658_vm6, %v8567_v2 }
  0x66   : > { %2665 = vst.msk [vmem:[#allocation4 + $0x38] sm:$0x3] %vm2658_vm6, %v8567_v2 }
  0x67   : > { %2667 = vst.msk [vmem:[#allocation4 + $0x48] sm:$0x3] %vm2658_vm6, %v8567_v2 }
  0x68   : > { %2669 = vst.msk [vmem:[#allocation4 + $0x58] sm:$0x3] %vm2658_vm6, %v8567_v2 }
  0x69   : > { %2671 = vst.msk [vmem:[#allocation4 + $0x68] sm:$0x3] %vm2658_vm6, %v8567_v2 }
  0x6a   : > { %2673 = vst.msk [vmem:[#allocation4 + $0x78] sm:$0x3] %vm2658_vm6, %v8567_v2 }
  0x6b   : > { %2675 = vst.msk [vmem:[#allocation4 + $0x88] sm:$0x3] %vm2658_vm6, %v8567_v2 }
  0x6c   : > { %2677 = vst.msk [vmem:[#allocation4 + $0x98] sm:$0x3] %vm2658_vm6, %v8567_v2 }
  0x6d   : > { %2681 = vst.msk [vmem:[#allocation4 + $0xb8] sm:$0x3] %vm2658_vm6, %v8567_v2 }
  0x6e   : > { %7333 = vmatmul.msk.bf16.gmra.mxu2 %vm334_vm1, %v502_v6  ;;  %2683 = vst.msk [vmem:[#allocation4 + $0xc8] sm:$0x3] %vm2658_vm6, %v8567_v2 }
  0x6f   : > { %2685 = vst.msk [vmem:[#allocation4 + $0xd8] sm:$0x3] %vm2658_vm6, %v8567_v2 }
  0x70   : > { %7338 = vmatmul.msk.bf16.gmra.mxu3 %vm334_vm1, %v568_v8  ;;  %2687 = vst.msk [vmem:[#allocation4 + $0xe8] sm:$0x3] %vm2658_vm6, %v8567_v2 }
  0x71   : > { %7343 = vmatmul.msk.bf16.gmra.mxu0 %vm334_vm1, %v634_v9  ;;  %v8301_v9 = vld [vmem:[%s11366_s3 + $0x48] sm:$0xff]  ;;  %2689 = vst.msk [vmem:[#allocation4 + $0xf8] sm:$0x3] %vm2658_vm6, %v8567_v2 }
  0x72   : > { %7345 = vmatmul.msk.bf16.vlgmr.msra.gmra.mxu1 %vm334_vm1, %v697_v10  ;;  %2691 = vst.msk [vmem:[#allocation4 + $0x108] sm:$0x3] %vm2658_vm6, %v8567_v2 }
  0x73   : > { %1377 = vmatpush.bf16.msra.mxu1 %v8301_v9  ;;  %2693 = vst.msk [vmem:[#allocation4 + $0x118] sm:$0x3] %vm2658_vm6, %v8567_v2 }
  0x74   : > { %2695 = vst.msk [vmem:[#allocation4 + $0x128] sm:$0x3] %vm2658_vm6, %v8567_v2 }
  0x75   : > { %2697 = vst.msk [vmem:[#allocation4 + $0x138] sm:$0x3] %vm2658_vm6, %v8567_v2 }
  0x76   : > { %2699 = vst.msk [vmem:[#allocation4 + $0x148] sm:$0x3] %vm2658_vm6, %v8567_v2 }
  0x77   : > { %2701 = vst.msk [vmem:[#allocation4 + $0x158] sm:$0x3] %vm2658_vm6, %v8567_v2 }
  0x78   : > { %2703 = vst.msk [vmem:[#allocation4 + $0x168] sm:$0x3] %vm2658_vm6, %v8567_v2 }
  0x79   : > { %2705 = vst.msk [vmem:[#allocation4 + $0x178] sm:$0x3] %vm2658_vm6, %v8567_v2 }
  0x7a   : > { %2707 = vst.msk [vmem:[#allocation4 + $0x188] sm:$0x3] %vm2658_vm6, %v8567_v2 }
  0x7b   : > { %2709 = vst.msk [vmem:[#allocation4 + $0x198] sm:$0x3] %vm2658_vm6, %v8567_v2 }
  0x7c   : > { %2711 = vst.msk [vmem:[#allocation4 + $0x1a8] sm:$0x3] %vm2658_vm6, %v8567_v2 }
  0x7d   : > { %2713 = vst.msk [vmem:[#allocation4 + $0x1b8] sm:$0x3] %vm2658_vm6, %v8567_v2 }
  0x7e   : > { %7350 = vmatmul.msk.bf16.vlgmr.msra.gmra.mxu2 %vm334_vm1, %v383_v48  ;;  %2715 = vst.msk [vmem:[#allocation4 + $0x1c8] sm:$0x3] %vm2658_vm6, %v8567_v2 }
  0x7f   : > { %2719 = vst.msk [vmem:[#allocation4 + $0x1e8] sm:$0x3] %vm2658_vm6, %v8567_v2 }
  0x80   : > { %7355 = vmatmul.msk.bf16.vlgmr.msra.gmra.mxu3 %vm334_vm1, %v8687_v15  ;;  %2721 = vst.msk [vmem:[#allocation4 + $0x1f8] sm:$0x3] %vm2658_vm6, %v8567_v2 }
  0x81   : > { %7360 = vmatmul.msk.bf16.vlgmr.msra.gmra.mxu0 %vm334_vm1, %v500_v53  ;;  %2723 = vst.msk [vmem:[#allocation4 + $0x208] sm:$0x3] %vm2658_vm6, %v8567_v2 }
  0x82   : > { %7346 = vmatmul.msk.bf16.gmra.mxu1 %vm334_vm1, %v698_v11  ;;  %v8298_v11 = vld [vmem:[%s11366_s3 + $0x30] sm:$0xff]  ;;  %2725 = vst.msk [vmem:[#allocation4 + $0x218] sm:$0x3] %vm2658_vm6, %v8567_v2 }
  0x83   : > { %1292 = vmatpush.bf16.msrb.mxu0 %v8298_v11  ;;  %2727 = vst.msk [vmem:[#allocation4 + $0x228] sm:$0x3] %vm2658_vm6, %v8567_v2 }
  0x84   : > { %2729 = vst.msk [vmem:[#allocation4 + $0x238] sm:$0x3] %vm2658_vm6, %v8567_v2 }
  0x85   : > { %2731 = vst.msk [vmem:[#allocation4 + $0x248] sm:$0x3] %vm2658_vm6, %v8567_v2 }
  0x86   : > { %2733 = vst.msk [vmem:[#allocation4 + $0x258] sm:$0x3] %vm2658_vm6, %v8567_v2 }
  0x87   : > { %2735 = vst.msk [vmem:[#allocation4 + $0x268] sm:$0x3] %vm2658_vm6, %v8567_v2 }
  0x8e   : > { %7351 = vmatmul.msk.bf16.gmra.mxu2 %vm334_vm1, %v384_v57 }
  0x90   : > { %7356 = vmatmul.msk.bf16.gmra.mxu3 %vm334_vm1, %v8722_v28 }
  0x91   : > { %7361 = vmatmul.msk.bf16.gmra.mxu0 %vm334_vm1, %v501_v61 }
  0x92   : > { %7347 = vmatmul.msk.bf16.gmra.mxu1 %vm334_vm1, %v699_v12 }
  0x9b   : > { %v8774_v14 = vpop.f32.mrf.mxu1 }
  0x9e   : > { %7352 = vmatmul.msk.bf16.gmra.mxu2 %vm334_vm1, %v385_v1 }
  0xa0   : > { %7357 = vmatmul.msk.bf16.gmra.mxu3 %vm334_vm1, %v8736_v34 }
  0xa1   : > { %7362 = vmatmul.msk.bf16.gmra.mxu0 %vm334_vm1, %v502_v6 }
  0xa2   : > { %7348 = vmatmul.msk.bf16.gmra.mxu1 %vm334_vm1, %v700_v16 }
  0xa3   : > { %v8781_v15 = vpop.f32.mrf.mxu1 }
  0xae   : > { %v425_v23 = vpop.f32.mrf.mxu0  ;;  %7353 = vmatmul.msk.bf16.gmra.mxu2 %vm334_vm1, %v767_v19 }
  0xaf   : > { %v469_v24 = vpop.f32.mrf.mxu1 }
  0xb0   : > { %7358 = vmatmul.msk.bf16.gmra.mxu3 %vm334_vm1, %v833_v21  ;;  %v470_v1 = vadd.f32 %v469_v24, %v425_v23 }
  0xb1   : > { %7363 = vmatmul.msk.bf16.gmra.mxu0 %vm334_vm1, %v899_v22  ;;  %v8786_v25 = vpop.f32.mrf.mxu2 }
  0xb3   : > { %v8788_v26 = vpop.f32.mrf.mxu3 }
  0xb6   : > { %v8790_v27 = vpop.f32.mrf.mxu0 }
  0xb7   : > { %v8792_v28 = vpop.f32.mrf.mxu1 }
  0xb8   : > { %v472_v12 = vadd.f32 %v8792_v28, %v8790_v27  ;;  %v8931_v28 = vld [vmem:[%s11365_s2] ss:$0 sm:$0xff] }
  0xb9   : > { %v8797_v30 = vpop.f32.mrf.mxu2 }
  0xbb   : > { %v8799_v31 = vpop.f32.mrf.mxu3 }
  0xbe   : > { %v8801_v32 = vpop.f32.mrf.mxu0 }
  0xbf   : > { %v8803_v33 = vpop.f32.mrf.mxu1 }
  0xc0   : > { %v475_v24 = vadd.f32 %v8803_v33, %v8774_v14 }
  0xc1   : > { %v527_v34 = vpop.f32.mrf.mxu2 }
  0xc2   : > { %v547_v3 = vadd.f32 %v527_v34, %v470_v1  ;;  %v1150_v1 = vld [vmem:[#allocation3 + $0x2] sm:$0xff] }
  0xc3   : > { %v593_v35 = vpop.f32.mrf.mxu3 }
  0xc4   : > { %v613_v8 = vadd.f32 %v593_v35, %v547_v3 }
  0xc6   : > { %v8805_v36 = vpop.f32.mrf.mxu0  ;;  %v679_v16 = vadd.f32 %v8801_v32, %v613_v8  ;;  %v1032_v8 = vmax.f32 %v1019_v63, 0.0 }
  0xc7   : > { %v8807_v37 = vpop.f32.mrf.mxu1 }
  0xc8   : > { %v477_v33 = vadd.f32 %v8807_v37, %v8781_v15 }
  0xc9   : > { %v8809_v38 = vpop.f32.mrf.mxu2 }
  0xca   : > { %v548_v13 = vadd.f32 %v8809_v38, %v472_v12  ;;  %v1163_v12 = vmax.f32 %v1150_v1, 0.0 }
  0xcb   : > { %v8811_v39 = vpop.f32.mrf.mxu3 }
  0xcc   : > { %v614_v20 = vadd.f32 %v8811_v39, %v548_v13 }
  0xce   : > { %v8813_v40 = vpop.f32.mrf.mxu0  ;;  %v680_v34 = vadd.f32 %v8805_v36, %v614_v20  ;;  %v995_v36 = vld [vmem:[#allocation3] sm:$0xff] }
  0xcf   : > { %v8815_v41 = vpop.f32.mrf.mxu1  ;;  %v1007_v11 = vmax.f32 %v995_v36, 0.0 }
  0xd0   : > { %v480_v20 = vadd.f32 %v8815_v41, %v8786_v25 }
  0xd1   : > { %v8817_v42 = vpop.f32.mrf.mxu2 }
  0xd2   : > { %v549_v29 = vadd.f32 %v8817_v42, %v475_v24 }
  0xd3   : > { %v8819_v43 = vpop.f32.mrf.mxu3 }
  0xd6   : > { %v8821_v44 = vpop.f32.mrf.mxu0 }
  0xd7   : > { %v8823_v45 = vpop.f32.mrf.mxu1 }
  0xd9   : > { %v8828_v47 = vpop.f32.mrf.mxu2 }
  0xda   : > { %v550_v42 = vadd.f32 %v8828_v47, %v477_v33 }
  0xdb   : > { %v8830_v48 = vpop.f32.mrf.mxu3 }
  0xdc   : > { %v616_v15 = vadd.f32 %v8830_v48, %v550_v42 }
  0xde   : > { %v8832_v49 = vpop.f32.mrf.mxu0 }
  0xdf   : > { %v8834_v50 = vpop.f32.mrf.mxu1 }
  0xe1   : > { %v8836_v51 = vpop.f32.mrf.mxu2 }
  0xe3   : > { %v8838_v52 = vpop.f32.mrf.mxu3 }
  0xe6   : > { %v8840_v53 = vpop.f32.mrf.mxu0 }
  0xe7   : > { %v8842_v54 = vpop.f32.mrf.mxu1 }
  0xe9   : > { %v8844_v55 = vpop.f32.mrf.mxu2 }
  0xeb   : > { %v8850_v56 = vpop.f32.mrf.mxu3 }
  0xee   : > { %v8858_v57 = vpop.f32.mrf.mxu0 }
  0xef   : > { %v725_v58 = vpop.f32.mrf.mxu1 }
  0xf0   : > { %v745_v18 = vadd.f32 %v725_v58, %v679_v16  ;;  %v615_v58 = vadd.f32 %v8819_v43, %v549_v29 }
  0xf1   : > { %v8872_v61 = vpop.f32.mrf.mxu2 }
  0xf2   : > { %v681_v5 = vadd.f32 %v8813_v40, %v615_v58 }
  0xf3   : > { %v8878_v62 = vpop.f32.mrf.mxu3 }
  0xf6   : > { %v8892_v4 = vpop.f32.mrf.mxu0 }
  0xf7   : > { %v727_v7 = vpop.f32.mrf.mxu1 }
  0xf8   : > { %v746_v39 = vadd.f32 %v727_v7, %v680_v34 }
  0xf9   : > { %v8903_v6 = vpop.f32.mrf.mxu2 }
  0xfb   : > { %v8912_v10 = vpop.f32.mrf.mxu3 }
  0xfe   : > { %v924_v17 = vpop.f32.mrf.mxu0 }
  0xff   : > { %v730_v23 = vpop.f32.mrf.mxu1 }
 0x100   : > { %v747_v9 = vadd.f32 %v730_v23, %v681_v5 }
 0x101   : > { %v792_v19 = vpop.f32.mrf.mxu2 }
 0x102   : > { %v812_v21 = vadd.f32 %v792_v19, %v745_v18 }
 0x103   : > { %v858_v22 = vpop.f32.mrf.mxu3 }
 0x104   : > { %v878_v27 = vadd.f32 %v858_v22, %v812_v21 }
 0x106   : > { %v944_v32 = vadd.f32 %v924_v17, %v878_v27  ;;  %v926_v35 = vpop.f32.mrf.mxu0  ;;  %v551_v27 = vadd.f32 %v8836_v51, %v480_v20 }
 0x107   : > { %v732_v0 = vpop.f32.mrf.mxu1 }
 0x108   : > { %v956_v38 = vadd.f32 %v8931_v28, %v944_v32  ;;  %v682_v32 = vadd.f32 %v8821_v44, %v616_v15  ;;  %v8300_v44 = vld [vmem:[%s11366_s3 + $0x40] sm:$0xff] }
 0x109   : > { %v794_v46 = vpop.f32.mrf.mxu2  ;;  %1378 = vmatpush.bf16.msra.mxu1 %v8300_v44 }
 0x10a   : > { %987 = vst.msk [vmem:[#allocation3 + $0x11] sm:$0xff] %vm964_vm3, %v956_v38  ;;  %v813_v14 = vadd.f32 %v794_v46, %v746_v39  ;;  %v617_v46 = vadd.f32 %v8838_v52, %v551_v27 }
 0x10b   : > { %v860_v59 = vpop.f32.mrf.mxu3 }
 0x10c   : > { %v879_v60 = vadd.f32 %v860_v59, %v813_v14  ;;  %v482_v14 = vadd.f32 %v8823_v45, %v8797_v30  ;;  %v683_v52 = vadd.f32 %v8832_v49, %v617_v46 }
 0x10e   : > { %v945_v3 = vadd.f32 %v926_v35, %v879_v60  ;;  %v929_v7 = vpop.f32.mrf.mxu0  ;;  %v748_v35 = vadd.f32 %v732_v0, %v682_v32  ;;  %v552_v63 = vadd.f32 %v8844_v55, %v482_v14 }
 0x10f   : > { %v735_v25 = vpop.f32.mrf.mxu1 }
 0x110   : > { %v957_v43 = vadd.f32 %v8931_v28, %v945_v3  ;;  %v749_v5 = vadd.f32 %v735_v25, %v683_v52  ;;  %v618_v30 = vadd.f32 %v8850_v56, %v552_v63  ;;  %v485_v56 = vadd.f32 %v8834_v50, %v8788_v26  ;;  %v8303_v50 = vld [vmem:[%s11366_s3 + $0x58] sm:$0xff] }
 0x111   : > { %v797_v37 = vpop.f32.mrf.mxu2  ;;  %v8944_v13 = vld [vmem:[#allocation3 + $0x11] sm:$0xff]  ;;  %1463 = vmatpush.bf16.msra.mxu2 %v8303_v50 }
 0x112   : > { %v996_v16 = vld [vmem:[#allocation3 + $0x10] sm:$0xff]  ;;  %988 = vst.msk [vmem:[#allocation3 + $0x21] sm:$0xff] %vm964_vm3, %v957_v43  ;;  %v814_v17 = vadd.f32 %v797_v37, %v747_v9  ;;  %v1033_v40 = vmax.f32 %v8944_v13, 0.0  ;;  %v684_v26 = vadd.f32 %v8840_v53, %v618_v30 }
 0x113   : > { %v8946_v47 = vld [vmem:[#allocation3 + $0x12] sm:$0xff]  ;;  %v1008_v18 = vmax.f32 %v996_v16, 0.0  ;;  %v863_v21 = vpop.f32.mrf.mxu3 }
 0x114   : > { %v1164_v19 = vmax.f32 %v8946_v47, 0.0  ;;  %v880_v22 = vadd.f32 %v863_v21, %v814_v17  ;;  %v1040_v48 = vpack.c.bf16 %v1033_v40, %v1032_v8  ;;  %v8306_v50 = vld [vmem:[%s11366_s3 + $0x70] sm:$0xff] }
 0x115   : > { %v1015_v23 = vpack.c.bf16 %v1008_v18, %v1007_v11 }
 0x116   : > { %v1171_v24 = vpack.c.bf16 %v1164_v19, %v1163_v12  ;;  %v946_v29 = vadd.f32 %v929_v7, %v880_v22  ;;  %v931_v34 = vpop.f32.mrf.mxu0  ;;  %7376 = vmatmul.msk.bf16.vlgmr.msrb.gmra.mxu1 %vm964_vm3, %v1040_v48  ;;  %v553_v22 = vadd.f32 %v8872_v61, %v485_v56  ;;  %v8305_v61 = vld [vmem:[%s11366_s3 + $0x68] sm:$0xff] }
 0x117   : > { %7388 = vmatmul.msk.bf16.vlgmr.msrb.gmra.mxu2 %vm964_vm3, %v1015_v23  ;;  %v737_v7 = vpop.f32.mrf.mxu1  ;;  %1550 = vmatpush.bf16.msra.mxu3 %v8305_v61 }
 0x118   : > { %7404 = vmatmul.msk.bf16.vlgmr.msrb.gmra.mxu3 %vm964_vm3, %v1171_v24  ;;  %v958_v41 = vadd.f32 %v8931_v28, %v946_v29  ;;  %v750_v53 = vadd.f32 %v737_v7, %v684_v26  ;;  %v619_v32 = vadd.f32 %v8878_v62, %v553_v22  ;;  %v8309_v26 = vld [vmem:[%s11366_s3 + $0x88] sm:$0xff] }
 0x119   : > { %v799_v38 = vpop.f32.mrf.mxu2  ;;  %v1237_v39 = vld [vmem:[#allocation3 + $0x20] sm:$0xff]  ;;  %1722 = vmatpush.bf16.msrb.mxu1 %v8309_v26 }
 0x11a   : > { %989 = vst.msk [vmem:[#allocation3 + $0x31] sm:$0xff] %vm964_vm3, %v958_v41  ;;  %v815_v51 = vadd.f32 %v799_v38, %v748_v35  ;;  %v1250_v58 = vmax.f32 %v1237_v39, 0.0  ;;  %v8973_v0 = vld [vmem:[#allocation3 + $0x21] sm:$0xff]  ;;  %v487_v41 = vadd.f32 %v8842_v54, %v8799_v31  ;;  %v685_v62 = vadd.f32 %v8858_v57, %v619_v32  ;;  %v8307_v54 = vld [vmem:[%s11366_s3 + $0x78] sm:$0xff] }
 0x11b   : > { %v865_v33 = vpop.f32.mrf.mxu3  ;;  %v8975_v36 = vld [vmem:[#allocation3 + $0x22] sm:$0xff]  ;;  %v1034_v55 = vmax.f32 %v8973_v0, 0.0  ;;  %1636 = vmatpush.bf16.msra.mxu0 %v8307_v54 }
 0x11c   : > { %v881_v59 = vadd.f32 %v865_v33, %v815_v51  ;;  %v1257_v60 = vpack.c.bf16 %v1250_v58, %v1008_v18  ;;  %v1165_v9 = vmax.f32 %v8975_v36, 0.0  ;;  %v554_v51 = vadd.f32 %v8903_v6, %v487_v41  ;;  %v8302_v33 = vld [vmem:[%s11366_s3 + $0x50] sm:$0xff]  ;;  %v8304_v31 = vld [vmem:[%s11366_s3 + $0x60] sm:$0xff] }
 0x11d   : > { %1464 = vmatpush.bf16.msra.mxu2 %v8302_v33  ;;  %1551 = vmatpush.bf16.msra.mxu3 %v8304_v31 }
 0x11e   : > { %v947_v42 = vadd.f32 %v931_v34, %v881_v59  ;;  %7420 = vmatmul.msk.bf16.vlgmr.msrb.gmra.mxu0 %vm964_vm3, %v1257_v60  ;;  %v934_v1 = vpop.f32.mrf.mxu0  ;;  %v620_v57 = vadd.f32 %v8912_v10, %v554_v51 }
 0x11f   : > { %v740_v38 = vpop.f32.mrf.mxu1  ;;  %1637 = vmatpush.bf16.msra.mxu0 %v8306_v50 }
 0x120   : > { %v959_v3 = vadd.f32 %v8931_v28, %v947_v42  ;;  %v751_v59 = vadd.f32 %v740_v38, %v685_v62 }
 0x121   : > { %v802_v45 = vpop.f32.mrf.mxu2  ;;  %v8979_v8 = vld [vmem:[#allocation3 + $0x31] sm:$0xff] }
 0x122   : > { %v998_v43 = vld [vmem:[#allocation3 + $0x30] sm:$0xff]  ;;  %990 = vst.msk [vmem:[#allocation3 + $0x41] sm:$0xff] %vm964_vm3, %v959_v3  ;;  %v816_v11 = vadd.f32 %v802_v45, %v749_v5  ;;  %v1035_v12 = vmax.f32 %v8979_v8, 0.0 }
 0x123   : > { %v8982_v49 = vld [vmem:[#allocation3 + $0x32] sm:$0xff]  ;;  %v1010_v15 = vmax.f32 %v998_v43, 0.0  ;;  %v868_v16 = vpop.f32.mrf.mxu3 }
 0x124   : > { %v1166_v37 = vmax.f32 %v8982_v49, 0.0  ;;  %v882_v17 = vadd.f32 %v868_v16, %v816_v11  ;;  %v8994_v18 = vpack.c.bf16 %v1035_v12, %v1034_v55 }
 0x125   : > { %v8996_v20 = vpack.c.bf16 %v1010_v15, %v1250_v58 }
 0x126   : > { %v9002_v21 = vpack.c.bf16 %v1166_v37, %v1165_v9  ;;  %v948_v48 = vadd.f32 %v934_v1, %v882_v17  ;;  %7377 = vmatmul.msk.bf16.gmra.mxu1 %vm964_vm3, %v8994_v18  ;;  %v936_v24 = vpop.f32.mrf.mxu0 }
 0x127   : > { %7389 = vmatmul.msk.bf16.gmra.mxu2 %vm964_vm3, %v8996_v20  ;;  %v742_v17 = vpop.f32.mrf.mxu1 }
 0x128   : > { %7405 = vmatmul.msk.bf16.gmra.mxu3 %vm964_vm3, %v9002_v21  ;;  %v960_v23 = vadd.f32 %v8931_v28, %v948_v48  ;;  %v686_v48 = vadd.f32 %v8892_v4, %v620_v57 }
 0x129   : > { %v804_v27 = vpop.f32.mrf.mxu2  ;;  %v1239_v29 = vld [vmem:[#allocation3 + $0x40] sm:$0xff] }
 0x12a   : > { %991 = vst.msk [vmem:[#allocation3 + $0x51] sm:$0xff] %vm964_vm3, %v960_v23  ;;  %v817_v34 = vadd.f32 %v804_v27, %v750_v53  ;;  %v1252_v25 = vmax.f32 %v1239_v29, 0.0  ;;  %v9024_v58 = vld [vmem:[#allocation3 + $0x41] sm:$0xff]  ;;  %v752_v23 = vadd.f32 %v742_v17, %v686_v48 }
 0x12b   : > { %v870_v35 = vpop.f32.mrf.mxu3  ;;  %v9026_v44 = vld [vmem:[#allocation3 + $0x42] sm:$0xff]  ;;  %v1036_v42 = vmax.f32 %v9024_v58, 0.0 }
 0x12c   : > { %v883_v39 = vadd.f32 %v870_v35, %v817_v34  ;;  %v1258_v46 = vpack.c.bf16 %v1252_v25, %v1010_v15  ;;  %v1167_v3 = vmax.f32 %v9026_v44, 0.0 }
 0x12d   : > { %v1344_v47 = vpack.c.bf16 %v1036_v42, %v1035_v12 }
 0x12e   : > { %v949_v14 = vadd.f32 %v936_v24, %v883_v39  ;;  %7421 = vmatmul.msk.bf16.gmra.mxu0 %vm964_vm3, %v1258_v46  ;;  %v939_v10 = vpop.f32.mrf.mxu0 }
 0x130   : > { %v961_v6 = vadd.f32 %v8931_v28, %v949_v14 }
 0x131   : > { %v807_v60 = vpop.f32.mrf.mxu2  ;;  %v9041_v63 = vld [vmem:[#allocation3 + $0x51] sm:$0xff] }
 0x132   : > { %v1000_v52 = vld [vmem:[#allocation3 + $0x50] sm:$0xff]  ;;  %992 = vst.msk [vmem:[#allocation3 + $0x61] sm:$0xff] %vm964_vm3, %v961_v6  ;;  %v818_v5 = vadd.f32 %v807_v60, %v751_v59  ;;  %v1037_v30 = vmax.f32 %v9041_v63, 0.0 }
 0x133   : > { %v9044_v1 = vld [vmem:[#allocation3 + $0x52] sm:$0xff]  ;;  %v1012_v45 = vmax.f32 %v1000_v52, 0.0  ;;  %v873_v43 = vpop.f32.mrf.mxu3 }
 0x134   : > { %v1168_v7 = vmax.f32 %v9044_v1, 0.0  ;;  %v884_v11 = vadd.f32 %v873_v43, %v818_v5  ;;  %v1042_v15 = vpack.c.bf16 %v1037_v30, %v1036_v42  ;;  %v8308_v43 = vld [vmem:[%s11366_s3 + $0x80] sm:$0xff]  ;;  %v9134_v1 = vld [vmem:[#allocation3 + $0x91] sm:$0xff] }
 0x135   : > { %v1017_v56 = vpack.c.bf16 %v1012_v45, %v1252_v25  ;;  %1723 = vmatpush.bf16.msrb.mxu1 %v8308_v43 }
 0x136   : > { %v9058_v16 = vpack.c.bf16 %v1168_v7, %v1167_v3  ;;  %v950_v22 = vadd.f32 %v939_v10, %v884_v11  ;;  %7378 = vmatmul.msk.bf16.gmra.mxu1 %vm964_vm3, %v1042_v15  ;;  %v941_v25 = vpop.f32.mrf.mxu0  ;;  %v1429_v10 = vpack.c.bf16 %v1165_v9, %v1164_v19  ;;  %v9128_v9 = vld [vmem:[#allocation3 + $0x90] sm:$0xff] }
 0x137   : > { %7390 = vmatmul.msk.bf16.gmra.mxu2 %vm964_vm3, %v1017_v56 }
 0x138   : > { %7406 = vmatmul.msk.bf16.gmra.mxu3 %vm964_vm3, %v9058_v16  ;;  %v962_v61 = vadd.f32 %v8931_v28, %v950_v22 }
 0x139   : > { %v809_v53 = vpop.f32.mrf.mxu2  ;;  %v1241_v4 = vld [vmem:[#allocation3 + $0x60] sm:$0xff] }
 0x13a   : > { %993 = vst.msk [vmem:[#allocation3 + $0x71] sm:$0xff] %vm964_vm3, %v962_v61  ;;  %v819_v24 = vadd.f32 %v809_v53, %v752_v23  ;;  %v1254_v27 = vmax.f32 %v1241_v4, 0.0  ;;  %v9074_v35 = vld [vmem:[#allocation3 + $0x61] sm:$0xff] }
 0x13b   : > { %v875_v29 = vpop.f32.mrf.mxu3  ;;  %v1156_v38 = vld [vmem:[#allocation3 + $0x62] sm:$0xff]  ;;  %v1038_v51 = vmax.f32 %v9074_v35, 0.0 }
 0x13c   : > { %v885_v32 = vadd.f32 %v875_v29, %v819_v24  ;;  %v1259_v34 = vpack.c.bf16 %v1254_v27, %v1012_v45  ;;  %v1169_v54 = vmax.f32 %v1156_v38, 0.0  ;;  %v1343_v45 = vpack.c.bf16 %v1034_v55, %v1033_v40 }
 0x13d   : > { %v1430_v40 = vpack.c.bf16 %v1167_v3, %v1166_v37  ;;  %v1345_v19 = vpack.c.bf16 %v1038_v51, %v1037_v30  ;;  %v1601_v3 = vmax.f32 %v9134_v1, 0.0 }
 0x13e   : > { %v951_v41 = vadd.f32 %v941_v25, %v885_v32  ;;  %7422 = vmatmul.msk.bf16.gmra.mxu0 %vm964_vm3, %v1259_v34  ;;  %v1431_v36 = vpack.c.bf16 %v1169_v54, %v1168_v7 }
 0x140   : > { %v963_v39 = vadd.f32 %v8931_v28, %v951_v41 }
 0x141   : > { %v9077_v46 = vld [vmem:[#allocation3 + $0x71] sm:$0xff] }
 0x142   : > { %v1002_v14 = vld [vmem:[#allocation3 + $0x70] sm:$0xff]  ;;  %994 = vst.msk [vmem:[#allocation3 + $0x81] sm:$0xff] %vm964_vm3, %v963_v39  ;;  %v1039_v33 = vmax.f32 %v9077_v46, 0.0 }
 0x143   : > { %v1157_v62 = vld [vmem:[#allocation3 + $0x72] sm:$0xff]  ;;  %v1014_v31 = vmax.f32 %v1002_v14, 0.0 }
 0x144   : > { %v1170_v6 = vmax.f32 %v1157_v62, 0.0  ;;  %v1043_v59 = vpack.c.bf16 %v1039_v33, %v1038_v51 }
 0x145   : > { %v1018_v57 = vpack.c.bf16 %v1014_v31, %v1254_v27 }
 0x146   : > { %v9082_v60 = vpack.c.bf16 %v1170_v6, %v1169_v54  ;;  %7379 = vmatmul.msk.bf16.gmra.mxu1 %vm964_vm3, %v1043_v59  ;;  %v9167_v54 = vld [vmem:[#allocation3 + $0x92] sm:$0xff] }
 0x147   : > { %7391 = vmatmul.msk.bf16.gmra.mxu2 %vm964_vm3, %v1018_v57 }
 0x148   : > { %7407 = vmatmul.msk.bf16.gmra.mxu3 %vm964_vm3, %v9082_v60 }
 0x149   : > { %v1243_v28 = vld [vmem:[#allocation3 + $0x80] sm:$0xff] }
 0x14a   : > { %v1256_v52 = vmax.f32 %v1243_v28, 0.0  ;;  %v9125_v55 = vld [vmem:[#allocation3 + $0x81] sm:$0xff] }
 0x14b   : > { %v1415_v49 = vld [vmem:[#allocation3 + $0x82] sm:$0xff]  ;;  %v1342_v12 = vmax.f32 %v9125_v55, 0.0 }
 0x14c   : > { %v1260_v5 = vpack.c.bf16 %v1256_v52, %v1014_v31  ;;  %v1428_v37 = vmax.f32 %v1415_v49, 0.0 }
 0x14d   : > { %v1605_v30 = vpack.c.bf16 %v1601_v3, %v1342_v12 }
 0x14e   : > { %7423 = vmatmul.msk.bf16.gmra.mxu0 %vm964_vm3, %v1260_v5  ;;  %v1432_v44 = vpack.c.bf16 %v1428_v37, %v1170_v6 }
 0x156   : > { %7436 = vmatmul.msk.bf16.vlgmr.msra.gmra.mxu1 %vm964_vm3, %v1343_v45  ;;  %v8310_v45 = vld [vmem:[%s11367_s4] sm:$0xff] }
 0x157   : > { %7452 = vmatmul.msk.bf16.vlgmr.msra.gmra.mxu2 %vm964_vm3, %v1429_v10 }
 0x158   : > { %7468 = vmatmul.msk.bf16.vlgmr.msra.gmra.mxu3 %vm964_vm3, %v8996_v20  ;;  %v1346_v20 = vpack.c.bf16 %v1342_v12, %v1039_v33  ;;  %1793 = vmatpush.bf16.msrb.mxu2 %v8310_v45 }
 0x15e   : > { %7484 = vmatmul.msk.bf16.vlgmr.msra.gmra.mxu0 %vm964_vm3, %v8994_v18  ;;  %v1515_v18 = vmax.f32 %v9128_v9, 0.0 }
 0x160   : > { %v1519_v42 = vpack.c.bf16 %v1515_v18, %v1256_v52 }
 0x166   : > { %7437 = vmatmul.msk.bf16.gmra.mxu1 %vm964_vm3, %v1344_v47 }
 0x167   : > { %7453 = vmatmul.msk.bf16.gmra.mxu2 %vm964_vm3, %v1430_v40 }
 0x168   : > { %7469 = vmatmul.msk.bf16.gmra.mxu3 %vm964_vm3, %v1017_v56 }
 0x16e   : > { %7485 = vmatmul.msk.bf16.gmra.mxu0 %vm964_vm3, %v1042_v15 }
 0x176   : > { %7438 = vmatmul.msk.bf16.gmra.mxu1 %vm964_vm3, %v1345_v19 }
 0x177   : > { %7454 = vmatmul.msk.bf16.gmra.mxu2 %vm964_vm3, %v1431_v36 }
 0x178   : > { %7470 = vmatmul.msk.bf16.gmra.mxu3 %vm964_vm3, %v1018_v57 }
 0x17e   : > { %7486 = vmatmul.msk.bf16.gmra.mxu0 %vm964_vm3, %v1043_v59  ;;  %v1687_v59 = vmax.f32 %v9167_v54, 0.0 }
 0x186   : > { %7439 = vmatmul.msk.bf16.gmra.mxu1 %vm964_vm3, %v1346_v20 }
 0x187   : > { %7455 = vmatmul.msk.bf16.gmra.mxu2 %vm964_vm3, %v1432_v44 }
 0x188   : > { %7471 = vmatmul.msk.bf16.gmra.mxu3 %vm964_vm3, %v1519_v42 }
 0x18e   : > { %7487 = vmatmul.msk.bf16.gmra.mxu0 %vm964_vm3, %v1605_v30 }
 0x193   : > { %v1077_v7 = vpop.f32.mrf.mxu1 }
 0x196   : > { %7500 = vmatmul.msk.bf16.vlgmr.msrb.gmra.mxu1 %vm964_vm3, %v9002_v21 }
 0x19a   : > { %v1130_v11 = vpop.f32.mrf.mxu2 }
 0x19b   : > { %v1131_v15 = vadd.f32 %v1130_v11, %v1077_v7  ;;  %v1208_v56 = vpop.f32.mrf.mxu3  ;;  %v9145_v17 = vpop.f32.mrf.mxu1 }
 0x19c   : > { %v1294_v22 = vpop.f32.mrf.mxu0 }
 0x19d   : > { %v1228_v48 = vadd.f32 %v1208_v56, %v1131_v15 }
 0x19f   : > { %v1314_v26 = vadd.f32 %v1294_v22, %v1228_v48 }
 0x1a2   : > { %v9147_v50 = vpop.f32.mrf.mxu2 }
 0x1a3   : > { %v9149_v61 = vpop.f32.mrf.mxu3  ;;  %v1082_v23 = vpop.f32.mrf.mxu1 }
 0x1a4   : > { %v9151_v53 = vpop.f32.mrf.mxu0 }
 0x1a6   : > { %7501 = vmatmul.msk.bf16.gmra.mxu1 %vm964_vm3, %v9058_v16 }
 0x1aa   : > { %v1135_v4 = vpop.f32.mrf.mxu2 }
 0x1ab   : > { %v1136_v21 = vadd.f32 %v1135_v4, %v1082_v23  ;;  %v1213_v24 = vpop.f32.mrf.mxu3  ;;  %v9155_v27 = vpop.f32.mrf.mxu1 }
 0x1ac   : > { %v1299_v29 = vpop.f32.mrf.mxu0 }
 0x1ad   : > { %v1230_v32 = vadd.f32 %v1213_v24, %v1136_v21 }
 0x1af   : > { %v1316_v34 = vadd.f32 %v1299_v29, %v1230_v32  ;;  %v1133_v32 = vadd.f32 %v9147_v50, %v9145_v17 }
 0x1b2   : > { %v9157_v25 = vpop.f32.mrf.mxu2 }
 0x1b3   : > { %v9159_v41 = vpop.f32.mrf.mxu3  ;;  %v1087_v38 = vpop.f32.mrf.mxu1 }
 0x1b4   : > { %v9161_v39 = vpop.f32.mrf.mxu0 }
 0x1b6   : > { %7502 = vmatmul.msk.bf16.gmra.mxu1 %vm964_vm3, %v9082_v60  ;;  %v1691_v60 = vpack.c.bf16 %v1687_v59, %v1428_v37 }
 0x1ba   : > { %v1140_v51 = vpop.f32.mrf.mxu2 }
 0x1bb   : > { %v1141_v16 = vadd.f32 %v1140_v51, %v1087_v38  ;;  %v1218_v14 = vpop.f32.mrf.mxu3  ;;  %v9165_v62 = vpop.f32.mrf.mxu1  ;;  %v1229_v38 = vadd.f32 %v9149_v61, %v1133_v32 }
 0x1bc   : > { %v1304_v33 = vpop.f32.mrf.mxu0 }
 0x1bd   : > { %v1232_v31 = vadd.f32 %v1218_v14, %v1141_v16  ;;  %v1315_v16 = vadd.f32 %v9151_v53, %v1229_v38 }
 0x1bf   : > { %v1318_v6 = vadd.f32 %v1304_v33, %v1232_v31 }
 0x1c2   : > { %v9170_v57 = vpop.f32.mrf.mxu2 }
 0x1c3   : > { %v9172_v28 = vpop.f32.mrf.mxu3  ;;  %v1092_v52 = vpop.f32.mrf.mxu1 }
 0x1c4   : > { %v9174_v5 = vpop.f32.mrf.mxu0 }
 0x1c6   : > { %7503 = vmatmul.msk.bf16.gmra.mxu1 %vm964_vm3, %v1691_v60 }
 0x1ca   : > { %v1145_v10 = vpop.f32.mrf.mxu2 }
 0x1cb   : > { %v1146_v43 = vadd.f32 %v1145_v10, %v1092_v52  ;;  %v1223_v47 = vpop.f32.mrf.mxu3  ;;  %v9182_v40 = vpop.f32.mrf.mxu1  ;;  %v1138_v52 = vadd.f32 %v9157_v25, %v9155_v27 }
 0x1cc   : > { %v1309_v36 = vpop.f32.mrf.mxu0 }
 0x1cd   : > { %v1234_v19 = vadd.f32 %v1223_v47, %v1146_v43  ;;  %v1231_v47 = vadd.f32 %v9159_v41, %v1138_v52 }
 0x1cf   : > { %v1320_v49 = vadd.f32 %v1309_v36, %v1234_v19 }
 0x1d2   : > { %v9188_v7 = vpop.f32.mrf.mxu2 }
 0x1d3   : > { %v1380_v12 = vpop.f32.mrf.mxu1  ;;  %v9192_v56 = vpop.f32.mrf.mxu3 }
 0x1d4   : > { %v1400_v20 = vadd.f32 %v1380_v12, %v1314_v26  ;;  %v9194_v22 = vpop.f32.mrf.mxu0  ;;  %v1317_v12 = vadd.f32 %v9161_v39, %v1231_v47 }
 0x1da   : > { %v1466_v48 = vpop.f32.mrf.mxu2 }
 0x1db   : > { %v1382_v44 = vpop.f32.mrf.mxu1  ;;  %v1553_v4 = vpop.f32.mrf.mxu3  ;;  %v1486_v61 = vadd.f32 %v1466_v48, %v1400_v20 }
 0x1dc   : > { %v1639_v26 = vpop.f32.mrf.mxu0  ;;  %v1401_v14 = vadd.f32 %v1382_v44, %v1315_v16 }
 0x1e2   : > { %v1468_v21 = vpop.f32.mrf.mxu2 }
 0x1e3   : > { %v1385_v42 = vpop.f32.mrf.mxu1  ;;  %v1487_v33 = vadd.f32 %v1468_v21, %v1401_v14 }
 0x1e4   : > { %v9184_v37 = vadd.f32 %v1385_v42, %v1316_v34  ;;  %v1555_v34 = vpop.f32.mrf.mxu3  ;;  %v1641_v17 = vpop.f32.mrf.mxu0 }
 0x1e5   : > { %v1574_v60 = vadd.f32 %v1555_v34, %v1487_v33 }
 0x1e7   : > { %v1660_v19 = vadd.f32 %v1641_v17, %v1574_v60 }
 0x1ea   : > { %v1471_v50 = vpop.f32.mrf.mxu2 }
 0x1eb   : > { %v9186_v30 = vpop.f32.mrf.mxu1  ;;  %v1488_v44 = vadd.f32 %v1471_v50, %v9184_v37 }
 0x1ec   : > { %v1558_v31 = vpop.f32.mrf.mxu3  ;;  %v1644_v45 = vpop.f32.mrf.mxu0  ;;  %v1403_v42 = vadd.f32 %v9186_v30, %v1317_v12  ;;  %v1143_v30 = vadd.f32 %v9170_v57, %v9165_v62 }
 0x1ed   : > { %v1575_v37 = vadd.f32 %v1558_v31, %v1488_v44 }
 0x1ee   : > { %v1233_v34 = vadd.f32 %v9172_v28, %v1143_v30  ;;  %v8314_v28 = vld [vmem:[%s11366_s3 + $0x18] sm:$0xff] }
 0x1ef   : > { %v1661_v32 = vadd.f32 %v1644_v45, %v1575_v37  ;;  %1909 = vmatpush.bf16.msrb.mxu3 %v8314_v28 }
 0x1f0   : > { %v1319_v33 = vadd.f32 %v9174_v5, %v1233_v34  ;;  %v8313_v5 = vld [vmem:[%s11366_s3 + $0x10] sm:$0xff] }
 0x1f2   : > { %v1473_v10 = vpop.f32.mrf.mxu2 }
 0x1f3   : > { %v1390_v11 = vpop.f32.mrf.mxu1  ;;  %1910 = vmatpush.bf16.msrb.mxu3 %v8313_v5 }
 0x1f4   : > { %v9190_v15 = vadd.f32 %v1390_v11, %v1318_v6  ;;  %v1573_v6 = vadd.f32 %v1553_v4, %v1486_v61  ;;  %v1646_v11 = vpop.f32.mrf.mxu0 }
 0x1f6   : > { %v1659_v43 = vadd.f32 %v1639_v26, %v1573_v6  ;;  %v1489_v26 = vadd.f32 %v1473_v10, %v1403_v42 }
 0x1fa   : > { %v1476_v4 = vpop.f32.mrf.mxu2 }
 0x1fb   : > { %v9196_v23 = vpop.f32.mrf.mxu1  ;;  %v1490_v31 = vadd.f32 %v1476_v4, %v9190_v15 }
 0x1fc   : > { %v1649_v17 = vpop.f32.mrf.mxu0 }
 0x202   : > { %v1478_v16 = vpop.f32.mrf.mxu2 }
 0x203   : > { %v1395_v24 = vpop.f32.mrf.mxu1 }
 0x204   : > { %v9202_v29 = vadd.f32 %v1395_v24, %v1320_v49  ;;  %v1560_v49 = vpop.f32.mrf.mxu3 }
 0x205   : > { %v1576_v21 = vadd.f32 %v1560_v49, %v1489_v26 }
 0x207   : > { %v1662_v38 = vadd.f32 %v1646_v11, %v1576_v21 }
 0x20a   : > { %v1481_v15 = vpop.f32.mrf.mxu2 }
 0x20b   : > { %v9221_v51 = vpop.f32.mrf.mxu1  ;;  %v1492_v4 = vadd.f32 %v1481_v15, %v9202_v29  ;;  %v8312_v29 = vld [vmem:[%s11366_s3 + $0x8] sm:$0xff] }
 0x20c   : > { %v1563_v24 = vpop.f32.mrf.mxu3  ;;  %1962 = vmatpush.bf16.msrb.mxu0 %v8312_v29  ;;  %v8322_v29 = vld [vmem:[%s11366_s3 + $0x58] sm:$0xff] }
 0x20d   : > { %v1577_v10 = vadd.f32 %v1563_v24, %v1490_v31 }
 0x213   : > { %v1725_v53 = vpop.f32.mrf.mxu1 }
 0x214   : > { %v1745_v27 = vadd.f32 %v1725_v53, %v1659_v43  ;;  %v1405_v53 = vadd.f32 %v9196_v23, %v1319_v33  ;;  %v1565_v52 = vpop.f32.mrf.mxu3  ;;  %v1651_v43 = vpop.f32.mrf.mxu0  ;;  %v1148_v23 = vadd.f32 %v9188_v7, %v9182_v40  ;;  %v8318_v33 = vld [vmem:[%s11366_s3 + $0x38] sm:$0xff] }
 0x215   : > { %2124 = vmatpush.bf16.msra.mxu2 %v8318_v33 }
 0x216   : > { %v1753_v41 = vmax.f32 %v1745_v27, 0.0  ;;  %v1491_v60 = vadd.f32 %v1478_v16, %v1405_v53  ;;  %v1235_v27 = vadd.f32 %v9192_v56, %v1148_v23 }
 0x218   : > { %v1578_v47 = vadd.f32 %v1565_v52, %v1491_v60  ;;  %v9331_v52 = vld [vmem:[#allocation3] sm:$0xff] }
 0x219   : > { %v1985_v60 = vld [vmem:[#allocation3 + $0x2] sm:$0xff]  ;;  %v1843_v5 = vmax.f32 %v9331_v52, 0.0 }
 0x21b   : > { %v1727_v25 = vpop.f32.mrf.mxu1 }
 0x21c   : > { %v1746_v36 = vadd.f32 %v1727_v25, %v1660_v19  ;;  %v1663_v19 = vadd.f32 %v1649_v17, %v1577_v10  ;;  %v1664_v25 = vadd.f32 %v1651_v43, %v1578_v47  ;;  %v1568_v49 = vpop.f32.mrf.mxu3  ;;  %v1654_v11 = vpop.f32.mrf.mxu0  ;;  %v1997_v43 = vmax.f32 %v1985_v60, 0.0 }
 0x21e   : > { %v1754_v20 = vmax.f32 %v1746_v36, 0.0 }
 0x220   : > { %v1761_v48 = vpack.c.bf16 %v1754_v20, %v1753_v41  ;;  %v1321_v20 = vadd.f32 %v9194_v22, %v1235_v27 }
 0x222   : > { %7508 = vmatmul.msk.bf16.vlgmr.msrb.gmra.mxu2 %vm1773_vm5, %v1761_v48  ;;  %v1483_v48 = vpop.f32.mrf.mxu2  ;;  %v1407_v40 = vadd.f32 %v9221_v51, %v1321_v20  ;;  %v8316_v51 = vld [vmem:[%s11366_s3 + $0x28] sm:$0xff] }
 0x223   : > { %v1730_v39 = vpop.f32.mrf.mxu1  ;;  %2039 = vmatpush.bf16.msra.mxu1 %v8316_v51  ;;  %v8324_v51 = vld [vmem:[%s11366_s3 + $0x68] sm:$0xff] }
 0x224   : > { %v1747_v50 = vadd.f32 %v1730_v39, %v1661_v32  ;;  %v1493_v26 = vadd.f32 %v1483_v48, %v1407_v40  ;;  %v1579_v39 = vadd.f32 %v1568_v49, %v1492_v4  ;;  %v1570_v37 = vpop.f32.mrf.mxu3  ;;  %v1656_v24 = vpop.f32.mrf.mxu0 }
 0x226   : > { %v1755_v62 = vmax.f32 %v1747_v50, 0.0  ;;  %v1580_v30 = vadd.f32 %v1570_v37, %v1493_v26  ;;  %v1665_v21 = vadd.f32 %v1654_v11, %v1579_v39 }
 0x228   : > { %v1666_v32 = vadd.f32 %v1656_v24, %v1580_v30 }
 0x22b   : > { %v1732_v61 = vpop.f32.mrf.mxu1 }
 0x22c   : > { %v1748_v14 = vadd.f32 %v1732_v61, %v1662_v38  ;;  %v8311_v61 = vld [vmem:[%s11366_s3] sm:$0xff] }
 0x22d   : > { %1963 = vmatpush.bf16.msrb.mxu0 %v8311_v61 }
 0x22e   : > { %v1756_v57 = vmax.f32 %v1748_v14, 0.0  ;;  %v8315_v14 = vld [vmem:[%s11366_s3 + $0x20] sm:$0xff] }
 0x22f   : > { %2040 = vmatpush.bf16.msra.mxu1 %v8315_v14 }
 0x230   : > { %v1762_v6 = vpack.c.bf16 %v1756_v57, %v1755_v62  ;;  %v8320_v62 = vld [vmem:[%s11366_s3 + $0x48] sm:$0xff]  ;;  %v8317_v57 = vld [vmem:[%s11366_s3 + $0x30] sm:$0xff] }
 0x231   : > { %2209 = vmatpush.bf16.msra.mxu3 %v8320_v62  ;;  %2125 = vmatpush.bf16.msra.mxu2 %v8317_v57  ;;  %v8321_v62 = vld [vmem:[%s11366_s3 + $0x50] sm:$0xff]  ;;  %v8323_v57 = vld [vmem:[%s11366_s3 + $0x60] sm:$0xff] }
 0x232   : > { %7509 = vmatmul.msk.bf16.gmra.mxu2 %vm1773_vm5, %v1762_v6  ;;  %v9329_v6 = vld [vmem:[#allocation3 + $0x1] sm:$0xff]  ;;  %2294 = vmatpush.bf16.msra.mxu0 %v8322_v29 }
 0x233   : > { %v1735_v45 = vpop.f32.mrf.mxu1  ;;  %v1867_v10 = vmax.f32 %v9329_v6, 0.0  ;;  %2379 = vmatpush.bf16.msrb.mxu1 %v8324_v51  ;;  %v8338_v6 = vld [vmem:[%s11368_s5 + $0x40] sm:$0xff] }
 0x234   : > { %v1749_v36 = vadd.f32 %v1735_v45, %v1663_v19 }
 0x236   : > { %v1757_v44 = vmax.f32 %v1749_v36, 0.0  ;;  %2295 = vmatpush.bf16.msra.mxu0 %v8321_v62 }
 0x237   : > { %2380 = vmatpush.bf16.msrb.mxu1 %v8323_v57 }
 0x23b   : > { %v1737_v12 = vpop.f32.mrf.mxu1 }
 0x23c   : > { %v1750_v41 = vadd.f32 %v1737_v12, %v1664_v25  ;;  %v8319_v12 = vld [vmem:[%s11366_s3 + $0x40] sm:$0xff] }
 0x23d   : > { %2210 = vmatpush.bf16.msra.mxu3 %v8319_v12  ;;  %v8325_v12 = vld [vmem:[%s11366_s3 + $0x70] sm:$0xff] }
 0x23e   : > { %v1758_v42 = vmax.f32 %v1750_v41, 0.0 }
 0x240   : > { %v1763_v7 = vpack.c.bf16 %v1758_v42, %v1757_v44 }
 0x242   : > { %7510 = vmatmul.msk.bf16.gmra.mxu2 %vm1773_vm5, %v1763_v7 }
 0x243   : > { %v1740_v56 = vpop.f32.mrf.mxu1 }
 0x244   : > { %v1751_v22 = vadd.f32 %v1740_v56, %v1665_v21 }
 0x246   : > { %v1759_v17 = vmax.f32 %v1751_v22, 0.0 }
 0x24b   : > { %v1742_v34 = vpop.f32.mrf.mxu1 }
 0x24c   : > { %v1752_v38 = vadd.f32 %v1742_v34, %v1666_v32 }
 0x24e   : > { %v1760_v50 = vmax.f32 %v1752_v38, 0.0 }
 0x250   : > { %v1764_v16 = vpack.c.bf16 %v1760_v50, %v1759_v17 }
 0x252   : > { %7511 = vmatmul.msk.bf16.gmra.mxu2 %vm1773_vm5, %v1764_v16 }
 0x2a5   : > { %v1795_v31 = vpop.f32.mrf.mxu2 }
 0x2a6   : > { %v1815_v53 = vadd.f32 %v1795_v31, %v8944_v13 }
 0x2a8   : > { %1823 = vst.msk [vmem:[#allocation3 + $0x11] sm:$0xff] %vm964_vm3, %v1815_v53 }
 0x2ad   : > { %v1797_v28 = vpop.f32.mrf.mxu2 }
 0x2ae   : > { %v1816_v45 = vadd.f32 %v1797_v28, %v8973_v0 }
 0x2af   : > { %v9336_v15 = vld [vmem:[#allocation3 + $0x11] sm:$0xff] }
 0x2b0   : > { %v1832_v23 = vld [vmem:[#allocation3 + $0x10] sm:$0xff]  ;;  %1824 = vst.msk [vmem:[#allocation3 + $0x21] sm:$0xff] %vm964_vm3, %v1816_v45  ;;  %v1868_v13 = vmax.f32 %v9336_v15, 0.0 }
 0x2b1   : > { %v9338_v47 = vld [vmem:[#allocation3 + $0x12] sm:$0xff]  ;;  %v1844_v19 = vmax.f32 %v1832_v23, 0.0 }
 0x2b2   : > { %v1998_v27 = vmax.f32 %v9338_v47, 0.0  ;;  %v1875_v0 = vpack.c.bf16 %v1868_v13, %v1867_v10 }
 0x2b3   : > { %v1851_v25 = vpack.c.bf16 %v1844_v19, %v1843_v5 }
 0x2b4   : > { %v2005_v36 = vpack.c.bf16 %v1998_v27, %v1997_v43  ;;  %7524 = vmatmul.msk.bf16.vlgmr.msrb.gmra.mxu3 %vm964_vm3, %v1875_v0 }
 0x2b5   : > { %7536 = vmatmul.msk.bf16.vlgmr.msrb.gmra.mxu0 %vm964_vm3, %v1851_v25  ;;  %v1800_v49 = vpop.f32.mrf.mxu2 }
 0x2b6   : > { %7552 = vmatmul.msk.bf16.vlgmr.msra.gmra.mxu1 %vm964_vm3, %v2005_v36  ;;  %v1817_v41 = vadd.f32 %v1800_v49, %v8979_v8  ;;  %v8328_v49 = vld [vmem:[%s11366_s3 + $0x88] sm:$0xff] }
 0x2b7   : > { %v2071_v20 = vld [vmem:[#allocation3 + $0x20] sm:$0xff]  ;;  %2549 = vmatpush.bf16.msrb.mxu3 %v8328_v49 }
 0x2b8   : > { %1825 = vst.msk [vmem:[#allocation3 + $0x31] sm:$0xff] %vm964_vm3, %v1817_v41  ;;  %v2083_v44 = vmax.f32 %v2071_v20, 0.0  ;;  %v9360_v11 = vld [vmem:[#allocation3 + $0x21] sm:$0xff] }
 0x2b9   : > { %v9362_v4 = vld [vmem:[#allocation3 + $0x22] sm:$0xff]  ;;  %v1869_v26 = vmax.f32 %v9360_v11, 0.0 }
 0x2ba   : > { %v2090_v42 = vpack.c.bf16 %v2083_v44, %v1844_v19  ;;  %v1999_v30 = vmax.f32 %v9362_v4, 0.0 }
 0x2bb   : > { %v2175_v57 = vpack.c.bf16 %v1869_v26, %v1868_v13 }
 0x2bc   : > { %7568 = vmatmul.msk.bf16.vlgmr.msra.gmra.mxu2 %vm964_vm3, %v2090_v42 }
 0x2bd   : > { %v1802_v48 = vpop.f32.mrf.mxu2 }
 0x2be   : > { %v1818_v40 = vadd.f32 %v1802_v48, %v9024_v58 }
 0x2bf   : > { %v9365_v7 = vld [vmem:[#allocation3 + $0x31] sm:$0xff] }
 0x2c0   : > { %v1834_v8 = vld [vmem:[#allocation3 + $0x30] sm:$0xff]  ;;  %1826 = vst.msk [vmem:[#allocation3 + $0x41] sm:$0xff] %vm964_vm3, %v1818_v40  ;;  %v1870_v39 = vmax.f32 %v9365_v7, 0.0 }
 0x2c1   : > { %v9368_v56 = vld [vmem:[#allocation3 + $0x32] sm:$0xff]  ;;  %v1846_v37 = vmax.f32 %v1834_v8, 0.0 }
 0x2c2   : > { %v2000_v21 = vmax.f32 %v9368_v56, 0.0  ;;  %v9378_v58 = vpack.c.bf16 %v1870_v39, %v1869_v26 }
 0x2c3   : > { %v9380_v24 = vpack.c.bf16 %v1846_v37, %v2083_v44 }
 0x2c4   : > { %v9386_v32 = vpack.c.bf16 %v2000_v21, %v1999_v30  ;;  %7525 = vmatmul.msk.bf16.gmra.mxu3 %vm964_vm3, %v9378_v58 }
 0x2c5   : > { %7537 = vmatmul.msk.bf16.gmra.mxu0 %vm964_vm3, %v9380_v24  ;;  %v1805_v22 = vpop.f32.mrf.mxu2 }
 0x2c6   : > { %7553 = vmatmul.msk.bf16.gmra.mxu1 %vm964_vm3, %v9386_v32  ;;  %v1819_v34 = vadd.f32 %v1805_v22, %v9041_v63  ;;  %v8326_v63 = vld [vmem:[%s11366_s3 + $0x78] sm:$0xff] }
 0x2c7   : > { %v2073_v38 = vld [vmem:[#allocation3 + $0x40] sm:$0xff]  ;;  %2464 = vmatpush.bf16.msrb.mxu2 %v8326_v63 }
 0x2c8   : > { %1827 = vst.msk [vmem:[#allocation3 + $0x51] sm:$0xff] %vm964_vm3, %v1819_v34  ;;  %v2085_v17 = vmax.f32 %v2073_v38, 0.0  ;;  %v9397_v16 = vld [vmem:[#allocation3 + $0x41] sm:$0xff] }
 0x2c9   : > { %v9405_v14 = vld [vmem:[#allocation3 + $0x42] sm:$0xff]  ;;  %v1871_v53 = vmax.f32 %v9397_v16, 0.0 }
 0x2ca   : > { %v2091_v50 = vpack.c.bf16 %v2085_v17, %v1846_v37  ;;  %v2001_v43 = vmax.f32 %v9405_v14, 0.0 }
 0x2cb   : > { %2465 = vmatpush.bf16.msrb.mxu2 %v8325_v12  ;;  %v2176_v47 = vpack.c.bf16 %v1871_v53, %v1870_v39 }
 0x2cc   : > { %7569 = vmatmul.msk.bf16.gmra.mxu2 %vm964_vm3, %v2091_v50  ;;  %v2261_v13 = vpack.c.bf16 %v2001_v43, %v2000_v21 }
 0x2cd   : > { %v1807_v61 = vpop.f32.mrf.mxu2 }
 0x2ce   : > { %v1820_v33 = vadd.f32 %v1807_v61, %v9074_v35 }
 0x2cf   : > { %v9417_v31 = vld [vmem:[#allocation3 + $0x51] sm:$0xff] }
 0x2d0   : > { %v1836_v60 = vld [vmem:[#allocation3 + $0x50] sm:$0xff]  ;;  %1828 = vst.msk [vmem:[#allocation3 + $0x61] sm:$0xff] %vm964_vm3, %v1820_v33  ;;  %v1872_v35 = vmax.f32 %v9417_v31, 0.0 }
 0x2d1   : > { %v9420_v28 = vld [vmem:[#allocation3 + $0x52] sm:$0xff]  ;;  %v1848_v45 = vmax.f32 %v1836_v60, 0.0  ;;  %v2260_v60 = vpack.c.bf16 %v1999_v30, %v1998_v27 }
 0x2d2   : > { %v2002_v23 = vmax.f32 %v9420_v28, 0.0  ;;  %v1877_v19 = vpack.c.bf16 %v1872_v35, %v1871_v53  ;;  %v8327_v28 = vld [vmem:[%s11366_s3 + $0x80] sm:$0xff] }
 0x2d3   : > { %v1853_v0 = vpack.c.bf16 %v1848_v45, %v2085_v17  ;;  %2550 = vmatpush.bf16.msrb.mxu3 %v8327_v28 }
 0x2d4   : > { %v9426_v25 = vpack.c.bf16 %v2002_v23, %v2001_v43  ;;  %7526 = vmatmul.msk.bf16.gmra.mxu3 %vm964_vm3, %v1877_v19 }
 0x2d5   : > { %7538 = vmatmul.msk.bf16.gmra.mxu0 %vm964_vm3, %v1853_v0  ;;  %v1810_v36 = vpop.f32.mrf.mxu2 }
 0x2d6   : > { %7554 = vmatmul.msk.bf16.gmra.mxu1 %vm964_vm3, %v9426_v25  ;;  %v1821_v41 = vadd.f32 %v1810_v36, %v9077_v46 }
 0x2d7   : > { %v2075_v20 = vld [vmem:[#allocation3 + $0x60] sm:$0xff] }
 0x2d8   : > { %1829 = vst.msk [vmem:[#allocation3 + $0x71] sm:$0xff] %vm964_vm3, %v1821_v41  ;;  %v2087_v44 = vmax.f32 %v2075_v20, 0.0  ;;  %v9441_v48 = vld [vmem:[#allocation3 + $0x61] sm:$0xff] }
 0x2d9   : > { %v1991_v8 = vld [vmem:[#allocation3 + $0x62] sm:$0xff]  ;;  %v1873_v34 = vmax.f32 %v9441_v48, 0.0 }
 0x2da   : > { %v2092_v42 = vpack.c.bf16 %v2087_v44, %v1848_v45  ;;  %v2003_v29 = vmax.f32 %v1991_v8, 0.0 }
 0x2db   : > { %v2177_v27 = vpack.c.bf16 %v1873_v34, %v1872_v35 }
 0x2dc   : > { %7570 = vmatmul.msk.bf16.gmra.mxu2 %vm964_vm3, %v2092_v42  ;;  %v2262_v4 = vpack.c.bf16 %v2003_v29, %v2002_v23 }
 0x2dd   : > { %v1812_v40 = vpop.f32.mrf.mxu2 }
 0x2de   : > { %v1822_v37 = vadd.f32 %v1812_v40, %v9125_v55 }
 0x2df   : > { %v9444_v22 = vld [vmem:[#allocation3 + $0x71] sm:$0xff] }
 0x2e0   : > { %v1838_v46 = vld [vmem:[#allocation3 + $0x70] sm:$0xff]  ;;  %1830 = vst.msk [vmem:[#allocation3 + $0x81] sm:$0xff] %vm964_vm3, %v1822_v37  ;;  %v1874_v17 = vmax.f32 %v9444_v22, 0.0 }
 0x2e1   : > { %v1992_v38 = vld [vmem:[#allocation3 + $0x72] sm:$0xff]  ;;  %v1850_v50 = vmax.f32 %v1838_v46, 0.0 }
 0x2e2   : > { %v2004_v51 = vmax.f32 %v1992_v38, 0.0  ;;  %v1878_v61 = vpack.c.bf16 %v1874_v17, %v1873_v34 }
 0x2e3   : > { %v1854_v14 = vpack.c.bf16 %v1850_v50, %v2087_v44 }
 0x2e4   : > { %v9449_v63 = vpack.c.bf16 %v2004_v51, %v2003_v29  ;;  %7527 = vmatmul.msk.bf16.gmra.mxu3 %vm964_vm3, %v1878_v61 }
 0x2e5   : > { %7539 = vmatmul.msk.bf16.gmra.mxu0 %vm964_vm3, %v1854_v14 }
 0x2e6   : > { %7555 = vmatmul.msk.bf16.gmra.mxu1 %vm964_vm3, %v9449_v63 }
 0x2e7   : > { %v2077_v55 = vld [vmem:[#allocation3 + $0x80] sm:$0xff] }
 0x2e8   : > { %v2089_v33 = vmax.f32 %v2077_v55, 0.0  ;;  %v9484_v26 = vld [vmem:[#allocation3 + $0x81] sm:$0xff] }
 0x2e9   : > { %v2247_v56 = vld [vmem:[#allocation3 + $0x82] sm:$0xff]  ;;  %v2174_v39 = vmax.f32 %v9484_v26, 0.0 }
 0x2ea   : > { %v2093_v62 = vpack.c.bf16 %v2089_v33, %v1850_v50  ;;  %v2259_v30 = vmax.f32 %v2247_v56, 0.0 }
 0x2eb   : > { %v2178_v21 = vpack.c.bf16 %v2174_v39, %v1874_v17  ;;  %v2433_v53 = vpack.c.bf16 %v1601_v3, %v2174_v39 }
 0x2ec   : > { %7571 = vmatmul.msk.bf16.gmra.mxu2 %vm964_vm3, %v2093_v62  ;;  %v8329_v62 = vld [vmem:[%s11367_s4] sm:$0xff] }
 0x2ed   : > { %2619 = vmatpush.bf16.msrb.mxu0 %v8329_v62 }
 0x2f4   : > { %7584 = vmatmul.msk.bf16.vlgmr.msra.gmra.mxu3 %vm964_vm3, %v2175_v57 }
 0x2f5   : > { %7600 = vmatmul.msk.bf16.vlgmr.msra.gmra.mxu0 %vm964_vm3, %v2260_v60 }
 0x2f6   : > { %7616 = vmatmul.msk.bf16.vlgmr.msrb.gmra.mxu1 %vm964_vm3, %v9380_v24  ;;  %v2348_v24 = vpack.c.bf16 %v1515_v18, %v2089_v33  ;;  %v2518_v33 = vpack.c.bf16 %v1687_v59, %v2259_v30 }
 0x2fc   : > { %7632 = vmatmul.msk.bf16.vlgmr.msrb.gmra.mxu2 %vm964_vm3, %v9378_v58  ;;  %v2263_v58 = vpack.c.bf16 %v2259_v30, %v2004_v51 }
 0x304   : > { %7585 = vmatmul.msk.bf16.gmra.mxu3 %vm964_vm3, %v2176_v47 }
 0x305   : > { %7601 = vmatmul.msk.bf16.gmra.mxu0 %vm964_vm3, %v2261_v13 }
 0x306   : > { %7617 = vmatmul.msk.bf16.gmra.mxu1 %vm964_vm3, %v1853_v0 }
 0x30c   : > { %7633 = vmatmul.msk.bf16.gmra.mxu2 %vm964_vm3, %v1877_v19 }
 0x314   : > { %7586 = vmatmul.msk.bf16.gmra.mxu3 %vm964_vm3, %v2177_v27 }
 0x315   : > { %7602 = vmatmul.msk.bf16.gmra.mxu0 %vm964_vm3, %v2262_v4 }
 0x316   : > { %7618 = vmatmul.msk.bf16.gmra.mxu1 %vm964_vm3, %v1854_v14 }
 0x31c   : > { %7634 = vmatmul.msk.bf16.gmra.mxu2 %vm964_vm3, %v1878_v61 }
 0x324   : > { %7587 = vmatmul.msk.bf16.gmra.mxu3 %vm964_vm3, %v2178_v21 }
 0x325   : > { %7603 = vmatmul.msk.bf16.gmra.mxu0 %vm964_vm3, %v2263_v58 }
 0x326   : > { %7619 = vmatmul.msk.bf16.gmra.mxu1 %vm964_vm3, %v2348_v24 }
 0x32c   : > { %7635 = vmatmul.msk.bf16.gmra.mxu2 %vm964_vm3, %v2433_v53 }
 0x332   : > { %v1965_v35 = vpop.f32.mrf.mxu0 }
 0x333   : > { %v2042_v45 = vpop.f32.mrf.mxu1 }
 0x334   : > { %7648 = vmatmul.msk.bf16.vlgmr.msrb.gmra.mxu3 %vm964_vm3, %v9386_v32 }
 0x337   : > { %v1912_v43 = vpop.f32.mrf.mxu3 }
 0x338   : > { %v1966_v23 = vadd.f32 %v1965_v35, %v1912_v43 }
 0x33a   : > { %v1967_v9 = vpop.f32.mrf.mxu0  ;;  %v2062_v19 = vadd.f32 %v2042_v45, %v1966_v23 }
 0x33b   : > { %v9498_v18 = vpop.f32.mrf.mxu1 }
 0x33f   : > { %v1914_v0 = vpop.f32.mrf.mxu3  ;;  %v2127_v36 = vpop.f32.mrf.mxu2 }
 0x340   : > { %v2147_v49 = vadd.f32 %v2127_v36, %v2062_v19 }
 0x342   : > { %v1970_v12 = vpop.f32.mrf.mxu0 }
 0x343   : > { %v2047_v41 = vpop.f32.mrf.mxu1 }
 0x344   : > { %7649 = vmatmul.msk.bf16.gmra.mxu3 %vm964_vm3, %v9426_v25 }
 0x347   : > { %v1917_v1 = vpop.f32.mrf.mxu3  ;;  %v2129_v3 = vpop.f32.mrf.mxu2 }
 0x348   : > { %v1971_v20 = vadd.f32 %v1970_v12, %v1917_v1 }
 0x34a   : > { %v9502_v44 = vpop.f32.mrf.mxu0  ;;  %v2064_v42 = vadd.f32 %v2047_v41, %v1971_v20  ;;  %v1968_v20 = vadd.f32 %v1967_v9, %v1914_v0 }
 0x34b   : > { %v9504_v32 = vpop.f32.mrf.mxu1 }
 0x34f   : > { %v1919_v40 = vpop.f32.mrf.mxu3  ;;  %v2132_v8 = vpop.f32.mrf.mxu2 }
 0x350   : > { %v2149_v37 = vadd.f32 %v2132_v8, %v2064_v42 }
 0x352   : > { %v1975_v34 = vpop.f32.mrf.mxu0 }
 0x353   : > { %v2052_v46 = vpop.f32.mrf.mxu1 }
 0x354   : > { %7650 = vmatmul.msk.bf16.gmra.mxu3 %vm964_vm3, %v9449_v63 }
 0x357   : > { %v1922_v38 = vpop.f32.mrf.mxu3  ;;  %v2134_v17 = vpop.f32.mrf.mxu2 }
 0x358   : > { %v1976_v50 = vadd.f32 %v1975_v34, %v1922_v38  ;;  %v2063_v34 = vadd.f32 %v9498_v18, %v1968_v20 }
 0x35a   : > { %v2066_v25 = vadd.f32 %v2052_v46, %v1976_v50  ;;  %v9508_v29 = vpop.f32.mrf.mxu0  ;;  %v2148_v46 = vadd.f32 %v2129_v3, %v2063_v34 }
 0x35b   : > { %v9510_v51 = vpop.f32.mrf.mxu1 }
 0x35f   : > { %v9512_v61 = vpop.f32.mrf.mxu3  ;;  %v2137_v14 = vpop.f32.mrf.mxu2 }
 0x360   : > { %v2151_v55 = vadd.f32 %v2137_v14, %v2066_v25 }
 0x362   : > { %v1980_v63 = vpop.f32.mrf.mxu0 }
 0x363   : > { %v2057_v47 = vpop.f32.mrf.mxu1 }
 0x364   : > { %7651 = vmatmul.msk.bf16.gmra.mxu3 %vm964_vm3, %v2518_v33 }
 0x367   : > { %v1927_v57 = vpop.f32.mrf.mxu3  ;;  %v9520_v60 = vpop.f32.mrf.mxu2 }
 0x368   : > { %v1981_v28 = vadd.f32 %v1980_v63, %v1927_v57  ;;  %v1973_v57 = vadd.f32 %v9502_v44, %v1919_v40 }
 0x36a   : > { %v2068_v13 = vadd.f32 %v2057_v47, %v1981_v28  ;;  %v9524_v24 = vpop.f32.mrf.mxu0 }
 0x36b   : > { %v9526_v45 = vpop.f32.mrf.mxu1 }
 0x36f   : > { %v9522_v27 = vpop.f32.mrf.mxu3  ;;  %v2142_v4 = vpop.f32.mrf.mxu2 }
 0x370   : > { %v2153_v56 = vadd.f32 %v2142_v4, %v2068_v13 }
 0x372   : > { %v2297_v19 = vpop.f32.mrf.mxu0 }
 0x373   : > { %v2382_v36 = vpop.f32.mrf.mxu1 }
 0x377   : > { %v2212_v54 = vpop.f32.mrf.mxu3  ;;  %v9528_v43 = vpop.f32.mrf.mxu2 }
 0x378   : > { %v2232_v59 = vadd.f32 %v2212_v54, %v2147_v49 }
 0x37a   : > { %v2299_v49 = vpop.f32.mrf.mxu0  ;;  %v2317_v25 = vadd.f32 %v2297_v19, %v2232_v59 }
 0x37b   : > { %v2384_v42 = vpop.f32.mrf.mxu1 }
 0x37c   : > { %v2402_v63 = vadd.f32 %v2382_v36, %v2317_v25 }
 0x37f   : > { %v2214_v39 = vpop.f32.mrf.mxu3  ;;  %v2467_v12 = vpop.f32.mrf.mxu2 }
 0x380   : > { %v2233_v38 = vadd.f32 %v2214_v39, %v2148_v46  ;;  %v2487_v28 = vadd.f32 %v2467_v12, %v2402_v63 }
 0x382   : > { %v2302_v50 = vpop.f32.mrf.mxu0 }
 0x383   : > { %v2387_v33 = vpop.f32.mrf.mxu1 }
 0x387   : > { %v2217_v30 = vpop.f32.mrf.mxu3  ;;  %v2469_v8 = vpop.f32.mrf.mxu2 }
 0x388   : > { %v2234_v21 = vadd.f32 %v2217_v30, %v2149_v37 }
 0x38a   : > { %v2304_v13 = vpop.f32.mrf.mxu0 }
 0x38b   : > { %v2389_v54 = vpop.f32.mrf.mxu1 }
 0x38f   : > { %v2219_v58 = vpop.f32.mrf.mxu3  ;;  %v2472_v62 = vpop.f32.mrf.mxu2 }
 0x392   : > { %v2307_v36 = vpop.f32.mrf.mxu0 }
 0x397   : > { %v2222_v53 = vpop.f32.mrf.mxu3  ;;  %v2474_v30 = vpop.f32.mrf.mxu2 }
 0x398   : > { %v2236_v35 = vadd.f32 %v2222_v53, %v2151_v55  ;;  %v2318_v55 = vadd.f32 %v2299_v49, %v2233_v38  ;;  %v1978_v49 = vadd.f32 %v9508_v29, %v9512_v61  ;;  %v8331_v29 = vld [vmem:[%s11368_s5 + $0x8] sm:$0xff]  ;;  %v8333_v61 = vld [vmem:[%s11368_s5 + $0x18] sm:$0xff] }
 0x399   : > { %2870 = vmatpush.bf16.msra.mxu2 %v8331_v29  ;;  %2817 = vmatpush.bf16.msra.mxu1 %v8333_v61 }
 0x39a   : > { %v2403_v47 = vadd.f32 %v2384_v42, %v2318_v55  ;;  %v2321_v63 = vadd.f32 %v2307_v36, %v2236_v35  ;;  %v8337_v35 = vld [vmem:[%s11368_s5 + $0x38] sm:$0xff] }
 0x39b   : > { %3034 = vmatpush.bf16.msra.mxu0 %v8337_v35 }
 0x39c   : > { %v2488_v9 = vadd.f32 %v2469_v8, %v2403_v47  ;;  %v8334_v47 = vld [vmem:[%s11368_s5 + $0x20] sm:$0xff] }
 0x39f   : > { %v2224_v23 = vpop.f32.mrf.mxu3 }
 0x3a7   : > { %v2227_v41 = vpop.f32.mrf.mxu3 }
 0x3a8   : > { %v9530_v1 = vadd.f32 %v2227_v41, %v2153_v56  ;;  %v2065_v56 = vadd.f32 %v9504_v32, %v1973_v57  ;;  %v2319_v41 = vadd.f32 %v2302_v50, %v2234_v21  ;;  %v2392_v32 = vpop.f32.mrf.mxu1 }
 0x3aa   : > { %v2150_v3 = vadd.f32 %v2134_v17, %v2065_v56  ;;  %v2404_v12 = vadd.f32 %v2387_v33, %v2319_v41  ;;  %v2477_v17 = vpop.f32.mrf.mxu2 }
 0x3ac   : > { %v2235_v53 = vadd.f32 %v2219_v58, %v2150_v3  ;;  %v2489_v20 = vadd.f32 %v2472_v62, %v2404_v12  ;;  %v2067_v58 = vadd.f32 %v9510_v51, %v1978_v49  ;;  %v8335_v51 = vld [vmem:[%s11368_s5 + $0x28] sm:$0xff] }
 0x3ad   : > { %2948 = vmatpush.bf16.msra.mxu3 %v8335_v51 }
 0x3ae   : > { %v2320_v40 = vadd.f32 %v2304_v13, %v2235_v53  ;;  %v2152_v21 = vadd.f32 %v9520_v60, %v2067_v58  ;;  %v2406_v13 = vadd.f32 %v2392_v32, %v2321_v63 }
 0x3af   : > { %v9532_v37 = vpop.f32.mrf.mxu3 }
 0x3b0   : > { %v2405_v42 = vadd.f32 %v2389_v54, %v2320_v40  ;;  %v2237_v55 = vadd.f32 %v2224_v23, %v2152_v21  ;;  %v2394_v57 = vpop.f32.mrf.mxu1  ;;  %v2491_v56 = vadd.f32 %v2477_v17, %v2406_v13 }
 0x3b1   : > { %2949 = vmatpush.bf16.msra.mxu3 %v8334_v47 }
 0x3b2   : > { %v2490_v8 = vadd.f32 %v2474_v30, %v2405_v42  ;;  %v2479_v60 = vpop.f32.mrf.mxu2 }
 0x3b7   : > { %v2552_v14 = vpop.f32.mrf.mxu3 }
 0x3b8   : > { %v2572_v0 = vadd.f32 %v2552_v14, %v2487_v28  ;;  %v2309_v14 = vpop.f32.mrf.mxu0  ;;  %v8330_v28 = vld [vmem:[%s11368_s5] sm:$0xff] }
 0x3b9   : > { %v2322_v23 = vadd.f32 %v2309_v14, %v2237_v55  ;;  %2871 = vmatpush.bf16.msra.mxu2 %v8330_v28  ;;  %v8341_v14 = vld [vmem:[%s11368_s5 + $0x58] sm:$0xff] }
 0x3ba   : > { %v2580_v39 = vmax.f32 %v2572_v0, 0.0  ;;  %v8336_v0 = vld [vmem:[%s11368_s5 + $0x30] sm:$0xff]  ;;  %v2482_v41 = vpop.f32.mrf.mxu2  ;;  %v8345_v55 = vld [vmem:[%s11368_s5 + $0x78] sm:$0xff] }
 0x3bb   : > { %3035 = vmatpush.bf16.msra.mxu0 %v8336_v0 }
 0x3bf   : > { %v2554_v4 = vpop.f32.mrf.mxu3 }
 0x3c0   : > { %v2573_v18 = vadd.f32 %v2554_v4, %v2488_v9  ;;  %v8332_v9 = vld [vmem:[%s11368_s5 + $0x10] sm:$0xff]  ;;  %v1983_v4 = vadd.f32 %v9524_v24, %v9522_v27  ;;  %v2312_v3 = vpop.f32.mrf.mxu0 }
 0x3c1   : > { %2818 = vmatpush.bf16.msra.mxu1 %v8332_v9  ;;  %v2323_v12 = vadd.f32 %v2312_v3, %v9530_v1  ;;  %v8339_v1 = vld [vmem:[%s11368_s5 + $0x48] sm:$0xff] }
 0x3c2   : > { %v2581_v59 = vmax.f32 %v2573_v18, 0.0  ;;  %v2407_v18 = vadd.f32 %v2394_v57, %v2322_v23  ;;  %v2069_v30 = vadd.f32 %v9526_v45, %v1983_v4  ;;  %v2484_v45 = vpop.f32.mrf.mxu2  ;;  %3219 = vmatpush.bf16.msrb.mxu2 %v8339_v1 }
 0x3c4   : > { %v2588_v19 = vpack.c.bf16 %v2581_v59, %v2580_v39  ;;  %v2492_v54 = vadd.f32 %v2479_v60, %v2407_v18 }
 0x3c5   : > { %3166 = vmatpush.bf16.msrb.mxu1 %v8341_v14 }
 0x3c6   : > { %7656 = vmatmul.msk.bf16.vlgmr.msrb.gmra.mxu0 %vm1773_vm5, %v2588_v19  ;;  %v2397_v19 = vpop.f32.mrf.mxu1  ;;  %3220 = vmatpush.bf16.msrb.mxu2 %v8338_v6 }
 0x3c7   : > { %v2557_v44 = vpop.f32.mrf.mxu3  ;;  %v2408_v42 = vadd.f32 %v2397_v19, %v2323_v12  ;;  %3383 = vmatpush.bf16.msrb.mxu0 %v8345_v55 }
 0x3c8   : > { %v2574_v34 = vadd.f32 %v2557_v44, %v2489_v20  ;;  %v2154_v44 = vadd.f32 %v9528_v43, %v2069_v30  ;;  %v2314_v49 = vpop.f32.mrf.mxu0 }
 0x3ca   : > { %v2582_v50 = vmax.f32 %v2574_v34, 0.0  ;;  %v2239_v27 = vadd.f32 %v9532_v37, %v2154_v44 }
 0x3cc   : > { %v2324_v32 = vadd.f32 %v2314_v49, %v2239_v27 }
 0x3ce   : > { %v2399_v17 = vpop.f32.mrf.mxu1 }
 0x3cf   : > { %v2559_v46 = vpop.f32.mrf.mxu3  ;;  %v2409_v34 = vadd.f32 %v2399_v17, %v2324_v32 }
 0x3d0   : > { %v2575_v38 = vadd.f32 %v2559_v46, %v2490_v8  ;;  %v2493_v8 = vadd.f32 %v2482_v41, %v2408_v42 }
 0x3d1   : > { %v2494_v46 = vadd.f32 %v2484_v45, %v2409_v34 }
 0x3d2   : > { %v2583_v25 = vmax.f32 %v2575_v38, 0.0 }
 0x3d4   : > { %v2589_v33 = vpack.c.bf16 %v2583_v25, %v2582_v50  ;;  %v8343_v25 = vld [vmem:[%s11368_s5 + $0x68] sm:$0xff] }
 0x3d5   : > { %3297 = vmatpush.bf16.msrb.mxu3 %v8343_v25 }
 0x3d6   : > { %7657 = vmatmul.msk.bf16.gmra.mxu0 %vm1773_vm5, %v2589_v33 }
 0x3d7   : > { %v2562_v62 = vpop.f32.mrf.mxu3 }
 0x3d8   : > { %v2576_v39 = vadd.f32 %v2562_v62, %v2491_v56 }
 0x3da   : > { %v2584_v40 = vmax.f32 %v2576_v39, 0.0 }
 0x3df   : > { %v2564_v59 = vpop.f32.mrf.mxu3 }
 0x3e0   : > { %v2577_v53 = vadd.f32 %v2564_v59, %v2492_v54  ;;  %v8340_v54 = vld [vmem:[%s11368_s5 + $0x50] sm:$0xff] }
 0x3e1   : > { %3167 = vmatpush.bf16.msrb.mxu1 %v8340_v54  ;;  %v8348_v54 = vld [vmem:[%s11368_s5 + $0x90] sm:$0xff] }
 0x3e2   : > { %v2585_v36 = vmax.f32 %v2577_v53, 0.0 }
 0x3e4   : > { %v2590_v24 = vpack.c.bf16 %v2585_v36, %v2584_v40 }
 0x3e6   : > { %7658 = vmatmul.msk.bf16.gmra.mxu0 %vm1773_vm5, %v2590_v24 }
 0x3e7   : > { %v2567_v20 = vpop.f32.mrf.mxu3 }
 0x3e8   : > { %v2578_v58 = vadd.f32 %v2567_v20, %v2493_v8 }
 0x3ea   : > { %v2586_v21 = vmax.f32 %v2578_v58, 0.0 }
 0x3ef   : > { %v2569_v43 = vpop.f32.mrf.mxu3 }
 0x3f0   : > { %v2579_v38 = vadd.f32 %v2569_v43, %v2494_v46 }
 0x3f2   : > { %v2587_v50 = vmax.f32 %v2579_v38, 0.0 }
 0x3f4   : > { %v2591_v37 = vpack.c.bf16 %v2587_v50, %v2586_v21  ;;  %v8349_v50 = vld [vmem:[%s11368_s5 + $0x98] sm:$0xff] }
 0x3f6   : > { %7659 = vmatmul.msk.bf16.gmra.mxu0 %vm1773_vm5, %v2591_v37 }
 0x443   : > { %v2621_v33 = vpop.f32.mrf.mxu0 }
 0x444   : > { %v2641_v63 = vadd.f32 %v2621_v33, %v9336_v15 }
 0x446   : > { %2649 = vst.msk [vmem:[#allocation3 + $0x11] sm:$0xff] %vm964_vm3, %v2641_v63 }
 0x44b   : > { %v2623_v57 = vpop.f32.mrf.mxu0 }
 0x44c   : > { %v2642_v29 = vadd.f32 %v2623_v57, %v9360_v11 }
 0x44d   : > { %v2763_v51 = vld [vmem:[#allocation3 + $0x11] sm:$0xff] }
 0x44e   : > { %v2739_v61 = vld [vmem:[#allocation3 + $0x10] sm:$0xff]  ;;  %2650 = vst.msk [vmem:[#allocation3 + $0x21] sm:$0xff] %vm964_vm3, %v2642_v29  ;;  %v9591_v60 = vmax.f32 %v2763_v51, 0.0 }
 0x44f   : > { %v2751_v62 = vmax.f32 %v2739_v61, 0.0 }
 0x450   : > { %v2783_v35 = vpack.c.bf16 %v9591_v60, %v1867_v10 }
 0x451   : > { %v2758_v15 = vpack.c.bf16 %v2751_v62, %v1843_v5  ;;  %v8342_v5 = vld [vmem:[%s11368_s5 + $0x60] sm:$0xff] }
 0x452   : > { %7672 = vmatmul.msk.bf16.vlgmr.msra.gmra.mxu1 %vm964_vm3, %v2783_v35  ;;  %3298 = vmatpush.bf16.msrb.mxu3 %v8342_v5 }
 0x453   : > { %7684 = vmatmul.msk.bf16.vlgmr.msra.gmra.mxu2 %vm964_vm3, %v2758_v15  ;;  %v2626_v23 = vpop.f32.mrf.mxu0  ;;  %3515 = vmatpush.bf16.msra.mxu1 %v8349_v50  ;;  %v8357_v50 = vld [vmem:[%s11368_s5 + $0xd8] sm:$0xff] }
 0x454   : > { %v2643_v11 = vadd.f32 %v2626_v23, %v9365_v7  ;;  %v3111_v23 = vld [vmem:[#allocation3 + $0x2] sm:$0xff] }
 0x455   : > { %v2894_v28 = vld [vmem:[#allocation3 + $0x20] sm:$0xff] }
 0x456   : > { %v2980_v47 = vld [vmem:[#allocation3 + $0x21] sm:$0xff]  ;;  %2651 = vst.msk [vmem:[#allocation3 + $0x31] sm:$0xff] %vm964_vm3, %v2643_v11  ;;  %v2907_v9 = vmax.f32 %v2894_v28, 0.0  ;;  %v3112_v11 = vld [vmem:[#allocation3 + $0x12] sm:$0xff] }
 0x457   : > { %v9602_v0 = vmax.f32 %v2980_v47, 0.0  ;;  %v3086_v28 = vld [vmem:[#allocation3 + $0x1] sm:$0xff]  ;;  %v3124_v47 = vmax.f32 %v3111_v23, 0.0  ;;  %3516 = vmatpush.bf16.msra.mxu1 %v8348_v54 }
 0x458   : > { %v9607_v52 = vpack.c.bf16 %v2907_v9, %v2751_v62  ;;  %v3099_v6 = vmax.f32 %v3086_v28, 0.0  ;;  %v9864_v28 = vld [vmem:[%s11369_s6] ss:$0 sm:$0xff] }
 0x459   : > { %v9611_v10 = vpack.c.bf16 %v9602_v0, %v9591_v60 }
 0x45a   : > { %7700 = vmatmul.msk.bf16.vlgmr.msra.gmra.mxu3 %vm964_vm3, %v9607_v52 }
 0x45b   : > { %7716 = vmatmul.msk.bf16.vlgmr.msra.gmra.mxu0 %vm964_vm3, %v9611_v10  ;;  %v2628_v7 = vpop.f32.mrf.mxu0 }
 0x45c   : > { %v2644_v13 = vadd.f32 %v2628_v7, %v9397_v16  ;;  %v8344_v16 = vld [vmem:[%s11368_s5 + $0x70] sm:$0xff]  ;;  %v3107_v7 = vpack.c.bf16 %v9591_v60, %v3099_v6  ;;  %v8350_v60 = vld [vmem:[%s11368_s5 + $0xa0] sm:$0xff] }
 0x45d   : > { %v2765_v4 = vld [vmem:[#allocation3 + $0x31] sm:$0xff]  ;;  %3384 = vmatpush.bf16.msrb.mxu0 %v8344_v16 }
 0x45e   : > { %v2741_v56 = vld [vmem:[#allocation3 + $0x30] sm:$0xff]  ;;  %2652 = vst.msk [vmem:[#allocation3 + $0x41] sm:$0xff] %vm964_vm3, %v2644_v13  ;;  %v2778_v18 = vmax.f32 %v2765_v4, 0.0  ;;  %v3329_v13 = vld [vmem:[#allocation3 + $0x22] sm:$0xff] }
 0x45f   : > { %v2753_v3 = vmax.f32 %v2741_v56, 0.0  ;;  %v8346_v4 = vld [vmem:[%s11368_s5 + $0x80] sm:$0xff]  ;;  %v3342_v56 = vmax.f32 %v3329_v13, 0.0  ;;  %v8356_v13 = vld [vmem:[%s11368_s5 + $0xd0] sm:$0xff] }
 0x460   : > { %v9626_v39 = vpack.c.bf16 %v2778_v18, %v9602_v0 }
 0x461   : > { %v9628_v59 = vpack.c.bf16 %v2753_v3, %v2907_v9  ;;  %v3125_v9 = vmax.f32 %v3112_v11, 0.0 }
 0x462   : > { %7673 = vmatmul.msk.bf16.gmra.mxu1 %vm964_vm3, %v9626_v39 }
 0x463   : > { %7685 = vmatmul.msk.bf16.gmra.mxu2 %vm964_vm3, %v9628_v59  ;;  %v2631_v30 = vpop.f32.mrf.mxu0  ;;  %v3132_v5 = vpack.c.bf16 %v3125_v9, %v3124_v47 }
 0x464   : > { %v2645_v53 = vadd.f32 %v2631_v30, %v9417_v31 }
 0x465   : > { %v2896_v19 = vld [vmem:[#allocation3 + $0x40] sm:$0xff] }
 0x466   : > { %v2982_v41 = vld [vmem:[#allocation3 + $0x41] sm:$0xff]  ;;  %2653 = vst.msk [vmem:[#allocation3 + $0x51] sm:$0xff] %vm964_vm3, %v2645_v53  ;;  %v2909_v44 = vmax.f32 %v2896_v19, 0.0  ;;  %v8352_v19 = vld [vmem:[%s11368_s5 + $0xb0] sm:$0xff] }
 0x467   : > { %v9639_v40 = vmax.f32 %v2982_v41, 0.0  ;;  %v3331_v53 = vld [vmem:[#allocation3 + $0x42] sm:$0xff] }
 0x468   : > { %v9641_v36 = vpack.c.bf16 %v2909_v44, %v2753_v3  ;;  %v3114_v3 = vld [vmem:[#allocation3 + $0x32] sm:$0xff]  ;;  %v3344_v41 = vmax.f32 %v3331_v53, 0.0 }
 0x469   : > { %v9644_v27 = vpack.c.bf16 %v9639_v40, %v2778_v18  ;;  %v9723_v18 = vpack.c.bf16 %v3342_v56, %v3125_v9  ;;  %v3127_v16 = vmax.f32 %v3114_v3, 0.0 }
 0x46a   : > { %7701 = vmatmul.msk.bf16.gmra.mxu3 %vm964_vm3, %v9641_v36 }
 0x46b   : > { %7717 = vmatmul.msk.bf16.gmra.mxu0 %vm964_vm3, %v9644_v27  ;;  %v2633_v31 = vpop.f32.mrf.mxu0  ;;  %v9735_v30 = vpack.c.bf16 %v3127_v16, %v3342_v56 }
 0x46c   : > { %v2646_v24 = vadd.f32 %v2633_v31, %v9441_v48  ;;  %v8347_v48 = vld [vmem:[%s11368_s5 + $0x88] sm:$0xff] }
 0x46d   : > { %v2767_v12 = vld [vmem:[#allocation3 + $0x51] sm:$0xff]  ;;  %3568 = vmatpush.bf16.msra.mxu2 %v8347_v48 }
 0x46e   : > { %v2743_v49 = vld [vmem:[#allocation3 + $0x50] sm:$0xff]  ;;  %2654 = vst.msk [vmem:[#allocation3 + $0x61] sm:$0xff] %vm964_vm3, %v2646_v24  ;;  %v2780_v20 = vmax.f32 %v2767_v12, 0.0 }
 0x46f   : > { %v2755_v32 = vmax.f32 %v2743_v49, 0.0  ;;  %v3116_v31 = vld [vmem:[#allocation3 + $0x52] sm:$0xff] }
 0x470   : > { %v9653_v42 = vpack.c.bf16 %v2780_v20, %v9639_v40  ;;  %v3129_v24 = vmax.f32 %v3116_v31, 0.0 }
 0x471   : > { %v9655_v17 = vpack.c.bf16 %v2755_v32, %v2909_v44  ;;  %3569 = vmatpush.bf16.msra.mxu2 %v8346_v4  ;;  %v9744_v44 = vpack.c.bf16 %v3344_v41, %v3127_v16  ;;  %v8360_v4 = vld [vmem:[%s11368_s5 + $0xf0] sm:$0xff] }
 0x472   : > { %7674 = vmatmul.msk.bf16.gmra.mxu1 %vm964_vm3, %v9653_v42  ;;  %v9750_v12 = vpack.c.bf16 %v3129_v24, %v3344_v41 }
 0x473   : > { %7686 = vmatmul.msk.bf16.gmra.mxu2 %vm964_vm3, %v9655_v17  ;;  %v2636_v45 = vpop.f32.mrf.mxu0 }
 0x474   : > { %v2647_v8 = vadd.f32 %v2636_v45, %v9444_v22  ;;  %v8351_v22 = vld [vmem:[%s11368_s5 + $0xa8] sm:$0xff] }
 0x475   : > { %v2898_v34 = vld [vmem:[#allocation3 + $0x60] sm:$0xff]  ;;  %3646 = vmatpush.bf16.msra.mxu3 %v8351_v22 }
 0x476   : > { %v2984_v46 = vld [vmem:[#allocation3 + $0x61] sm:$0xff]  ;;  %2655 = vst.msk [vmem:[#allocation3 + $0x71] sm:$0xff] %vm964_vm3, %v2647_v8  ;;  %v2911_v58 = vmax.f32 %v2898_v34, 0.0 }
 0x477   : > { %v9666_v43 = vmax.f32 %v2984_v46, 0.0  ;;  %v3333_v49 = vld [vmem:[#allocation3 + $0x62] sm:$0xff] }
 0x478   : > { %v9668_v38 = vpack.c.bf16 %v2911_v58, %v2755_v32  ;;  %v8355_v32 = vld [vmem:[%s11368_s5 + $0xc8] sm:$0xff] }
 0x479   : > { %v9671_v21 = vpack.c.bf16 %v9666_v43, %v2780_v20  ;;  %3647 = vmatpush.bf16.msra.mxu3 %v8350_v60  ;;  %v3346_v20 = vmax.f32 %v3333_v49, 0.0  ;;  %v8359_v8 = vld [vmem:[%s11368_s5 + $0xe8] sm:$0xff] }
 0x47a   : > { %7702 = vmatmul.msk.bf16.gmra.mxu3 %vm964_vm3, %v9668_v38 }
 0x47b   : > { %7718 = vmatmul.msk.bf16.gmra.mxu0 %vm964_vm3, %v9671_v21  ;;  %v2638_v37 = vpop.f32.mrf.mxu0  ;;  %v9759_v48 = vpack.c.bf16 %v3346_v20, %v3129_v24 }
 0x47c   : > { %v2648_v1 = vadd.f32 %v2638_v37, %v9484_v26  ;;  %v8353_v26 = vld [vmem:[%s11368_s5 + $0xb8] sm:$0xff] }
 0x47d   : > { %v2769_v25 = vld [vmem:[#allocation3 + $0x71] sm:$0xff]  ;;  %3732 = vmatpush.bf16.msra.mxu0 %v8353_v26  ;;  %v8354_v26 = vld [vmem:[%s11368_s5 + $0xc0] sm:$0xff] }
 0x47e   : > { %v2745_v14 = vld [vmem:[#allocation3 + $0x70] sm:$0xff]  ;;  %2656 = vst.msk [vmem:[#allocation3 + $0x81] sm:$0xff] %vm964_vm3, %v2648_v1  ;;  %v9685_v55 = vmax.f32 %v2769_v25, 0.0  ;;  %v8361_v37 = vld [vmem:[%s11368_s5 + $0xf8] sm:$0xff] }
 0x47f   : > { %v2757_v33 = vmax.f32 %v2745_v14, 0.0  ;;  %v3118_v45 = vld [vmem:[#allocation3 + $0x72] sm:$0xff] }
 0x480   : > { %v9689_v63 = vpack.c.bf16 %v9685_v55, %v9666_v43  ;;  %v3131_v34 = vmax.f32 %v3118_v45, 0.0 }
 0x481   : > { %v9691_v57 = vpack.c.bf16 %v2757_v33, %v2911_v58  ;;  %3733 = vmatpush.bf16.msra.mxu0 %v8352_v19 }
 0x482   : > { %7675 = vmatmul.msk.bf16.gmra.mxu1 %vm964_vm3, %v9689_v63  ;;  %v9770_v46 = vpack.c.bf16 %v3131_v34, %v3346_v20 }
 0x483   : > { %7687 = vmatmul.msk.bf16.gmra.mxu2 %vm964_vm3, %v9691_v57 }
 0x485   : > { %v9700_v29 = vld [vmem:[#allocation3 + $0x80] sm:$0xff] }
 0x486   : > { %v2986_v51 = vld [vmem:[#allocation3 + $0x81] sm:$0xff]  ;;  %v2913_v61 = vmax.f32 %v9700_v29, 0.0 }
 0x487   : > { %v9703_v62 = vmax.f32 %v2986_v51, 0.0  ;;  %v9772_v58 = vld [vmem:[#allocation3 + $0x82] sm:$0xff] }
 0x488   : > { %v9707_v35 = vpack.c.bf16 %v2913_v61, %v2757_v33  ;;  %v3348_v22 = vmax.f32 %v9772_v58, 0.0  ;;  %v8358_v51 = vld [vmem:[%s11368_s5 + $0xe0] sm:$0xff] }
 0x489   : > { %v9711_v15 = vpack.c.bf16 %v9703_v62, %v9685_v55 }
 0x48a   : > { %7703 = vmatmul.msk.bf16.gmra.mxu3 %vm964_vm3, %v9707_v35  ;;  %v9801_v1 = vpack.c.bf16 %v3348_v22, %v3131_v34 }
 0x48b   : > { %7719 = vmatmul.msk.bf16.gmra.mxu0 %vm964_vm3, %v9711_v15 }
 0x492   : > { %7736 = vmatmul.msk.bf16.vlgmr.msrb.gmra.mxu1 %vm964_vm3, %v3132_v5 }
 0x493   : > { %7748 = vmatmul.msk.bf16.vlgmr.msrb.gmra.mxu2 %vm964_vm3, %v3107_v7  ;;  %3864 = vmatpush.bf16.msrb.mxu1 %v8357_v50 }
 0x494   : > { %3917 = vmatpush.bf16.msrb.mxu2 %v8355_v32 }
 0x497   : > { %3865 = vmatpush.bf16.msrb.mxu1 %v8356_v13 }
 0x498   : > { %3918 = vmatpush.bf16.msrb.mxu2 %v8354_v26 }
 0x49a   : > { %7764 = vmatmul.msk.bf16.vlgmr.msrb.gmra.mxu3 %vm964_vm3, %v9611_v10 }
 0x49b   : > { %7780 = vmatmul.msk.bf16.vlgmr.msrb.gmra.mxu0 %vm964_vm3, %v9723_v18  ;;  %3995 = vmatpush.bf16.msrb.mxu3 %v8359_v8 }
 0x49c   : > { %4081 = vmatpush.bf16.msrb.mxu0 %v8361_v37 }
 0x49f   : > { %3996 = vmatpush.bf16.msrb.mxu3 %v8358_v51 }
 0x4a0   : > { %4082 = vmatpush.bf16.msrb.mxu0 %v8360_v4 }
 0x4a2   : > { %7737 = vmatmul.msk.bf16.gmra.mxu1 %vm964_vm3, %v9735_v30 }
 0x4a3   : > { %7749 = vmatmul.msk.bf16.gmra.mxu2 %vm964_vm3, %v9626_v39 }
 0x4aa   : > { %7765 = vmatmul.msk.bf16.gmra.mxu3 %vm964_vm3, %v9644_v27 }
 0x4ab   : > { %7781 = vmatmul.msk.bf16.gmra.mxu0 %vm964_vm3, %v9744_v44 }
 0x4b2   : > { %7738 = vmatmul.msk.bf16.gmra.mxu1 %vm964_vm3, %v9750_v12 }
 0x4b3   : > { %7750 = vmatmul.msk.bf16.gmra.mxu2 %vm964_vm3, %v9653_v42 }
 0x4ba   : > { %7766 = vmatmul.msk.bf16.gmra.mxu3 %vm964_vm3, %v9671_v21 }
 0x4bb   : > { %7782 = vmatmul.msk.bf16.gmra.mxu0 %vm964_vm3, %v9759_v48 }
 0x4c2   : > { %7739 = vmatmul.msk.bf16.gmra.mxu1 %vm964_vm3, %v9770_v46 }
 0x4c3   : > { %7751 = vmatmul.msk.bf16.gmra.mxu2 %vm964_vm3, %v9689_v63 }
 0x4ca   : > { %7767 = vmatmul.msk.bf16.gmra.mxu3 %vm964_vm3, %v9711_v15 }
 0x4cb   : > { %7783 = vmatmul.msk.bf16.gmra.mxu0 %vm964_vm3, %v9801_v1 }
 0x4cf   : > { %v2820_v25 = vpop.f32.mrf.mxu1 }
 0x4d2   : > { %7800 = vmatmul.msk.bf16.vlgmr.msra.gmra.mxu1 %vm964_vm3, %v9611_v10 }
 0x4d3   : > { %7812 = vmatmul.msk.bf16.vlgmr.msra.gmra.mxu2 %vm964_vm3, %v9607_v52 }
 0x4d6   : > { %v2873_v14 = vpop.f32.mrf.mxu2 }
 0x4d7   : > { %v2822_v10 = vpop.f32.mrf.mxu1  ;;  %v2874_v52 = vadd.f32 %v2873_v14, %v2820_v25 }
 0x4d8   : > { %v3037_v33 = vpop.f32.mrf.mxu0 }
 0x4da   : > { %7828 = vmatmul.msk.bf16.vlgmr.msra.gmra.mxu3 %vm964_vm3, %v9628_v59 }
 0x4db   : > { %7844 = vmatmul.msk.bf16.vlgmr.msra.gmra.mxu0 %vm964_vm3, %v9626_v39 }
 0x4dd   : > { %v2951_v59 = vpop.f32.mrf.mxu3 }
 0x4de   : > { %v2875_v23 = vpop.f32.mrf.mxu2  ;;  %v2971_v11 = vadd.f32 %v2951_v59, %v2874_v52 }
 0x4df   : > { %v2825_v47 = vpop.f32.mrf.mxu1  ;;  %v2876_v7 = vadd.f32 %v2875_v23, %v2822_v10 }
 0x4e0   : > { %v3039_v9 = vpop.f32.mrf.mxu0  ;;  %v3057_v6 = vadd.f32 %v3037_v33, %v2971_v11  ;;  %v9918_v11 = vld [vmem:[#allocation3 + $0x91] sm:$0xff] }
 0x4e2   : > { %v3069_v5 = vadd.f32 %v9864_v28, %v3057_v6  ;;  %7801 = vmatmul.msk.bf16.gmra.mxu1 %vm964_vm3, %v9644_v27  ;;  %v3697_v6 = vmax.f32 %v9918_v11, 0.0 }
 0x4e3   : > { %7813 = vmatmul.msk.bf16.gmra.mxu2 %vm964_vm3, %v9641_v36 }
 0x4e4   : > { %3078 = vst.msk [vmem:[#allocation4 + $0x11] sm:$0xff] %vm1773_vm5, %v3069_v5 }
 0x4e5   : > { %v2953_v56 = vpop.f32.mrf.mxu3 }
 0x4e6   : > { %v2878_v27 = vpop.f32.mrf.mxu2  ;;  %v2972_v36 = vadd.f32 %v2953_v56, %v2876_v7 }
 0x4e7   : > { %v2827_v3 = vpop.f32.mrf.mxu1  ;;  %v2879_v53 = vadd.f32 %v2878_v27, %v2825_v47 }
 0x4e8   : > { %v3042_v60 = vpop.f32.mrf.mxu0  ;;  %v3058_v54 = vadd.f32 %v3039_v9, %v2972_v36 }
 0x4ea   : > { %v3070_v16 = vadd.f32 %v9864_v28, %v3058_v54  ;;  %7829 = vmatmul.msk.bf16.gmra.mxu3 %vm964_vm3, %v9655_v17 }
 0x4eb   : > { %7845 = vmatmul.msk.bf16.gmra.mxu0 %vm964_vm3, %v9653_v42 }
 0x4ec   : > { %3079 = vst.msk [vmem:[#allocation4 + $0x21] sm:$0xff] %vm1773_vm5, %v3070_v16 }
 0x4ed   : > { %v2956_v41 = vpop.f32.mrf.mxu3 }
 0x4ee   : > { %v2880_v19 = vpop.f32.mrf.mxu2  ;;  %v2973_v2 = vadd.f32 %v2956_v41, %v2879_v53 }
 0x4ef   : > { %v2830_v31 = vpop.f32.mrf.mxu1  ;;  %v2881_v17 = vadd.f32 %v2880_v19, %v2827_v3  ;;  %v3784_v3 = vld [vmem:[#allocation3 + $0x11] sm:$0xff] }
 0x4f0   : > { %v3044_v24 = vpop.f32.mrf.mxu0  ;;  %v3059_v49 = vadd.f32 %v3042_v60, %v2973_v2  ;;  %v3797_v41 = vmax.f32 %v3784_v3, 0.0 }
 0x4f2   : > { %v3071_v20 = vadd.f32 %v9864_v28, %v3059_v49  ;;  %7802 = vmatmul.msk.bf16.gmra.mxu1 %vm964_vm3, %v9671_v21  ;;  %v3805_v49 = vpack.c.bf16 %v9602_v0, %v3797_v41  ;;  %v3786_v0 = vld [vmem:[#allocation3 + $0x31] sm:$0xff] }
 0x4f3   : > { %7814 = vmatmul.msk.bf16.gmra.mxu2 %vm964_vm3, %v9668_v38  ;;  %v9911_v21 = vld [vmem:[#allocation4 + $0x21] sm:$0xff] }
 0x4f4   : > { %3080 = vst.msk [vmem:[#allocation4 + $0x31] sm:$0xff] %vm1773_vm5, %v3071_v20 }
 0x4f5   : > { %v2958_v45 = vpop.f32.mrf.mxu3  ;;  %11389 = vst [vmem:[#allocation5_spill] sm:$0xff] %v9911_v21 }
 0x4f6   : > { %v2883_v32 = vpop.f32.mrf.mxu2  ;;  %v2974_v8 = vadd.f32 %v2958_v45, %v2881_v17 }
 0x4f7   : > { %v2832_v34 = vpop.f32.mrf.mxu1  ;;  %v2884_v14 = vadd.f32 %v2883_v32, %v2830_v31 }
 0x4f8   : > { %v3047_v50 = vpop.f32.mrf.mxu0  ;;  %v3060_v37 = vadd.f32 %v3044_v24, %v2974_v8 }
 0x4fa   : > { %v3072_v25 = vadd.f32 %v9864_v28, %v3060_v37  ;;  %7830 = vmatmul.msk.bf16.gmra.mxu3 %vm964_vm3, %v9691_v57  ;;  %v3598_v57 = vld [vmem:[#allocation3 + $0x90] sm:$0xff] }
 0x4fb   : > { %7846 = vmatmul.msk.bf16.gmra.mxu0 %vm964_vm3, %v9689_v63  ;;  %v9913_v38 = vld [vmem:[#allocation4 + $0x31] sm:$0xff]  ;;  %v3611_v9 = vmax.f32 %v3598_v57, 0.0 }
 0x4fc   : > { %11390 = vst [vmem:[#allocation6_spill] sm:$0xff] %v9913_v38 }
 0x4fd   : > { %3081 = vst.msk [vmem:[#allocation4 + $0x41] sm:$0xff] %vm1773_vm5, %v3072_v25  ;;  %v2961_v52 = vpop.f32.mrf.mxu3  ;;  %v3615_v36 = vpack.c.bf16 %v3611_v9, %v2913_v61 }
 0x4fe   : > { %v2885_v33 = vpop.f32.mrf.mxu2  ;;  %v2975_v26 = vadd.f32 %v2961_v52, %v2884_v14 }
 0x4ff   : > { %v2835_v51 = vpop.f32.mrf.mxu1  ;;  %v2886_v47 = vadd.f32 %v2885_v33, %v2832_v34 }
 0x500   : > { %v3049_v23 = vpop.f32.mrf.mxu0  ;;  %v3061_v59 = vadd.f32 %v3047_v50, %v2975_v26 }
 0x502   : > { %v3073_v63 = vadd.f32 %v9864_v28, %v3061_v59  ;;  %7803 = vmatmul.msk.bf16.gmra.mxu1 %vm964_vm3, %v9711_v15  ;;  %v3701_v15 = vpack.c.bf16 %v3697_v6, %v9703_v62 }
 0x503   : > { %7815 = vmatmul.msk.bf16.gmra.mxu2 %vm964_vm3, %v9707_v35 }
 0x504   : > { %3082 = vst.msk [vmem:[#allocation4 + $0x51] sm:$0xff] %vm1773_vm5, %v3073_v63  ;;  %v9935_v60 = vld [vmem:[#allocation4 + $0x41] sm:$0xff] }
 0x505   : > { %v2963_v7 = vpop.f32.mrf.mxu3  ;;  %11391 = vst [vmem:[#allocation7_spill] sm:$0xff] %v9935_v60 }
 0x506   : > { %v2888_v5 = vpop.f32.mrf.mxu2  ;;  %v2976_v13 = vadd.f32 %v2963_v7, %v2886_v47 }
 0x507   : > { %v2837_v4 = vpop.f32.mrf.mxu1  ;;  %v2889_v16 = vadd.f32 %v2888_v5, %v2835_v51 }
 0x508   : > { %v3052_v27 = vpop.f32.mrf.mxu0  ;;  %v3062_v56 = vadd.f32 %v3049_v23, %v2976_v13 }
 0x50a   : > { %v3074_v35 = vadd.f32 %v9864_v28, %v3062_v56  ;;  %7831 = vmatmul.msk.bf16.gmra.mxu3 %vm964_vm3, %v3615_v36 }
 0x50b   : > { %7847 = vmatmul.msk.bf16.gmra.mxu0 %vm964_vm3, %v3701_v15  ;;  %v9937_v54 = vld [vmem:[#allocation4 + $0x51] sm:$0xff] }
 0x50c   : > { %11392 = vst [vmem:[#allocation8_spill] sm:$0xff] %v9937_v54 }
 0x50d   : > { %3083 = vst.msk [vmem:[#allocation4 + $0x61] sm:$0xff] %vm1773_vm5, %v3074_v35  ;;  %v2966_v53 = vpop.f32.mrf.mxu3 }
 0x50e   : > { %v2890_v61 = vpop.f32.mrf.mxu2  ;;  %v2977_v19 = vadd.f32 %v2966_v53, %v2889_v16 }
 0x50f   : > { %v3169_v31 = vpop.f32.mrf.mxu1  ;;  %v2891_v17 = vadd.f32 %v2890_v61, %v2837_v4 }
 0x510   : > { %v3054_v2 = vpop.f32.mrf.mxu0  ;;  %v3063_v24 = vadd.f32 %v3052_v27, %v2977_v19 }
 0x512   : > { %v3075_v20 = vadd.f32 %v9864_v28, %v3063_v24  ;;  %7864 = vmatmul.msk.bf16.vlgmr.msrb.gmra.mxu1 %vm964_vm3, %v9723_v18 }
 0x513   : > { %7876 = vmatmul.msk.bf16.vlgmr.msrb.gmra.mxu2 %vm964_vm3, %v3805_v49 }
 0x514   : > { %3084 = vst.msk [vmem:[#allocation4 + $0x71] sm:$0xff] %vm1773_vm5, %v3075_v20  ;;  %v9953_v18 = vld [vmem:[#allocation4 + $0x61] sm:$0xff] }
 0x515   : > { %v2968_v32 = vpop.f32.mrf.mxu3  ;;  %11393 = vst [vmem:[#allocation9_spill] sm:$0xff] %v9953_v18 }
 0x516   : > { %v3222_v45 = vpop.f32.mrf.mxu2  ;;  %v2978_v8 = vadd.f32 %v2968_v32, %v2891_v17 }
 0x517   : > { %v3171_v34 = vpop.f32.mrf.mxu1  ;;  %v3223_v33 = vadd.f32 %v3222_v45, %v3169_v31 }
 0x518   : > { %v3386_v50 = vpop.f32.mrf.mxu0  ;;  %v3064_v37 = vadd.f32 %v3054_v2, %v2978_v8 }
 0x51a   : > { %v3076_v25 = vadd.f32 %v9864_v28, %v3064_v37  ;;  %7892 = vmatmul.msk.bf16.vlgmr.msrb.gmra.mxu3 %vm964_vm3, %v9626_v39  ;;  %v9963_v39 = vld [vmem:[%s11369_s6] ss:$0 sm:$0xff] }
 0x51b   : > { %7908 = vmatmul.msk.bf16.vlgmr.msrb.gmra.mxu0 %vm964_vm3, %v9735_v30  ;;  %v9955_v14 = vld [vmem:[#allocation4 + $0x71] sm:$0xff]  ;;  %v3799_v30 = vmax.f32 %v3786_v0, 0.0 }
 0x51c   : > { %11394 = vst [vmem:[#allocation10_spill] sm:$0xff] %v9955_v14 }
 0x51d   : > { %3085 = vst.msk [vmem:[#allocation4 + $0x81] sm:$0xff] %vm1773_vm5, %v3076_v25  ;;  %v3300_v51 = vpop.f32.mrf.mxu3  ;;  %v3806_v63 = vpack.c.bf16 %v9639_v40, %v3799_v30  ;;  %v3788_v40 = vld [vmem:[#allocation3 + $0x51] sm:$0xff] }
 0x51e   : > { %v3224_v26 = vpop.f32.mrf.mxu2  ;;  %v3320_v28 = vadd.f32 %v3300_v51, %v3223_v33  ;;  %v3801_v16 = vmax.f32 %v3788_v40, 0.0 }
 0x51f   : > { %v3174_v23 = vpop.f32.mrf.mxu1  ;;  %v3225_v9 = vadd.f32 %v3224_v26, %v3171_v34  ;;  %v3790_v34 = vld [vmem:[#allocation3 + $0x71] sm:$0xff] }
 0x520   : > { %v3388_v59 = vpop.f32.mrf.mxu0  ;;  %v3406_v57 = vadd.f32 %v3386_v50, %v3320_v28  ;;  %v3807_v41 = vpack.c.bf16 %v9666_v43, %v3801_v16  ;;  %v8365_v43 = vld [vmem:[%s11370_s7 + $0x18] sm:$0xff]  ;;  %v3803_v51 = vmax.f32 %v3790_v34, 0.0 }
 0x521   : > { %4368 = vmatpush.bf16.msra.mxu0 %v8365_v43 }
 0x522   : > { %v3418_v47 = vadd.f32 %v9963_v39, %v3406_v57  ;;  %7865 = vmatmul.msk.bf16.gmra.mxu1 %vm964_vm3, %v9744_v44  ;;  %v4033_v57 = vld [vmem:[#allocation3 + $0x92] sm:$0xff] }
 0x523   : > { %7877 = vmatmul.msk.bf16.gmra.mxu2 %vm964_vm3, %v3806_v63 }
 0x524   : > { %3427 = vst.msk [vmem:[#allocation4 + $0xb1] sm:$0xff] %vm1773_vm5, %v3418_v47 }
 0x525   : > { %v3302_v7 = vpop.f32.mrf.mxu3 }
 0x526   : > { %v3227_v5 = vpop.f32.mrf.mxu2  ;;  %v3321_v13 = vadd.f32 %v3302_v7, %v3225_v9 }
 0x527   : > { %v3176_v4 = vpop.f32.mrf.mxu1  ;;  %v3228_v44 = vadd.f32 %v3227_v5, %v3174_v23  ;;  %v4046_v5 = vmax.f32 %v4033_v57, 0.0 }
 0x528   : > { %v3391_v27 = vpop.f32.mrf.mxu0  ;;  %v3407_v56 = vadd.f32 %v3388_v59, %v3321_v13  ;;  %v3946_v59 = vld [vmem:[#allocation3 + $0x81] sm:$0xff] }
 0x529   : > { %v3959_v9 = vmax.f32 %v3946_v59, 0.0  ;;  %v4050_v40 = vpack.c.bf16 %v4046_v5, %v3348_v22 }
 0x52a   : > { %v3419_v36 = vadd.f32 %v9963_v39, %v3407_v56  ;;  %7893 = vmatmul.msk.bf16.gmra.mxu3 %vm964_vm3, %v9653_v42  ;;  %v3944_v42 = vld [vmem:[#allocation3 + $0x61] sm:$0xff] }
 0x52b   : > { %7909 = vmatmul.msk.bf16.gmra.mxu0 %vm964_vm3, %v9750_v12  ;;  %v3957_v20 = vmax.f32 %v3944_v42, 0.0  ;;  %v8364_v42 = vld [vmem:[%s11370_s7 + $0x10] sm:$0xff] }
 0x52c   : > { %3428 = vst.msk [vmem:[#allocation4 + $0xc1] sm:$0xff] %vm1773_vm5, %v3419_v36  ;;  %v3964_v36 = vpack.c.bf16 %v3697_v6, %v3959_v9  ;;  %4298 = vmatpush.bf16.msra.mxu3 %v8364_v42 }
 0x52d   : > { %v3305_v35 = vpop.f32.mrf.mxu3  ;;  %v3963_v8 = vpack.c.bf16 %v9685_v55, %v3957_v20 }
 0x52e   : > { %v3229_v15 = vpop.f32.mrf.mxu2  ;;  %v3322_v3 = vadd.f32 %v3305_v35, %v3228_v44  ;;  %v8363_v44 = vld [vmem:[%s11370_s7 + $0x8] sm:$0xff] }
 0x52f   : > { %v3179_v61 = vpop.f32.mrf.mxu1  ;;  %v3230_v12 = vadd.f32 %v3229_v15, %v3176_v4  ;;  %4189 = vmatpush.bf16.msra.mxu1 %v8363_v44 }
 0x530   : > { %v3393_v53 = vpop.f32.mrf.mxu0  ;;  %v3408_v19 = vadd.f32 %v3391_v27, %v3322_v3 }
 0x532   : > { %v3420_v2 = vadd.f32 %v9963_v39, %v3408_v19  ;;  %7866 = vmatmul.msk.bf16.gmra.mxu1 %vm964_vm3, %v9759_v48 }
 0x533   : > { %7878 = vmatmul.msk.bf16.gmra.mxu2 %vm964_vm3, %v3807_v41  ;;  %v9991_v50 = vld [vmem:[#allocation4 + $0xc1] sm:$0xff] }
 0x534   : > { %3429 = vst.msk [vmem:[#allocation4 + $0xd1] sm:$0xff] %vm1773_vm5, %v3420_v2  ;;  %v8362_v2 = vld [vmem:[%s11370_s7] sm:$0xff] }
 0x535   : > { %v3307_v24 = vpop.f32.mrf.mxu3  ;;  %11395 = vst [vmem:[#allocation11_spill] sm:$0xff] %v9991_v50  ;;  %4236 = vmatpush.bf16.msra.mxu2 %v8362_v2 }
 0x536   : > { %v3232_v31 = vpop.f32.mrf.mxu2  ;;  %v3323_v49 = vadd.f32 %v3307_v24, %v3230_v12  ;;  %v4329_v24 = vld [vmem:[#allocation4 + $0xc0] sm:$0xff] }
 0x537   : > { %v3181_v17 = vpop.f32.mrf.mxu1  ;;  %v3233_v25 = vadd.f32 %v3232_v31, %v3179_v61 }
 0x538   : > { %v3396_v32 = vpop.f32.mrf.mxu0  ;;  %v3409_v45 = vadd.f32 %v3393_v53, %v3323_v49 }
 0x53a   : > { %v3421_v48 = vadd.f32 %v9963_v39, %v3409_v45  ;;  %7894 = vmatmul.msk.bf16.gmra.mxu3 %vm964_vm3, %v3963_v8 }
 0x53b   : > { %7910 = vmatmul.msk.bf16.gmra.mxu0 %vm964_vm3, %v9770_v46  ;;  %v9993_v37 = vld [vmem:[#allocation4 + $0xd1] sm:$0xff]  ;;  %v3808_v46 = vpack.c.bf16 %v9703_v62, %v3803_v51 }
 0x53c   : > { %11396 = vst [vmem:[#allocation12_spill] sm:$0xff] %v9993_v37 }
 0x53d   : > { %3430 = vst.msk [vmem:[#allocation4 + $0xe1] sm:$0xff] %vm1773_vm5, %v3421_v48  ;;  %v3310_v33 = vpop.f32.mrf.mxu3 }
 0x53e   : > { %v3234_v55 = vpop.f32.mrf.mxu2  ;;  %v3324_v26 = vadd.f32 %v3310_v33, %v3233_v25 }
 0x53f   : > { %v3184_v28 = vpop.f32.mrf.mxu1  ;;  %v3235_v47 = vadd.f32 %v3234_v55, %v3181_v17 }
 0x540   : > { %v3398_v30 = vpop.f32.mrf.mxu0  ;;  %v3410_v23 = vadd.f32 %v3396_v32, %v3324_v26  ;;  %v4328_v32 = vld [vmem:[#allocation4 + $0xb0] sm:$0xff] }
 0x541   : > { %v10029_v45 = vpack.c.bf16 %v4329_v24, %v4328_v32  ;;  %v8369_v32 = vld [vmem:[%s11370_s7 + $0x38] sm:$0xff] }
 0x542   : > { %v3422_v63 = vadd.f32 %v9963_v39, %v3410_v23  ;;  %7867 = vmatmul.msk.bf16.gmra.mxu1 %vm964_vm3, %v9801_v1  ;;  %v10050_v23 = vld [vmem:[%s11369_s6] ss:$0 sm:$0xff]  ;;  %4648 = vmatpush.bf16.msrb.mxu0 %v8369_v32 }
 0x543   : > { %7879 = vmatmul.msk.bf16.gmra.mxu2 %vm964_vm3, %v3808_v46 }
 0x544   : > { %3431 = vst.msk [vmem:[#allocation4 + $0xf1] sm:$0xff] %vm1773_vm5, %v3422_v63  ;;  %v10015_v35 = vld [vmem:[#allocation4 + $0xe1] sm:$0xff] }
 0x545   : > { %v3312_v13 = vpop.f32.mrf.mxu3  ;;  %11397 = vst [vmem:[#allocation13_spill] sm:$0xff] %v10015_v35 }
 0x546   : > { %v3237_v7 = vpop.f32.mrf.mxu2  ;;  %v3325_v4 = vadd.f32 %v3312_v13, %v3235_v47 }
 0x547   : > { %v3186_v27 = vpop.f32.mrf.mxu1  ;;  %v3238_v15 = vadd.f32 %v3237_v7, %v3184_v28  ;;  %v4331_v7 = vld [vmem:[#allocation4 + $0xe0] sm:$0xff] }
 0x548   : > { %v3401_v56 = vpop.f32.mrf.mxu0  ;;  %v3411_v62 = vadd.f32 %v3398_v30, %v3325_v4 }
 0x54a   : > { %v3423_v1 = vadd.f32 %v9963_v39, %v3411_v62  ;;  %7895 = vmatmul.msk.bf16.gmra.mxu3 %vm964_vm3, %v3964_v36 }
 0x54b   : > { %7911 = vmatmul.msk.bf16.gmra.mxu0 %vm964_vm3, %v4050_v40  ;;  %v10017_v11 = vld [vmem:[#allocation4 + $0xf1] sm:$0xff]  ;;  %v4149_v40 = vld [vmem:[#allocation4 + $0x141] sm:$0xff] }
 0x54c   : > { %3432 = vst.msk [vmem:[#allocation4 + $0x101] sm:$0xff] %vm1773_vm5, %v3423_v1 }
 0x54d   : > { %11398 = vst [vmem:[#allocation14_spill] sm:$0xff] %v10017_v11  ;;  %v3315_v58 = vpop.f32.mrf.mxu3  ;;  %v8381_v11 = vld [vmem:[%s11370_s7 + $0x8] sm:$0xff] }
 0x54e   : > { %v3239_v6 = vpop.f32.mrf.mxu2  ;;  %v3326_v3 = vadd.f32 %v3315_v58, %v3238_v15 }
 0x54f   : > { %v3518_v61 = vpop.f32.mrf.mxu1  ;;  %v3240_v41 = vadd.f32 %v3239_v6, %v3186_v27 }
 0x550   : > { %v3403_v16 = vpop.f32.mrf.mxu0  ;;  %v3412_v53 = vadd.f32 %v3401_v56, %v3326_v3  ;;  %v4330_v56 = vld [vmem:[#allocation4 + $0xd0] sm:$0xff] }
 0x551   : > { %v10054_v36 = vpack.c.bf16 %v4331_v7, %v4330_v56 }
 0x552   : > { %v3424_v19 = vadd.f32 %v9963_v39, %v3412_v53 }
 0x553   : > { %v10034_v48 = vld [vmem:[#allocation4 + $0x100] sm:$0xff] }
 0x554   : > { %3433 = vst.msk [vmem:[#allocation4 + $0x111] sm:$0xff] %vm1773_vm5, %v3424_v19  ;;  %v10039_v55 = vld [vmem:[#allocation4 + $0x101] sm:$0xff] }
 0x555   : > { %v3317_v12 = vpop.f32.mrf.mxu3  ;;  %11399 = vst [vmem:[#allocation15_spill] sm:$0xff] %v10039_v55 }
 0x556   : > { %v3571_v31 = vpop.f32.mrf.mxu2  ;;  %v3327_v49 = vadd.f32 %v3317_v12, %v3240_v41 }
 0x557   : > { %v3520_v20 = vpop.f32.mrf.mxu1  ;;  %v3572_v25 = vadd.f32 %v3571_v31, %v3518_v61  ;;  %v4333_v31 = vld [vmem:[#allocation4 + $0x100] sm:$0xff] }
 0x558   : > { %v3735_v17 = vpop.f32.mrf.mxu0  ;;  %v3413_v43 = vadd.f32 %v3403_v16, %v3327_v49 }
 0x55a   : > { %v3425_v8 = vadd.f32 %v9963_v39, %v3413_v43 }
 0x55b   : > { %7946 = vmatmul.msk.bf16.vlgmr.msra.gmra.mxu0 %vm1773_vm5, %v10029_v45  ;;  %v10036_v34 = vld [vmem:[#allocation4 + $0x110] sm:$0xff] }
 0x55c   : > { %3434 = vst.msk [vmem:[#allocation4 + $0x121] sm:$0xff] %vm1773_vm5, %v3425_v8  ;;  %v10041_v33 = vld [vmem:[#allocation4 + $0x111] sm:$0xff] }
 0x55d   : > { %11400 = vst [vmem:[#allocation16_spill] sm:$0xff] %v10041_v33  ;;  %v3649_v28 = vpop.f32.mrf.mxu3 }
 0x55e   : > { %v3573_v51 = vpop.f32.mrf.mxu2  ;;  %v3669_v30 = vadd.f32 %v3649_v28, %v3572_v25 }
 0x55f   : > { %v3523_v46 = vpop.f32.mrf.mxu1  ;;  %v3574_v47 = vadd.f32 %v3573_v51, %v3520_v20 }
 0x560   : > { %v3737_v59 = vpop.f32.mrf.mxu0  ;;  %v3755_v57 = vadd.f32 %v3735_v17, %v3669_v30  ;;  %v4332_v17 = vld [vmem:[#allocation4 + $0xf0] sm:$0xff] }
 0x561   : > { %v4341_v8 = vpack.c.bf16 %v4333_v31, %v4332_v17 }
 0x562   : > { %v3767_v63 = vadd.f32 %v10050_v23, %v3755_v57 }
 0x563   : > { %v4335_v56 = vld [vmem:[#allocation4 + $0x120] sm:$0xff] }
 0x564   : > { %3776 = vst.msk [vmem:[#allocation4 + $0x151] sm:$0xff] %vm1773_vm5, %v3767_v63 }
 0x565   : > { %v3651_v5 = vpop.f32.mrf.mxu3 }
 0x566   : > { %v3576_v9 = vpop.f32.mrf.mxu2  ;;  %v3670_v13 = vadd.f32 %v3651_v5, %v3574_v47 }
 0x567   : > { %v3525_v4 = vpop.f32.mrf.mxu1  ;;  %v3577_v15 = vadd.f32 %v3576_v9, %v3523_v46 }
 0x568   : > { %v3740_v27 = vpop.f32.mrf.mxu0  ;;  %v3756_v62 = vadd.f32 %v3737_v59, %v3670_v13 }
 0x56a   : > { %v3768_v1 = vadd.f32 %v10050_v23, %v3756_v62 }
 0x56b   : > { %7947 = vmatmul.msk.bf16.gmra.mxu0 %vm1773_vm5, %v10054_v36  ;;  %v10059_v44 = vld [vmem:[#allocation4 + $0x151] sm:$0xff] }
 0x56c   : > { %3777 = vst.msk [vmem:[#allocation4 + $0x161] sm:$0xff] %vm1773_vm5, %v3768_v1  ;;  %v10063_v6 = vpack.c.bf16 %v10059_v44, %v4149_v40 }
 0x56d   : > { %v3654_v3 = vpop.f32.mrf.mxu3 }
 0x56e   : > { %v3578_v58 = vpop.f32.mrf.mxu2  ;;  %v3671_v16 = vadd.f32 %v3654_v3, %v3577_v15  ;;  %7918 = vmatmul.msk.bf16.vlgmr.msra.gmra.mxu1 %vm1773_vm5, %v10063_v6  ;;  %v4334_v15 = vld [vmem:[#allocation4 + $0x110] sm:$0xff] }
 0x56f   : > { %v3528_v61 = vpop.f32.mrf.mxu1  ;;  %v3579_v2 = vadd.f32 %v3578_v58, %v3525_v4  ;;  %v4342_v3 = vpack.c.bf16 %v4335_v56, %v4334_v15 }
 0x570   : > { %v3742_v53 = vpop.f32.mrf.mxu0  ;;  %v3757_v19 = vadd.f32 %v3740_v27, %v3671_v16 }
 0x572   : > { %v3769_v41 = vadd.f32 %v10050_v23, %v3757_v19  ;;  %v8366_v19 = vld [vmem:[%s11370_s7 + $0x20] sm:$0xff] }
 0x573   : > { %v4151_v51 = vld [vmem:[#allocation4 + $0x161] sm:$0xff]  ;;  %4438 = vmatpush.bf16.msrb.mxu1 %v8366_v19 }
 0x574   : > { %3778 = vst.msk [vmem:[#allocation4 + $0x171] sm:$0xff] %vm1773_vm5, %v3769_v41 }
 0x575   : > { %v3656_v12 = vpop.f32.mrf.mxu3 }
 0x576   : > { %v3581_v42 = vpop.f32.mrf.mxu2  ;;  %v3672_v24 = vadd.f32 %v3656_v12, %v3579_v2 }
 0x577   : > { %v3530_v49 = vpop.f32.mrf.mxu1  ;;  %v3582_v30 = vadd.f32 %v3581_v42, %v3528_v61 }
 0x578   : > { %v3745_v20 = vpop.f32.mrf.mxu0  ;;  %v3758_v43 = vadd.f32 %v3742_v53, %v3672_v24 }
 0x57a   : > { %v3770_v25 = vadd.f32 %v10050_v23, %v3758_v43  ;;  %v8367_v43 = vld [vmem:[%s11370_s7 + $0x28] sm:$0xff] }
 0x57b   : > { %7948 = vmatmul.msk.bf16.gmra.mxu0 %vm1773_vm5, %v4341_v8  ;;  %v10074_v28 = vld [vmem:[#allocation4 + $0x171] sm:$0xff]  ;;  %4508 = vmatpush.bf16.msrb.mxu2 %v8367_v43 }
 0x57c   : > { %3779 = vst.msk [vmem:[#allocation4 + $0x181] sm:$0xff] %vm1773_vm5, %v3770_v25  ;;  %v10078_v46 = vpack.c.bf16 %v10074_v28, %v4151_v51  ;;  %v8368_v8 = vld [vmem:[%s11370_s7 + $0x30] sm:$0xff] }
 0x57d   : > { %v3659_v57 = vpop.f32.mrf.mxu3  ;;  %4578 = vmatpush.bf16.msrb.mxu3 %v8368_v8 }
 0x57e   : > { %v3583_v59 = vpop.f32.mrf.mxu2  ;;  %v3673_v63 = vadd.f32 %v3659_v57, %v3582_v30  ;;  %7919 = vmatmul.msk.bf16.gmra.mxu1 %vm1773_vm5, %v10078_v46 }
 0x57f   : > { %v3533_v47 = vpop.f32.mrf.mxu1  ;;  %v3584_v13 = vadd.f32 %v3583_v59, %v3530_v49 }
 0x580   : > { %v3747_v9 = vpop.f32.mrf.mxu0  ;;  %v3759_v5 = vadd.f32 %v3745_v20, %v3673_v63 }
 0x582   : > { %v3771_v7 = vadd.f32 %v10050_v23, %v3759_v5 }
 0x583   : > { %v4153_v61 = vld [vmem:[#allocation4 + $0x181] sm:$0xff] }
 0x584   : > { %3780 = vst.msk [vmem:[#allocation4 + $0x191] sm:$0xff] %vm1773_vm5, %v3771_v7 }
 0x585   : > { %v3661_v27 = vpop.f32.mrf.mxu3 }
 0x586   : > { %v3586_v4 = vpop.f32.mrf.mxu2  ;;  %v3674_v62 = vadd.f32 %v3661_v27, %v3584_v13 }
 0x587   : > { %v3535_v40 = vpop.f32.mrf.mxu1  ;;  %v3587_v41 = vadd.f32 %v3586_v4, %v3533_v47 }
 0x588   : > { %v3750_v1 = vpop.f32.mrf.mxu0  ;;  %v3760_v58 = vadd.f32 %v3747_v9, %v3674_v62  ;;  %v10106_v9 = vpack.c.bf16 %v4151_v51, %v10059_v44  ;;  %v10120_v44 = vld [vmem:[%s11369_s6] ss:$0 sm:$0xff] }
 0x58a   : > { %v3772_v16 = vadd.f32 %v10050_v23, %v3760_v58 }
 0x58b   : > { %7949 = vmatmul.msk.bf16.gmra.mxu0 %vm1773_vm5, %v4342_v3  ;;  %v10086_v53 = vld [vmem:[#allocation4 + $0x191] sm:$0xff] }
 0x58c   : > { %3781 = vst.msk [vmem:[#allocation4 + $0x1a1] sm:$0xff] %vm1773_vm5, %v3772_v16  ;;  %v10093_v2 = vpack.c.bf16 %v10086_v53, %v4153_v61 }
 0x58d   : > { %v3664_v12 = vpop.f32.mrf.mxu3 }
 0x58e   : > { %v3588_v42 = vpop.f32.mrf.mxu2  ;;  %v3675_v31 = vadd.f32 %v3664_v12, %v3587_v41  ;;  %7920 = vmatmul.msk.bf16.gmra.mxu1 %vm1773_vm5, %v10093_v2  ;;  %v10127_v12 = vpack.c.bf16 %v4153_v61, %v10074_v28  ;;  %v4398_v61 = vld [vmem:[#allocation4 + $0x11] sm:$0xff] }
 0x58f   : > { %v3867_v49 = vpop.f32.mrf.mxu1  ;;  %v3589_v32 = vadd.f32 %v3588_v42, %v3535_v40 }
 0x590   : > { %v3752_v24 = vpop.f32.mrf.mxu0  ;;  %v3761_v20 = vadd.f32 %v3750_v1, %v3675_v31  ;;  %v4134_v31 = vld [vmem:[#allocation4 + $0x1e0] sm:$0xff] }
 0x592   : > { %v3773_v17 = vadd.f32 %v10050_v23, %v3761_v20 }
 0x593   : > { %v4155_v7 = vld [vmem:[#allocation4 + $0x1a1] sm:$0xff] }
 0x594   : > { %3782 = vst.msk [vmem:[#allocation4 + $0x1b1] sm:$0xff] %vm1773_vm5, %v3773_v17  ;;  %v4399_v17 = vld [vmem:[#allocation4 + $0x21] sm:$0xff] }
 0x595   : > { %v3666_v25 = vpop.f32.mrf.mxu3 }
 0x596   : > { %v3920_v30 = vpop.f32.mrf.mxu2  ;;  %v3676_v59 = vadd.f32 %v3666_v25, %v3589_v32 }
 0x597   : > { %v3869_v57 = vpop.f32.mrf.mxu1  ;;  %v3921_v4 = vadd.f32 %v3920_v30, %v3867_v49 }
 0x598   : > { %v4084_v63 = vpop.f32.mrf.mxu0  ;;  %v3762_v47 = vadd.f32 %v3752_v24, %v3676_v59  ;;  %v4258_v24 = vld [vmem:[#allocation4 + $0x1e1] sm:$0xff] }
 0x59a   : > { %v3774_v5 = vadd.f32 %v10050_v23, %v3762_v47 }
 0x59b   : > { %7986 = vmatmul.msk.bf16.vlgmr.msrb.gmra.mxu0 %vm1773_vm5, %v10106_v9  ;;  %v10111_v13 = vld [vmem:[#allocation4 + $0x1b1] sm:$0xff] }
 0x59c   : > { %3783 = vst.msk [vmem:[#allocation4 + $0x1c1] sm:$0xff] %vm1773_vm5, %v3774_v5  ;;  %v10115_v27 = vpack.c.bf16 %v10111_v13, %v4155_v7 }
 0x59d   : > { %v3998_v62 = vpop.f32.mrf.mxu3 }
 0x59e   : > { %v3922_v56 = vpop.f32.mrf.mxu2  ;;  %v4018_v40 = vadd.f32 %v3998_v62, %v3921_v4  ;;  %7921 = vmatmul.msk.bf16.gmra.mxu1 %vm1773_vm5, %v10115_v27 }
 0x59f   : > { %v3872_v1 = vpop.f32.mrf.mxu1  ;;  %v3923_v58 = vadd.f32 %v3922_v56, %v3869_v57  ;;  %v10141_v57 = vpack.c.bf16 %v4399_v17, %v4398_v61 }
 0x5a0   : > { %v4086_v23 = vpop.f32.mrf.mxu0  ;;  %v4104_v51 = vadd.f32 %v4084_v63, %v4018_v40 }
 0x5a2   : > { %v4116_v15 = vadd.f32 %v10120_v44, %v4104_v51 }
 0x5a4   : > { %4125 = vst.msk [vmem:[#allocation4 + $0x1f1] sm:$0xff] %vm1773_vm5, %v4116_v15  ;;  %v8373_v15 = vld [vmem:[%s11370_s7 + $0x10] sm:$0xff] }
 0x5a5   : > { %v4000_v16 = vpop.f32.mrf.mxu3  ;;  %5081 = vmatpush.bf16.msra.mxu0 %v8373_v15 }
 0x5a6   : > { %v3925_v3 = vpop.f32.mrf.mxu2  ;;  %v4019_v19 = vadd.f32 %v4000_v16, %v3923_v58 }
 0x5a7   : > { %v3874_v20 = vpop.f32.mrf.mxu1  ;;  %v3926_v8 = vadd.f32 %v3925_v3, %v3872_v1  ;;  %v10154_v3 = vpack.c.bf16 %v4155_v7, %v10086_v53 }
 0x5a8   : > { %v4089_v41 = vpop.f32.mrf.mxu0  ;;  %v4105_v42 = vadd.f32 %v4086_v23, %v4019_v19 }
 0x5aa   : > { %v4117_v49 = vadd.f32 %v10120_v44, %v4105_v42 }
 0x5ab   : > { %7987 = vmatmul.msk.bf16.gmra.mxu0 %vm1773_vm5, %v10127_v12  ;;  %v10132_v32 = vld [vmem:[#allocation4 + $0x1f0] sm:$0xff] }
 0x5ac   : > { %v10134_v43 = vld [vmem:[#allocation4 + $0x1f1] sm:$0xff]  ;;  %4126 = vst.msk [vmem:[#allocation4 + $0x201] sm:$0xff] %vm1773_vm5, %v4117_v49  ;;  %v4144_v25 = vpack.c.bf16 %v10132_v32, %v4134_v31 }
 0x5ad   : > { %v10139_v28 = vpack.c.bf16 %v10134_v43, %v4258_v24  ;;  %v4003_v59 = vpop.f32.mrf.mxu3 }
 0x5ae   : > { %v3927_v30 = vpop.f32.mrf.mxu2  ;;  %v4020_v63 = vadd.f32 %v4003_v59, %v3926_v8  ;;  %7926 = vmatmul.msk.bf16.vlgmr.msra.gmra.mxu2 %vm1773_vm5, %v4144_v25  ;;  %7956 = vmatmul.msk.bf16.vlgmr.msrb.gmra.mxu1 %vm1773_vm5, %v10141_v57 }
 0x5af   : > { %7936 = vmatmul.msk.bf16.vlgmr.msra.gmra.mxu3 %vm1773_vm5, %v10139_v28  ;;  %v3928_v56 = vadd.f32 %v3927_v30, %v3874_v20  ;;  %v3877_v62 = vpop.f32.mrf.mxu1  ;;  %v4400_v20 = vld [vmem:[#allocation4 + $0x31] sm:$0xff] }
 0x5b0   : > { %v4091_v47 = vpop.f32.mrf.mxu0  ;;  %v4106_v5 = vadd.f32 %v4089_v41, %v4020_v63  ;;  %v4401_v41 = vld [vmem:[#allocation4 + $0x41] sm:$0xff] }
 0x5b1   : > { %v10174_v25 = vpack.c.bf16 %v4401_v41, %v4400_v20 }
 0x5b2   : > { %v4118_v4 = vadd.f32 %v10120_v44, %v4106_v5 }
 0x5b3   : > { %v10159_v19 = vld [vmem:[#allocation4 + $0x200] sm:$0xff] }
 0x5b4   : > { %4127 = vst.msk [vmem:[#allocation4 + $0x211] sm:$0xff] %vm1773_vm5, %v4118_v4  ;;  %v10163_v31 = vld [vmem:[#allocation4 + $0x201] sm:$0xff] }
 0x5b5   : > { %v4005_v23 = vpop.f32.mrf.mxu3 }
 0x5b6   : > { %v3930_v40 = vpop.f32.mrf.mxu2  ;;  %v4021_v51 = vadd.f32 %v4005_v23, %v3928_v56  ;;  %v4615_v56 = vld [vmem:[#allocation4 + $0x1c1] sm:$0xff] }
 0x5b7   : > { %v3931_v49 = vadd.f32 %v3930_v40, %v3877_v62  ;;  %v3879_v30 = vpop.f32.mrf.mxu1  ;;  %v10184_v15 = vpack.c.bf16 %v4615_v56, %v10111_v13  ;;  %v8370_v13 = vld [vmem:[%s11370_s7 + $0x40] sm:$0xff] }
 0x5b8   : > { %v4094_v1 = vpop.f32.mrf.mxu0  ;;  %v4107_v58 = vadd.f32 %v4091_v47, %v4021_v51  ;;  %4718 = vmatpush.bf16.msra.mxu1 %v8370_v13  ;;  %v8371_v56 = vld [vmem:[%s11370_s7] sm:$0xff] }
 0x5b9   : > { %5020 = vmatpush.bf16.msra.mxu3 %v8371_v56  ;;  %v5042_v13 = vld [vmem:[#allocation4 + $0x142] sm:$0xff] }
 0x5ba   : > { %v4119_v16 = vadd.f32 %v10120_v44, %v4107_v58 }
 0x5bb   : > { %7988 = vmatmul.msk.bf16.gmra.mxu0 %vm1773_vm5, %v10154_v3  ;;  %v10161_v42 = vld [vmem:[#allocation4 + $0x210] sm:$0xff] }
 0x5bc   : > { %v10165_v24 = vld [vmem:[#allocation4 + $0x211] sm:$0xff]  ;;  %4128 = vst.msk [vmem:[#allocation4 + $0x221] sm:$0xff] %vm1773_vm5, %v4119_v16  ;;  %v4145_v53 = vpack.c.bf16 %v10161_v42, %v10159_v19 }
 0x5bd   : > { %v10172_v7 = vpack.c.bf16 %v10165_v24, %v10163_v31  ;;  %v4008_v8 = vpop.f32.mrf.mxu3 }
 0x5be   : > { %v3932_v17 = vpop.f32.mrf.mxu2  ;;  %v4022_v61 = vadd.f32 %v4008_v8, %v3931_v49  ;;  %7927 = vmatmul.msk.bf16.gmra.mxu2 %vm1773_vm5, %v4145_v53  ;;  %7957 = vmatmul.msk.bf16.gmra.mxu1 %vm1773_vm5, %v10174_v25  ;;  %v4403_v49 = vld [vmem:[#allocation4 + $0x61] sm:$0xff] }
 0x5bf   : > { %7937 = vmatmul.msk.bf16.gmra.mxu3 %vm1773_vm5, %v10172_v7  ;;  %v3933_v5 = vadd.f32 %v3932_v17, %v3879_v30  ;;  %v3882_v58 = vpop.f32.mrf.mxu1  ;;  %v4402_v30 = vld [vmem:[#allocation4 + $0x51] sm:$0xff] }
 0x5c0   : > { %v4096_v59 = vpop.f32.mrf.mxu0  ;;  %v4108_v63 = vadd.f32 %v4094_v1, %v4022_v61 }
 0x5c2   : > { %v4120_v47 = vadd.f32 %v10120_v44, %v4108_v63  ;;  %v10207_v63 = vpack.c.bf16 %v4403_v49, %v4402_v30 }
 0x5c3   : > { %v10189_v1 = vld [vmem:[#allocation4 + $0x220] sm:$0xff] }
 0x5c4   : > { %4129 = vst.msk [vmem:[#allocation4 + $0x231] sm:$0xff] %vm1773_vm5, %v4120_v47  ;;  %v10191_v41 = vld [vmem:[#allocation4 + $0x221] sm:$0xff]  ;;  %v4550_v22 = vpack.c.bf16 %v10189_v1, %v10161_v42 }
 0x5c5   : > { %v4010_v4 = vpop.f32.mrf.mxu3  ;;  %v10283_v29 = vpack.c.bf16 %v10191_v41, %v10165_v24  ;;  %v5048_v42 = vld [vmem:[#allocation4 + $0x1a2] sm:$0xff] }
 0x5c6   : > { %v4023_v62 = vadd.f32 %v4010_v4, %v3933_v5  ;;  %v3935_v40 = vpop.f32.mrf.mxu2  ;;  %v8372_v4 = vld [vmem:[%s11370_s7 + $0x8] sm:$0xff] }
 0x5c7   : > { %v3936_v17 = vadd.f32 %v3935_v40, %v3882_v58  ;;  %4973 = vmatpush.bf16.msra.mxu2 %v8372_v4  ;;  %v3884_v58 = vpop.f32.mrf.mxu1 }
 0x5c8   : > { %v4099_v23 = vpop.f32.mrf.mxu0  ;;  %v4109_v51 = vadd.f32 %v4096_v59, %v4023_v62 }
 0x5ca   : > { %v4121_v16 = vadd.f32 %v10120_v44, %v4109_v51 }
 0x5cb   : > { %7989 = vmatmul.msk.bf16.gmra.mxu0 %vm1773_vm5, %v10184_v15  ;;  %v10193_v53 = vld [vmem:[#allocation4 + $0x230] sm:$0xff] }
 0x5cc   : > { %v10195_v20 = vld [vmem:[#allocation4 + $0x231] sm:$0xff]  ;;  %4130 = vst.msk [vmem:[#allocation4 + $0x241] sm:$0xff] %vm1773_vm5, %v4121_v16  ;;  %v4146_v8 = vpack.c.bf16 %v10193_v53, %v10189_v1 }
 0x5cd   : > { %v10205_v61 = vpack.c.bf16 %v10195_v20, %v10191_v41  ;;  %v4013_v59 = vpop.f32.mrf.mxu3  ;;  %v4472_v41 = vld [vmem:[#allocation4 + $0xf1] sm:$0xff] }
 0x5ce   : > { %v4024_v47 = vadd.f32 %v4013_v59, %v3936_v17  ;;  %7928 = vmatmul.msk.bf16.gmra.mxu2 %vm1773_vm5, %v4146_v8  ;;  %7958 = vmatmul.msk.bf16.gmra.mxu1 %vm1773_vm5, %v10207_v63  ;;  %v3937_v40 = vpop.f32.mrf.mxu2  ;;  %v5043_v17 = vld [vmem:[#allocation4 + $0x152] sm:$0xff] }
 0x5cf   : > { %7938 = vmatmul.msk.bf16.gmra.mxu3 %vm1773_vm5, %v10205_v61  ;;  %v3938_v16 = vadd.f32 %v3937_v40, %v3884_v58  ;;  %v5052_v39 = vpack.c.bf16 %v5043_v17, %v5042_v13  ;;  %v4469_v13 = vld [vmem:[#allocation4 + $0xc1] sm:$0xff] }
 0x5d0   : > { %v4101_v5 = vpop.f32.mrf.mxu0  ;;  %v4110_v62 = vadd.f32 %v4099_v23, %v4024_v47  ;;  %v4405_v47 = vld [vmem:[#allocation4 + $0x81] sm:$0xff] }
 0x5d2   : > { %v4122_v51 = vadd.f32 %v10120_v44, %v4110_v62 }
 0x5d3   : > { %v10226_v23 = vld [vmem:[#allocation4 + $0x240] sm:$0xff] }
 0x5d4   : > { %4131 = vst.msk [vmem:[#allocation4 + $0x251] sm:$0xff] %vm1773_vm5, %v4122_v51  ;;  %v4264_v56 = vld [vmem:[#allocation4 + $0x241] sm:$0xff]  ;;  %v4404_v51 = vld [vmem:[#allocation4 + $0x71] sm:$0xff]  ;;  %v4551_v0 = vpack.c.bf16 %v10226_v23, %v10193_v53 }
 0x5d5   : > { %v4015_v49 = vpop.f32.mrf.mxu3  ;;  %v10307_v10 = vpack.c.bf16 %v4264_v56, %v10195_v20  ;;  %v8376_v53 = vld [vmem:[%s11370_s7 + $0x28] sm:$0xff] }
 0x5d6   : > { %v4025_v8 = vadd.f32 %v4015_v49, %v3938_v16  ;;  %v5044_v16 = vld [vmem:[#allocation4 + $0x162] sm:$0xff] }
 0x5d8   : > { %v10222_v30 = vpop.f32.mrf.mxu0  ;;  %v4111_v59 = vadd.f32 %v4101_v5, %v4025_v8  ;;  %v4468_v8 = vld [vmem:[#allocation4 + $0xb1] sm:$0xff] }
 0x5da   : > { %v4123_v52 = vadd.f32 %v10120_v44, %v4111_v59  ;;  %v10238_v44 = vpack.c.bf16 %v4405_v47, %v4404_v51  ;;  %v10252_v59 = vpack.c.bf16 %v4469_v13, %v4468_v8  ;;  %v4549_v47 = vpack.c.bf16 %v10159_v19, %v10132_v32  ;;  %v5046_v32 = vld [vmem:[#allocation4 + $0x182] sm:$0xff]  ;;  %v4470_v8 = vld [vmem:[#allocation4 + $0xd1] sm:$0xff] }
 0x5db   : > { %8024 = vmatmul.msk.bf16.vlgmr.msra.gmra.mxu0 %vm1773_vm5, %v5052_v39  ;;  %v10228_v4 = vld [vmem:[#allocation4 + $0x250] sm:$0xff] }
 0x5dc   : > { %v10230_v62 = vld [vmem:[#allocation4 + $0x251] sm:$0xff]  ;;  %4132 = vst.msk [vmem:[#allocation4 + $0x261] sm:$0xff] %vm1773_vm5, %v4123_v52  ;;  %v4147_v40 = vpack.c.bf16 %v10228_v4, %v10226_v23 }
 0x5dd   : > { %v10236_v5 = vpack.c.bf16 %v10230_v62, %v4264_v56  ;;  %v5045_v52 = vld [vmem:[#allocation4 + $0x172] sm:$0xff] }
 0x5de   : > { %7929 = vmatmul.msk.bf16.gmra.mxu2 %vm1773_vm5, %v4147_v40  ;;  %7959 = vmatmul.msk.bf16.gmra.mxu1 %vm1773_vm5, %v10238_v44  ;;  %v5053_v49 = vpack.c.bf16 %v5045_v52, %v5044_v16  ;;  %v10258_v40 = vpack.c.bf16 %v10163_v31, %v10134_v43  ;;  %v5047_v16 = vld [vmem:[#allocation4 + $0x192] sm:$0xff]  ;;  %v4471_v31 = vld [vmem:[#allocation4 + $0xe1] sm:$0xff] }
 0x5df   : > { %7939 = vmatmul.msk.bf16.gmra.mxu3 %vm1773_vm5, %v10236_v5  ;;  %v8377_v43 = vld [vmem:[%s11370_s7 + $0x30] sm:$0xff]  ;;  %v5054_v19 = vpack.c.bf16 %v5047_v16, %v5046_v32 }
 0x5e0   : > { %v10245_v39 = vpop.f32.mrf.mxu0  ;;  %5357 = vmatpush.bf16.msrb.mxu0 %v8377_v43  ;;  %v5049_v43 = vld [vmem:[#allocation4 + $0x1b2] sm:$0xff] }
 0x5e1   : > { %v5055_v1 = vpack.c.bf16 %v5049_v43, %v5048_v42  ;;  %v8375_v42 = vld [vmem:[%s11370_s7 + $0x20] sm:$0xff] }
 0x5e3   : > { %v4545_v56 = vld [vmem:[#allocation4 + $0x260] sm:$0xff] }
 0x5e4   : > { %v4552_v26 = vpack.c.bf16 %v4545_v56, %v10228_v4 }
 0x5e8   : > { %v10247_v58 = vpop.f32.mrf.mxu0 }
 0x5eb   : > { %8025 = vmatmul.msk.bf16.gmra.mxu0 %vm1773_vm5, %v5053_v49  ;;  %v10250_v17 = vpop.f32.mrf.mxu1 }
 0x5ee   : > { %7966 = vmatmul.msk.bf16.vlgmr.msrb.gmra.mxu2 %vm1773_vm5, %v10252_v59  ;;  %7996 = vmatmul.msk.bf16.vlgmr.msra.gmra.mxu1 %vm1773_vm5, %v10258_v40 }
 0x5ef   : > { %7976 = vmatmul.msk.bf16.vlgmr.msrb.gmra.mxu3 %vm1773_vm5, %v4549_v47  ;;  %v10277_v47 = vpack.c.bf16 %v4471_v31, %v4470_v8  ;;  %v4473_v31 = vld [vmem:[#allocation4 + $0x101] sm:$0xff]  ;;  %5219 = vmatpush.bf16.msrb.mxu2 %v8375_v42 }
 0x5f0   : > { %v10265_v51 = vpop.f32.mrf.mxu0  ;;  %v10302_v8 = vpack.c.bf16 %v4473_v31, %v4472_v41  ;;  %5288 = vmatpush.bf16.msrb.mxu3 %v8376_v53  ;;  %v4474_v41 = vld [vmem:[#allocation4 + $0x111] sm:$0xff] }
 0x5f3   : > { %v10267_v52 = vpop.f32.mrf.mxu1 }
 0x5f8   : > { %v10269_v49 = vpop.f32.mrf.mxu0 }
 0x5fb   : > { %8026 = vmatmul.msk.bf16.gmra.mxu0 %vm1773_vm5, %v5054_v19  ;;  %v10275_v13 = vpop.f32.mrf.mxu1 }
 0x5fe   : > { %7967 = vmatmul.msk.bf16.gmra.mxu2 %vm1773_vm5, %v10277_v47  ;;  %7997 = vmatmul.msk.bf16.gmra.mxu1 %vm1773_vm5, %v10283_v29 }
 0x5ff   : > { %7977 = vmatmul.msk.bf16.gmra.mxu3 %vm1773_vm5, %v4550_v22  ;;  %v8374_v22 = vld [vmem:[%s11370_s7 + $0x18] sm:$0xff] }
 0x600   : > { %v10290_v16 = vpop.f32.mrf.mxu0  ;;  %5150 = vmatpush.bf16.msrb.mxu1 %v8374_v22 }
 0x603   : > { %v10292_v32 = vpop.f32.mrf.mxu1 }
 0x608   : > { %v10294_v19 = vpop.f32.mrf.mxu0 }
 0x60b   : > { %8027 = vmatmul.msk.bf16.gmra.mxu0 %vm1773_vm5, %v5055_v1  ;;  %v10297_v24 = vpop.f32.mrf.mxu1  ;;  %v4685_v1 = vld [vmem:[#allocation4 + $0x261] sm:$0xff] }
 0x60c   : > { %v10334_v42 = vpack.c.bf16 %v4685_v1, %v10230_v62 }
 0x60e   : > { %7968 = vmatmul.msk.bf16.gmra.mxu2 %vm1773_vm5, %v10302_v8  ;;  %7998 = vmatmul.msk.bf16.gmra.mxu1 %vm1773_vm5, %v10307_v10 }
 0x60f   : > { %7978 = vmatmul.msk.bf16.gmra.mxu3 %vm1773_vm5, %v4551_v0  ;;  %v4475_v0 = vld [vmem:[#allocation4 + $0x121] sm:$0xff] }
 0x610   : > { %v10314_v43 = vpop.f32.mrf.mxu0  ;;  %v10330_v22 = vpack.c.bf16 %v4475_v0, %v4474_v41 }
 0x611   : > { %11401 = vst [vmem:[#allocation17_spill] sm:$0xff] %v10314_v43 }
 0x613   : > { %v10322_v20 = vpop.f32.mrf.mxu1 }
 0x618   : > { %v10324_v23 = vpop.f32.mrf.mxu0 }
 0x61b   : > { %8064 = vmatmul.msk.bf16.vlgmr.msrb.gmra.mxu0 %vm1773_vm5, %v10106_v9  ;;  %v10328_v31 = vpop.f32.mrf.mxu1 }
 0x61e   : > { %7969 = vmatmul.msk.bf16.gmra.mxu2 %vm1773_vm5, %v10330_v22  ;;  %7999 = vmatmul.msk.bf16.gmra.mxu1 %vm1773_vm5, %v10334_v42 }
 0x61f   : > { %7979 = vmatmul.msk.bf16.gmra.mxu3 %vm1773_vm5, %v4552_v26 }
 0x620   : > { %v10341_v9 = vpop.f32.mrf.mxu0 }
 0x623   : > { %v10343_v53 = vpop.f32.mrf.mxu1 }
 0x628   : > { %v10345_v55 = vpop.f32.mrf.mxu0 }
 0x62b   : > { %8065 = vmatmul.msk.bf16.gmra.mxu0 %vm1773_vm5, %v10127_v12  ;;  %v10349_v4 = vpop.f32.mrf.mxu1  ;;  %v8380_v12 = vld [vmem:[%s11370_s7] sm:$0xff] }
 0x62c   : > { %5798 = vmatpush.bf16.msra.mxu0 %v8380_v12 }
 0x62e   : > { %8006 = vmatmul.msk.bf16.vlgmr.msra.gmra.mxu2 %vm1773_vm5, %v10139_v28  ;;  %8034 = vmatmul.msk.bf16.vlgmr.msrb.gmra.mxu1 %vm1773_vm5, %v10141_v57 }
 0x62f   : > { %8014 = vmatmul.msk.bf16.vlgmr.msra.gmra.mxu3 %vm1773_vm5, %v10063_v6 }
 0x630   : > { %v10357_v26 = vpop.f32.mrf.mxu0  ;;  %5751 = vmatpush.bf16.msra.mxu3 %v8381_v11 }
 0x631   : > { %v4238_v62 = vpop.f32.mrf.mxu2 }
 0x632   : > { %v4300_v0 = vpop.f32.mrf.mxu3  ;;  %v4239_v21 = vadd.f32 %v4238_v62, %v10250_v17 }
 0x633   : > { %v10359_v56 = vpop.f32.mrf.mxu1 }
 0x638   : > { %v10361_v1 = vpop.f32.mrf.mxu0 }
 0x639   : > { %v4240_v41 = vpop.f32.mrf.mxu2 }
 0x63a   : > { %v4302_v28 = vpop.f32.mrf.mxu3 }
 0x63b   : > { %8066 = vmatmul.msk.bf16.gmra.mxu0 %vm1773_vm5, %v10154_v3  ;;  %v10368_v6 = vpop.f32.mrf.mxu1 }
 0x63e   : > { %8007 = vmatmul.msk.bf16.gmra.mxu2 %vm1773_vm5, %v10172_v7  ;;  %8035 = vmatmul.msk.bf16.gmra.mxu1 %vm1773_vm5, %v10174_v25 }
 0x63f   : > { %8015 = vmatmul.msk.bf16.gmra.mxu3 %vm1773_vm5, %v10078_v46  ;;  %v8378_v46 = vld [vmem:[%s11370_s7 + $0x38] sm:$0xff] }
 0x640   : > { %v10376_v57 = vpop.f32.mrf.mxu0  ;;  %5426 = vmatpush.bf16.msra.mxu1 %v8378_v46 }
 0x641   : > { %v4243_v33 = vpop.f32.mrf.mxu2 }
 0x642   : > { %v4305_v18 = vpop.f32.mrf.mxu3 }
 0x643   : > { %v10378_v14 = vpop.f32.mrf.mxu1 }
 0x648   : > { %v10380_v12 = vpop.f32.mrf.mxu0 }
 0x649   : > { %11402 = vst [vmem:[#allocation18_spill] sm:$0xff] %v10380_v12  ;;  %v10382_v3 = vpop.f32.mrf.mxu2  ;;  %v4241_v12 = vadd.f32 %v4240_v41, %v10267_v52  ;;  %v4244_v41 = vadd.f32 %v4243_v33, %v10275_v13  ;;  %v5252_v13 = vld [vmem:[#allocation4 + $0x42] sm:$0xff] }
 0x64a   : > { %v10384_v35 = vpop.f32.mrf.mxu3 }
 0x64b   : > { %8067 = vmatmul.msk.bf16.gmra.mxu0 %vm1773_vm5, %v10184_v15  ;;  %v10391_v7 = vpop.f32.mrf.mxu1  ;;  %v8379_v15 = vld [vmem:[%s11370_s7 + $0x40] sm:$0xff]  ;;  %v4321_v62 = vadd.f32 %v4302_v28, %v4241_v12  ;;  %v10466_v28 = vld [vmem:[#allocation4 + $0xf0] sm:$0xff] }
 0x64c   : > { %5495 = vmatpush.bf16.msra.mxu2 %v8379_v15  ;;  %v5710_v33 = vpack.c.bf16 %v10034_v48, %v10466_v28 }
 0x64d   : > { %v4391_v52 = vadd.f32 %v10245_v39, %v4321_v62  ;;  %v4322_v39 = vadd.f32 %v4305_v18, %v4244_v41  ;;  %v4246_v18 = vadd.f32 %v10382_v3, %v10292_v32 }
 0x64e   : > { %8008 = vmatmul.msk.bf16.gmra.mxu2 %vm1773_vm5, %v10205_v61  ;;  %8036 = vmatmul.msk.bf16.gmra.mxu1 %vm1773_vm5, %v10207_v63 }
 0x64f   : > { %8016 = vmatmul.msk.bf16.gmra.mxu3 %vm1773_vm5, %v10093_v2 }
 0x650   : > { %v10399_v25 = vpop.f32.mrf.mxu0 }
 0x651   : > { %11403 = vst [vmem:[#allocation19_spill] sm:$0xff] %v10399_v25  ;;  %v10407_v46 = vpop.f32.mrf.mxu2 }
 0x652   : > { %v10409_v60 = vpop.f32.mrf.mxu3 }
 0x653   : > { %v10411_v2 = vpop.f32.mrf.mxu1 }
 0x658   : > { %v10413_v61 = vpop.f32.mrf.mxu0 }
 0x659   : > { %11404 = vst [vmem:[#allocation20_spill] sm:$0xff] %v10413_v61  ;;  %v10415_v63 = vpop.f32.mrf.mxu2  ;;  %v4320_v61 = vadd.f32 %v4300_v0, %v4239_v21 }
 0x65a   : > { %v10417_v54 = vpop.f32.mrf.mxu3 }
 0x65b   : > { %8110 = vmatmul.msk.bf16.vlgmr.msra.gmra.mxu0 %vm1773_vm5, %v10029_v45  ;;  %v10421_v50 = vpop.f32.mrf.mxu1 }
 0x65e   : > { %8009 = vmatmul.msk.bf16.gmra.mxu2 %vm1773_vm5, %v10236_v5  ;;  %8037 = vmatmul.msk.bf16.gmra.mxu1 %vm1773_vm5, %v10238_v44  ;;  %v5249_v44 = vld [vmem:[#allocation4 + $0x12] sm:$0xff] }
 0x65f   : > { %8017 = vmatmul.msk.bf16.gmra.mxu3 %vm1773_vm5, %v10115_v27  ;;  %v5250_v27 = vld [vmem:[#allocation4 + $0x22] sm:$0xff] }
 0x660   : > { %v10429_v11 = vpop.f32.mrf.mxu0  ;;  %v5259_v17 = vpack.c.bf16 %v5250_v27, %v5249_v44 }
 0x661   : > { %11405 = vst [vmem:[#allocation21_spill] sm:$0xff] %v10429_v11  ;;  %v10431_v15 = vpop.f32.mrf.mxu2  ;;  %v4390_v11 = vadd.f32 %v10222_v30, %v4320_v61 }
 0x662   : > { %v10433_v37 = vpop.f32.mrf.mxu3 }
 0x663   : > { %v10436_v45 = vpop.f32.mrf.mxu1 }
 0x668   : > { %v10438_v38 = vpop.f32.mrf.mxu0 }
 0x669   : > { %11406 = vst [vmem:[#allocation22_spill] sm:$0xff] %v10438_v38  ;;  %v10440_v5 = vpop.f32.mrf.mxu2 }
 0x66a   : > { %v10442_v25 = vpop.f32.mrf.mxu3 }
 0x66b   : > { %8111 = vmatmul.msk.bf16.gmra.mxu0 %vm1773_vm5, %v10054_v36  ;;  %v4720_v43 = vpop.f32.mrf.mxu1  ;;  %v4460_v36 = vadd.f32 %v10349_v4, %v4390_v11  ;;  %v8385_v4 = vld [vmem:[%s11370_s7 + $0x28] sm:$0xff] }
 0x66c   : > { %6066 = vmatpush.bf16.msrb.mxu0 %v8385_v4 }
 0x66e   : > { %8044 = vmatmul.msk.bf16.vlgmr.msrb.gmra.mxu2 %vm1773_vm5, %v10252_v59  ;;  %8074 = vmatmul.msk.bf16.vlgmr.msra.gmra.mxu1 %vm1773_vm5, %v10258_v40  ;;  %v10462_v40 = vld [vmem:[%s11371_s8] ss:$0 sm:$0xff] }
 0x66f   : > { %8054 = vmatmul.msk.bf16.vlgmr.msrb.gmra.mxu3 %vm1773_vm5, %v5259_v17 }
 0x670   : > { %v10453_v21 = vpop.f32.mrf.mxu0 }
 0x671   : > { %v4510_v0 = vpop.f32.mrf.mxu2 }
 0x672   : > { %v4580_v38 = vpop.f32.mrf.mxu3  ;;  %v4530_v30 = vadd.f32 %v4510_v0, %v4460_v36  ;;  %v5251_v36 = vld [vmem:[#allocation4 + $0x32] sm:$0xff] }
 0x673   : > { %v4722_v27 = vpop.f32.mrf.mxu1  ;;  %v5260_v0 = vpack.c.bf16 %v5252_v13, %v5251_v36 }
 0x674   : > { %v4600_v61 = vadd.f32 %v4580_v38, %v4530_v30  ;;  %v4461_v38 = vadd.f32 %v10359_v56, %v4391_v52  ;;  %v4392_v30 = vadd.f32 %v10247_v58, %v4322_v39  ;;  %v4323_v58 = vadd.f32 %v10384_v35, %v4246_v18 }
 0x676   : > { %v4670_v59 = vadd.f32 %v10324_v23, %v4600_v61  ;;  %v4462_v3 = vadd.f32 %v10368_v6, %v4392_v30  ;;  %v5254_v30 = vld [vmem:[#allocation4 + $0x62] sm:$0xff] }
 0x678   : > { %v10464_v44 = vpop.f32.mrf.mxu0  ;;  %v4740_v12 = vadd.f32 %v4720_v43, %v4670_v59 }
 0x679   : > { %v4512_v23 = vpop.f32.mrf.mxu2 }
 0x67a   : > { %v4582_v11 = vpop.f32.mrf.mxu3  ;;  %v4752_v17 = vadd.f32 %v10462_v40, %v4740_v12  ;;  %v4531_v62 = vadd.f32 %v4512_v23, %v4461_v38  ;;  %v4249_v38 = vadd.f32 %v10407_v46, %v10297_v24  ;;  %v10493_v23 = vld [vmem:[#allocation4 + $0x120] sm:$0xff] }
 0x67b   : > { %8112 = vmatmul.msk.bf16.gmra.mxu0 %vm1773_vm5, %v5710_v33  ;;  %v4725_v52 = vpop.f32.mrf.mxu1 }
 0x67c   : > { %v4760_v43 = vsub.f32 0.0, %v4752_v17  ;;  %v4601_v56 = vadd.f32 %v4582_v11, %v4531_v62  ;;  %v5711_v62 = vpack.c.bf16 %v10493_v23, %v10036_v34 }
 0x67e   : > { %v4768_v41 = vmul.f32 1.442695, %v4760_v43  ;;  %v4671_v61 = vadd.f32 %v10341_v9, %v4601_v56  ;;  %8045 = vmatmul.msk.bf16.gmra.mxu2 %vm1773_vm5, %v10277_v47  ;;  %8075 = vmatmul.msk.bf16.gmra.mxu1 %vm1773_vm5, %v10283_v29  ;;  %v4393_v47 = vadd.f32 %v10265_v51, %v4323_v58  ;;  %v4324_v51 = vadd.f32 %v10409_v60, %v4249_v38  ;;  %v5253_v56 = vld [vmem:[#allocation4 + $0x52] sm:$0xff] }
 0x67f   : > { %8055 = vmatmul.msk.bf16.gmra.mxu3 %vm1773_vm5, %v5260_v0  ;;  %v4251_v43 = vadd.f32 %v10415_v63, %v10322_v20  ;;  %v8382_v58 = vld [vmem:[%s11370_s7 + $0x10] sm:$0xff] }
 0x680   : > { %v10485_v59 = vpop.f32.mrf.mxu0  ;;  %8419 = vpow2.f32 %v4768_v41  ;;  %v4741_v32 = vadd.f32 %v4722_v27, %v4671_v61  ;;  %v4463_v46 = vadd.f32 %v10378_v14, %v4393_v47  ;;  %v4394_v60 = vadd.f32 %v10269_v49, %v4324_v51  ;;  %5859 = vmatpush.bf16.msrb.mxu1 %v8382_v58 }
 0x681   : > { %v4515_v4 = vpop.f32.mrf.mxu2  ;;  %v5261_v14 = vpack.c.bf16 %v5254_v30, %v5253_v56  ;;  %v4325_v49 = vadd.f32 %v10417_v54, %v4251_v43  ;;  %v4254_v51 = vadd.f32 %v10431_v15, %v10328_v31  ;;  %v5256_v56 = vld [vmem:[#allocation4 + $0x82] sm:$0xff] }
 0x682   : > { %v4585_v39 = vpop.f32.mrf.mxu3  ;;  %v4753_v9 = vadd.f32 %v10462_v40, %v4741_v32  ;;  %v4532_v12 = vadd.f32 %v4515_v4, %v4462_v3 }
 0x683   : > { %v4727_v13 = vpop.f32.mrf.mxu1 }
 0x684   : > { %v4761_v33 = vsub.f32 0.0, %v4753_v9  ;;  %v4602_v29 = vadd.f32 %v4585_v39, %v4532_v12  ;;  %v4464_v12 = vadd.f32 %v10391_v7, %v4394_v60  ;;  %v4326_v60 = vadd.f32 %v10433_v37, %v4254_v51 }
 0x686   : > { %v8420_v35 = vpop.eup %8419  ;;  %v4770_v11 = vmul.f32 1.442695, %v4761_v33  ;;  %v4672_v27 = vadd.f32 %v10345_v55, %v4602_v29 }
 0x687   : > { %v10496_v6 = vadd.f32 1.0, %v8420_v35 }
 0x688   : > { %v10498_v17 = vpop.f32.mrf.mxu0  ;;  %8421 = vpow2.f32 %v4770_v11  ;;  %v4742_v24 = vadd.f32 %v4725_v52, %v4672_v27 }
 0x689   : > { %8423 = vrcp.f32 %v10496_v6  ;;  %v4517_v36 = vpop.f32.mrf.mxu2  ;;  %v4801_v29 = vand.u32 2147483647, %v10496_v6  ;;  %v4803_v35 = vand.u32 2147483648, %v10496_v6  ;;  %vm4797_vm8 = vweird.f32 %v10496_v6 }
 0x68a   : > { %v4587_v0 = vpop.f32.mrf.mxu3  ;;  %v4754_v55 = vadd.f32 %v10462_v40, %v4742_v24  ;;  %v4533_v18 = vadd.f32 %v4517_v36, %v4463_v46 }
 0x68b   : > { %8113 = vmatmul.msk.bf16.gmra.mxu0 %vm1773_vm5, %v5711_v62  ;;  %v4730_v61 = vpop.f32.mrf.mxu1  ;;  %v6028_v62 = vld [vmem:[#allocation4 + $0x201] sm:$0xff]  ;;  %vm4802_vm10 = vcmp.eq.f32.partialorder %v4801_v29, 8.507059e+37 }
 0x68c   : > { %v4762_v41 = vsub.f32 0.0, %v4754_v55  ;;  %v4603_v52 = vadd.f32 %v4587_v0, %v4533_v18  ;;  %v6027_v0 = vld [vmem:[#allocation4 + $0x1f1] sm:$0xff]  ;;  %v4804_v55 = vor.u32 1.1754944e-38, %v4803_v35 }
 0x68e   : > { %v8422_v32 = vpop.eup %8421  ;;  %v4772_v3 = vmul.f32 1.442695, %v4762_v41  ;;  %v4673_v4 = vadd.f32 %v10357_v26, %v4603_v52  ;;  %8046 = vmatmul.msk.bf16.gmra.mxu2 %vm1773_vm5, %v10302_v8  ;;  %8076 = vmatmul.msk.bf16.gmra.mxu1 %vm1773_vm5, %v10307_v10  ;;  %v4395_v10 = vadd.f32 %v10290_v16, %v4325_v49 }
 0x68f   : > { %8056 = vmatmul.msk.bf16.gmra.mxu3 %vm1773_vm5, %v5261_v14  ;;  %v8424_v20 = vpop.eup %8423  ;;  %v10518_v63 = vadd.f32 1.0, %v8422_v32 }
 0x690   : > { %v10522_v39 = vpop.f32.mrf.mxu0  ;;  %v4793_v9 = vmul.f32 %v8424_v20, %v10496_v6  ;;  %8425 = vpow2.f32 %v4772_v3  ;;  %v4743_v26 = vadd.f32 %v4727_v13, %v4673_v4  ;;  %vm4798_vm7 = vweird.f32 %v8424_v20 }
 0x691   : > { %8427 = vrcp.f32 %v10518_v63  ;;  %v4520_v8 = vpop.f32.mrf.mxu2  ;;  %vm4799_vm9 = vmor %vm4797_vm8, %vm4798_vm7  ;;  %v4465_v15 = vadd.f32 %v10411_v2, %v4395_v10  ;;  %v10548_v6 = vpack.c.bf16 %v6028_v62, %v6027_v0  ;;  %v5255_v2 = vld [vmem:[#allocation4 + $0x72] sm:$0xff]  ;;  %v4256_v4 = vadd.f32 %v10440_v5, %v10343_v53 }
 0x692   : > { %v4590_v47 = vpop.f32.mrf.mxu3  ;;  %v4794_v54 = vsub.f32 1.0, %v4793_v9  ;;  %v4755_v38 = vadd.f32 %v10462_v40, %v4743_v26  ;;  %v4534_v33 = vadd.f32 %v4520_v8, %v4464_v12  ;;  %v4818_v37 = vand.u32 2147483648, %v10518_v63 }
 0x693   : > { %v10532_v27 = vpop.f32.mrf.mxu1  ;;  %v5262_v49 = vpack.c.bf16 %v5256_v56, %v5255_v2  ;;  %vm4812_vm12 = vweird.f32 %v10518_v63 }
 0x694   : > { %v4795_v11 = vmul.f32 %v8424_v20, %v4794_v54  ;;  %v4763_v13 = vsub.f32 0.0, %v4755_v38  ;;  %v4604_v7 = vadd.f32 %v4590_v47, %v4534_v33  ;;  %v4327_v33 = vadd.f32 %v10442_v25, %v4256_v4  ;;  %v5457_v4 = vld [vmem:[#allocation4 + $0x162] sm:$0xff] }
 0x695   : > { %v4819_v10 = vor.u32 1.1754944e-38, %v4818_v37 }
 0x696   : > { %v8426_v24 = vpop.eup %8425  ;;  %v4796_v46 = vadd.f32 %v8424_v20, %v4795_v11  ;;  %v4774_v16 = vmul.f32 1.442695, %v4763_v13  ;;  %v4674_v36 = vadd.f32 %v10361_v1, %v4604_v7 }
 0x697   : > { %v8428_v30 = vpop.eup %8427  ;;  %v10543_v18 = vadd.f32 1.0, %v8426_v24 }
 0x698   : > { %v10545_v31 = vpop.f32.mrf.mxu0  ;;  %v4800_v43 = vsel %vm4799_vm9, %v8424_v20, %v4796_v46  ;;  %v4808_v1 = vmul.f32 %v8428_v30, %v10518_v63  ;;  %8429 = vpow2.f32 %v4774_v16  ;;  %v4744_v32 = vadd.f32 %v4730_v61, %v4674_v36 }
 0x699   : > { %v4805_v41 = vsel %vm4802_vm10, %v4804_v55, %v4800_v43  ;;  %8431 = vrcp.f32 %v10543_v18  ;;  %v4522_v52 = vpop.f32.mrf.mxu2  ;;  %v4816_v20 = vand.u32 2147483647, %v10518_v63  ;;  %vm4813_vm11 = vweird.f32 %v8428_v30 }
 0x69a   : > { %v4592_v14 = vpop.f32.mrf.mxu3  ;;  %4912 = vst [vmem:[%s10541_s22] sm:$0xff] %v4805_v41  ;;  %v4809_v58 = vsub.f32 1.0, %v4808_v1  ;;  %v4535_v3 = vadd.f32 %v4522_v52, %v4465_v15  ;;  %v4756_v26 = vadd.f32 %v10462_v40, %v4744_v32  ;;  %v4396_v61 = vadd.f32 %v10294_v19, %v4326_v60  ;;  %vm4814_vm13 = vmor %vm4812_vm12, %vm4813_vm11  ;;  %v6029_v1 = vld [vmem:[#allocation4 + $0x211] sm:$0xff]  ;;  %v11408_v60 = vld [vmem:[#allocation18_spill] sm:$0xff] }
 0x69b   : > { %8150 = vmatmul.msk.bf16.vlgmr.msrb.gmra.mxu0 %vm1773_vm5, %v10548_v6  ;;  %v4735_v8 = vpop.f32.mrf.mxu1  ;;  %vm4817_vm14 = vcmp.eq.f32.partialorder %v4816_v20, 8.507059e+37  ;;  %v4833_v24 = vand.u32 2147483648, %v10543_v18  ;;  %v4831_v36 = vand.u32 2147483647, %v10543_v18  ;;  %vm4827_vm0 = vweird.f32 %v10543_v18 }
 0x69c   : > { %v4810_v9 = vmul.f32 %v8428_v30, %v4809_v58  ;;  %v4605_v12 = vadd.f32 %v4592_v14, %v4535_v3  ;;  %v4764_v38 = vsub.f32 0.0, %v4756_v26  ;;  %v4466_v11 = vadd.f32 %v10421_v50, %v4396_v61  ;;  %v6030_v50 = vld [vmem:[#allocation4 + $0x221] sm:$0xff]  ;;  %v5712_v26 = vld [vmem:[#allocation4 + $0x11] sm:$0xff] }
 0x69d   : > { %v4834_v56 = vor.u32 1.1754944e-38, %v4833_v24  ;;  %v10586_v14 = vpack.c.bf16 %v6030_v50, %v6029_v1  ;;  %vm4832_vm2 = vcmp.eq.f32.partialorder %v4831_v36, 8.507059e+37  ;;  %v8383_v1 = vld [vmem:[%s11370_s7 + $0x18] sm:$0xff] }
 0x69e   : > { %v8430_v47 = vpop.eup %8429  ;;  %v4811_v54 = vadd.f32 %v8428_v30, %v4810_v9  ;;  %v4675_v53 = vadd.f32 %v10376_v57, %v4605_v12  ;;  %8047 = vmatmul.msk.bf16.gmra.mxu2 %vm1773_vm5, %v10330_v22  ;;  %8077 = vmatmul.msk.bf16.gmra.mxu1 %vm1773_vm5, %v10334_v42  ;;  %v4776_v63 = vmul.f32 1.442695, %v4764_v38  ;;  %v11407_v42 = vld [vmem:[#allocation17_spill] sm:$0xff] }
 0x69f   : > { %8057 = vmatmul.msk.bf16.gmra.mxu3 %vm1773_vm5, %v5262_v49  ;;  %v8432_v5 = vpop.eup %8431  ;;  %v10568_v29 = vadd.f32 1.0, %v8430_v47  ;;  %v4397_v51 = vadd.f32 %v11407_v42, %v4327_v33  ;;  %v5456_v47 = vld [vmem:[#allocation4 + $0x152] sm:$0xff]  ;;  %5928 = vmatpush.bf16.msrb.mxu2 %v8383_v1 }
 0x6a0   : > { %v4815_v19 = vsel %vm4814_vm13, %v8428_v30, %v4811_v54  ;;  %v4823_v57 = vmul.f32 %v8432_v5, %v10543_v18  ;;  %v10573_v35 = vpop.f32.mrf.mxu0  ;;  %v4745_v62 = vadd.f32 %v10532_v27, %v4675_v53  ;;  %vm4828_vm15 = vweird.f32 %v8432_v5  ;;  %v8547_v54 = vld [vmem:[#allocation4 + $0x21] sm:$0xff] }
 0x6a1   : > { %v4820_v22 = vsel %vm4817_vm14, %v4819_v10, %v4815_v19  ;;  %8433 = vrcp.f32 %v10568_v29  ;;  %v4525_v25 = vpop.f32.mrf.mxu2  ;;  %vm4829_vm1 = vmor %vm4827_vm0, %vm4828_vm15  ;;  %v4467_v52 = vadd.f32 %v10436_v45, %v4397_v51  ;;  %v10596_v38 = vpack.c.bf16 %v8547_v54, %v5712_v26 }
 0x6a2   : > { %v4595_v13 = vpop.f32.mrf.mxu3  ;;  %4913 = vst [vmem:[%s10541_s22 + $0x8] sm:$0xff] %v4820_v22  ;;  %v4824_v7 = vsub.f32 1.0, %v4823_v57  ;;  %8435 = vpow2.f32 %v4776_v63  ;;  %v4536_v46 = vadd.f32 %v4525_v25, %v4466_v11  ;;  %v4757_v0 = vadd.f32 %v10462_v40, %v4745_v62  ;;  %v5820_v63 = vld [vmem:[#allocation4 + $0xb1] sm:$0xff]  ;;  %v8548_v22 = vld [vmem:[#allocation4 + $0xc1] sm:$0xff] }
 0x6a3   : > { %v4737_v30 = vpop.f32.mrf.mxu1  ;;  %v4846_v53 = vand.u32 2147483647, %v10568_v29  ;;  %v10602_v11 = vpack.c.bf16 %v8548_v22, %v5820_v63  ;;  %vm4842_vm4 = vweird.f32 %v10568_v29 }
 0x6a4   : > { %v4825_v16 = vmul.f32 %v8432_v5, %v4824_v7  ;;  %v4606_v55 = vadd.f32 %v4595_v13, %v4536_v46  ;;  %v4765_v43 = vsub.f32 0.0, %v4757_v0  ;;  %v11409_v7 = vld [vmem:[#allocation19_spill] sm:$0xff] }
 0x6a5   : > { %vm4847_vm7 = vcmp.eq.f32.partialorder %v4846_v53, 8.507059e+37 }
 0x6a6   : > { %v4826_v15 = vadd.f32 %v8432_v5, %v4825_v16  ;;  %v4676_v41 = vadd.f32 %v11408_v60, %v4606_v55  ;;  %v4778_v2 = vmul.f32 1.442695, %v4765_v43 }
 0x6a7   : > { %v8434_v27 = vpop.eup %8433 }
 0x6a8   : > { %v8436_v58 = vpop.eup %8435  ;;  %v4830_v32 = vsel %vm4829_vm1, %v8432_v5, %v4826_v15  ;;  %v4838_v3 = vmul.f32 %v8434_v27, %v10568_v29  ;;  %v4746_v37 = vadd.f32 %v4735_v8, %v4676_v41  ;;  %8437 = vpow2.f32 %v4778_v2  ;;  %v10592_v45 = vpop.f32.mrf.mxu0 }
 0x6a9   : > { %v4835_v18 = vsel %vm4832_vm2, %v4834_v56, %v4830_v32  ;;  %v10589_v20 = vadd.f32 1.0, %v8436_v58  ;;  %v4527_v49 = vpop.f32.mrf.mxu2  ;;  %v4848_v8 = vand.u32 2147483648, %v10568_v29  ;;  %v5466_v5 = vpack.c.bf16 %v5457_v4, %v5456_v47  ;;  %v6032_v58 = vld [vmem:[#allocation4 + $0x241] sm:$0xff]  ;;  %v11410_v4 = vld [vmem:[#allocation20_spill] sm:$0xff] }
 0x6aa   : > { %v4597_v9 = vpop.f32.mrf.mxu3  ;;  %4914 = vst [vmem:[%s10541_s22 + $0x10] sm:$0xff] %v4835_v18  ;;  %v4839_v12 = vsub.f32 1.0, %v4838_v3  ;;  %v4537_v61 = vadd.f32 %v4527_v49, %v4467_v52  ;;  %vm4843_vm3 = vweird.f32 %v8434_v27  ;;  %v4758_v10 = vadd.f32 %v10462_v40, %v4746_v37  ;;  %v6031_v37 = vld [vmem:[#allocation4 + $0x231] sm:$0xff] }
 0x6ab   : > { %8151 = vmatmul.msk.bf16.gmra.mxu0 %vm1773_vm5, %v10586_v14  ;;  %8439 = vrcp.f32 %v10589_v20  ;;  %v5152_v57 = vpop.f32.mrf.mxu1  ;;  %vm4844_vm6 = vmor %vm4842_vm4, %vm4843_vm3  ;;  %v4849_v42 = vor.u32 1.1754944e-38, %v4848_v8  ;;  %v4863_v32 = vand.u32 2147483648, %v10589_v20  ;;  %v10628_v49 = vpack.c.bf16 %v6032_v58, %v6031_v37 }
 0x6ac   : > { %v4840_v33 = vmul.f32 %v8434_v27, %v4839_v12  ;;  %v4607_v19 = vadd.f32 %v4597_v9, %v4537_v61  ;;  %v4766_v13 = vsub.f32 0.0, %v4758_v10  ;;  %v8390_v9 = vld [vmem:[%s11370_s7 + $0x8] sm:$0xff]  ;;  %vm4857_vm9 = vweird.f32 %v10589_v20 }
 0x6ad   : > { %v4864_v54 = vor.u32 1.1754944e-38, %v4863_v32  ;;  %6531 = vmatpush.bf16.msra.mxu0 %v8390_v9 }
 0x6ae   : > { %v4841_v25 = vadd.f32 %v8434_v27, %v4840_v33  ;;  %v4677_v62 = vadd.f32 %v11409_v7, %v4607_v19  ;;  %8084 = vmatmul.msk.bf16.vlgmr.msra.gmra.mxu2 %vm1773_vm5, %v5466_v5  ;;  %8120 = vmatmul.msk.bf16.vlgmr.msrb.gmra.mxu1 %vm1773_vm5, %v10602_v11  ;;  %v8438_v51 = vpop.eup %8437  ;;  %v4780_v46 = vmul.f32 1.442695, %v4766_v13  ;;  %v5459_v33 = vld [vmem:[#allocation4 + $0x182] sm:$0xff] }
 0x6af   : > { %8102 = vmatmul.msk.bf16.vlgmr.msra.gmra.mxu3 %vm1773_vm5, %v10596_v38  ;;  %v10611_v0 = vadd.f32 1.0, %v8438_v51  ;;  %v8550_v51 = vld [vmem:[#allocation4 + $0x41] sm:$0xff] }
 0x6b0   : > { %v4845_v24 = vsel %vm4844_vm6, %v8434_v27, %v4841_v25  ;;  %v4747_v16 = vadd.f32 %v4737_v30, %v4677_v62  ;;  %8441 = vpow2.f32 %v4780_v46  ;;  %v8384_v30 = vld [vmem:[%s11370_s7 + $0x20] sm:$0xff]  ;;  %v10623_v60 = vpop.f32.mrf.mxu0 }
 0x6b1   : > { %v8440_v29 = vpop.eup %8439  ;;  %v4850_v36 = vsel %vm4847_vm7, %v4849_v42, %v4845_v24  ;;  %v4975_v50 = vpop.f32.mrf.mxu2  ;;  %8443 = vrcp.f32 %v10611_v0  ;;  %5997 = vmatpush.bf16.msrb.mxu3 %v8384_v30  ;;  %v11411_v25 = vld [vmem:[#allocation21_spill] sm:$0xff]  ;;  %v8549_v42 = vld [vmem:[#allocation4 + $0x31] sm:$0xff]  ;;  %v4878_v46 = vand.u32 2147483648, %v10611_v0  ;;  %vm4872_vm13 = vweird.f32 %v10611_v0 }
 0x6b2   : > { %v5022_v55 = vpop.f32.mrf.mxu3  ;;  %4915 = vst [vmem:[%s10541_s22 + $0x18] sm:$0xff] %v4850_v36  ;;  %v4853_v15 = vmul.f32 %v8440_v29, %v10589_v20  ;;  %v4759_v43 = vadd.f32 %v10462_v40, %v4747_v16  ;;  %v4861_v40 = vand.u32 2147483647, %v10589_v20  ;;  %vm4858_vm8 = vweird.f32 %v8440_v29  ;;  %v8551_v16 = vld [vmem:[#allocation4 + $0xd1] sm:$0xff] }
 0x6b3   : > { %v5023_v41 = vadd.f32 %v5022_v55, %v4975_v50  ;;  %v5154_v52 = vpop.f32.mrf.mxu1  ;;  %vm4859_vm10 = vmor %vm4857_vm9, %vm4858_vm8  ;;  %v10644_v24 = vpack.c.bf16 %v8550_v51, %v8549_v42 }
 0x6b4   : > { %v4854_v27 = vsub.f32 1.0, %v4853_v15  ;;  %v4767_v56 = vsub.f32 0.0, %v4759_v43  ;;  %vm4862_vm11 = vcmp.eq.f32.partialorder %v4861_v40, 8.507059e+37  ;;  %v4876_v15 = vand.u32 2147483647, %v10611_v0 }
 0x6b5   : > { %v5103_v18 = vadd.f32 %v11410_v4, %v5023_v41  ;;  %v4879_v41 = vor.u32 1.1754944e-38, %v4878_v46 }
 0x6b6   : > { %v4855_v3 = vmul.f32 %v8440_v29, %v4854_v27  ;;  %v4782_v2 = vmul.f32 1.442695, %v4767_v56  ;;  %v8442_v26 = vpop.eup %8441  ;;  %vm4877_vm15 = vcmp.eq.f32.partialorder %v4876_v15, 8.507059e+37 }
 0x6b7   : > { %v10634_v61 = vadd.f32 %v5152_v57, %v5103_v18  ;;  %v8444_v47 = vpop.eup %8443  ;;  %v10636_v53 = vadd.f32 1.0, %v8442_v26  ;;  %v5458_v57 = vld [vmem:[#allocation4 + $0x172] sm:$0xff]  ;;  %v11412_v18 = vld [vmem:[#allocation22_spill] sm:$0xff] }
 0x6b8   : > { %v4856_v12 = vadd.f32 %v8440_v29, %v4855_v3  ;;  %8445 = vpow2.f32 %v4782_v2  ;;  %v4868_v19 = vmul.f32 %v8444_v47, %v10611_v0  ;;  %v5467_v62 = vpack.c.bf16 %v5459_v33, %v5458_v57  ;;  %v10650_v43 = vpop.f32.mrf.mxu0  ;;  %v6034_v26 = vld [vmem:[#allocation4 + $0x261] sm:$0xff] }
 0x6b9   : > { %v4977_v8 = vpop.f32.mrf.mxu2  ;;  %8447 = vrcp.f32 %v10636_v53  ;;  %vm4873_vm12 = vweird.f32 %v8444_v47  ;;  %v4893_v0 = vand.u32 2147483648, %v10636_v53  ;;  %vm4887_vm1 = vweird.f32 %v10636_v53 }
 0x6ba   : > { %v5024_v5 = vpop.f32.mrf.mxu3  ;;  %v4860_v10 = vsel %vm4859_vm10, %v8440_v29, %v4856_v12  ;;  %v4869_v22 = vsub.f32 1.0, %v4868_v19  ;;  %v8552_v29 = vld [vmem:[#allocation4 + $0xe1] sm:$0xff]  ;;  %vm4874_vm14 = vmor %vm4872_vm13, %vm4873_vm12 }
 0x6bb   : > { %v5025_v63 = vadd.f32 %v5024_v5, %v4977_v8  ;;  %8152 = vmatmul.msk.bf16.gmra.mxu0 %vm1773_vm5, %v10628_v49  ;;  %v4865_v20 = vsel %vm4862_vm11, %v4864_v54, %v4860_v10  ;;  %v5157_v7 = vpop.f32.mrf.mxu1  ;;  %v10647_v36 = vpack.c.bf16 %v8552_v29, %v8551_v16  ;;  %v4891_v54 = vand.u32 2147483647, %v10636_v53  ;;  %v6033_v5 = vld [vmem:[#allocation4 + $0x251] sm:$0xff]  ;;  %v8554_v29 = vld [vmem:[#allocation4 + $0x61] sm:$0xff] }
 0x6bc   : > { %4916 = vst [vmem:[%s10541_s22 + $0x20] sm:$0xff] %v4865_v20  ;;  %v4870_v55 = vmul.f32 %v8444_v47, %v4869_v22  ;;  %v5461_v20 = vld [vmem:[#allocation4 + $0x1a2] sm:$0xff]  ;;  %v4894_v57 = vor.u32 1.1754944e-38, %v4893_v0  ;;  %v8553_v16 = vld [vmem:[#allocation4 + $0x51] sm:$0xff] }
 0x6bd   : > { %v5104_v13 = vadd.f32 %v11411_v25, %v5025_v63  ;;  %v10674_v63 = vpack.c.bf16 %v6034_v26, %v6033_v5  ;;  %vm4892_vm3 = vcmp.eq.f32.partialorder %v4891_v54, 8.507059e+37 }
 0x6be   : > { %v8446_v50 = vpop.eup %8445  ;;  %8085 = vmatmul.msk.bf16.gmra.mxu2 %vm1773_vm5, %v5467_v62  ;;  %8121 = vmatmul.msk.bf16.gmra.mxu1 %vm1773_vm5, %v10647_v36  ;;  %v4871_v27 = vadd.f32 %v8444_v47, %v4870_v55 }
 0x6bf   : > { %8103 = vmatmul.msk.bf16.gmra.mxu3 %vm1773_vm5, %v10644_v24  ;;  %v10655_v1 = vadd.f32 %v5154_v52, %v5104_v13  ;;  %v10657_v30 = vadd.f32 1.0, %v8446_v50  ;;  %v8448_v56 = vpop.eup %8447  ;;  %v10679_v50 = vpack.c.bf16 %v8554_v29, %v8553_v16 }
 0x6c0   : > { %v4875_v32 = vsel %vm4874_vm14, %v8444_v47, %v4871_v27  ;;  %v4883_v52 = vmul.f32 %v8448_v56, %v10636_v53  ;;  %vm4888_vm0 = vweird.f32 %v8448_v56  ;;  %v10672_v19 = vpop.f32.mrf.mxu0  ;;  %v5460_v53 = vld [vmem:[#allocation4 + $0x192] sm:$0xff] }
 0x6c1   : > { %8449 = vrcp.f32 %v10657_v30  ;;  %v4980_v58 = vpop.f32.mrf.mxu2  ;;  %v4880_v2 = vsel %vm4877_vm15, %v4879_v41, %v4875_v32  ;;  %vm4889_vm2 = vmor %vm4887_vm1, %vm4888_vm0  ;;  %v4908_v51 = vand.u32 2147483648, %v10657_v30  ;;  %v5468_v46 = vpack.c.bf16 %v5461_v20, %v5460_v53  ;;  %v8386_v41 = vld [vmem:[%s11370_s7 + $0x30] sm:$0xff]  ;;  %v5463_v20 = vld [vmem:[#allocation4 + $0x1c2] sm:$0xff] }
 0x6c2   : > { %v5027_v40 = vpop.f32.mrf.mxu3  ;;  %4917 = vst [vmem:[%s10541_s22 + $0x28] sm:$0xff] %v4880_v2  ;;  %v4884_v4 = vsub.f32 1.0, %v4883_v52  ;;  %v4906_v15 = vand.u32 2147483647, %v10657_v30  ;;  %vm4902_vm6 = vweird.f32 %v10657_v30  ;;  %v8387_v2 = vld [vmem:[%s11370_s7 + $0x38] sm:$0xff]  ;;  %6136 = vmatpush.bf16.msra.mxu1 %v8386_v41 }
 0x6c3   : > { %v5028_v3 = vadd.f32 %v5027_v40, %v4980_v58  ;;  %v5159_v9 = vpop.f32.mrf.mxu1  ;;  %v8555_v58 = vld [vmem:[#allocation4 + $0xf1] sm:$0xff]  ;;  %v8556_v40 = vld [vmem:[#allocation4 + $0x101] sm:$0xff]  ;;  %6206 = vmatpush.bf16.msra.mxu2 %v8387_v2 }
 0x6c4   : > { %v4885_v12 = vmul.f32 %v8448_v56, %v4884_v4  ;;  %v10687_v32 = vpack.c.bf16 %v8556_v40, %v8555_v58  ;;  %vm4907_vm8 = vcmp.eq.f32.partialorder %v4906_v15, 8.507059e+37  ;;  %v8557_v53 = vld [vmem:[#allocation4 + $0x71] sm:$0xff]  ;;  %v5890_v40 = vld [vmem:[#allocation4 + $0x200] sm:$0xff] }
 0x6c5   : > { %v5105_v37 = vadd.f32 %v11412_v18, %v5028_v3  ;;  %v6098_v2 = vld [vmem:[#allocation4 + $0xd0] sm:$0xff] }
 0x6c6   : > { %v4886_v33 = vadd.f32 %v8448_v56, %v4885_v12 }
 0x6c7   : > { %v10668_v8 = vadd.f32 %v5157_v7, %v5105_v37  ;;  %v8450_v47 = vpop.eup %8449 }
 0x6c8   : > { %v4898_v10 = vmul.f32 %v8450_v47, %v10657_v30  ;;  %v4890_v13 = vsel %vm4889_vm2, %v8448_v56, %v4886_v33  ;;  %vm4903_vm4 = vweird.f32 %v8450_v47  ;;  %v8388_v30 = vld [vmem:[%s11370_s7 + $0x40] sm:$0xff]  ;;  %v10704_v0 = vpop.f32.mrf.mxu0 }
 0x6c9   : > { %v4982_v22 = vpop.f32.mrf.mxu2  ;;  %v4895_v42 = vsel %vm4892_vm3, %v4894_v57, %v4890_v13  ;;  %vm4904_vm7 = vmor %vm4902_vm6, %vm4903_vm4  ;;  %6275 = vmatpush.bf16.msra.mxu3 %v8388_v30  ;;  %v5889_v30 = vld [vmem:[#allocation4 + $0x1f0] sm:$0xff] }
 0x6ca   : > { %v5029_v25 = vpop.f32.mrf.mxu3  ;;  %v4899_v7 = vsub.f32 1.0, %v4898_v10  ;;  %4918 = vst [vmem:[%s10541_s22 + $0x30] sm:$0xff] %v4895_v42 }
 0x6cb   : > { %v5030_v62 = vadd.f32 %v5029_v25, %v4982_v22  ;;  %8153 = vmatmul.msk.bf16.gmra.mxu0 %vm1773_vm5, %v10674_v63  ;;  %v5162_v56 = vpop.f32.mrf.mxu1  ;;  %v10713_v22 = vld [vmem:[#allocation4 + $0x121] sm:$0xff]  ;;  %v5462_v25 = vld [vmem:[#allocation4 + $0x1b2] sm:$0xff] }
 0x6cc   : > { %v4900_v55 = vmul.f32 %v8450_v47, %v4899_v7 }
 0x6cd   : > { %v5106_v27 = vadd.f32 %v10453_v21, %v5030_v62  ;;  %v4909_v21 = vor.u32 1.1754944e-38, %v4908_v51  ;;  %v5469_v62 = vpack.c.bf16 %v5463_v20, %v5462_v25  ;;  %v8558_v51 = vld [vmem:[#allocation4 + $0x111] sm:$0xff]  ;;  %v8393_v20 = vld [vmem:[%s11370_s7 + $0x20] sm:$0xff] }
 0x6ce   : > { %v4901_v52 = vadd.f32 %v8450_v47, %v4900_v55  ;;  %8086 = vmatmul.msk.bf16.gmra.mxu2 %vm1773_vm5, %v5468_v46  ;;  %8122 = vmatmul.msk.bf16.gmra.mxu1 %vm1773_vm5, %v10687_v32  ;;  %v5833_v46 = vpack.c.bf16 %v10713_v22, %v8558_v51  ;;  %v5960_v51 = vld [vmem:[#allocation4 + $0x171] sm:$0xff] }
 0x6cf   : > { %8104 = vmatmul.msk.bf16.gmra.mxu3 %vm1773_vm5, %v10679_v50  ;;  %v10693_v3 = vadd.f32 %v5159_v9, %v5106_v27  ;;  %6777 = vmatpush.bf16.msrb.mxu0 %v8393_v20 }
 0x6d0   : > { %v4905_v4 = vsel %vm4904_vm7, %v8450_v47, %v4901_v52  ;;  %v10709_v47 = vld [vmem:[#allocation4 + $0x81] sm:$0xff]  ;;  %v10715_v13 = vpop.f32.mrf.mxu0 }
 0x6d1   : > { %v4910_v18 = vsel %vm4907_vm8, %v4909_v21, %v4905_v4  ;;  %v4985_v37 = vpop.f32.mrf.mxu2  ;;  %v10719_v42 = vpack.c.bf16 %v10709_v47, %v8557_v53  ;;  %v5959_v52 = vld [vmem:[#allocation4 + $0x161] sm:$0xff]  ;;  %v5958_v4 = vld [vmem:[#allocation4 + $0x151] sm:$0xff] }
 0x6d2   : > { %v5032_v9 = vpop.f32.mrf.mxu3  ;;  %4919 = vst [vmem:[%s10541_s22 + $0x38] sm:$0xff] %v4910_v18  ;;  %v5891_v53 = vld [vmem:[#allocation4 + $0x210] sm:$0xff] }
 0x6d3   : > { %v5033_v26 = vadd.f32 %v5032_v9, %v4985_v37  ;;  %v5164_v54 = vpop.f32.mrf.mxu1  ;;  %v10738_v9 = vpack.c.bf16 %v5959_v52, %v5958_v4  ;;  %v5962_v4 = vld [vmem:[#allocation4 + $0x191] sm:$0xff] }
 0x6d5   : > { %v5107_v12 = vadd.f32 %v10464_v44, %v5033_v26  ;;  %11413 = vst [vmem:[#allocation17_spill] sm:$0xff] %v10738_v9  ;;  %v6097_v26 = vld [vmem:[#allocation4 + $0xc0] sm:$0xff] }
 0x6d7   : > { %v10707_v5 = vadd.f32 %v5162_v56, %v5107_v12  ;;  %v6107_v12 = vpack.c.bf16 %v6098_v2, %v6097_v26  ;;  %v5963_v2 = vld [vmem:[#allocation4 + $0x1a1] sm:$0xff] }
 0x6d8   : > { %v10729_v27 = vpop.f32.mrf.mxu0  ;;  %v10789_v26 = vpack.c.bf16 %v5963_v2, %v5962_v4  ;;  %v6104_v2 = vld [vmem:[#allocation4 + $0x130] sm:$0xff] }
 0x6d9   : > { %v4987_v33 = vpop.f32.mrf.mxu2  ;;  %v5964_v4 = vld [vmem:[#allocation4 + $0x1b1] sm:$0xff] }
 0x6da   : > { %v5034_v10 = vpop.f32.mrf.mxu3  ;;  %11415 = vst [vmem:[#allocation19_spill] sm:$0xff] %v10789_v26 }
 0x6db   : > { %v5035_v57 = vadd.f32 %v5034_v10, %v4987_v33  ;;  %8198 = vmatmul.msk.bf16.vlgmr.msra.gmra.mxu0 %vm1773_vm5, %v10602_v11  ;;  %v5167_v44 = vpop.f32.mrf.mxu1 }
 0x6dd   : > { %v5108_v7 = vadd.f32 %v10485_v59, %v5035_v57 }
 0x6de   : > { %8087 = vmatmul.msk.bf16.gmra.mxu2 %vm1773_vm5, %v5469_v62  ;;  %8123 = vmatmul.msk.bf16.gmra.mxu1 %vm1773_vm5, %v5833_v46 }
 0x6df   : > { %8105 = vmatmul.msk.bf16.gmra.mxu3 %vm1773_vm5, %v10719_v42  ;;  %v10725_v11 = vadd.f32 %v5164_v54, %v5108_v7  ;;  %v5892_v7 = vld [vmem:[#allocation4 + $0x220] sm:$0xff] }
 0x6e1   : > { %v4990_v16 = vpop.f32.mrf.mxu2 }
 0x6e2   : > { %v5037_v59 = vpop.f32.mrf.mxu3 }
 0x6e3   : > { %v5038_v29 = vadd.f32 %v5037_v59, %v4990_v16  ;;  %v5169_v15 = vpop.f32.mrf.mxu1  ;;  %v5900_v59 = vpack.c.bf16 %v5892_v7, %v5891_v53  ;;  %v8391_v7 = vld [vmem:[%s11370_s7 + $0x10] sm:$0xff] }
 0x6e5   : > { %v5109_v55 = vadd.f32 %v10498_v17, %v5038_v29  ;;  %v5899_v17 = vpack.c.bf16 %v5890_v40, %v5889_v30  ;;  %v5893_v30 = vld [vmem:[#allocation4 + $0x230] sm:$0xff] }
 0x6e7   : > { %v10731_v56 = vadd.f32 %v5167_v44, %v5109_v55  ;;  %v5961_v44 = vld [vmem:[#allocation4 + $0x181] sm:$0xff] }
 0x6e8   : > { %v10767_v29 = vpack.c.bf16 %v5961_v44, %v5960_v51  ;;  %v6099_v55 = vld [vmem:[#allocation4 + $0xe0] sm:$0xff]  ;;  %v8392_v44 = vld [vmem:[%s11370_s7 + $0x18] sm:$0xff] }
 0x6e9   : > { %v4992_v41 = vpop.f32.mrf.mxu2 }
 0x6ea   : > { %v5039_v58 = vpop.f32.mrf.mxu3  ;;  %11414 = vst [vmem:[#allocation18_spill] sm:$0xff] %v10767_v29 }
 0x6eb   : > { %v5040_v21 = vadd.f32 %v5039_v58, %v4992_v41  ;;  %8199 = vmatmul.msk.bf16.gmra.mxu0 %vm1773_vm5, %v10647_v36  ;;  %v10736_v37 = vpop.f32.mrf.mxu1  ;;  %v10746_v36 = vpop.f32.mrf.mxu0 }
 0x6ed   : > { %v5110_v18 = vadd.f32 %v10522_v39, %v5040_v21 }
 0x6ee   : > { %8130 = vmatmul.msk.bf16.vlgmr.msrb.gmra.mxu2 %vm1773_vm5, %v5899_v17  ;;  %8160 = vmatmul.msk.bf16.vlgmr.msra.gmra.mxu1 %vm1773_vm5, %v6107_v12  ;;  %v8389_v12 = vld [vmem:[%s11370_s7] sm:$0xff] }
 0x6ef   : > { %8140 = vmatmul.msk.bf16.vlgmr.msrb.gmra.mxu3 %vm1773_vm5, %v10738_v9  ;;  %v10743_v54 = vadd.f32 %v5169_v15, %v5110_v18  ;;  %v6108_v15 = vpack.c.bf16 %v10466_v28, %v6099_v55  ;;  %v5894_v28 = vld [vmem:[#allocation4 + $0x240] sm:$0xff]  ;;  %6578 = vmatpush.bf16.msrb.mxu1 %v8389_v12 }
 0x6f0   : > { %v5901_v17 = vpack.c.bf16 %v5894_v28, %v5893_v30  ;;  %6639 = vmatpush.bf16.msrb.mxu2 %v8391_v7  ;;  %6708 = vmatpush.bf16.msrb.mxu3 %v8392_v44  ;;  %v5965_v28 = vld [vmem:[#allocation4 + $0x1c1] sm:$0xff]  ;;  %v5895_v30 = vld [vmem:[#allocation4 + $0x250] sm:$0xff]  ;;  %v6110_v7 = vpack.c.bf16 %v6104_v2, %v10493_v23 }
 0x6f1   : > { %v10748_v33 = vpop.f32.mrf.mxu2 }
 0x6f2   : > { %v10750_v39 = vpop.f32.mrf.mxu3 }
 0x6f3   : > { %v10752_v10 = vpop.f32.mrf.mxu1  ;;  %v10761_v62 = vpop.f32.mrf.mxu0 }
 0x6f9   : > { %v10757_v57 = vpop.f32.mrf.mxu2 }
 0x6fa   : > { %v10759_v25 = vpop.f32.mrf.mxu3 }
 0x6fb   : > { %8200 = vmatmul.msk.bf16.gmra.mxu0 %vm1773_vm5, %v10687_v32  ;;  %v10765_v16 = vpop.f32.mrf.mxu1  ;;  %v10778_v58 = vpop.f32.mrf.mxu0 }
 0x6fe   : > { %8131 = vmatmul.msk.bf16.gmra.mxu2 %vm1773_vm5, %v5900_v59  ;;  %8161 = vmatmul.msk.bf16.gmra.mxu1 %vm1773_vm5, %v6108_v15  ;;  %v5896_v15 = vld [vmem:[#allocation4 + $0x260] sm:$0xff] }
 0x6ff   : > { %8141 = vmatmul.msk.bf16.gmra.mxu3 %vm1773_vm5, %v10767_v29  ;;  %v5902_v12 = vpack.c.bf16 %v5896_v15, %v5895_v30  ;;  %v5241_v15 = vadd.f32 %v10748_v33, %v10634_v61  ;;  %v11418_v61 = vld [vmem:[#allocation6_spill] sm:$0xff]  ;;  %v11419_v33 = vld [vmem:[#allocation5_spill] sm:$0xff] }
 0x700   : > { %v11420_v29 = vpack.c.bf16 %v11418_v61, %v11419_v33 }
 0x701   : > { %v10774_v41 = vpop.f32.mrf.mxu2  ;;  %v5310_v23 = vadd.f32 %v10750_v39, %v5241_v15  ;;  %v11421_v39 = vld [vmem:[#allocation12_spill] sm:$0xff]  ;;  %v11422_v15 = vld [vmem:[#allocation11_spill] sm:$0xff] }
 0x702   : > { %v10776_v32 = vpop.f32.mrf.mxu3  ;;  %v11423_v9 = vpack.c.bf16 %v11421_v39, %v11422_v15 }
 0x703   : > { %v10780_v40 = vpop.f32.mrf.mxu1  ;;  %v10794_v20 = vpop.f32.mrf.mxu0 }
 0x709   : > { %v10782_v52 = vpop.f32.mrf.mxu2 }
 0x70a   : > { %v10784_v21 = vpop.f32.mrf.mxu3 }
 0x70b   : > { %8201 = vmatmul.msk.bf16.gmra.mxu0 %vm1773_vm5, %v5833_v46  ;;  %v10787_v18 = vpop.f32.mrf.mxu1  ;;  %v11416_v46 = vpack.c.bf16 %v10036_v34, %v10034_v48  ;;  %v10815_v48 = vpop.f32.mrf.mxu0 }
 0x70e   : > { %8132 = vmatmul.msk.bf16.gmra.mxu2 %vm1773_vm5, %v5901_v17  ;;  %8162 = vmatmul.msk.bf16.gmra.mxu1 %vm1773_vm5, %v11416_v46  ;;  %v10825_v46 = vpack.c.bf16 %v5965_v28, %v5964_v4  ;;  %v5379_v4 = vadd.f32 %v10545_v31, %v5310_v23 }
 0x70f   : > { %8142 = vmatmul.msk.bf16.gmra.mxu3 %vm1773_vm5, %v10789_v26 }
 0x710   : > { %11417 = vst [vmem:[#allocation20_spill] sm:$0xff] %v10825_v46 }
 0x711   : > { %v10809_v53 = vpop.f32.mrf.mxu2 }
 0x712   : > { %v10811_v51 = vpop.f32.mrf.mxu3 }
 0x713   : > { %v10813_v59 = vpop.f32.mrf.mxu1  ;;  %v10836_v26 = vpop.f32.mrf.mxu0 }
 0x719   : > { %v10817_v34 = vpop.f32.mrf.mxu2 }
 0x71a   : > { %v10819_v55 = vpop.f32.mrf.mxu3 }
 0x71b   : > { %8236 = vmatmul.msk.bf16.vlgmr.msrb.gmra.mxu0 %vm1773_vm5, %v10548_v6  ;;  %v10823_v17 = vpop.f32.mrf.mxu1 }
 0x71e   : > { %8133 = vmatmul.msk.bf16.gmra.mxu2 %vm1773_vm5, %v5902_v12  ;;  %8163 = vmatmul.msk.bf16.gmra.mxu1 %vm1773_vm5, %v6110_v7  ;;  %v5242_v12 = vadd.f32 %v10757_v57, %v10655_v1  ;;  %v10852_v7 = vpop.f32.mrf.mxu0  ;;  %v10869_v1 = vld [vmem:[%s11371_s8] ss:$0 sm:$0xff] }
 0x71f   : > { %8143 = vmatmul.msk.bf16.gmra.mxu3 %vm1773_vm5, %v10825_v46 }
 0x720   : > { %v5311_v31 = vadd.f32 %v10759_v25, %v5242_v12 }
 0x721   : > { %v10832_v44 = vpop.f32.mrf.mxu2 }
 0x722   : > { %v10834_v6 = vpop.f32.mrf.mxu3  ;;  %v5380_v33 = vadd.f32 %v10573_v35, %v5311_v31  ;;  %v8397_v35 = vld [vmem:[%s11370_s7 + $0x40] sm:$0xff] }
 0x723   : > { %v10840_v28 = vpop.f32.mrf.mxu1  ;;  %7053 = vmatpush.bf16.msra.mxu0 %v8397_v35 }
 0x729   : > { %v10843_v2 = vpop.f32.mrf.mxu2 }
 0x72a   : > { %v10845_v30 = vpop.f32.mrf.mxu3 }
 0x72b   : > { %8237 = vmatmul.msk.bf16.gmra.mxu0 %vm1773_vm5, %v10586_v14  ;;  %v5861_v46 = vpop.f32.mrf.mxu1  ;;  %v5448_v14 = vadd.f32 %v10736_v37, %v5379_v4  ;;  %v10878_v37 = vpop.f32.mrf.mxu0 }
 0x72e   : > { %8170 = vmatmul.msk.bf16.vlgmr.msra.gmra.mxu2 %vm1773_vm5, %v11420_v29  ;;  %8206 = vmatmul.msk.bf16.vlgmr.msrb.gmra.mxu1 %vm1773_vm5, %v10596_v38 }
 0x72f   : > { %8180 = vmatmul.msk.bf16.vlgmr.msra.gmra.mxu3 %vm1773_vm5, %v11423_v9  ;;  %v5243_v9 = vadd.f32 %v10774_v41, %v10668_v8 }
 0x731   : > { %v5497_v57 = vpop.f32.mrf.mxu2  ;;  %v5312_v39 = vadd.f32 %v10776_v32, %v5243_v9  ;;  %v5244_v32 = vadd.f32 %v10782_v52, %v10693_v3 }
 0x732   : > { %v5753_v23 = vpop.f32.mrf.mxu3  ;;  %v5517_v29 = vadd.f32 %v5497_v57, %v5448_v14  ;;  %v5449_v14 = vadd.f32 %v10752_v10, %v5380_v33  ;;  %v11425_v33 = vld [vmem:[#allocation7_spill] sm:$0xff] }
 0x733   : > { %v5801_v61 = vadd.f32 %v10729_v27, %v5753_v23  ;;  %v5863_v25 = vpop.f32.mrf.mxu1  ;;  %v5313_v3 = vadd.f32 %v10784_v21, %v5244_v32  ;;  %v10905_v52 = vpop.f32.mrf.mxu0  ;;  %v5245_v21 = vadd.f32 %v10809_v53, %v10707_v5 }
 0x734   : > { %v5529_v38 = vadd.f32 %v10869_v1, %v5517_v29 }
 0x735   : > { %v10876_v12 = vadd.f32 %v5861_v46, %v5801_v61  ;;  %v5381_v46 = vadd.f32 %v10592_v45, %v5312_v39  ;;  %v11424_v61 = vld [vmem:[#allocation8_spill] sm:$0xff] }
 0x736   : > { %v5537_v4 = vsub.f32 0.0, %v5529_v38  ;;  %v11426_v9 = vpack.c.bf16 %v11424_v61, %v11425_v33  ;;  %v11428_v38 = vld [vmem:[#allocation13_spill] sm:$0xff]  ;;  %v5314_v61 = vadd.f32 %v10811_v51, %v5245_v21  ;;  %v8394_v51 = vld [vmem:[%s11370_s7 + $0x28] sm:$0xff] }
 0x737   : > { %6846 = vmatpush.bf16.msra.mxu1 %v8394_v51 }
 0x738   : > { %v5545_v15 = vmul.f32 1.442695, %v5537_v4  ;;  %v5450_v4 = vadd.f32 %v10765_v16, %v5381_v46 }
 0x739   : > { %v5499_v27 = vpop.f32.mrf.mxu2 }
 0x73a   : > { %v5755_v31 = vpop.f32.mrf.mxu3  ;;  %8451 = vpow2.f32 %v5545_v15  ;;  %v5518_v8 = vadd.f32 %v5499_v27, %v5449_v14 }
 0x73b   : > { %v5803_v41 = vadd.f32 %v10746_v36, %v5755_v31  ;;  %8238 = vmatmul.msk.bf16.gmra.mxu0 %vm1773_vm5, %v10628_v49  ;;  %v5866_v57 = vpop.f32.mrf.mxu1  ;;  %v11427_v36 = vld [vmem:[#allocation14_spill] sm:$0xff]  ;;  %v5382_v31 = vadd.f32 %v10623_v60, %v5313_v3 }
 0x73c   : > { %v5530_v10 = vadd.f32 %v10869_v1, %v5518_v8  ;;  %v11429_v49 = vpack.c.bf16 %v11427_v36, %v11428_v38  ;;  %v5383_v38 = vadd.f32 %v10650_v43, %v5314_v61 }
 0x73d   : > { %v10892_v23 = vadd.f32 %v5863_v25, %v5803_v41 }
 0x73e   : > { %v5538_v29 = vsub.f32 0.0, %v5530_v10  ;;  %8171 = vmatmul.msk.bf16.gmra.mxu2 %vm1773_vm5, %v11426_v9  ;;  %8207 = vmatmul.msk.bf16.gmra.mxu1 %vm1773_vm5, %v10644_v24  ;;  %v5451_v10 = vadd.f32 %v10780_v40, %v5382_v31  ;;  %v10919_v9 = vpop.f32.mrf.mxu0 }
 0x73f   : > { %8181 = vmatmul.msk.bf16.gmra.mxu3 %vm1773_vm5, %v11429_v49  ;;  %v5246_v49 = vadd.f32 %v10817_v34, %v10725_v11 }
 0x740   : > { %v8452_v45 = vpop.eup %8451  ;;  %v5547_v25 = vmul.f32 1.442695, %v5538_v29 }
 0x741   : > { %v5561_v39 = vadd.f32 1.0, %v8452_v45  ;;  %v5502_v15 = vpop.f32.mrf.mxu2 }
 0x742   : > { %v5758_v14 = vpop.f32.mrf.mxu3  ;;  %8453 = vpow2.f32 %v5547_v25  ;;  %v5519_v35 = vadd.f32 %v5502_v15, %v5450_v4  ;;  %v11430_v15 = vld [vmem:[#allocation10_spill] sm:$0xff] }
 0x743   : > { %v5806_v27 = vadd.f32 %v10761_v62, %v5758_v14  ;;  %8455 = vrcp.f32 %v5561_v39  ;;  %v5868_v8 = vpop.f32.mrf.mxu1  ;;  %v5578_v45 = vand.u32 2147483647, %v5561_v39  ;;  %v5580_v3 = vand.u32 2147483648, %v5561_v39  ;;  %v11431_v14 = vld [vmem:[#allocation9_spill] sm:$0xff] }
 0x744   : > { %v5531_v24 = vadd.f32 %v10869_v1, %v5519_v35  ;;  %v11432_v35 = vpack.c.bf16 %v11430_v15, %v11431_v14  ;;  %vm5574_vm10 = vweird.f32 %v5561_v39 }
 0x745   : > { %v10911_v41 = vadd.f32 %v5866_v57, %v5806_v27  ;;  %v11434_v27 = vld [vmem:[#allocation15_spill] sm:$0xff]  ;;  %vm5579_vm12 = vcmp.eq.f32.partialorder %v5578_v45, 8.507059e+37  ;;  %v10964_v45 = vld [vmem:[#allocation4 + $0x22] sm:$0xff] }
 0x746   : > { %v5539_v32 = vsub.f32 0.0, %v5531_v24 }
 0x748   : > { %v8454_v16 = vpop.eup %8453  ;;  %v5549_v46 = vmul.f32 1.442695, %v5539_v32  ;;  %v5315_v32 = vadd.f32 %v10819_v55, %v5246_v49 }
 0x749   : > { %v8456_v29 = vpop.eup %8455  ;;  %v10917_v62 = vadd.f32 1.0, %v8454_v16  ;;  %v5504_v33 = vpop.f32.mrf.mxu2  ;;  %v5581_v16 = vor.u32 1.1754944e-38, %v5580_v3 }
 0x74a   : > { %v5760_v60 = vpop.f32.mrf.mxu3  ;;  %v5570_v36 = vmul.f32 %v8456_v29, %v5561_v39  ;;  %8457 = vpow2.f32 %v5549_v46  ;;  %v5520_v57 = vadd.f32 %v5504_v33, %v5451_v10  ;;  %vm5575_vm9 = vweird.f32 %v8456_v29 }
 0x74b   : > { %8239 = vmatmul.msk.bf16.gmra.mxu0 %vm1773_vm5, %v10674_v63  ;;  %8459 = vrcp.f32 %v10917_v62  ;;  %v5808_v53 = vadd.f32 %v10778_v58, %v5760_v60  ;;  %v5871_v4 = vpop.f32.mrf.mxu1  ;;  %v11433_v58 = vld [vmem:[#allocation16_spill] sm:$0xff]  ;;  %vm5576_vm11 = vmor %vm5574_vm10, %vm5575_vm9  ;;  %v5452_v10 = vadd.f32 %v10787_v18, %v5383_v38  ;;  %v10950_v60 = vpop.f32.mrf.mxu0  ;;  %v5247_v18 = vadd.f32 %v10832_v44, %v10731_v56 }
 0x74c   : > { %v5571_v5 = vsub.f32 1.0, %v5570_v36  ;;  %v5532_v40 = vadd.f32 %v10869_v1, %v5520_v57  ;;  %v11435_v31 = vpack.c.bf16 %v11433_v58, %v11434_v27  ;;  %vm5589_vm14 = vweird.f32 %v10917_v62 }
 0x74d   : > { %v10940_v43 = vadd.f32 %v5868_v8, %v5808_v53  ;;  %v10959_v53 = vld [vmem:[#allocation4 + $0x32] sm:$0xff]  ;;  %v5316_v14 = vadd.f32 %v10834_v6, %v5247_v18 }
 0x74e   : > { %v5572_v25 = vmul.f32 %v8456_v29, %v5571_v5  ;;  %v5540_v63 = vsub.f32 0.0, %v5532_v40  ;;  %8172 = vmatmul.msk.bf16.gmra.mxu2 %vm1773_vm5, %v11432_v35  ;;  %8208 = vmatmul.msk.bf16.gmra.mxu1 %vm1773_vm5, %v10679_v50  ;;  %v5384_v5 = vadd.f32 %v10672_v19, %v5315_v32  ;;  %v5595_v40 = vand.u32 2147483648, %v10917_v62 }
 0x74f   : > { %8182 = vmatmul.msk.bf16.gmra.mxu3 %vm1773_vm5, %v11435_v31  ;;  %v7024_v44 = vpack.c.bf16 %v10959_v53, %v10964_v45 }
 0x750   : > { %v8458_v11 = vpop.eup %8457  ;;  %v5573_v34 = vadd.f32 %v8456_v29, %v5572_v25  ;;  %v5551_v24 = vmul.f32 1.442695, %v5540_v63  ;;  %v10969_v25 = vld [vmem:[#allocation4 + $0x91] sm:$0xff]  ;;  %v5453_v58 = vadd.f32 %v10813_v59, %v5384_v5  ;;  %v5248_v59 = vadd.f32 %v10843_v2, %v10743_v54 }
 0x751   : > { %v8460_v21 = vpop.eup %8459  ;;  %v10945_v46 = vadd.f32 1.0, %v8458_v11  ;;  %v5507_v8 = vpop.f32.mrf.mxu2  ;;  %v10971_v63 = vld [vmem:[#allocation4 + $0x131] sm:$0xff]  ;;  %v6180_v6 = vpack.c.bf16 %v10969_v25, %v10709_v47 }
 0x752   : > { %v5763_v61 = vpop.f32.mrf.mxu3  ;;  %v5577_v33 = vsel %vm5576_vm11, %v8456_v29, %v5573_v34  ;;  %v5585_v50 = vmul.f32 %v8460_v21, %v10917_v62  ;;  %8461 = vpow2.f32 %v5551_v24  ;;  %v5521_v36 = vadd.f32 %v5507_v8, %v5452_v10 }
 0x753   : > { %v5582_v39 = vsel %vm5579_vm12, %v5581_v16, %v5577_v33  ;;  %8463 = vrcp.f32 %v10945_v46  ;;  %v5811_v57 = vadd.f32 %v10794_v20, %v5763_v61  ;;  %v5593_v29 = vand.u32 2147483647, %v10917_v62  ;;  %v5873_v56 = vpop.f32.mrf.mxu1  ;;  %v10990_v33 = vpop.f32.mrf.mxu0 }
 0x754   : > { %8088 = vst [vmem:[%s10541_s22 + $0x40] sm:$0xff] %v5582_v39  ;;  %v5586_v55 = vsub.f32 1.0, %v5585_v50  ;;  %vm5590_vm13 = vweird.f32 %v8460_v21  ;;  %v5533_v38 = vadd.f32 %v10869_v1, %v5521_v36  ;;  %v6249_v32 = vpack.c.bf16 %v10971_v63, %v10713_v22 }
 0x755   : > { %v10962_v49 = vadd.f32 %v5871_v4, %v5811_v57  ;;  %vm5591_vm15 = vmor %vm5589_vm14, %vm5590_vm13  ;;  %v5596_v4 = vor.u32 1.1754944e-38, %v5595_v40  ;;  %vm5594_vm0 = vcmp.eq.f32.partialorder %v5593_v29, 8.507059e+37  ;;  %v5385_v10 = vadd.f32 %v10704_v0, %v5316_v14 }
 0x756   : > { %v5587_v51 = vmul.f32 %v8460_v21, %v5586_v55  ;;  %v5541_v19 = vsub.f32 0.0, %v5533_v38  ;;  %v5610_v8 = vand.u32 2147483648, %v10945_v46  ;;  %v5608_v47 = vand.u32 2147483647, %v10945_v46 }
 0x757   : > { %v5317_v54 = vadd.f32 %v10845_v30, %v5248_v59  ;;  %vm5604_vm2 = vweird.f32 %v10945_v46  ;;  %v5454_v36 = vadd.f32 %v10823_v17, %v5385_v10  ;;  %v11009_v17 = vld [vmem:[#allocation4 + $0x52] sm:$0xff]  ;;  %v6808_v10 = vld [vmem:[#allocation4 + $0x162] sm:$0xff] }
 0x758   : > { %v8462_v20 = vpop.eup %8461  ;;  %v5588_v3 = vadd.f32 %v8460_v21, %v5587_v51  ;;  %v5553_v34 = vmul.f32 1.442695, %v5541_v19  ;;  %v5611_v55 = vor.u32 1.1754944e-38, %v5610_v8  ;;  %vm5609_vm4 = vcmp.eq.f32.partialorder %v5608_v47, 8.507059e+37 }
 0x759   : > { %v8464_v15 = vpop.eup %8463  ;;  %v10974_v35 = vadd.f32 1.0, %v8462_v20  ;;  %v5509_v62 = vpop.f32.mrf.mxu2 }
 0x75a   : > { %v5765_v27 = vpop.f32.mrf.mxu3  ;;  %v5592_v31 = vsel %vm5591_vm15, %v8460_v21, %v5588_v3  ;;  %v5600_v11 = vmul.f32 %v8464_v15, %v10945_v46  ;;  %v5522_v16 = vadd.f32 %v5509_v62, %v5453_v58  ;;  %vm5605_vm1 = vweird.f32 %v8464_v15 }
 0x75b   : > { %8276 = vmatmul.msk.bf16.vlgmr.msra.gmra.mxu0 %vm1773_vm5, %v7024_v44  ;;  %v5597_v24 = vsel %vm5594_vm0, %v5596_v4, %v5592_v31  ;;  %8465 = vrcp.f32 %v10974_v35  ;;  %v5813_v61 = vadd.f32 %v10815_v48, %v5765_v27  ;;  %vm5606_vm3 = vmor %vm5604_vm2, %vm5605_vm1  ;;  %v5876_v38 = vpop.f32.mrf.mxu1  ;;  %v5386_v3 = vadd.f32 %v10715_v13, %v5317_v54  ;;  %v11015_v4 = vld [vmem:[#allocation4 + $0x42] sm:$0xff]  ;;  %v11021_v58 = vpop.f32.mrf.mxu0  ;;  %v6807_v54 = vld [vmem:[#allocation4 + $0x152] sm:$0xff] }
 0x75c   : > { %8089 = vst [vmem:[%s10541_s22 + $0x48] sm:$0xff] %v5597_v24  ;;  %v5601_v21 = vsub.f32 1.0, %v5600_v11  ;;  %8467 = vpow2.f32 %v5553_v34  ;;  %v5534_v22 = vadd.f32 %v10869_v1, %v5522_v16  ;;  %v5625_v44 = vand.u32 2147483648, %v10974_v35 }
 0x75d   : > { %v10998_v0 = vadd.f32 %v5873_v56, %v5813_v61  ;;  %v5623_v56 = vand.u32 2147483647, %v10974_v35  ;;  %v7025_v13 = vpack.c.bf16 %v11009_v17, %v11015_v4  ;;  %vm5619_vm7 = vweird.f32 %v10974_v35 }
 0x75e   : > { %v5602_v50 = vmul.f32 %v8464_v15, %v5601_v21  ;;  %8173 = vmatmul.msk.bf16.gmra.mxu2 %vm1773_vm5, %v6180_v6  ;;  %8209 = vmatmul.msk.bf16.gmra.mxu1 %vm1773_vm5, %v10719_v42  ;;  %v5542_v2 = vsub.f32 0.0, %v5534_v22  ;;  %v5455_v31 = vadd.f32 %v10840_v28, %v5386_v3  ;;  %v5626_v11 = vor.u32 1.1754944e-38, %v5625_v44  ;;  %v6600_v28 = vld [vmem:[#allocation4 + $0x12] sm:$0xff] }
 0x75f   : > { %8183 = vmatmul.msk.bf16.gmra.mxu3 %vm1773_vm5, %v6249_v32  ;;  %vm5624_vm9 = vcmp.eq.f32.partialorder %v5623_v56, 8.507059e+37  ;;  %v6610_v22 = vpack.c.bf16 %v10964_v45, %v6600_v28 }
 0x760   : > { %v5603_v48 = vadd.f32 %v8464_v15, %v5602_v50  ;;  %v5555_v40 = vmul.f32 1.442695, %v5542_v2 }
 0x761   : > { %v8466_v39 = vpop.eup %8465  ;;  %v5512_v57 = vpop.f32.mrf.mxu2 }
 0x762   : > { %v5768_v5 = vpop.f32.mrf.mxu3  ;;  %v8468_v18 = vpop.eup %8467  ;;  %v5607_v29 = vsel %vm5606_vm3, %v8464_v15, %v5603_v48  ;;  %v5615_v42 = vmul.f32 %v8466_v39, %v10974_v35  ;;  %v5523_v46 = vadd.f32 %v5512_v57, %v5454_v36  ;;  %8469 = vpow2.f32 %v5555_v40  ;;  %v8396_v48 = vld [vmem:[%s11370_s7 + $0x38] sm:$0xff] }
 0x763   : > { %v5612_v51 = vsel %vm5609_vm4, %v5611_v55, %v5607_v29  ;;  %v11004_v30 = vadd.f32 1.0, %v8468_v18  ;;  %v5816_v20 = vadd.f32 %v10836_v26, %v5768_v5  ;;  %vm5620_vm6 = vweird.f32 %v8466_v39  ;;  %v5878_v2 = vpop.f32.mrf.mxu1  ;;  %6984 = vmatpush.bf16.msra.mxu3 %v8396_v48 }
 0x764   : > { %8090 = vst [vmem:[%s10541_s22 + $0x50] sm:$0xff] %v5612_v51  ;;  %v5616_v19 = vsub.f32 1.0, %v5615_v42  ;;  %v5535_v14 = vadd.f32 %v10869_v1, %v5523_v46  ;;  %vm5621_vm8 = vmor %vm5619_vm7, %vm5620_vm6 }
 0x765   : > { %8471 = vrcp.f32 %v11004_v30  ;;  %v11017_v26 = vadd.f32 %v5876_v38, %v5816_v20  ;;  %v5640_v57 = vand.u32 2147483648, %v11004_v30  ;;  %v5638_v18 = vand.u32 2147483647, %v11004_v30  ;;  %v11052_v38 = vpop.f32.mrf.mxu0 }
 0x766   : > { %v5617_v15 = vmul.f32 %v8466_v39, %v5616_v19  ;;  %v5543_v27 = vsub.f32 0.0, %v5535_v14  ;;  %vm5634_vm11 = vweird.f32 %v11004_v30  ;;  %v11056_v14 = vld [vmem:[#allocation4 + $0x72] sm:$0xff] }
 0x767   : > { %v5641_v3 = vor.u32 1.1754944e-38, %v5640_v57  ;;  %vm5639_vm13 = vcmp.eq.f32.partialorder %v5638_v18, 8.507059e+37 }
 0x768   : > { %v5618_v62 = vadd.f32 %v8466_v39, %v5617_v15  ;;  %v8470_v6 = vpop.eup %8469  ;;  %v5557_v59 = vmul.f32 1.442695, %v5543_v27  ;;  %v11060_v27 = vld [vmem:[#allocation4 + $0x62] sm:$0xff] }
 0x769   : > { %v5514_v34 = vpop.f32.mrf.mxu2  ;;  %v11027_v61 = vadd.f32 1.0, %v8470_v6 }
 0x76a   : > { %v5770_v24 = vpop.f32.mrf.mxu3  ;;  %v5622_v32 = vsel %vm5621_vm8, %v8466_v39, %v5618_v62  ;;  %v5524_v21 = vadd.f32 %v5514_v34, %v5455_v31  ;;  %8473 = vpow2.f32 %v5557_v59  ;;  %v6817_v39 = vpack.c.bf16 %v6808_v10, %v6807_v54 }
 0x76b   : > { %v5818_v16 = vadd.f32 %v10852_v7, %v5770_v24  ;;  %8277 = vmatmul.msk.bf16.gmra.mxu0 %vm1773_vm5, %v7025_v13  ;;  %v8472_v8 = vpop.eup %8471  ;;  %v5627_v35 = vsel %vm5624_vm9, %v5626_v11, %v5622_v32  ;;  %v8395_v7 = vld [vmem:[%s11370_s7 + $0x30] sm:$0xff]  ;;  %8475 = vrcp.f32 %v11027_v61  ;;  %v5655_v62 = vand.u32 2147483648, %v11027_v61 }
 0x76c   : > { %8091 = vst [vmem:[%s10541_s22 + $0x58] sm:$0xff] %v5627_v35  ;;  %v5630_v50 = vmul.f32 %v8472_v8, %v11004_v30  ;;  %v5536_v47 = vadd.f32 %v10869_v1, %v5524_v21  ;;  %v11436_v1 = vld [vmem:[#allocation17_spill] sm:$0xff]  ;;  %6915 = vmatpush.bf16.msra.mxu2 %v8395_v7  ;;  %vm5635_vm10 = vweird.f32 %v8472_v8  ;;  %v5653_v11 = vand.u32 2147483647, %v11027_v61  ;;  %v11437_v7 = vld [vmem:[#allocation18_spill] sm:$0xff] }
 0x76d   : > { %v11043_v45 = vadd.f32 %v5878_v2, %v5818_v16  ;;  %vm5636_vm12 = vmor %vm5634_vm11, %vm5635_vm10  ;;  %v7026_v34 = vpack.c.bf16 %v11056_v14, %v11060_v27  ;;  %vm5649_vm15 = vweird.f32 %v11027_v61  ;;  %v6810_v21 = vld [vmem:[#allocation4 + $0x182] sm:$0xff]  ;;  %v5656_v10 = vor.u32 1.1754944e-38, %v5655_v62 }
 0x76e   : > { %v5631_v55 = vsub.f32 1.0, %v5630_v50  ;;  %v5544_v36 = vsub.f32 0.0, %v5536_v47  ;;  %8216 = vmatmul.msk.bf16.vlgmr.msrb.gmra.mxu2 %vm1773_vm5, %v6610_v22  ;;  %8246 = vmatmul.msk.bf16.vlgmr.msra.gmra.mxu1 %vm1773_vm5, %v6817_v39  ;;  %vm5654_vm1 = vcmp.eq.f32.partialorder %v5653_v11, 8.507059e+37  ;;  %v6611_v50 = vpack.c.bf16 %v11015_v4, %v10959_v53  ;;  %v6809_v47 = vld [vmem:[#allocation4 + $0x172] sm:$0xff] }
 0x76f   : > { %8226 = vmatmul.msk.bf16.vlgmr.msrb.gmra.mxu3 %vm1773_vm5, %v11436_v1  ;;  %v6818_v54 = vpack.c.bf16 %v6810_v21, %v6809_v47 }
 0x770   : > { %v5632_v5 = vmul.f32 %v8472_v8, %v5631_v55  ;;  %v5559_v29 = vmul.f32 1.442695, %v5544_v36  ;;  %v8474_v51 = vpop.eup %8473  ;;  %v11080_v55 = vpop.f32.mrf.mxu1 }
 0x771   : > { %v11048_v42 = vpop.f32.mrf.mxu2  ;;  %v8476_v20 = vpop.eup %8475  ;;  %v5567_v19 = vadd.f32 1.0, %v8474_v51 }
 0x772   : > { %v11050_v40 = vpop.f32.mrf.mxu3  ;;  %v5633_v46 = vadd.f32 %v8472_v8, %v5632_v5  ;;  %8477 = vpow2.f32 %v5559_v29  ;;  %v5645_v44 = vmul.f32 %v8476_v20, %v11027_v61  ;;  %vm5650_vm14 = vweird.f32 %v8476_v20 }
 0x773   : > { %8479 = vrcp.f32 %v5567_v19  ;;  %vm5651_vm0 = vmor %vm5649_vm15, %vm5650_vm14  ;;  %v5670_v48 = vand.u32 2147483648, %v5567_v19  ;;  %v5668_v39 = vand.u32 2147483647, %v5567_v19  ;;  %vm5664_vm3 = vweird.f32 %v5567_v19 }
 0x774   : > { %v5637_v56 = vsel %vm5636_vm12, %v8472_v8, %v5633_v46  ;;  %v5646_v13 = vsub.f32 1.0, %v5645_v44  ;;  %v11071_v8 = vpop.f32.mrf.mxu0 }
 0x775   : > { %v5642_v15 = vsel %vm5639_vm13, %v5641_v3, %v5637_v56  ;;  %v5671_v5 = vor.u32 1.1754944e-38, %v5670_v48  ;;  %vm5669_vm6 = vcmp.eq.f32.partialorder %v5668_v39, 8.507059e+37  ;;  %v7021_v3 = vld [vmem:[#allocation4 + $0x92] sm:$0xff] }
 0x776   : > { %8092 = vst [vmem:[%s10541_s22 + $0x60] sm:$0xff] %v5642_v15  ;;  %v5647_v31 = vmul.f32 %v8476_v20, %v5646_v13  ;;  %v6813_v48 = vld [vmem:[#allocation4 + $0x1b2] sm:$0xff] }
 0x778   : > { %v8478_v30 = vpop.eup %8477  ;;  %v5648_v59 = vadd.f32 %v8476_v20, %v5647_v31 }
 0x779   : > { %v5568_v24 = vadd.f32 1.0, %v8478_v30  ;;  %v11065_v6 = vpop.f32.mrf.mxu2  ;;  %v8480_v16 = vpop.eup %8479 }
 0x77a   : > { %v11067_v32 = vpop.f32.mrf.mxu3  ;;  %v5652_v35 = vsel %vm5651_vm0, %v8476_v20, %v5648_v59  ;;  %v5660_v28 = vmul.f32 %v8480_v16, %v5567_v19  ;;  %vm5665_vm2 = vweird.f32 %v8480_v16  ;;  %v7020_v20 = vld [vmem:[#allocation4 + $0x82] sm:$0xff] }
 0x77b   : > { %8278 = vmatmul.msk.bf16.gmra.mxu0 %vm1773_vm5, %v7026_v34  ;;  %8481 = vrcp.f32 %v5568_v24  ;;  %v5657_v22 = vsel %vm5654_vm1, %v5656_v10, %v5652_v35  ;;  %vm5666_vm4 = vmor %vm5664_vm3, %vm5665_vm2  ;;  %v5685_v46 = vand.u32 2147483648, %v5568_v24  ;;  %v5683_v15 = vand.u32 2147483647, %v5568_v24  ;;  %v6140_v34 = vpop.f32.mrf.mxu1  ;;  %v6812_v59 = vld [vmem:[#allocation4 + $0x1a2] sm:$0xff]  ;;  %v6811_v10 = vld [vmem:[#allocation4 + $0x192] sm:$0xff] }
 0x77c   : > { %8093 = vst [vmem:[%s10541_s22 + $0x68] sm:$0xff] %v5657_v22  ;;  %v5661_v61 = vsub.f32 1.0, %v5660_v28  ;;  %v11086_v56 = vpop.f32.mrf.mxu0  ;;  %vm5679_vm8 = vweird.f32 %v5568_v24  ;;  %v7027_v19 = vpack.c.bf16 %v7021_v3, %v7020_v20  ;;  %v11438_v35 = vld [vmem:[#allocation19_spill] sm:$0xff] }
 0x77d   : > { %v5686_v62 = vor.u32 1.1754944e-38, %v5685_v46  ;;  %vm5684_vm10 = vcmp.eq.f32.partialorder %v5683_v15, 8.507059e+37  ;;  %v6946_v3 = vld [vmem:[#allocation4 + $0xd1] sm:$0xff]  ;;  %v6945_v15 = vld [vmem:[#allocation4 + $0xc1] sm:$0xff] }
 0x77e   : > { %8217 = vmatmul.msk.bf16.gmra.mxu2 %vm1773_vm5, %v6611_v50  ;;  %8247 = vmatmul.msk.bf16.gmra.mxu1 %vm1773_vm5, %v6818_v54  ;;  %v5662_v2 = vmul.f32 %v8480_v16, %v5661_v61  ;;  %v6814_v61 = vld [vmem:[#allocation4 + $0x1c2] sm:$0xff] }
 0x77f   : > { %8227 = vmatmul.msk.bf16.gmra.mxu3 %vm1773_vm5, %v11437_v7  ;;  %v6613_v7 = vpack.c.bf16 %v7020_v20, %v11056_v14  ;;  %v5950_v14 = vadd.f32 %v11048_v42, %v10876_v12  ;;  %v6877_v20 = vld [vmem:[#allocation4 + $0x31] sm:$0xff] }
 0x780   : > { %v5663_v1 = vadd.f32 %v8480_v16, %v5662_v2  ;;  %v6820_v2 = vpack.c.bf16 %v6814_v61, %v6813_v48  ;;  %v6879_v48 = vld [vmem:[#allocation4 + $0x51] sm:$0xff] }
 0x781   : > { %v8482_v36 = vpop.eup %8481  ;;  %v11082_v53 = vpop.f32.mrf.mxu2 }
 0x782   : > { %v11084_v4 = vpop.f32.mrf.mxu3  ;;  %v5675_v57 = vmul.f32 %v8482_v36, %v5568_v24  ;;  %v5667_v18 = vsel %vm5666_vm4, %v8480_v16, %v5663_v1  ;;  %vm5680_vm7 = vweird.f32 %v8482_v36  ;;  %v6612_v16 = vpack.c.bf16 %v11060_v27, %v11009_v17 }
 0x783   : > { %v5672_v51 = vsel %vm5669_vm6, %v5671_v5, %v5667_v18  ;;  %vm5681_vm9 = vmor %vm5679_vm8, %vm5680_vm7  ;;  %v6819_v24 = vpack.c.bf16 %v6812_v59, %v6811_v10  ;;  %v11107_v22 = vpop.f32.mrf.mxu1  ;;  %v6019_v18 = vadd.f32 %v11050_v40, %v5950_v14  ;;  %v5952_v10 = vadd.f32 %v11082_v53, %v10911_v41 }
 0x784   : > { %v5676_v29 = vsub.f32 1.0, %v5675_v57  ;;  %8094 = vst [vmem:[%s10541_s22 + $0x70] sm:$0xff] %v5672_v51  ;;  %v11101_v28 = vpop.f32.mrf.mxu0 }
 0x786   : > { %v5677_v44 = vmul.f32 %v8482_v36, %v5676_v29 }
 0x788   : > { %v5678_v13 = vadd.f32 %v8482_v36, %v5677_v44  ;;  %v6876_v44 = vld [vmem:[#allocation4 + $0x21] sm:$0xff] }
 0x789   : > { %v11089_v30 = vpop.f32.mrf.mxu2 }
 0x78a   : > { %v11091_v31 = vpop.f32.mrf.mxu3  ;;  %v5682_v11 = vsel %vm5681_vm9, %v8482_v36, %v5678_v13  ;;  %v11439_v36 = vld [vmem:[#allocation20_spill] sm:$0xff]  ;;  %v6088_v13 = vadd.f32 %v10878_v37, %v6019_v18  ;;  %v5953_v53 = vadd.f32 %v11089_v30, %v10940_v43 }
 0x78b   : > { %8279 = vmatmul.msk.bf16.gmra.mxu0 %vm1773_vm5, %v7027_v19  ;;  %v5687_v21 = vsel %vm5684_vm10, %v5686_v62, %v5682_v11  ;;  %v11116_v39 = vpop.f32.mrf.mxu1  ;;  %v5951_v19 = vadd.f32 %v11065_v6, %v10892_v23  ;;  %v6886_v62 = vpack.c.bf16 %v6877_v20, %v6876_v44  ;;  %v6955_v11 = vpack.c.bf16 %v6946_v3, %v6945_v15  ;;  %v11151_v23 = vld [vmem:[%s11371_s8] ss:$0 sm:$0xff]  ;;  %v6878_v3 = vld [vmem:[#allocation4 + $0x41] sm:$0xff] }
 0x78c   : > { %8095 = vst [vmem:[%s10541_s22 + $0x78] sm:$0xff] %v5687_v21  ;;  %v11113_v27 = vpop.f32.mrf.mxu0  ;;  %v6158_v40 = vadd.f32 %v11080_v55, %v6088_v13  ;;  %v6021_v55 = vadd.f32 %v11084_v4, %v5952_v10  ;;  %v6887_v44 = vpack.c.bf16 %v6879_v48, %v6878_v3 }
 0x78d   : > { %v6020_v42 = vadd.f32 %v11067_v32, %v5951_v19  ;;  %v6022_v19 = vadd.f32 %v11091_v31, %v5953_v53 }
 0x78e   : > { %8218 = vmatmul.msk.bf16.gmra.mxu2 %vm1773_vm5, %v6612_v16  ;;  %8248 = vmatmul.msk.bf16.gmra.mxu1 %vm1773_vm5, %v6819_v24  ;;  %v6090_v41 = vadd.f32 %v10919_v9, %v6021_v55 }
 0x78f   : > { %8228 = vmatmul.msk.bf16.gmra.mxu3 %vm1773_vm5, %v11438_v35  ;;  %v6089_v6 = vadd.f32 %v10905_v52, %v6020_v42  ;;  %v6947_v52 = vld [vmem:[#allocation4 + $0xe1] sm:$0xff] }
 0x791   : > { %v11103_v50 = vpop.f32.mrf.mxu2 }
 0x792   : > { %v11105_v47 = vpop.f32.mrf.mxu3 }
 0x793   : > { %v11131_v29 = vpop.f32.mrf.mxu1 }
 0x794   : > { %v11126_v5 = vpop.f32.mrf.mxu0 }
 0x799   : > { %v11109_v54 = vpop.f32.mrf.mxu2 }
 0x79a   : > { %v11111_v17 = vpop.f32.mrf.mxu3 }
 0x79b   : > { %v11146_v16 = vpop.f32.mrf.mxu1 }
 0x79c   : > { %v11140_v12 = vpop.f32.mrf.mxu0 }
 0x79e   : > { %8219 = vmatmul.msk.bf16.gmra.mxu2 %vm1773_vm5, %v6613_v7  ;;  %8249 = vmatmul.msk.bf16.gmra.mxu1 %vm1773_vm5, %v6820_v2  ;;  %v6159_v7 = vadd.f32 %v6140_v34, %v6089_v6  ;;  %v6948_v2 = vld [vmem:[#allocation4 + $0xf1] sm:$0xff]  ;;  %v6091_v6 = vadd.f32 %v10950_v60, %v6022_v19  ;;  %v6880_v60 = vld [vmem:[#allocation4 + $0x61] sm:$0xff] }
 0x79f   : > { %8229 = vmatmul.msk.bf16.gmra.mxu3 %vm1773_vm5, %v11439_v36  ;;  %v6956_v15 = vpack.c.bf16 %v6948_v2, %v6947_v52  ;;  %v6950_v2 = vld [vmem:[#allocation4 + $0x111] sm:$0xff]  ;;  %v6949_v52 = vld [vmem:[#allocation4 + $0x101] sm:$0xff] }
 0x7a0   : > { %v6161_v55 = vadd.f32 %v11116_v39, %v6091_v6 }
 0x7a1   : > { %v11122_v1 = vpop.f32.mrf.mxu2 }
 0x7a2   : > { %v11124_v57 = vpop.f32.mrf.mxu3 }
 0x7a3   : > { %v11163_v13 = vpop.f32.mrf.mxu1 }
 0x7a4   : > { %v11157_v35 = vpop.f32.mrf.mxu0 }
 0x7a9   : > { %v11133_v51 = vpop.f32.mrf.mxu2 }
 0x7aa   : > { %v11135_v46 = vpop.f32.mrf.mxu3 }
 0x7ab   : > { %v11175_v31 = vpop.f32.mrf.mxu1 }
 0x7ae   : > { %8256 = vmatmul.msk.bf16.vlgmr.msra.gmra.mxu2 %vm1773_vm5, %v6886_v62 }
 0x7af   : > { %8266 = vmatmul.msk.bf16.vlgmr.msra.gmra.mxu3 %vm1773_vm5, %v6955_v11  ;;  %v6160_v11 = vadd.f32 %v11107_v22, %v6090_v41  ;;  %v6957_v41 = vpack.c.bf16 %v6950_v2, %v6949_v52 }
 0x7b1   : > { %v6208_v59 = vpop.f32.mrf.mxu2 }
 0x7b2   : > { %v6277_v21 = vpop.f32.mrf.mxu3  ;;  %v6228_v37 = vadd.f32 %v6208_v59, %v6158_v40  ;;  %v11170_v59 = vpop.f32.mrf.mxu0 }
 0x7b4   : > { %v6297_v24 = vadd.f32 %v6277_v21, %v6228_v37  ;;  %v5954_v21 = vadd.f32 %v11103_v50, %v10962_v49 }
 0x7b6   : > { %v6309_v32 = vadd.f32 %v11151_v23, %v6297_v24  ;;  %v6023_v24 = vadd.f32 %v11105_v47, %v5954_v21 }
 0x7b8   : > { %v6317_v61 = vsub.f32 0.0, %v6309_v32 }
 0x7b9   : > { %v6210_v36 = vpop.f32.mrf.mxu2 }
 0x7ba   : > { %v6279_v14 = vpop.f32.mrf.mxu3  ;;  %v6325_v18 = vmul.f32 1.442695, %v6317_v61  ;;  %v6229_v20 = vadd.f32 %v6210_v36, %v6159_v7  ;;  %v6881_v61 = vld [vmem:[#allocation4 + $0x71] sm:$0xff] }
 0x7bb   : > { %v6888_v47 = vpack.c.bf16 %v6881_v61, %v6880_v60 }
 0x7bc   : > { %8483 = vpow2.f32 %v6325_v18  ;;  %v6298_v4 = vadd.f32 %v6279_v14, %v6229_v20  ;;  %v6092_v18 = vadd.f32 %v10990_v33, %v6023_v24  ;;  %v5955_v20 = vadd.f32 %v11109_v54, %v10998_v0 }
 0x7be   : > { %v6310_v34 = vadd.f32 %v11151_v23, %v6298_v4  ;;  %8257 = vmatmul.msk.bf16.gmra.mxu2 %vm1773_vm5, %v6887_v44  ;;  %v11185_v44 = vpop.f32.mrf.mxu0  ;;  %v6024_v33 = vadd.f32 %v11111_v17, %v5955_v20  ;;  %v6162_v54 = vadd.f32 %v11131_v29, %v6092_v18  ;;  %v5956_v29 = vadd.f32 %v11122_v1, %v11017_v26 }
 0x7bf   : > { %8267 = vmatmul.msk.bf16.gmra.mxu3 %vm1773_vm5, %v6956_v15 }
 0x7c0   : > { %v6318_v62 = vsub.f32 0.0, %v6310_v34  ;;  %v11193_v34 = vpop.f32.mrf.mxu1  ;;  %v6093_v17 = vadd.f32 %v11021_v58, %v6024_v33  ;;  %v6025_v26 = vadd.f32 %v11124_v57, %v5956_v29 }
 0x7c1   : > { %v6213_v42 = vpop.f32.mrf.mxu2 }
 0x7c2   : > { %v6282_v9 = vpop.f32.mrf.mxu3  ;;  %v8484_v40 = vpop.eup %8483  ;;  %v6327_v43 = vmul.f32 1.442695, %v6318_v62  ;;  %v6230_v30 = vadd.f32 %v6213_v42, %v6160_v11  ;;  %v6163_v2 = vadd.f32 %v11146_v16, %v6093_v17 }
 0x7c3   : > { %v6341_v37 = vadd.f32 1.0, %v8484_v40 }
 0x7c4   : > { %8485 = vpow2.f32 %v6327_v43  ;;  %v6299_v10 = vadd.f32 %v6282_v9, %v6230_v30 }
 0x7c5   : > { %8487 = vrcp.f32 %v6341_v37  ;;  %v6360_v0 = vand.u32 2147483648, %v6341_v37  ;;  %v6358_v62 = vand.u32 2147483647, %v6341_v37  ;;  %vm6354_vm12 = vweird.f32 %v6341_v37 }
 0x7c6   : > { %v6311_v22 = vadd.f32 %v11151_v23, %v6299_v10 }
 0x7c7   : > { %v6361_v10 = vor.u32 1.1754944e-38, %v6360_v0  ;;  %vm6359_vm14 = vcmp.eq.f32.partialorder %v6358_v62, 8.507059e+37 }
 0x7c8   : > { %v6319_v32 = vsub.f32 0.0, %v6311_v22  ;;  %v11212_v52 = vpop.f32.mrf.mxu1 }
 0x7c9   : > { %v6215_v7 = vpop.f32.mrf.mxu2 }
 0x7ca   : > { %v6284_v48 = vpop.f32.mrf.mxu3  ;;  %v8486_v49 = vpop.eup %8485  ;;  %v6329_v50 = vmul.f32 1.442695, %v6319_v32  ;;  %v6231_v36 = vadd.f32 %v6215_v7, %v6161_v55  ;;  %v6882_v7 = vld [vmem:[#allocation4 + $0x81] sm:$0xff] }
 0x7cb   : > { %v8488_v14 = vpop.eup %8487  ;;  %v11183_v3 = vadd.f32 1.0, %v8486_v49  ;;  %v6889_v18 = vpack.c.bf16 %v10969_v25, %v6882_v7 }
 0x7cc   : > { %v6350_v39 = vmul.f32 %v8488_v14, %v6341_v37  ;;  %8489 = vpow2.f32 %v6329_v50  ;;  %v6300_v15 = vadd.f32 %v6284_v48, %v6231_v36  ;;  %vm6355_vm11 = vweird.f32 %v8488_v14  ;;  %v11202_v37 = vpop.f32.mrf.mxu0  ;;  %v6951_v48 = vld [vmem:[#allocation4 + $0x121] sm:$0xff] }
 0x7cd   : > { %8491 = vrcp.f32 %v11183_v3  ;;  %vm6356_vm13 = vmor %vm6354_vm12, %vm6355_vm11  ;;  %v6375_v1 = vand.u32 2147483648, %v11183_v3  ;;  %v6373_v50 = vand.u32 2147483647, %v11183_v3  ;;  %v6958_v20 = vpack.c.bf16 %v10971_v63, %v6951_v48 }
 0x7ce   : > { %v6351_v53 = vsub.f32 1.0, %v6350_v39  ;;  %v6312_v4 = vadd.f32 %v11151_v23, %v6300_v15  ;;  %8258 = vmatmul.msk.bf16.gmra.mxu2 %vm1773_vm5, %v6888_v47  ;;  %vm6369_vm0 = vweird.f32 %v11183_v3 }
 0x7cf   : > { %8268 = vmatmul.msk.bf16.gmra.mxu3 %vm1773_vm5, %v6957_v41  ;;  %v6094_v41 = vadd.f32 %v11052_v38, %v6025_v26  ;;  %v6376_v25 = vor.u32 1.1754944e-38, %v6375_v1  ;;  %vm6374_vm2 = vcmp.eq.f32.partialorder %v6373_v50, 8.507059e+37 }
 0x7d0   : > { %v6352_v19 = vmul.f32 %v8488_v14, %v6351_v53  ;;  %v6320_v11 = vsub.f32 0.0, %v6312_v4  ;;  %v5957_v53 = vadd.f32 %v11133_v51, %v11043_v45 }
 0x7d1   : > { %v6218_v42 = vpop.f32.mrf.mxu2  ;;  %v6164_v51 = vadd.f32 %v11163_v13, %v6094_v41 }
 0x7d2   : > { %v6287_v9 = vpop.f32.mrf.mxu3  ;;  %v8490_v40 = vpop.eup %8489  ;;  %v6353_v43 = vadd.f32 %v8488_v14, %v6352_v19  ;;  %v6331_v30 = vmul.f32 1.442695, %v6320_v11  ;;  %v6232_v21 = vadd.f32 %v6218_v42, %v6162_v54  ;;  %v6026_v45 = vadd.f32 %v11135_v46, %v5957_v53 }
 0x7d3   : > { %v8492_v6 = vpop.eup %8491  ;;  %v11198_v22 = vadd.f32 1.0, %v8490_v40 }
 0x7d4   : > { %v6357_v24 = vsel %vm6356_vm13, %v8488_v14, %v6353_v43  ;;  %v6365_v32 = vmul.f32 %v8492_v6, %v11183_v3  ;;  %8493 = vpow2.f32 %v6331_v30  ;;  %v6301_v58 = vadd.f32 %v6287_v9, %v6232_v21  ;;  %v11226_v62 = vpop.f32.mrf.mxu0 }
 0x7d5   : > { %v6362_v55 = vsel %vm6359_vm14, %v6361_v10, %v6357_v24  ;;  %8495 = vrcp.f32 %v11198_v22  ;;  %vm6370_vm15 = vweird.f32 %v8492_v6  ;;  %v6390_v38 = vand.u32 2147483648, %v11198_v22  ;;  %v11232_v10 = vpop.f32.mrf.mxu1 }
 0x7d6   : > { %8184 = vst [vmem:[%s10541_s22 + $0x80] sm:$0xff] %v6362_v55  ;;  %v6366_v61 = vsub.f32 1.0, %v6365_v32  ;;  %v6313_v36 = vadd.f32 %v11151_v23, %v6301_v58  ;;  %vm6371_vm1 = vmor %vm6369_vm0, %vm6370_vm15  ;;  %v6388_v42 = vand.u32 2147483647, %v11198_v22  ;;  %vm6384_vm4 = vweird.f32 %v11198_v22 }
 0x7d7   : > { %v6095_v17 = vadd.f32 %v11071_v8, %v6026_v45  ;;  %v6391_v13 = vor.u32 1.1754944e-38, %v6390_v38 }
 0x7d8   : > { %v6367_v49 = vmul.f32 %v8492_v6, %v6366_v61  ;;  %v6321_v16 = vsub.f32 0.0, %v6313_v36  ;;  %vm6389_vm6 = vcmp.eq.f32.partialorder %v6388_v42, 8.507059e+37 }
 0x7d9   : > { %v6220_v60 = vpop.f32.mrf.mxu2  ;;  %v6165_v26 = vadd.f32 %v11175_v31, %v6095_v17 }
 0x7da   : > { %v6289_v14 = vpop.f32.mrf.mxu3  ;;  %v8494_v47 = vpop.eup %8493  ;;  %v6368_v57 = vadd.f32 %v8492_v6, %v6367_v49  ;;  %v6233_v39 = vadd.f32 %v6220_v60, %v6163_v2  ;;  %v6333_v0 = vmul.f32 1.442695, %v6321_v16 }
 0x7db   : > { %v8496_v15 = vpop.eup %8495  ;;  %v6344_v4 = vadd.f32 1.0, %v8494_v47 }
 0x7dc   : > { %v6372_v63 = vsel %vm6371_vm1, %v8492_v6, %v6368_v57  ;;  %v6380_v33 = vmul.f32 %v8496_v15, %v11198_v22  ;;  %v6302_v19 = vadd.f32 %v6289_v14, %v6233_v39  ;;  %vm6385_vm3 = vweird.f32 %v8496_v15  ;;  %v11237_v36 = vpop.f32.mrf.mxu0 }
 0x7dd   : > { %v6377_v54 = vsel %vm6374_vm2, %v6376_v25, %v6372_v63  ;;  %8497 = vrcp.f32 %v6344_v4  ;;  %v6405_v48 = vand.u32 2147483648, %v6344_v4  ;;  %v6403_v1 = vand.u32 2147483647, %v6344_v4  ;;  %v11239_v53 = vpop.f32.mrf.mxu1 }
 0x7de   : > { %8185 = vst [vmem:[%s10541_s22 + $0x88] sm:$0xff] %v6377_v54  ;;  %v6381_v3 = vsub.f32 1.0, %v6380_v33  ;;  %8499 = vpow2.f32 %v6333_v0  ;;  %8259 = vmatmul.msk.bf16.gmra.mxu2 %vm1773_vm5, %v6889_v18  ;;  %v6314_v9 = vadd.f32 %v11151_v23, %v6302_v19  ;;  %vm6399_vm8 = vweird.f32 %v6344_v4 }
 0x7df   : > { %8269 = vmatmul.msk.bf16.gmra.mxu3 %vm1773_vm5, %v6958_v20  ;;  %vm6386_vm5 = vmor %vm6384_vm4, %vm6385_vm3  ;;  %v6406_v20 = vor.u32 1.1754944e-38, %v6405_v48  ;;  %vm6404_vm10 = vcmp.eq.f32.partialorder %v6403_v1, 8.507059e+37 }
 0x7e0   : > { %v6382_v11 = vmul.f32 %v8496_v15, %v6381_v3  ;;  %v6322_v21 = vsub.f32 0.0, %v6314_v9 }
 0x7e1   : > { %v6223_v40 = vpop.f32.mrf.mxu2 }
 0x7e2   : > { %v6292_v43 = vpop.f32.mrf.mxu3  ;;  %v6383_v30 = vadd.f32 %v8496_v15, %v6382_v11  ;;  %v6234_v46 = vadd.f32 %v6223_v40, %v6164_v51  ;;  %v6335_v55 = vmul.f32 1.442695, %v6322_v21 }
 0x7e3   : > { %v8498_v6 = vpop.eup %8497 }
 0x7e4   : > { %v8500_v29 = vpop.eup %8499  ;;  %v6387_v24 = vsel %vm6386_vm5, %v8496_v15, %v6383_v30  ;;  %v6395_v32 = vmul.f32 %v8498_v6, %v6344_v4  ;;  %v6303_v7 = vadd.f32 %v6292_v43, %v6234_v46  ;;  %8501 = vpow2.f32 %v6335_v55  ;;  %v11247_v11 = vpop.f32.mrf.mxu0 }
 0x7e5   : > { %v6392_v61 = vsel %vm6389_vm6, %v6391_v13, %v6387_v24  ;;  %v6345_v58 = vadd.f32 1.0, %v8500_v29  ;;  %vm6400_vm7 = vweird.f32 %v8498_v6  ;;  %v11249_v46 = vpop.f32.mrf.mxu1 }
 0x7e6   : > { %8186 = vst [vmem:[%s10541_s22 + $0x90] sm:$0xff] %v6392_v61  ;;  %v6396_v22 = vsub.f32 1.0, %v6395_v32  ;;  %v6315_v2 = vadd.f32 %v11151_v23, %v6303_v7  ;;  %vm6401_vm9 = vmor %vm6399_vm8, %vm6400_vm7 }
 0x7e7   : > { %8503 = vrcp.f32 %v6345_v58  ;;  %v6420_v0 = vand.u32 2147483648, %v6345_v58  ;;  %v6418_v45 = vand.u32 2147483647, %v6345_v58  ;;  %vm6414_vm12 = vweird.f32 %v6345_v58 }
 0x7e8   : > { %v6397_v8 = vmul.f32 %v8498_v6, %v6396_v22  ;;  %v6323_v14 = vsub.f32 0.0, %v6315_v2 }
 0x7e9   : > { %v6225_v49 = vpop.f32.mrf.mxu2  ;;  %v6421_v9 = vor.u32 1.1754944e-38, %v6420_v0  ;;  %vm6419_vm14 = vcmp.eq.f32.partialorder %v6418_v45, 8.507059e+37 }
 0x7ea   : > { %v6294_v50 = vpop.f32.mrf.mxu3  ;;  %v6398_v60 = vadd.f32 %v8498_v6, %v6397_v8  ;;  %v6235_v18 = vadd.f32 %v6225_v49, %v6165_v26  ;;  %v8502_v47 = vpop.eup %8501  ;;  %v6337_v31 = vmul.f32 1.442695, %v6323_v14 }
 0x7eb   : > { %v6346_v41 = vadd.f32 1.0, %v8502_v47 }
 0x7ec   : > { %v6402_v57 = vsel %vm6401_vm9, %v8498_v6, %v6398_v60  ;;  %v6304_v16 = vadd.f32 %v6294_v50, %v6235_v18  ;;  %8505 = vpow2.f32 %v6337_v31  ;;  %v11256_v48 = vpop.f32.mrf.mxu0 }
 0x7ed   : > { %v8504_v39 = vpop.eup %8503  ;;  %v6407_v15 = vsel %vm6404_vm10, %v6406_v20, %v6402_v57  ;;  %8507 = vrcp.f32 %v6346_v41  ;;  %v6435_v17 = vand.u32 2147483648, %v6346_v41  ;;  %v6433_v55 = vand.u32 2147483647, %v6346_v41  ;;  %v11261_v14 = vpop.f32.mrf.mxu1 }
 0x7ee   : > { %8187 = vst [vmem:[%s10541_s22 + $0x98] sm:$0xff] %v6407_v15  ;;  %v6410_v25 = vmul.f32 %v8504_v39, %v6345_v58  ;;  %v6316_v63 = vadd.f32 %v11151_v23, %v6304_v16  ;;  %vm6415_vm11 = vweird.f32 %v8504_v39  ;;  %vm6429_vm0 = vweird.f32 %v6346_v41 }
 0x7ef   : > { %vm6416_vm13 = vmor %vm6414_vm12, %vm6415_vm11  ;;  %v6436_v22 = vor.u32 1.1754944e-38, %v6435_v17  ;;  %vm6434_vm2 = vcmp.eq.f32.partialorder %v6433_v55, 8.507059e+37 }
 0x7f0   : > { %v6411_v4 = vsub.f32 1.0, %v6410_v25  ;;  %v6324_v33 = vsub.f32 0.0, %v6316_v63 }
 0x7f1   : > { %v11243_v54 = vpop.f32.mrf.mxu2 }
 0x7f2   : > { %v11245_v3 = vpop.f32.mrf.mxu3  ;;  %v6412_v19 = vmul.f32 %v8504_v39, %v6411_v4  ;;  %v6339_v38 = vmul.f32 1.442695, %v6324_v33  ;;  %v8506_v51 = vpop.eup %8505 }
 0x7f3   : > { %v8508_v23 = vpop.eup %8507  ;;  %v6347_v40 = vadd.f32 1.0, %v8506_v51 }
 0x7f4   : > { %v6413_v42 = vadd.f32 %v8504_v39, %v6412_v19  ;;  %8509 = vpow2.f32 %v6339_v38  ;;  %v6425_v30 = vmul.f32 %v8508_v23, %v6346_v41  ;;  %vm6430_vm15 = vweird.f32 %v8508_v23  ;;  %v11263_v63 = vpop.f32.mrf.mxu0 }
 0x7f5   : > { %8511 = vrcp.f32 %v6347_v40  ;;  %vm6431_vm1 = vmor %vm6429_vm0, %vm6430_vm15  ;;  %v6450_v49 = vand.u32 2147483648, %v6347_v40  ;;  %v6448_v20 = vand.u32 2147483647, %v6347_v40  ;;  %vm6444_vm4 = vweird.f32 %v6347_v40  ;;  %v11266_v51 = vpop.f32.mrf.mxu1 }
 0x7f6   : > { %v6417_v43 = vsel %vm6416_vm13, %v8504_v39, %v6413_v42  ;;  %v6426_v6 = vsub.f32 1.0, %v6425_v30 }
 0x7f7   : > { %v6422_v21 = vsel %vm6419_vm14, %v6421_v9, %v6417_v43  ;;  %v6451_v16 = vor.u32 1.1754944e-38, %v6450_v49  ;;  %vm6449_vm6 = vcmp.eq.f32.partialorder %v6448_v20, 8.507059e+37 }
 0x7f8   : > { %8188 = vst [vmem:[%s10541_s22 + $0xa0] sm:$0xff] %v6422_v21  ;;  %v6427_v32 = vmul.f32 %v8508_v23, %v6426_v6 }
 0x7f9   : > { %v11252_v13 = vpop.f32.mrf.mxu2 }
 0x7fa   : > { %v11254_v29 = vpop.f32.mrf.mxu3  ;;  %v8510_v24 = vpop.eup %8509  ;;  %v6428_v58 = vadd.f32 %v8508_v23, %v6427_v32 }
 0x7fb   : > { %v6348_v61 = vadd.f32 1.0, %v8510_v24  ;;  %v8512_v7 = vpop.eup %8511 }
 0x7fc   : > { %v6432_v26 = vsel %vm6431_vm1, %v8508_v23, %v6428_v58  ;;  %v6440_v8 = vmul.f32 %v8512_v7, %v6347_v40  ;;  %vm6445_vm3 = vweird.f32 %v8512_v7  ;;  %v11271_v43 = vpop.f32.mrf.mxu0 }
 0x7fd   : > { %8513 = vrcp.f32 %v6348_v61  ;;  %v6437_v1 = vsel %vm6434_vm2, %v6436_v22, %v6432_v26  ;;  %vm6446_vm5 = vmor %vm6444_vm4, %vm6445_vm3  ;;  %v6465_v25 = vand.u32 2147483648, %v6348_v61  ;;  %v6463_v33 = vand.u32 2147483647, %v6348_v61  ;;  %v11273_v30 = vpop.f32.mrf.mxu1 }
 0x7fe   : > { %8189 = vst [vmem:[%s10541_s22 + $0xa8] sm:$0xff] %v6437_v1  ;;  %v6441_v2 = vsub.f32 1.0, %v6440_v8  ;;  %vm6459_vm8 = vweird.f32 %v6348_v61  ;;  %v6583_v1 = vadd.f32 %v11212_v52, %v11101_v28 }
 0x7ff   : > { %v6466_v38 = vor.u32 1.1754944e-38, %v6465_v25  ;;  %vm6464_vm10 = vcmp.eq.f32.partialorder %v6463_v33, 8.507059e+37 }
 0x800   : > { %v6442_v18 = vmul.f32 %v8512_v7, %v6441_v2 }
 0x801   : > { %v6646_v50 = vpop.f32.mrf.mxu2 }
 0x802   : > { %v11259_v60 = vpop.f32.mrf.mxu3  ;;  %v6443_v57 = vadd.f32 %v8512_v7, %v6442_v18  ;;  %v6662_v18 = vadd.f32 %v11252_v13, %v6583_v1 }
 0x803   : > { %v8514_v47 = vpop.eup %8513 }
 0x804   : > { %v6455_v31 = vmul.f32 %v8514_v47, %v6348_v61  ;;  %v6447_v39 = vsel %vm6446_vm5, %v8512_v7, %v6443_v57  ;;  %vm6460_vm7 = vweird.f32 %v8514_v47  ;;  %v11279_v17 = vpop.f32.mrf.mxu0  ;;  %v6581_v61 = vadd.f32 %v11193_v34, %v11086_v56 }
 0x805   : > { %v6452_v41 = vsel %vm6449_vm6, %v6451_v16, %v6447_v39  ;;  %vm6461_vm9 = vmor %vm6459_vm8, %vm6460_vm7  ;;  %v6848_v24 = vpop.f32.mrf.mxu1  ;;  %v6731_v56 = vadd.f32 %v11254_v29, %v6662_v18 }
 0x806   : > { %v6456_v15 = vsub.f32 1.0, %v6455_v31  ;;  %8190 = vst [vmem:[%s10541_s22 + $0xb0] sm:$0xff] %v6452_v41  ;;  %v6661_v58 = vadd.f32 %v11243_v54, %v6581_v61 }
 0x807   : > { %v6800_v31 = vadd.f32 %v11226_v62, %v6731_v56 }
 0x808   : > { %v6457_v4 = vmul.f32 %v8514_v47, %v6456_v15  ;;  %v6730_v22 = vadd.f32 %v11245_v3, %v6661_v58  ;;  %v6586_v3 = vadd.f32 %v11232_v10, %v11113_v27  ;;  %v6588_v27 = vadd.f32 %v11239_v53, %v11126_v5 }
 0x809   : > { %v6648_v0 = vpop.f32.mrf.mxu2  ;;  %v6591_v5 = vadd.f32 %v11249_v46, %v11140_v12  ;;  %v6593_v12 = vadd.f32 %v11261_v14, %v11157_v35 }
 0x80a   : > { %v6717_v19 = vpop.f32.mrf.mxu3  ;;  %v6458_v45 = vadd.f32 %v8514_v47, %v6457_v4  ;;  %v6799_v49 = vadd.f32 %v11202_v37, %v6730_v22  ;;  %v6663_v39 = vadd.f32 %v6646_v50, %v6586_v3  ;;  %v11304_v37 = vld [vmem:[%s11371_s8] ss:$0 sm:$0xff]  ;;  %v6664_v33 = vadd.f32 %v6648_v0, %v6588_v27 }
 0x80c   : > { %v6462_v42 = vsel %vm6461_vm9, %v8514_v47, %v6458_v45  ;;  %v7055_v7 = vpop.f32.mrf.mxu0  ;;  %v6868_v34 = vadd.f32 %v6848_v24, %v6799_v49  ;;  %v6732_v13 = vadd.f32 %v11259_v60, %v6663_v39  ;;  %v6733_v60 = vadd.f32 %v6717_v19, %v6664_v33 }
 0x80d   : > { %v6467_v23 = vsel %vm6464_vm10, %v6466_v38, %v6462_v42  ;;  %v6850_v2 = vpop.f32.mrf.mxu1 }
 0x80e   : > { %8191 = vst [vmem:[%s10541_s22 + $0xb8] sm:$0xff] %v6467_v23  ;;  %v6869_v15 = vadd.f32 %v6850_v2, %v6800_v31  ;;  %v6801_v4 = vadd.f32 %v11237_v36, %v6732_v13  ;;  %v6802_v36 = vadd.f32 %v11247_v11, %v6733_v60 }
 0x811   : > { %v6651_v9 = vpop.f32.mrf.mxu2 }
 0x812   : > { %v11269_v40 = vpop.f32.mrf.mxu3  ;;  %v6665_v0 = vadd.f32 %v6651_v9, %v6591_v5 }
 0x814   : > { %v7057_v20 = vpop.f32.mrf.mxu0 }
 0x815   : > { %v6853_v16 = vpop.f32.mrf.mxu1 }
 0x816   : > { %v6870_v61 = vadd.f32 %v6853_v16, %v6801_v4 }
 0x819   : > { %v11275_v21 = vpop.f32.mrf.mxu2 }
 0x81a   : > { %v11277_v6 = vpop.f32.mrf.mxu3  ;;  %v6666_v9 = vadd.f32 %v11275_v21, %v6593_v12 }
 0x81c   : > { %v7060_v62 = vpop.f32.mrf.mxu0  ;;  %v6735_v35 = vadd.f32 %v11277_v6, %v6666_v9 }
 0x81d   : > { %v6855_v42 = vpop.f32.mrf.mxu1 }
 0x81e   : > { %v6804_v6 = vadd.f32 %v11263_v63, %v6735_v35 }
 0x821   : > { %v11281_v32 = vpop.f32.mrf.mxu2 }
 0x822   : > { %v11283_v55 = vpop.f32.mrf.mxu3 }
 0x824   : > { %v7062_v2 = vpop.f32.mrf.mxu0 }
 0x829   : > { %v11289_v26 = vpop.f32.mrf.mxu2 }
 0x82a   : > { %v11291_v8 = vpop.f32.mrf.mxu3 }
 0x831   : > { %v6917_v54 = vpop.f32.mrf.mxu2 }
 0x832   : > { %v6986_v47 = vpop.f32.mrf.mxu3  ;;  %v6937_v57 = vadd.f32 %v6917_v54, %v6868_v34  ;;  %v6734_v34 = vadd.f32 %v11269_v40, %v6665_v0  ;;  %v7065_v40 = vpop.f32.mrf.mxu0 }
 0x834   : > { %v7006_v28 = vadd.f32 %v6986_v47, %v6937_v57  ;;  %v6871_v47 = vadd.f32 %v6855_v42, %v6802_v36  ;;  %v6803_v16 = vadd.f32 %v11256_v48, %v6734_v34  ;;  %v6596_v48 = vadd.f32 %v11266_v51, %v11170_v59 }
 0x836   : > { %v7075_v52 = vadd.f32 %v7055_v7, %v7006_v28 }
 0x838   : > { %v7087_v29 = vadd.f32 %v11304_v37, %v7075_v52 }
 0x839   : > { %v6919_v41 = vpop.f32.mrf.mxu2 }
 0x83a   : > { %v6988_v25 = vpop.f32.mrf.mxu3  ;;  %v7095_v10 = vsub.f32 0.0, %v7087_v29  ;;  %v6938_v50 = vadd.f32 %v6919_v41, %v6869_v15 }
 0x83c   : > { %v7103_v45 = vmul.f32 1.442695, %v7095_v10  ;;  %v7007_v38 = vadd.f32 %v6988_v25, %v6938_v50 }
 0x83e   : > { %8515 = vpow2.f32 %v7103_v45  ;;  %v7076_v23 = vadd.f32 %v7057_v20, %v7007_v38  ;;  %v6858_v20 = vpop.f32.mrf.mxu1  ;;  %v6667_v38 = vadd.f32 %v11281_v32, %v6596_v48  ;;  %v7067_v32 = vpop.f32.mrf.mxu0 }
 0x83f   : > { %v6872_v21 = vadd.f32 %v6858_v20, %v6803_v16 }
 0x840   : > { %v7088_v24 = vadd.f32 %v11304_v37, %v7076_v23  ;;  %v6736_v63 = vadd.f32 %v11283_v55, %v6667_v38 }
 0x841   : > { %v6922_v58 = vpop.f32.mrf.mxu2 }
 0x842   : > { %v6991_v7 = vpop.f32.mrf.mxu3  ;;  %v7096_v53 = vsub.f32 0.0, %v7088_v24  ;;  %v6939_v22 = vadd.f32 %v6922_v58, %v6870_v61  ;;  %v6805_v20 = vadd.f32 %v11271_v43, %v6736_v63 }
 0x844   : > { %v8516_v1 = vpop.eup %8515  ;;  %v7105_v49 = vmul.f32 1.442695, %v7096_v53  ;;  %v7008_v18 = vadd.f32 %v6991_v7, %v6939_v22 }
 0x845   : > { %v7119_v56 = vadd.f32 1.0, %v8516_v1 }
 0x846   : > { %8517 = vpow2.f32 %v7105_v49  ;;  %v7077_v19 = vadd.f32 %v7060_v62, %v7008_v18  ;;  %v6860_v45 = vpop.f32.mrf.mxu1 }
 0x847   : > { %8519 = vrcp.f32 %v7119_v56  ;;  %v7136_v25 = vand.u32 2147483647, %v7119_v56  ;;  %v7138_v27 = vand.u32 2147483648, %v7119_v56  ;;  %vm7132_vm12 = vweird.f32 %v7119_v56 }
 0x848   : > { %v7089_v54 = vadd.f32 %v11304_v37, %v7077_v19  ;;  %v6873_v1 = vadd.f32 %v6860_v45, %v6804_v6 }
 0x849   : > { %v6924_v46 = vpop.f32.mrf.mxu2  ;;  %v7139_v51 = vor.u32 1.1754944e-38, %v7138_v27  ;;  %vm7137_vm14 = vcmp.eq.f32.partialorder %v7136_v25, 8.507059e+37 }
 0x84a   : > { %v6993_v3 = vpop.f32.mrf.mxu3  ;;  %v7097_v57 = vsub.f32 0.0, %v7089_v54  ;;  %v6940_v11 = vadd.f32 %v6924_v46, %v6871_v47 }
 0x84c   : > { %v8518_v31 = vpop.eup %8517  ;;  %v7107_v39 = vmul.f32 1.442695, %v7097_v57  ;;  %v7009_v28 = vadd.f32 %v6993_v3, %v6940_v11 }
 0x84d   : > { %v8520_v52 = vpop.eup %8519  ;;  %v11321_v13 = vadd.f32 1.0, %v8518_v31 }
 0x84e   : > { %v7128_v29 = vmul.f32 %v8520_v52, %v7119_v56  ;;  %8521 = vpow2.f32 %v7107_v39  ;;  %v7078_v15 = vadd.f32 %v7062_v2, %v7009_v28  ;;  %vm7133_vm11 = vweird.f32 %v8520_v52  ;;  %v6863_v46 = vpop.f32.mrf.mxu1 }
 0x84f   : > { %8523 = vrcp.f32 %v11321_v13  ;;  %vm7134_vm13 = vmor %vm7132_vm12, %vm7133_vm11  ;;  %v6598_v2 = vadd.f32 %v11273_v30, %v11185_v44  ;;  %v7151_v36 = vand.u32 2147483647, %v11321_v13  ;;  %v7153_v0 = vand.u32 2147483648, %v11321_v13 }
 0x850   : > { %v7129_v14 = vsub.f32 1.0, %v7128_v29  ;;  %v7090_v41 = vadd.f32 %v11304_v37, %v7078_v15  ;;  %vm7147_vm0 = vweird.f32 %v11321_v13  ;;  %v6874_v28 = vadd.f32 %v6863_v46, %v6805_v20 }
 0x851   : > { %v6927_v62 = vpop.f32.mrf.mxu2  ;;  %v6668_v34 = vadd.f32 %v11289_v26, %v6598_v2  ;;  %v7154_v3 = vor.u32 1.1754944e-38, %v7153_v0  ;;  %vm7152_vm2 = vcmp.eq.f32.partialorder %v7151_v36, 8.507059e+37 }
 0x852   : > { %v6996_v10 = vpop.f32.mrf.mxu3  ;;  %v7130_v50 = vmul.f32 %v8520_v52, %v7129_v14  ;;  %v7098_v4 = vsub.f32 0.0, %v7090_v41  ;;  %v6941_v33 = vadd.f32 %v6927_v62, %v6872_v21  ;;  %v7070_v41 = vpop.f32.mrf.mxu0 }
 0x853   : > { %v6737_v43 = vadd.f32 %v11291_v8, %v6668_v34 }
 0x854   : > { %v8522_v42 = vpop.eup %8521  ;;  %v7131_v23 = vadd.f32 %v8520_v52, %v7130_v50  ;;  %v7109_v60 = vmul.f32 1.442695, %v7098_v4  ;;  %v7010_v24 = vadd.f32 %v6996_v10, %v6941_v33 }
 0x855   : > { %v8524_v59 = vpop.eup %8523  ;;  %v11330_v61 = vadd.f32 1.0, %v8522_v42  ;;  %v6806_v8 = vadd.f32 %v11279_v17, %v6737_v43 }
 0x856   : > { %v7135_v58 = vsel %vm7134_vm13, %v8520_v52, %v7131_v23  ;;  %v7143_v7 = vmul.f32 %v8524_v59, %v11321_v13  ;;  %8525 = vpow2.f32 %v7109_v60  ;;  %v7079_v22 = vadd.f32 %v7065_v40, %v7010_v24  ;;  %v6865_v45 = vpop.f32.mrf.mxu1 }
 0x857   : > { %v7140_v5 = vsel %vm7137_vm14, %v7139_v51, %v7135_v58  ;;  %8527 = vrcp.f32 %v11330_v61  ;;  %vm7148_vm15 = vweird.f32 %v8524_v59  ;;  %v7166_v52 = vand.u32 2147483647, %v11330_v61 }
 0x858   : > { %8280 = vst [vmem:[%s10541_s22 + $0xc0] sm:$0xff] %v7140_v5  ;;  %v7144_v53 = vsub.f32 1.0, %v7143_v7  ;;  %v7091_v55 = vadd.f32 %v11304_v37, %v7079_v22  ;;  %vm7149_vm1 = vmor %vm7147_vm0, %vm7148_vm15  ;;  %v7168_v13 = vand.u32 2147483648, %v11330_v61  ;;  %vm7162_vm4 = vweird.f32 %v11330_v61 }
 0x859   : > { %v6929_v49 = vpop.f32.mrf.mxu2  ;;  %vm7167_vm6 = vcmp.eq.f32.partialorder %v7166_v52, 8.507059e+37  ;;  %v6875_v23 = vadd.f32 %v6865_v45, %v6806_v8 }
 0x85a   : > { %v6998_v18 = vpop.f32.mrf.mxu3  ;;  %v7145_v56 = vmul.f32 %v8524_v59, %v7144_v53  ;;  %v6942_v19 = vadd.f32 %v6929_v49, %v6873_v1  ;;  %v7099_v44 = vsub.f32 0.0, %v7091_v55  ;;  %v7169_v62 = vor.u32 1.1754944e-38, %v7168_v13  ;;  %v7072_v53 = vpop.f32.mrf.mxu0 }
 0x85c   : > { %v8526_v54 = vpop.eup %8525  ;;  %v7146_v47 = vadd.f32 %v8524_v59, %v7145_v56  ;;  %v7011_v30 = vadd.f32 %v6998_v18, %v6942_v19  ;;  %v7111_v31 = vmul.f32 1.442695, %v7099_v44 }
 0x85d   : > { %v8528_v12 = vpop.eup %8527  ;;  %v7122_v57 = vadd.f32 1.0, %v8526_v54 }
 0x85e   : > { %v7150_v11 = vsel %vm7149_vm1, %v8524_v59, %v7146_v47  ;;  %v7158_v9 = vmul.f32 %v8528_v12, %v11330_v61  ;;  %v7080_v39 = vadd.f32 %v7067_v32, %v7011_v30  ;;  %vm7163_vm3 = vweird.f32 %v8528_v12 }
 0x85f   : > { %v7155_v26 = vsel %vm7152_vm2, %v7154_v3, %v7150_v11  ;;  %8529 = vrcp.f32 %v7122_v57  ;;  %vm7164_vm5 = vmor %vm7162_vm4, %vm7163_vm3  ;;  %v7181_v60 = vand.u32 2147483647, %v7122_v57  ;;  %v7183_v24 = vand.u32 2147483648, %v7122_v57 }
 0x860   : > { %8281 = vst [vmem:[%s10541_s22 + $0xc8] sm:$0xff] %v7155_v26  ;;  %v7159_v16 = vsub.f32 1.0, %v7158_v9  ;;  %8531 = vpow2.f32 %v7111_v31  ;;  %v7092_v35 = vadd.f32 %v11304_v37, %v7080_v39  ;;  %vm7177_vm8 = vweird.f32 %v7122_v57 }
 0x861   : > { %v6932_v40 = vpop.f32.mrf.mxu2  ;;  %v7184_v22 = vor.u32 1.1754944e-38, %v7183_v24  ;;  %vm7182_vm10 = vcmp.eq.f32.partialorder %v7181_v60, 8.507059e+37 }
 0x862   : > { %v7001_v29 = vpop.f32.mrf.mxu3  ;;  %v7160_v15 = vmul.f32 %v8528_v12, %v7159_v16  ;;  %v6943_v14 = vadd.f32 %v6932_v40, %v6874_v28  ;;  %v7100_v48 = vsub.f32 0.0, %v7092_v35 }
 0x864   : > { %v7161_v21 = vadd.f32 %v8528_v12, %v7160_v15  ;;  %v7012_v25 = vadd.f32 %v7001_v29, %v6943_v14  ;;  %v7113_v33 = vmul.f32 1.442695, %v7100_v48 }
 0x865   : > { %v8530_v27 = vpop.eup %8529 }
 0x866   : > { %v8532_v10 = vpop.eup %8531  ;;  %v7165_v50 = vsel %vm7164_vm5, %v8528_v12, %v7161_v21  ;;  %v7173_v4 = vmul.f32 %v8530_v27, %v7122_v57  ;;  %v7081_v42 = vadd.f32 %v7070_v41, %v7012_v25  ;;  %8533 = vpow2.f32 %v7113_v33 }
 0x867   : > { %v7170_v6 = vsel %vm7167_vm6, %v7169_v62, %v7165_v50  ;;  %v7123_v38 = vadd.f32 1.0, %v8532_v10  ;;  %vm7178_vm7 = vweird.f32 %v8530_v27 }
 0x868   : > { %8282 = vst [vmem:[%s10541_s22 + $0xd0] sm:$0xff] %v7170_v6  ;;  %v7174_v17 = vsub.f32 1.0, %v7173_v4  ;;  %v7093_v61 = vadd.f32 %v11304_v37, %v7081_v42  ;;  %vm7179_vm9 = vmor %vm7177_vm8, %vm7178_vm7 }
 0x869   : > { %8535 = vrcp.f32 %v7123_v38  ;;  %v6934_v59 = vpop.f32.mrf.mxu2  ;;  %v7198_v54 = vand.u32 2147483648, %v7123_v38  ;;  %v7196_v44 = vand.u32 2147483647, %v7123_v38  ;;  %vm7192_vm12 = vweird.f32 %v7123_v38 }
 0x86a   : > { %v7175_v51 = vmul.f32 %v8530_v27, %v7174_v17  ;;  %v6944_v58 = vadd.f32 %v6934_v59, %v6875_v23  ;;  %v7003_v7 = vpop.f32.mrf.mxu3  ;;  %v7101_v5 = vsub.f32 0.0, %v7093_v61 }
 0x86b   : > { %v7199_v57 = vor.u32 1.1754944e-38, %v7198_v54  ;;  %vm7197_vm14 = vcmp.eq.f32.partialorder %v7196_v44, 8.507059e+37 }
 0x86c   : > { %v7176_v63 = vadd.f32 %v8530_v27, %v7175_v51  ;;  %v7013_v32 = vadd.f32 %v7003_v7, %v6944_v58  ;;  %v8534_v1 = vpop.eup %8533  ;;  %v7115_v36 = vmul.f32 1.442695, %v7101_v5 }
 0x86d   : > { %v7124_v56 = vadd.f32 1.0, %v8534_v1 }
 0x86e   : > { %v7180_v2 = vsel %vm7179_vm9, %v8530_v27, %v7176_v63  ;;  %v7082_v0 = vadd.f32 %v7072_v53, %v7013_v32  ;;  %8537 = vpow2.f32 %v7115_v36 }
 0x86f   : > { %v8536_v49 = vpop.eup %8535  ;;  %v7185_v18 = vsel %vm7182_vm10, %v7184_v22, %v7180_v2  ;;  %8539 = vrcp.f32 %v7124_v56  ;;  %v7213_v26 = vand.u32 2147483648, %v7124_v56  ;;  %v7211_v28 = vand.u32 2147483647, %v7124_v56 }
 0x870   : > { %8283 = vst [vmem:[%s10541_s22 + $0xd8] sm:$0xff] %v7185_v18  ;;  %v7188_v55 = vmul.f32 %v8536_v49, %v7123_v38  ;;  %v7094_v19 = vadd.f32 %v11304_v37, %v7082_v0  ;;  %vm7193_vm11 = vweird.f32 %v8536_v49  ;;  %vm7207_vm0 = vweird.f32 %v7124_v56 }
 0x871   : > { %vm7194_vm13 = vmor %vm7192_vm12, %vm7193_vm11  ;;  %v7214_v29 = vor.u32 1.1754944e-38, %v7213_v26  ;;  %vm7212_vm2 = vcmp.eq.f32.partialorder %v7211_v28, 8.507059e+37 }
 0x872   : > { %v7189_v20 = vsub.f32 1.0, %v7188_v55  ;;  %v7102_v34 = vsub.f32 0.0, %v7094_v19 }
 0x874   : > { %v7190_v47 = vmul.f32 %v8536_v49, %v7189_v20  ;;  %v7117_v30 = vmul.f32 1.442695, %v7102_v34  ;;  %v8538_v12 = vpop.eup %8537 }
 0x875   : > { %v8540_v3 = vpop.eup %8539  ;;  %v7125_v11 = vadd.f32 1.0, %v8538_v12 }
 0x876   : > { %v7191_v46 = vadd.f32 %v8536_v49, %v7190_v47  ;;  %8541 = vpow2.f32 %v7117_v30  ;;  %v7203_v37 = vmul.f32 %v8540_v3, %v7124_v56  ;;  %vm7208_vm15 = vweird.f32 %v8540_v3 }
 0x877   : > { %8543 = vrcp.f32 %v7125_v11  ;;  %vm7209_vm1 = vmor %vm7207_vm0, %vm7208_vm15  ;;  %v7228_v8 = vand.u32 2147483648, %v7125_v11  ;;  %v7226_v48 = vand.u32 2147483647, %v7125_v11  ;;  %vm7222_vm4 = vweird.f32 %v7125_v11 }
 0x878   : > { %v7195_v9 = vsel %vm7194_vm13, %v8536_v49, %v7191_v46  ;;  %v7204_v43 = vsub.f32 1.0, %v7203_v37 }
 0x879   : > { %v7200_v31 = vsel %vm7197_vm14, %v7199_v57, %v7195_v9  ;;  %v7229_v10 = vor.u32 1.1754944e-38, %v7228_v8  ;;  %vm7227_vm6 = vcmp.eq.f32.partialorder %v7226_v48, 8.507059e+37 }
 0x87a   : > { %8284 = vst [vmem:[%s10541_s22 + $0xe0] sm:$0xff] %v7200_v31  ;;  %v7205_v39 = vmul.f32 %v8540_v3, %v7204_v43 }
 0x87c   : > { %v8542_v16 = vpop.eup %8541  ;;  %v7206_v13 = vadd.f32 %v8540_v3, %v7205_v39 }
 0x87d   : > { %v7126_v52 = vadd.f32 1.0, %v8542_v16  ;;  %v8544_v40 = vpop.eup %8543 }
 0x87e   : > { %v7210_v15 = vsel %vm7209_vm1, %v8540_v3, %v7206_v13  ;;  %v7218_v35 = vmul.f32 %v8544_v40, %v7125_v11  ;;  %vm7223_vm3 = vweird.f32 %v8544_v40 }
 0x87f   : > { %8545 = vrcp.f32 %v7126_v52  ;;  %v7215_v14 = vsel %vm7212_vm2, %v7214_v29, %v7210_v15  ;;  %vm7224_vm5 = vmor %vm7222_vm4, %vm7223_vm3  ;;  %v7243_v45 = vand.u32 2147483648, %v7126_v52  ;;  %v7241_v38 = vand.u32 2147483647, %v7126_v52 }
 0x880   : > { %8285 = vst [vmem:[%s10541_s22 + $0xe8] sm:$0xff] %v7215_v14  ;;  %v7219_v41 = vsub.f32 1.0, %v7218_v35  ;;  %vm7237_vm8 = vweird.f32 %v7126_v52 }
 0x881   : > { %v7244_v17 = vor.u32 1.1754944e-38, %v7243_v45  ;;  %vm7242_vm10 = vcmp.eq.f32.partialorder %v7241_v38, 8.507059e+37 }
 0x882   : > { %v7220_v21 = vmul.f32 %v8544_v40, %v7219_v41 }
 0x884   : > { %v7221_v27 = vadd.f32 %v8544_v40, %v7220_v21 }
 0x885   : > { %v8546_v25 = vpop.eup %8545 }
 0x886   : > { %v7233_v62 = vmul.f32 %v8546_v25, %v7126_v52  ;;  %v7225_v50 = vsel %vm7224_vm5, %v8544_v40, %v7221_v27  ;;  %vm7238_vm7 = vweird.f32 %v8546_v25 }
 0x887   : > { %v7230_v33 = vsel %vm7227_vm6, %v7229_v10, %v7225_v50  ;;  %vm7239_vm9 = vmor %vm7237_vm8, %vm7238_vm7 }
 0x888   : > { %v7234_v4 = vsub.f32 1.0, %v7233_v62  ;;  %8286 = vst [vmem:[%s10541_s22 + $0xf0] sm:$0xff] %v7230_v33 }
 0x88a   : > { %v7235_v6 = vmul.f32 %v8546_v25, %v7234_v4 }
 0x88c   : > { %v7236_v42 = vadd.f32 %v8546_v25, %v7235_v6 }
 0x88e   : > { %v7240_v23 = vsel %vm7239_vm9, %v8546_v25, %v7236_v42 }
 0x88f   : > { %v7245_v60 = vsel %vm7242_vm10, %v7244_v17, %v7240_v23 }
 0x890   : > { %8287 = vst [vmem:[%s10541_s22 + $0xf8] sm:$0xff] %v7245_v60 }
 0x891 PF: > { %s19_s30 = sadd.s32 1, %s8565_s30  }
 0x892   : > { %p16_p4 = scmp.ge.s32.totalorder %s19_s30, 4  }
 0x894   :  { %18 = sbr.rel (!%p16_p4) target bundleno = 1 (0x1), region = 140 }

</bundles_post_ra>
